<compile_context>
chip_gen: v5e
topology: v5e:2x2
jax: 0.10.0
libtpu: 0.0.40
codegen_flags: <defaults>
</compile_context>

<pallas_src>
import functools

import jax
import jax.numpy as jnp
from jax.experimental import pallas as pl
from jax.experimental.pallas import tpu as pltpu

# Layer-1 output spatial grid (16x16 input, stride 2 -> 8x8); all later layers
# run "a trous" on this grid with dilations 1 / 2 / 4 / 4.
_GH = 8
_GW = 8
_OUT_STRIDE = 4  # true final-layer outputs sit at multiples of 4 on the 8x8 grid


# -----------------------------------------------------------------------------
# In-kernel helpers
# -----------------------------------------------------------------------------
def _leaky(x):
    return jnp.where(x > 0, x, 0.2 * x)


def _lane_coords(m):
    """(1, M) int32 per-lane (h, w) coordinates of the flattened (n, h, w) axis."""
    lane = jax.lax.broadcasted_iota(jnp.int32, (1, m), 1)
    w = jnp.bitwise_and(lane, _GW - 1)
    h = jnp.bitwise_and(jnp.right_shift(lane, 3), _GH - 1)
    return h, w


def _shift_lanes(x, k, m):
    """y[:, r] = x[:, r + k] via a circular XLU lane roll; lanes that wrap or
    cross an image boundary are always zeroed by the caller's mask."""
    if k == 0:
        return x
    return pltpu.roll(x, (-k) % m, axis=1)


def _boundary_masks(h, w, dil):
    """f32 0/1 validity masks (1, M), one per 3x3 tap, for a zero-padded conv
    with dilation `dil` on the 8x8 grid.  Centre tap needs no mask (None)."""
    masks = {}
    for ky in (-1, 0, 1):
        for kx in (-1, 0, 1):
            dy, dx = ky * dil, kx * dil
            if dy == 0 and dx == 0:
                masks[(ky, kx)] = None
            else:
                ok = ((h + dy >= 0) & (h + dy < _GH) &
                      (w + dx >= 0) & (w + dx < _GW))
                masks[(ky, kx)] = ok.astype(jnp.float32)
    return masks


def _conv3x3_atrous(x, w_ref, dil, masks, m):
    """3x3 dilated conv in channel-major (C, M) layout as 9 accumulated MXU
    matmuls: y (Cout, M) += W_k (Cout, Cin) @ tap_k (Cin, M).  Taps are f32
    lane rolls + 0/1 border-mask multiplies, cast to bf16 at the matmul."""
    acc = None
    k = 0
    for ky in (-1, 0, 1):
        for kx in (-1, 0, 1):
            tap = _shift_lanes(x, ky * dil * _GW + kx * dil, m)
            mask = masks[(ky, kx)]
            if mask is not None:
                tap = tap * mask
            y = jnp.dot(w_ref[k], tap.astype(jnp.bfloat16),
                        preferred_element_type=jnp.float32)
            acc = y if acc is None else acc + y
            k += 1
    return acc


def _masked_bn_leaky(y, vmask, count, g_ref, be_ref, eps=1e-5):
    """Training-mode BatchNorm over the true strided output lanes only
    (single-pass sum / sum-of-squares, biased variance), then LeakyReLU."""
    ym = y * vmask
    inv = 1.0 / count
    mean = jnp.sum(ym, axis=1, keepdims=True) * inv
    var = jnp.maximum(jnp.sum(ym * ym, axis=1, keepdims=True) * inv
                      - mean * mean, 0.0)
    xhat = (y - mean) * (jax.lax.rsqrt(var + eps) * g_ref[...]) + be_ref[...]
    return _leaky(xhat)


# -----------------------------------------------------------------------------
# The fused kernel: all 5 layers, activations never leave VMEM / vregs
# -----------------------------------------------------------------------------
def _disc_kernel(x4_ref, w1_ref, b1_ref,
                 w2_ref, g2_ref, be2_ref,
                 w3_ref, g3_ref, be3_ref,
                 w4_ref, g4_ref, be4_ref,
                 w5_ref, b5_ref,
                 o_ref, *, n_batch):
    m = n_batch * _GH * _GW
    h, w = _lane_coords(m)

    # ---- Layer 1: 256->128, stride 2 folded via the 4 input parity planes.
    #      Tap (ky, kx) reads plane (ky&1, kx&1) with lane shift 0/-1/-8/-9. ----
    mh = (h >= 1).astype(jnp.float32)
    mw = (w >= 1).astype(jnp.float32)
    mhw = mh * mw
    planes = [x4_ref[p].astype(jnp.float32) for p in range(4)]   # (256, M) f32
    acc = None
    k = 0
    for ky in (-1, 0, 1):
        ph, dh = (1, -1) if ky < 0 else (ky, 0)
        for kx in (-1, 0, 1):
            pw, dw = (1, -1) if kx < 0 else (kx, 0)
            tap = _shift_lanes(planes[ph * 2 + pw], dh * _GW + dw, m)
            if dh < 0 and dw < 0:
                tap = tap * mhw
            elif dh < 0:
                tap = tap * mh
            elif dw < 0:
                tap = tap * mw
            y = jnp.dot(w1_ref[k], tap.astype(jnp.bfloat16),
                        preferred_element_type=jnp.float32)
            acc = y if acc is None else acc + y
            k += 1
    x = _leaky(acc + b1_ref[...])                                 # (128, M) f32

    # ---- Hoisted masks: per-dilation boundary masks (layers 4 & 5 share
    #      dilation 4) and BN validity masks over the true strided lanes. ----
    masks1 = _boundary_masks(h, w, 1)
    masks2 = _boundary_masks(h, w, 2)
    masks4 = _boundary_masks(h, w, 4)
    vmask2 = ((jnp.bitwise_and(h, 1) == 0) &
              (jnp.bitwise_and(w, 1) == 0)).astype(jnp.float32)
    vmask4 = ((jnp.bitwise_and(h, 3) == 0) &
              (jnp.bitwise_and(w, 3) == 0)).astype(jnp.float32)

    # ---- Layers 2-4: a-trous conv + masked BatchNorm + LeakyReLU ----
    for w_ref, g_ref, be_ref, dil, masks, vmask, vs in (
            (w2_ref, g2_ref, be2_ref, 1, masks1, vmask2, 2),
            (w3_ref, g3_ref, be3_ref, 2, masks2, vmask4, 4),
            (w4_ref, g4_ref, be4_ref, 4, masks4, vmask4, 4)):
        y = _conv3x3_atrous(x, w_ref, dil, masks, m)
        count = float(n_batch * (_GH // vs) * (_GW // vs))
        x = _masked_bn_leaky(y, vmask, count, g_ref, be_ref)

    # ---- Layer 5: 16->1 conv on the MXU (weights zero-padded to 8 output
    #      rows so the result stays one lane-dense (8, M) tile) + sigmoid. ----
    logit = _conv3x3_atrous(x, w5_ref, 4, masks4, m) + b5_ref[...]
    sig = pl.reciprocal(1.0 + jnp.exp(-logit), approx=True)
    o_ref[...] = jnp.clip(sig, 0.0, 1.0)                          # (8, M)


# -----------------------------------------------------------------------------
# Wrapper: bf16 space-to-depth transpose + single fused pallas_call
# -----------------------------------------------------------------------------
def _full_spec(shape):
    nd = len(shape)
    return pl.BlockSpec(shape, lambda i, _nd=nd: (0,) * _nd)


def discriminator_forward(x_nchw, params):
    n, c, hin, win = x_nchw.shape
    assert c == 256 and hin == 2 * _GH and win == 2 * _GW, (
        "fused kernel is specialised to 256-channel, 16x16 inputs")
    m = n * _GH * _GW

    # Space-to-depth parity split into channel-major (C, M) planes, bf16.
    # x4[ph*2+pw, ch, n*64 + oh*8 + ow] = x[n, ch, 2*oh+ph, 2*ow+pw]
    xb = x_nchw.astype(jnp.bfloat16).reshape(n, c, _GH, 2, _GW, 2)
    x4 = jnp.transpose(xb, (3, 5, 1, 0, 2, 4)).reshape(4, c, m)

    args = (x4,
            params["w1"], params["b1"],
            params["w2"], params["g2"], params["be2"],
            params["w3"], params["g3"], params["be3"],
            params["w4"], params["g4"], params["be4"],
            params["w5"], params["b5"])

    out = pl.pallas_call(
        functools.partial(_disc_kernel, n_batch=n),
        out_shape=jax.ShapeDtypeStruct((8, m), jnp.float32),
        grid=(1,),
        in_specs=[_full_spec(a.shape) for a in args],
        out_specs=_full_spec((8, m)),
        compiler_params=pltpu.CompilerParams(
            dimension_semantics=("arbitrary",),
            vmem_limit_bytes=32 * 1024 * 1024),
    )(*args)

    # Row 0 holds the sigmoid over the full 8x8 a-trous grid; keep the 2x2
    # true output positions -> NCHW (N, 1, 2, 2).
    res = out[0].reshape(n, _GH, _GW)[:, ::_OUT_STRIDE, ::_OUT_STRIDE]
    return res[:, None, :, :]


# -----------------------------------------------------------------------------
# Deterministic parameter init matching the module's layer shapes
# (weights stored tap-major, transposed for the channel-major kernel layout)
# -----------------------------------------------------------------------------
def init_params(key):
    def conv_wT(k, cin, cout):
        fan_in = 9 * cin
        w = jax.random.normal(k, (9, cout, cin), jnp.float32) / jnp.sqrt(fan_in)
        return w.astype(jnp.bfloat16)

    keys = jax.random.split(key, 13)
    p = {}
    p["w1"] = conv_wT(keys[0], 256, 128)
    p["b1"] = 0.01 * jax.random.normal(keys[1], (128, 1), jnp.float32)
    p["w2"] = conv_wT(keys[2], 128, 64)
    p["g2"] = 1.0 + 0.1 * jax.random.normal(keys[3], (64, 1), jnp.float32)
    p["be2"] = 0.1 * jax.random.normal(keys[4], (64, 1), jnp.float32)
    p["w3"] = conv_wT(keys[5], 64, 32)
    p["g3"] = 1.0 + 0.1 * jax.random.normal(keys[6], (32, 1), jnp.float32)
    p["be3"] = 0.1 * jax.random.normal(keys[7], (32, 1), jnp.float32)
    p["w4"] = conv_wT(keys[8], 32, 16)
    p["g4"] = 1.0 + 0.1 * jax.random.normal(keys[9], (16, 1), jnp.float32)
    p["be4"] = 0.1 * jax.random.normal(keys[10], (16, 1), jnp.float32)
    # 16->1 conv: real weights in output row 0, rows 1-7 zero-padded.
    w5 = jax.random.normal(keys[11], (9, 1, 16), jnp.float32) / jnp.sqrt(9 * 16)
    p["w5"] = jnp.pad(w5, ((0, 0), (0, 7), (0, 0))).astype(jnp.bfloat16)
    b5 = 0.01 * jax.random.normal(keys[12], (), jnp.float32)
    p["b5"] = jnp.full((8, 1), b5, jnp.float32)
    return p


if __name__ == "__main__":
    key = jax.random.PRNGKey(0)
    k_x, k_p = jax.random.split(key)

    # Input channels fixed at 256 by the module; small batch / 16x16 spatial.
    x = jax.random.normal(k_x, (2, 256, 16, 16), jnp.float32)
    params = init_params(k_p)

    fwd = jax.jit(discriminator_forward)
    y = jax.block_until_ready(fwd(x, params))

    # 16 -> 8 -> 4 -> 2 -> 2 -> 2 spatial; 1 output channel.
    assert y.shape == (2, 1, 2, 2), y.shape
    assert bool(jnp.all(jnp.isfinite(y)))
    assert bool(jnp.all(y >= 0.0)) and bool(jnp.all(y <= 1.0))
    print("KERNEL_OK")
</pallas_src>

<mosaic_0001>
module attributes {stable_mosaic.version = 11 : i64} {
  func.func @_disc_kernel(%arg0: i32, %arg1: memref<4x256x128xbf16, #tpu.memory_space<vmem>>, %arg2: memref<9x128x256xbf16, #tpu.memory_space<vmem>>, %arg3: memref<128x1xf32, #tpu.memory_space<vmem>>, %arg4: memref<9x64x128xbf16, #tpu.memory_space<vmem>>, %arg5: memref<64x1xf32, #tpu.memory_space<vmem>>, %arg6: memref<64x1xf32, #tpu.memory_space<vmem>>, %arg7: memref<9x32x64xbf16, #tpu.memory_space<vmem>>, %arg8: memref<32x1xf32, #tpu.memory_space<vmem>>, %arg9: memref<32x1xf32, #tpu.memory_space<vmem>>, %arg10: memref<9x16x32xbf16, #tpu.memory_space<vmem>>, %arg11: memref<16x1xf32, #tpu.memory_space<vmem>>, %arg12: memref<16x1xf32, #tpu.memory_space<vmem>>, %arg13: memref<9x8x16xbf16, #tpu.memory_space<vmem>>, %arg14: memref<8x1xf32, #tpu.memory_space<vmem>>, %arg15: memref<8x128xf32, #tpu.memory_space<vmem>>) attributes {dimension_semantics = [#tpu.dimension_semantics<arbitrary>], iteration_bounds = array<i64: 1>, scalar_prefetch = 0 : i64, scratch_operands = 0 : i64, tpu.core_type = #tpu.core_type<tc>, window_params = [{pipeline_mode = #tpu.pipeline_mode<synchronous>, transform_indices = @transform_0, window_bounds = array<i64: 4, 256, 128>}, {pipeline_mode = #tpu.pipeline_mode<synchronous>, transform_indices = @transform_1, window_bounds = array<i64: 9, 128, 256>}, {pipeline_mode = #tpu.pipeline_mode<synchronous>, transform_indices = @transform_2, window_bounds = array<i64: 128, 1>}, {pipeline_mode = #tpu.pipeline_mode<synchronous>, transform_indices = @transform_3, window_bounds = array<i64: 9, 64, 128>}, {pipeline_mode = #tpu.pipeline_mode<synchronous>, transform_indices = @transform_4, window_bounds = array<i64: 64, 1>}, {pipeline_mode = #tpu.pipeline_mode<synchronous>, transform_indices = @transform_5, window_bounds = array<i64: 64, 1>}, {pipeline_mode = #tpu.pipeline_mode<synchronous>, transform_indices = @transform_6, window_bounds = array<i64: 9, 32, 64>}, {pipeline_mode = #tpu.pipeline_mode<synchronous>, transform_indices = @transform_7, window_bounds = array<i64: 32, 1>}, {pipeline_mode = #tpu.pipeline_mode<synchronous>, transform_indices = @transform_8, window_bounds = array<i64: 32, 1>}, {pipeline_mode = #tpu.pipeline_mode<synchronous>, transform_indices = @transform_9, window_bounds = array<i64: 9, 16, 32>}, {pipeline_mode = #tpu.pipeline_mode<synchronous>, transform_indices = @transform_10, window_bounds = array<i64: 16, 1>}, {pipeline_mode = #tpu.pipeline_mode<synchronous>, transform_indices = @transform_11, window_bounds = array<i64: 16, 1>}, {pipeline_mode = #tpu.pipeline_mode<synchronous>, transform_indices = @transform_12, window_bounds = array<i64: 9, 8, 16>}, {pipeline_mode = #tpu.pipeline_mode<synchronous>, transform_indices = @transform_13, window_bounds = array<i64: 8, 1>}, {pipeline_mode = #tpu.pipeline_mode<synchronous>, transform_indices = @transform_14, window_bounds = array<i64: 8, 128>}]} {
    %0 = tpu.iota {dimensions = array<i32: 1>} : vector<1x128xi32>
    %c7_i32 = arith.constant 7 : i32
    %1 = vector.broadcast %c7_i32 : i32 to vector<1x128xi32>
    %2 = arith.andi %0, %1 : vector<1x128xi32>
    %c3_i32 = arith.constant 3 : i32
    %3 = vector.broadcast %c3_i32 : i32 to vector<1x128xi32>
    %4 = arith.shrsi %0, %3 : vector<1x128xi32>
    %c7_i32_0 = arith.constant 7 : i32
    %5 = vector.broadcast %c7_i32_0 : i32 to vector<1x128xi32>
    %6 = arith.andi %4, %5 : vector<1x128xi32>
    %c1_i32 = arith.constant 1 : i32
    %7 = vector.broadcast %c1_i32 : i32 to vector<1x128xi32>
    %8 = arith.cmpi sge, %6, %7 : vector<1x128xi32>
    %9 = arith.extui %8 : vector<1x128xi1> to vector<1x128xi32>
    %10 = arith.sitofp %9 : vector<1x128xi32> to vector<1x128xf32>
    %c1_i32_1 = arith.constant 1 : i32
    %11 = vector.broadcast %c1_i32_1 : i32 to vector<1x128xi32>
    %12 = arith.cmpi sge, %2, %11 : vector<1x128xi32>
    %13 = arith.extui %12 : vector<1x128xi1> to vector<1x128xi32>
    %14 = arith.sitofp %13 : vector<1x128xi32> to vector<1x128xf32>
    %15 = arith.mulf %10, %14 : vector<1x128xf32>
    %c0 = arith.constant 0 : index
    %c0_2 = arith.constant 0 : index
    %c0_3 = arith.constant 0 : index
    %16 = vector.load %arg1[%c0, %c0_2, %c0_3] : memref<4x256x128xbf16, #tpu.memory_space<vmem>>, vector<1x256x128xbf16>
    %17 = vector.shape_cast %16 : vector<1x256x128xbf16> to vector<256x128xbf16>
    %18 = arith.extf %17 : vector<256x128xbf16> to vector<256x128xf32>
    %c1 = arith.constant 1 : index
    %c0_4 = arith.constant 0 : index
    %c0_5 = arith.constant 0 : index
    %19 = vector.load %arg1[%c1, %c0_4, %c0_5] : memref<4x256x128xbf16, #tpu.memory_space<vmem>>, vector<1x256x128xbf16>
    %20 = vector.shape_cast %19 : vector<1x256x128xbf16> to vector<256x128xbf16>
    %21 = arith.extf %20 : vector<256x128xbf16> to vector<256x128xf32>
    %c2 = arith.constant 2 : index
    %c0_6 = arith.constant 0 : index
    %c0_7 = arith.constant 0 : index
    %22 = vector.load %arg1[%c2, %c0_6, %c0_7] : memref<4x256x128xbf16, #tpu.memory_space<vmem>>, vector<1x256x128xbf16>
    %23 = vector.shape_cast %22 : vector<1x256x128xbf16> to vector<256x128xbf16>
    %24 = arith.extf %23 : vector<256x128xbf16> to vector<256x128xf32>
    %c3 = arith.constant 3 : index
    %c0_8 = arith.constant 0 : index
    %c0_9 = arith.constant 0 : index
    %25 = vector.load %arg1[%c3, %c0_8, %c0_9] : memref<4x256x128xbf16, #tpu.memory_space<vmem>>, vector<1x256x128xbf16>
    %26 = vector.shape_cast %25 : vector<1x256x128xbf16> to vector<256x128xbf16>
    %27 = arith.extf %26 : vector<256x128xbf16> to vector<256x128xf32>
    %c9_i32 = arith.constant 9 : i32
    %28 = tpu.dynamic_rotate %27 by %c9_i32 dim 1 : vector<256x128xf32>, i32 -> vector<256x128xf32>
    %29 = vector.broadcast %15 : vector<1x128xf32> to vector<256x128xf32>
    %30 = arith.mulf %28, %29 : vector<256x128xf32>
    %c0_10 = arith.constant 0 : index
    %c0_11 = arith.constant 0 : index
    %c0_12 = arith.constant 0 : index
    %31 = vector.load %arg2[%c0_10, %c0_11, %c0_12] : memref<9x128x256xbf16, #tpu.memory_space<vmem>>, vector<1x128x256xbf16>
    %32 = vector.shape_cast %31 : vector<1x128x256xbf16> to vector<128x256xbf16>
    %33 = arith.truncf %30 : vector<256x128xf32> to vector<256x128xbf16>
    %cst = arith.constant dense<0.000000e+00> : vector<128x128xf32>
    %34 = tpu.matmul %32, %33, %cst {dimension_numbers = #tpu.dot_dimension_numbers<[1], [0], [0], [1], [0, 0, 1, 1], [], []>} : vector<128x256xbf16>, vector<256x128xbf16>, vector<128x128xf32> -> vector<128x128xf32>
    %c8_i32 = arith.constant 8 : i32
    %35 = tpu.dynamic_rotate %24 by %c8_i32 dim 1 : vector<256x128xf32>, i32 -> vector<256x128xf32>
    %36 = vector.broadcast %10 : vector<1x128xf32> to vector<256x128xf32>
    %37 = arith.mulf %35, %36 : vector<256x128xf32>
    %c1_13 = arith.constant 1 : index
    %c0_14 = arith.constant 0 : index
    %c0_15 = arith.constant 0 : index
    %38 = vector.load %arg2[%c1_13, %c0_14, %c0_15] : memref<9x128x256xbf16, #tpu.memory_space<vmem>>, vector<1x128x256xbf16>
    %39 = vector.shape_cast %38 : vector<1x128x256xbf16> to vector<128x256xbf16>
    %40 = arith.truncf %37 : vector<256x128xf32> to vector<256x128xbf16>
    %cst_16 = arith.constant dense<0.000000e+00> : vector<128x128xf32>
    %41 = tpu.matmul %39, %40, %cst_16 {dimension_numbers = #tpu.dot_dimension_numbers<[1], [0], [0], [1], [0, 0, 1, 1], [], []>} : vector<128x256xbf16>, vector<256x128xbf16>, vector<128x128xf32> -> vector<128x128xf32>
    %42 = arith.addf %34, %41 : vector<128x128xf32>
    %c8_i32_17 = arith.constant 8 : i32
    %43 = tpu.dynamic_rotate %27 by %c8_i32_17 dim 1 : vector<256x128xf32>, i32 -> vector<256x128xf32>
    %44 = vector.broadcast %10 : vector<1x128xf32> to vector<256x128xf32>
    %45 = arith.mulf %43, %44 : vector<256x128xf32>
    %c2_18 = arith.constant 2 : index
    %c0_19 = arith.constant 0 : index
    %c0_20 = arith.constant 0 : index
    %46 = vector.load %arg2[%c2_18, %c0_19, %c0_20] : memref<9x128x256xbf16, #tpu.memory_space<vmem>>, vector<1x128x256xbf16>
    %47 = vector.shape_cast %46 : vector<1x128x256xbf16> to vector<128x256xbf16>
    %48 = arith.truncf %45 : vector<256x128xf32> to vector<256x128xbf16>
    %cst_21 = arith.constant dense<0.000000e+00> : vector<128x128xf32>
    %49 = tpu.matmul %47, %48, %cst_21 {dimension_numbers = #tpu.dot_dimension_numbers<[1], [0], [0], [1], [0, 0, 1, 1], [], []>} : vector<128x256xbf16>, vector<256x128xbf16>, vector<128x128xf32> -> vector<128x128xf32>
    %50 = arith.addf %42, %49 : vector<128x128xf32>
    %c1_i32_22 = arith.constant 1 : i32
    %51 = tpu.dynamic_rotate %21 by %c1_i32_22 dim 1 : vector<256x128xf32>, i32 -> vector<256x128xf32>
    %52 = vector.broadcast %14 : vector<1x128xf32> to vector<256x128xf32>
    %53 = arith.mulf %51, %52 : vector<256x128xf32>
    %c3_23 = arith.constant 3 : index
    %c0_24 = arith.constant 0 : index
    %c0_25 = arith.constant 0 : index
    %54 = vector.load %arg2[%c3_23, %c0_24, %c0_25] : memref<9x128x256xbf16, #tpu.memory_space<vmem>>, vector<1x128x256xbf16>
    %55 = vector.shape_cast %54 : vector<1x128x256xbf16> to vector<128x256xbf16>
    %56 = arith.truncf %53 : vector<256x128xf32> to vector<256x128xbf16>
    %cst_26 = arith.constant dense<0.000000e+00> : vector<128x128xf32>
    %57 = tpu.matmul %55, %56, %cst_26 {dimension_numbers = #tpu.dot_dimension_numbers<[1], [0], [0], [1], [0, 0, 1, 1], [], []>} : vector<128x256xbf16>, vector<256x128xbf16>, vector<128x128xf32> -> vector<128x128xf32>
    %58 = arith.addf %50, %57 : vector<128x128xf32>
    %c4 = arith.constant 4 : index
    %c0_27 = arith.constant 0 : index
    %c0_28 = arith.constant 0 : index
    %59 = vector.load %arg2[%c4, %c0_27, %c0_28] : memref<9x128x256xbf16, #tpu.memory_space<vmem>>, vector<1x128x256xbf16>
    %60 = vector.shape_cast %59 : vector<1x128x256xbf16> to vector<128x256xbf16>
    %61 = arith.truncf %18 : vector<256x128xf32> to vector<256x128xbf16>
    %cst_29 = arith.constant dense<0.000000e+00> : vector<128x128xf32>
    %62 = tpu.matmul %60, %61, %cst_29 {dimension_numbers = #tpu.dot_dimension_numbers<[1], [0], [0], [1], [0, 0, 1, 1], [], []>} : vector<128x256xbf16>, vector<256x128xbf16>, vector<128x128xf32> -> vector<128x128xf32>
    %63 = arith.addf %58, %62 : vector<128x128xf32>
    %c5 = arith.constant 5 : index
    %c0_30 = arith.constant 0 : index
    %c0_31 = arith.constant 0 : index
    %64 = vector.load %arg2[%c5, %c0_30, %c0_31] : memref<9x128x256xbf16, #tpu.memory_space<vmem>>, vector<1x128x256xbf16>
    %65 = vector.shape_cast %64 : vector<1x128x256xbf16> to vector<128x256xbf16>
    %66 = arith.truncf %21 : vector<256x128xf32> to vector<256x128xbf16>
    %cst_32 = arith.constant dense<0.000000e+00> : vector<128x128xf32>
    %67 = tpu.matmul %65, %66, %cst_32 {dimension_numbers = #tpu.dot_dimension_numbers<[1], [0], [0], [1], [0, 0, 1, 1], [], []>} : vector<128x256xbf16>, vector<256x128xbf16>, vector<128x128xf32> -> vector<128x128xf32>
    %68 = arith.addf %63, %67 : vector<128x128xf32>
    %c1_i32_33 = arith.constant 1 : i32
    %69 = tpu.dynamic_rotate %27 by %c1_i32_33 dim 1 : vector<256x128xf32>, i32 -> vector<256x128xf32>
    %70 = vector.broadcast %14 : vector<1x128xf32> to vector<256x128xf32>
    %71 = arith.mulf %69, %70 : vector<256x128xf32>
    %c6 = arith.constant 6 : index
    %c0_34 = arith.constant 0 : index
    %c0_35 = arith.constant 0 : index
    %72 = vector.load %arg2[%c6, %c0_34, %c0_35] : memref<9x128x256xbf16, #tpu.memory_space<vmem>>, vector<1x128x256xbf16>
    %73 = vector.shape_cast %72 : vector<1x128x256xbf16> to vector<128x256xbf16>
    %74 = arith.truncf %71 : vector<256x128xf32> to vector<256x128xbf16>
    %cst_36 = arith.constant dense<0.000000e+00> : vector<128x128xf32>
    %75 = tpu.matmul %73, %74, %cst_36 {dimension_numbers = #tpu.dot_dimension_numbers<[1], [0], [0], [1], [0, 0, 1, 1], [], []>} : vector<128x256xbf16>, vector<256x128xbf16>, vector<128x128xf32> -> vector<128x128xf32>
    %76 = arith.addf %68, %75 : vector<128x128xf32>
    %c7 = arith.constant 7 : index
    %c0_37 = arith.constant 0 : index
    %c0_38 = arith.constant 0 : index
    %77 = vector.load %arg2[%c7, %c0_37, %c0_38] : memref<9x128x256xbf16, #tpu.memory_space<vmem>>, vector<1x128x256xbf16>
    %78 = vector.shape_cast %77 : vector<1x128x256xbf16> to vector<128x256xbf16>
    %79 = arith.truncf %24 : vector<256x128xf32> to vector<256x128xbf16>
    %cst_39 = arith.constant dense<0.000000e+00> : vector<128x128xf32>
    %80 = tpu.matmul %78, %79, %cst_39 {dimension_numbers = #tpu.dot_dimension_numbers<[1], [0], [0], [1], [0, 0, 1, 1], [], []>} : vector<128x256xbf16>, vector<256x128xbf16>, vector<128x128xf32> -> vector<128x128xf32>
    %81 = arith.addf %76, %80 : vector<128x128xf32>
    %c8 = arith.constant 8 : index
    %c0_40 = arith.constant 0 : index
    %c0_41 = arith.constant 0 : index
    %82 = vector.load %arg2[%c8, %c0_40, %c0_41] : memref<9x128x256xbf16, #tpu.memory_space<vmem>>, vector<1x128x256xbf16>
    %83 = vector.shape_cast %82 : vector<1x128x256xbf16> to vector<128x256xbf16>
    %84 = arith.truncf %27 : vector<256x128xf32> to vector<256x128xbf16>
    %cst_42 = arith.constant dense<0.000000e+00> : vector<128x128xf32>
    %85 = tpu.matmul %83, %84, %cst_42 {dimension_numbers = #tpu.dot_dimension_numbers<[1], [0], [0], [1], [0, 0, 1, 1], [], []>} : vector<128x256xbf16>, vector<256x128xbf16>, vector<128x128xf32> -> vector<128x128xf32>
    %86 = arith.addf %81, %85 : vector<128x128xf32>
    %c0_43 = arith.constant 0 : index
    %c0_44 = arith.constant 0 : index
    %87 = vector.load %arg3[%c0_43, %c0_44] : memref<128x1xf32, #tpu.memory_space<vmem>>, vector<128x1xf32>
    %88 = vector.broadcast %87 : vector<128x1xf32> to vector<128x128xf32>
    %89 = arith.addf %86, %88 : vector<128x128xf32>
    %cst_45 = arith.constant 0.000000e+00 : f32
    %90 = vector.broadcast %cst_45 : f32 to vector<128x128xf32>
    %91 = arith.cmpf ogt, %89, %90 : vector<128x128xf32>
    %cst_46 = arith.constant 2.000000e-01 : f32
    %92 = vector.broadcast %cst_46 : f32 to vector<128x128xf32>
    %93 = arith.mulf %92, %89 : vector<128x128xf32>
    %94 = arith.select %91, %89, %93 : vector<128x128xi1>, vector<128x128xf32>
    %c-1_i32 = arith.constant -1 : i32
    %95 = vector.broadcast %c-1_i32 : i32 to vector<1x128xi32>
    %96 = arith.addi %6, %95 : vector<1x128xi32>
    %c0_i32 = arith.constant 0 : i32
    %97 = vector.broadcast %c0_i32 : i32 to vector<1x128xi32>
    %98 = arith.cmpi sge, %96, %97 : vector<1x128xi32>
    %c-1_i32_47 = arith.constant -1 : i32
    %99 = vector.broadcast %c-1_i32_47 : i32 to vector<1x128xi32>
    %100 = arith.addi %6, %99 : vector<1x128xi32>
    %c8_i32_48 = arith.constant 8 : i32
    %101 = vector.broadcast %c8_i32_48 : i32 to vector<1x128xi32>
    %102 = arith.cmpi slt, %100, %101 : vector<1x128xi32>
    %103 = arith.andi %98, %102 : vector<1x128xi1>
    %c-1_i32_49 = arith.constant -1 : i32
    %104 = vector.broadcast %c-1_i32_49 : i32 to vector<1x128xi32>
    %105 = arith.addi %2, %104 : vector<1x128xi32>
    %c0_i32_50 = arith.constant 0 : i32
    %106 = vector.broadcast %c0_i32_50 : i32 to vector<1x128xi32>
    %107 = arith.cmpi sge, %105, %106 : vector<1x128xi32>
    %108 = arith.andi %103, %107 : vector<1x128xi1>
    %c-1_i32_51 = arith.constant -1 : i32
    %109 = vector.broadcast %c-1_i32_51 : i32 to vector<1x128xi32>
    %110 = arith.addi %2, %109 : vector<1x128xi32>
    %c8_i32_52 = arith.constant 8 : i32
    %111 = vector.broadcast %c8_i32_52 : i32 to vector<1x128xi32>
    %112 = arith.cmpi slt, %110, %111 : vector<1x128xi32>
    %113 = arith.andi %108, %112 : vector<1x128xi1>
    %114 = arith.extui %113 : vector<1x128xi1> to vector<1x128xi32>
    %115 = arith.sitofp %114 : vector<1x128xi32> to vector<1x128xf32>
    %c-1_i32_53 = arith.constant -1 : i32
    %116 = vector.broadcast %c-1_i32_53 : i32 to vector<1x128xi32>
    %117 = arith.addi %6, %116 : vector<1x128xi32>
    %c0_i32_54 = arith.constant 0 : i32
    %118 = vector.broadcast %c0_i32_54 : i32 to vector<1x128xi32>
    %119 = arith.cmpi sge, %117, %118 : vector<1x128xi32>
    %c-1_i32_55 = arith.constant -1 : i32
    %120 = vector.broadcast %c-1_i32_55 : i32 to vector<1x128xi32>
    %121 = arith.addi %6, %120 : vector<1x128xi32>
    %c8_i32_56 = arith.constant 8 : i32
    %122 = vector.broadcast %c8_i32_56 : i32 to vector<1x128xi32>
    %123 = arith.cmpi slt, %121, %122 : vector<1x128xi32>
    %124 = arith.andi %119, %123 : vector<1x128xi1>
    %c0_i32_57 = arith.constant 0 : i32
    %125 = vector.broadcast %c0_i32_57 : i32 to vector<1x128xi32>
    %126 = arith.addi %2, %125 : vector<1x128xi32>
    %c0_i32_58 = arith.constant 0 : i32
    %127 = vector.broadcast %c0_i32_58 : i32 to vector<1x128xi32>
    %128 = arith.cmpi sge, %126, %127 : vector<1x128xi32>
    %129 = arith.andi %124, %128 : vector<1x128xi1>
    %c0_i32_59 = arith.constant 0 : i32
    %130 = vector.broadcast %c0_i32_59 : i32 to vector<1x128xi32>
    %131 = arith.addi %2, %130 : vector<1x128xi32>
    %c8_i32_60 = arith.constant 8 : i32
    %132 = vector.broadcast %c8_i32_60 : i32 to vector<1x128xi32>
    %133 = arith.cmpi slt, %131, %132 : vector<1x128xi32>
    %134 = arith.andi %129, %133 : vector<1x128xi1>
    %135 = arith.extui %134 : vector<1x128xi1> to vector<1x128xi32>
    %136 = arith.sitofp %135 : vector<1x128xi32> to vector<1x128xf32>
    %c-1_i32_61 = arith.constant -1 : i32
    %137 = vector.broadcast %c-1_i32_61 : i32 to vector<1x128xi32>
    %138 = arith.addi %6, %137 : vector<1x128xi32>
    %c0_i32_62 = arith.constant 0 : i32
    %139 = vector.broadcast %c0_i32_62 : i32 to vector<1x128xi32>
    %140 = arith.cmpi sge, %138, %139 : vector<1x128xi32>
    %c-1_i32_63 = arith.constant -1 : i32
    %141 = vector.broadcast %c-1_i32_63 : i32 to vector<1x128xi32>
    %142 = arith.addi %6, %141 : vector<1x128xi32>
    %c8_i32_64 = arith.constant 8 : i32
    %143 = vector.broadcast %c8_i32_64 : i32 to vector<1x128xi32>
    %144 = arith.cmpi slt, %142, %143 : vector<1x128xi32>
    %145 = arith.andi %140, %144 : vector<1x128xi1>
    %c1_i32_65 = arith.constant 1 : i32
    %146 = vector.broadcast %c1_i32_65 : i32 to vector<1x128xi32>
    %147 = arith.addi %2, %146 : vector<1x128xi32>
    %c0_i32_66 = arith.constant 0 : i32
    %148 = vector.broadcast %c0_i32_66 : i32 to vector<1x128xi32>
    %149 = arith.cmpi sge, %147, %148 : vector<1x128xi32>
    %150 = arith.andi %145, %149 : vector<1x128xi1>
    %c1_i32_67 = arith.constant 1 : i32
    %151 = vector.broadcast %c1_i32_67 : i32 to vector<1x128xi32>
    %152 = arith.addi %2, %151 : vector<1x128xi32>
    %c8_i32_68 = arith.constant 8 : i32
    %153 = vector.broadcast %c8_i32_68 : i32 to vector<1x128xi32>
    %154 = arith.cmpi slt, %152, %153 : vector<1x128xi32>
    %155 = arith.andi %150, %154 : vector<1x128xi1>
    %156 = arith.extui %155 : vector<1x128xi1> to vector<1x128xi32>
    %157 = arith.sitofp %156 : vector<1x128xi32> to vector<1x128xf32>
    %c0_i32_69 = arith.constant 0 : i32
    %158 = vector.broadcast %c0_i32_69 : i32 to vector<1x128xi32>
    %159 = arith.addi %6, %158 : vector<1x128xi32>
    %c0_i32_70 = arith.constant 0 : i32
    %160 = vector.broadcast %c0_i32_70 : i32 to vector<1x128xi32>
    %161 = arith.cmpi sge, %159, %160 : vector<1x128xi32>
    %c0_i32_71 = arith.constant 0 : i32
    %162 = vector.broadcast %c0_i32_71 : i32 to vector<1x128xi32>
    %163 = arith.addi %6, %162 : vector<1x128xi32>
    %c8_i32_72 = arith.constant 8 : i32
    %164 = vector.broadcast %c8_i32_72 : i32 to vector<1x128xi32>
    %165 = arith.cmpi slt, %163, %164 : vector<1x128xi32>
    %166 = arith.andi %161, %165 : vector<1x128xi1>
    %c-1_i32_73 = arith.constant -1 : i32
    %167 = vector.broadcast %c-1_i32_73 : i32 to vector<1x128xi32>
    %168 = arith.addi %2, %167 : vector<1x128xi32>
    %c0_i32_74 = arith.constant 0 : i32
    %169 = vector.broadcast %c0_i32_74 : i32 to vector<1x128xi32>
    %170 = arith.cmpi sge, %168, %169 : vector<1x128xi32>
    %171 = arith.andi %166, %170 : vector<1x128xi1>
    %c-1_i32_75 = arith.constant -1 : i32
    %172 = vector.broadcast %c-1_i32_75 : i32 to vector<1x128xi32>
    %173 = arith.addi %2, %172 : vector<1x128xi32>
    %c8_i32_76 = arith.constant 8 : i32
    %174 = vector.broadcast %c8_i32_76 : i32 to vector<1x128xi32>
    %175 = arith.cmpi slt, %173, %174 : vector<1x128xi32>
    %176 = arith.andi %171, %175 : vector<1x128xi1>
    %177 = arith.extui %176 : vector<1x128xi1> to vector<1x128xi32>
    %178 = arith.sitofp %177 : vector<1x128xi32> to vector<1x128xf32>
    %c0_i32_77 = arith.constant 0 : i32
    %179 = vector.broadcast %c0_i32_77 : i32 to vector<1x128xi32>
    %180 = arith.addi %6, %179 : vector<1x128xi32>
    %c0_i32_78 = arith.constant 0 : i32
    %181 = vector.broadcast %c0_i32_78 : i32 to vector<1x128xi32>
    %182 = arith.cmpi sge, %180, %181 : vector<1x128xi32>
    %c0_i32_79 = arith.constant 0 : i32
    %183 = vector.broadcast %c0_i32_79 : i32 to vector<1x128xi32>
    %184 = arith.addi %6, %183 : vector<1x128xi32>
    %c8_i32_80 = arith.constant 8 : i32
    %185 = vector.broadcast %c8_i32_80 : i32 to vector<1x128xi32>
    %186 = arith.cmpi slt, %184, %185 : vector<1x128xi32>
    %187 = arith.andi %182, %186 : vector<1x128xi1>
    %c1_i32_81 = arith.constant 1 : i32
    %188 = vector.broadcast %c1_i32_81 : i32 to vector<1x128xi32>
    %189 = arith.addi %2, %188 : vector<1x128xi32>
    %c0_i32_82 = arith.constant 0 : i32
    %190 = vector.broadcast %c0_i32_82 : i32 to vector<1x128xi32>
    %191 = arith.cmpi sge, %189, %190 : vector<1x128xi32>
    %192 = arith.andi %187, %191 : vector<1x128xi1>
    %c1_i32_83 = arith.constant 1 : i32
    %193 = vector.broadcast %c1_i32_83 : i32 to vector<1x128xi32>
    %194 = arith.addi %2, %193 : vector<1x128xi32>
    %c8_i32_84 = arith.constant 8 : i32
    %195 = vector.broadcast %c8_i32_84 : i32 to vector<1x128xi32>
    %196 = arith.cmpi slt, %194, %195 : vector<1x128xi32>
    %197 = arith.andi %192, %196 : vector<1x128xi1>
    %198 = arith.extui %197 : vector<1x128xi1> to vector<1x128xi32>
    %199 = arith.sitofp %198 : vector<1x128xi32> to vector<1x128xf32>
    %c1_i32_85 = arith.constant 1 : i32
    %200 = vector.broadcast %c1_i32_85 : i32 to vector<1x128xi32>
    %201 = arith.addi %6, %200 : vector<1x128xi32>
    %c0_i32_86 = arith.constant 0 : i32
    %202 = vector.broadcast %c0_i32_86 : i32 to vector<1x128xi32>
    %203 = arith.cmpi sge, %201, %202 : vector<1x128xi32>
    %c1_i32_87 = arith.constant 1 : i32
    %204 = vector.broadcast %c1_i32_87 : i32 to vector<1x128xi32>
    %205 = arith.addi %6, %204 : vector<1x128xi32>
    %c8_i32_88 = arith.constant 8 : i32
    %206 = vector.broadcast %c8_i32_88 : i32 to vector<1x128xi32>
    %207 = arith.cmpi slt, %205, %206 : vector<1x128xi32>
    %208 = arith.andi %203, %207 : vector<1x128xi1>
    %c-1_i32_89 = arith.constant -1 : i32
    %209 = vector.broadcast %c-1_i32_89 : i32 to vector<1x128xi32>
    %210 = arith.addi %2, %209 : vector<1x128xi32>
    %c0_i32_90 = arith.constant 0 : i32
    %211 = vector.broadcast %c0_i32_90 : i32 to vector<1x128xi32>
    %212 = arith.cmpi sge, %210, %211 : vector<1x128xi32>
    %213 = arith.andi %208, %212 : vector<1x128xi1>
    %c-1_i32_91 = arith.constant -1 : i32
    %214 = vector.broadcast %c-1_i32_91 : i32 to vector<1x128xi32>
    %215 = arith.addi %2, %214 : vector<1x128xi32>
    %c8_i32_92 = arith.constant 8 : i32
    %216 = vector.broadcast %c8_i32_92 : i32 to vector<1x128xi32>
    %217 = arith.cmpi slt, %215, %216 : vector<1x128xi32>
    %218 = arith.andi %213, %217 : vector<1x128xi1>
    %219 = arith.extui %218 : vector<1x128xi1> to vector<1x128xi32>
    %220 = arith.sitofp %219 : vector<1x128xi32> to vector<1x128xf32>
    %c1_i32_93 = arith.constant 1 : i32
    %221 = vector.broadcast %c1_i32_93 : i32 to vector<1x128xi32>
    %222 = arith.addi %6, %221 : vector<1x128xi32>
    %c0_i32_94 = arith.constant 0 : i32
    %223 = vector.broadcast %c0_i32_94 : i32 to vector<1x128xi32>
    %224 = arith.cmpi sge, %222, %223 : vector<1x128xi32>
    %c1_i32_95 = arith.constant 1 : i32
    %225 = vector.broadcast %c1_i32_95 : i32 to vector<1x128xi32>
    %226 = arith.addi %6, %225 : vector<1x128xi32>
    %c8_i32_96 = arith.constant 8 : i32
    %227 = vector.broadcast %c8_i32_96 : i32 to vector<1x128xi32>
    %228 = arith.cmpi slt, %226, %227 : vector<1x128xi32>
    %229 = arith.andi %224, %228 : vector<1x128xi1>
    %c0_i32_97 = arith.constant 0 : i32
    %230 = vector.broadcast %c0_i32_97 : i32 to vector<1x128xi32>
    %231 = arith.addi %2, %230 : vector<1x128xi32>
    %c0_i32_98 = arith.constant 0 : i32
    %232 = vector.broadcast %c0_i32_98 : i32 to vector<1x128xi32>
    %233 = arith.cmpi sge, %231, %232 : vector<1x128xi32>
    %234 = arith.andi %229, %233 : vector<1x128xi1>
    %c0_i32_99 = arith.constant 0 : i32
    %235 = vector.broadcast %c0_i32_99 : i32 to vector<1x128xi32>
    %236 = arith.addi %2, %235 : vector<1x128xi32>
    %c8_i32_100 = arith.constant 8 : i32
    %237 = vector.broadcast %c8_i32_100 : i32 to vector<1x128xi32>
    %238 = arith.cmpi slt, %236, %237 : vector<1x128xi32>
    %239 = arith.andi %234, %238 : vector<1x128xi1>
    %240 = arith.extui %239 : vector<1x128xi1> to vector<1x128xi32>
    %241 = arith.sitofp %240 : vector<1x128xi32> to vector<1x128xf32>
    %c1_i32_101 = arith.constant 1 : i32
    %242 = vector.broadcast %c1_i32_101 : i32 to vector<1x128xi32>
    %243 = arith.addi %6, %242 : vector<1x128xi32>
    %c0_i32_102 = arith.constant 0 : i32
    %244 = vector.broadcast %c0_i32_102 : i32 to vector<1x128xi32>
    %245 = arith.cmpi sge, %243, %244 : vector<1x128xi32>
    %c1_i32_103 = arith.constant 1 : i32
    %246 = vector.broadcast %c1_i32_103 : i32 to vector<1x128xi32>
    %247 = arith.addi %6, %246 : vector<1x128xi32>
    %c8_i32_104 = arith.constant 8 : i32
    %248 = vector.broadcast %c8_i32_104 : i32 to vector<1x128xi32>
    %249 = arith.cmpi slt, %247, %248 : vector<1x128xi32>
    %250 = arith.andi %245, %249 : vector<1x128xi1>
    %c1_i32_105 = arith.constant 1 : i32
    %251 = vector.broadcast %c1_i32_105 : i32 to vector<1x128xi32>
    %252 = arith.addi %2, %251 : vector<1x128xi32>
    %c0_i32_106 = arith.constant 0 : i32
    %253 = vector.broadcast %c0_i32_106 : i32 to vector<1x128xi32>
    %254 = arith.cmpi sge, %252, %253 : vector<1x128xi32>
    %255 = arith.andi %250, %254 : vector<1x128xi1>
    %c1_i32_107 = arith.constant 1 : i32
    %256 = vector.broadcast %c1_i32_107 : i32 to vector<1x128xi32>
    %257 = arith.addi %2, %256 : vector<1x128xi32>
    %c8_i32_108 = arith.constant 8 : i32
    %258 = vector.broadcast %c8_i32_108 : i32 to vector<1x128xi32>
    %259 = arith.cmpi slt, %257, %258 : vector<1x128xi32>
    %260 = arith.andi %255, %259 : vector<1x128xi1>
    %261 = arith.extui %260 : vector<1x128xi1> to vector<1x128xi32>
    %262 = arith.sitofp %261 : vector<1x128xi32> to vector<1x128xf32>
    %c-2_i32 = arith.constant -2 : i32
    %263 = vector.broadcast %c-2_i32 : i32 to vector<1x128xi32>
    %264 = arith.addi %6, %263 : vector<1x128xi32>
    %c0_i32_109 = arith.constant 0 : i32
    %265 = vector.broadcast %c0_i32_109 : i32 to vector<1x128xi32>
    %266 = arith.cmpi sge, %264, %265 : vector<1x128xi32>
    %c-2_i32_110 = arith.constant -2 : i32
    %267 = vector.broadcast %c-2_i32_110 : i32 to vector<1x128xi32>
    %268 = arith.addi %6, %267 : vector<1x128xi32>
    %c8_i32_111 = arith.constant 8 : i32
    %269 = vector.broadcast %c8_i32_111 : i32 to vector<1x128xi32>
    %270 = arith.cmpi slt, %268, %269 : vector<1x128xi32>
    %271 = arith.andi %266, %270 : vector<1x128xi1>
    %c-2_i32_112 = arith.constant -2 : i32
    %272 = vector.broadcast %c-2_i32_112 : i32 to vector<1x128xi32>
    %273 = arith.addi %2, %272 : vector<1x128xi32>
    %c0_i32_113 = arith.constant 0 : i32
    %274 = vector.broadcast %c0_i32_113 : i32 to vector<1x128xi32>
    %275 = arith.cmpi sge, %273, %274 : vector<1x128xi32>
    %276 = arith.andi %271, %275 : vector<1x128xi1>
    %c-2_i32_114 = arith.constant -2 : i32
    %277 = vector.broadcast %c-2_i32_114 : i32 to vector<1x128xi32>
    %278 = arith.addi %2, %277 : vector<1x128xi32>
    %c8_i32_115 = arith.constant 8 : i32
    %279 = vector.broadcast %c8_i32_115 : i32 to vector<1x128xi32>
    %280 = arith.cmpi slt, %278, %279 : vector<1x128xi32>
    %281 = arith.andi %276, %280 : vector<1x128xi1>
    %282 = arith.extui %281 : vector<1x128xi1> to vector<1x128xi32>
    %283 = arith.sitofp %282 : vector<1x128xi32> to vector<1x128xf32>
    %c-2_i32_116 = arith.constant -2 : i32
    %284 = vector.broadcast %c-2_i32_116 : i32 to vector<1x128xi32>
    %285 = arith.addi %6, %284 : vector<1x128xi32>
    %c0_i32_117 = arith.constant 0 : i32
    %286 = vector.broadcast %c0_i32_117 : i32 to vector<1x128xi32>
    %287 = arith.cmpi sge, %285, %286 : vector<1x128xi32>
    %c-2_i32_118 = arith.constant -2 : i32
    %288 = vector.broadcast %c-2_i32_118 : i32 to vector<1x128xi32>
    %289 = arith.addi %6, %288 : vector<1x128xi32>
    %c8_i32_119 = arith.constant 8 : i32
    %290 = vector.broadcast %c8_i32_119 : i32 to vector<1x128xi32>
    %291 = arith.cmpi slt, %289, %290 : vector<1x128xi32>
    %292 = arith.andi %287, %291 : vector<1x128xi1>
    %c0_i32_120 = arith.constant 0 : i32
    %293 = vector.broadcast %c0_i32_120 : i32 to vector<1x128xi32>
    %294 = arith.addi %2, %293 : vector<1x128xi32>
    %c0_i32_121 = arith.constant 0 : i32
    %295 = vector.broadcast %c0_i32_121 : i32 to vector<1x128xi32>
    %296 = arith.cmpi sge, %294, %295 : vector<1x128xi32>
    %297 = arith.andi %292, %296 : vector<1x128xi1>
    %c0_i32_122 = arith.constant 0 : i32
    %298 = vector.broadcast %c0_i32_122 : i32 to vector<1x128xi32>
    %299 = arith.addi %2, %298 : vector<1x128xi32>
    %c8_i32_123 = arith.constant 8 : i32
    %300 = vector.broadcast %c8_i32_123 : i32 to vector<1x128xi32>
    %301 = arith.cmpi slt, %299, %300 : vector<1x128xi32>
    %302 = arith.andi %297, %301 : vector<1x128xi1>
    %303 = arith.extui %302 : vector<1x128xi1> to vector<1x128xi32>
    %304 = arith.sitofp %303 : vector<1x128xi32> to vector<1x128xf32>
    %c-2_i32_124 = arith.constant -2 : i32
    %305 = vector.broadcast %c-2_i32_124 : i32 to vector<1x128xi32>
    %306 = arith.addi %6, %305 : vector<1x128xi32>
    %c0_i32_125 = arith.constant 0 : i32
    %307 = vector.broadcast %c0_i32_125 : i32 to vector<1x128xi32>
    %308 = arith.cmpi sge, %306, %307 : vector<1x128xi32>
    %c-2_i32_126 = arith.constant -2 : i32
    %309 = vector.broadcast %c-2_i32_126 : i32 to vector<1x128xi32>
    %310 = arith.addi %6, %309 : vector<1x128xi32>
    %c8_i32_127 = arith.constant 8 : i32
    %311 = vector.broadcast %c8_i32_127 : i32 to vector<1x128xi32>
    %312 = arith.cmpi slt, %310, %311 : vector<1x128xi32>
    %313 = arith.andi %308, %312 : vector<1x128xi1>
    %c2_i32 = arith.constant 2 : i32
    %314 = vector.broadcast %c2_i32 : i32 to vector<1x128xi32>
    %315 = arith.addi %2, %314 : vector<1x128xi32>
    %c0_i32_128 = arith.constant 0 : i32
    %316 = vector.broadcast %c0_i32_128 : i32 to vector<1x128xi32>
    %317 = arith.cmpi sge, %315, %316 : vector<1x128xi32>
    %318 = arith.andi %313, %317 : vector<1x128xi1>
    %c2_i32_129 = arith.constant 2 : i32
    %319 = vector.broadcast %c2_i32_129 : i32 to vector<1x128xi32>
    %320 = arith.addi %2, %319 : vector<1x128xi32>
    %c8_i32_130 = arith.constant 8 : i32
    %321 = vector.broadcast %c8_i32_130 : i32 to vector<1x128xi32>
    %322 = arith.cmpi slt, %320, %321 : vector<1x128xi32>
    %323 = arith.andi %318, %322 : vector<1x128xi1>
    %324 = arith.extui %323 : vector<1x128xi1> to vector<1x128xi32>
    %325 = arith.sitofp %324 : vector<1x128xi32> to vector<1x128xf32>
    %c0_i32_131 = arith.constant 0 : i32
    %326 = vector.broadcast %c0_i32_131 : i32 to vector<1x128xi32>
    %327 = arith.addi %6, %326 : vector<1x128xi32>
    %c0_i32_132 = arith.constant 0 : i32
    %328 = vector.broadcast %c0_i32_132 : i32 to vector<1x128xi32>
    %329 = arith.cmpi sge, %327, %328 : vector<1x128xi32>
    %c0_i32_133 = arith.constant 0 : i32
    %330 = vector.broadcast %c0_i32_133 : i32 to vector<1x128xi32>
    %331 = arith.addi %6, %330 : vector<1x128xi32>
    %c8_i32_134 = arith.constant 8 : i32
    %332 = vector.broadcast %c8_i32_134 : i32 to vector<1x128xi32>
    %333 = arith.cmpi slt, %331, %332 : vector<1x128xi32>
    %334 = arith.andi %329, %333 : vector<1x128xi1>
    %c-2_i32_135 = arith.constant -2 : i32
    %335 = vector.broadcast %c-2_i32_135 : i32 to vector<1x128xi32>
    %336 = arith.addi %2, %335 : vector<1x128xi32>
    %c0_i32_136 = arith.constant 0 : i32
    %337 = vector.broadcast %c0_i32_136 : i32 to vector<1x128xi32>
    %338 = arith.cmpi sge, %336, %337 : vector<1x128xi32>
    %339 = arith.andi %334, %338 : vector<1x128xi1>
    %c-2_i32_137 = arith.constant -2 : i32
    %340 = vector.broadcast %c-2_i32_137 : i32 to vector<1x128xi32>
    %341 = arith.addi %2, %340 : vector<1x128xi32>
    %c8_i32_138 = arith.constant 8 : i32
    %342 = vector.broadcast %c8_i32_138 : i32 to vector<1x128xi32>
    %343 = arith.cmpi slt, %341, %342 : vector<1x128xi32>
    %344 = arith.andi %339, %343 : vector<1x128xi1>
    %345 = arith.extui %344 : vector<1x128xi1> to vector<1x128xi32>
    %346 = arith.sitofp %345 : vector<1x128xi32> to vector<1x128xf32>
    %c0_i32_139 = arith.constant 0 : i32
    %347 = vector.broadcast %c0_i32_139 : i32 to vector<1x128xi32>
    %348 = arith.addi %6, %347 : vector<1x128xi32>
    %c0_i32_140 = arith.constant 0 : i32
    %349 = vector.broadcast %c0_i32_140 : i32 to vector<1x128xi32>
    %350 = arith.cmpi sge, %348, %349 : vector<1x128xi32>
    %c0_i32_141 = arith.constant 0 : i32
    %351 = vector.broadcast %c0_i32_141 : i32 to vector<1x128xi32>
    %352 = arith.addi %6, %351 : vector<1x128xi32>
    %c8_i32_142 = arith.constant 8 : i32
    %353 = vector.broadcast %c8_i32_142 : i32 to vector<1x128xi32>
    %354 = arith.cmpi slt, %352, %353 : vector<1x128xi32>
    %355 = arith.andi %350, %354 : vector<1x128xi1>
    %c2_i32_143 = arith.constant 2 : i32
    %356 = vector.broadcast %c2_i32_143 : i32 to vector<1x128xi32>
    %357 = arith.addi %2, %356 : vector<1x128xi32>
    %c0_i32_144 = arith.constant 0 : i32
    %358 = vector.broadcast %c0_i32_144 : i32 to vector<1x128xi32>
    %359 = arith.cmpi sge, %357, %358 : vector<1x128xi32>
    %360 = arith.andi %355, %359 : vector<1x128xi1>
    %c2_i32_145 = arith.constant 2 : i32
    %361 = vector.broadcast %c2_i32_145 : i32 to vector<1x128xi32>
    %362 = arith.addi %2, %361 : vector<1x128xi32>
    %c8_i32_146 = arith.constant 8 : i32
    %363 = vector.broadcast %c8_i32_146 : i32 to vector<1x128xi32>
    %364 = arith.cmpi slt, %362, %363 : vector<1x128xi32>
    %365 = arith.andi %360, %364 : vector<1x128xi1>
    %366 = arith.extui %365 : vector<1x128xi1> to vector<1x128xi32>
    %367 = arith.sitofp %366 : vector<1x128xi32> to vector<1x128xf32>
    %c2_i32_147 = arith.constant 2 : i32
    %368 = vector.broadcast %c2_i32_147 : i32 to vector<1x128xi32>
    %369 = arith.addi %6, %368 : vector<1x128xi32>
    %c0_i32_148 = arith.constant 0 : i32
    %370 = vector.broadcast %c0_i32_148 : i32 to vector<1x128xi32>
    %371 = arith.cmpi sge, %369, %370 : vector<1x128xi32>
    %c2_i32_149 = arith.constant 2 : i32
    %372 = vector.broadcast %c2_i32_149 : i32 to vector<1x128xi32>
    %373 = arith.addi %6, %372 : vector<1x128xi32>
    %c8_i32_150 = arith.constant 8 : i32
    %374 = vector.broadcast %c8_i32_150 : i32 to vector<1x128xi32>
    %375 = arith.cmpi slt, %373, %374 : vector<1x128xi32>
    %376 = arith.andi %371, %375 : vector<1x128xi1>
    %c-2_i32_151 = arith.constant -2 : i32
    %377 = vector.broadcast %c-2_i32_151 : i32 to vector<1x128xi32>
    %378 = arith.addi %2, %377 : vector<1x128xi32>
    %c0_i32_152 = arith.constant 0 : i32
    %379 = vector.broadcast %c0_i32_152 : i32 to vector<1x128xi32>
    %380 = arith.cmpi sge, %378, %379 : vector<1x128xi32>
    %381 = arith.andi %376, %380 : vector<1x128xi1>
    %c-2_i32_153 = arith.constant -2 : i32
    %382 = vector.broadcast %c-2_i32_153 : i32 to vector<1x128xi32>
    %383 = arith.addi %2, %382 : vector<1x128xi32>
    %c8_i32_154 = arith.constant 8 : i32
    %384 = vector.broadcast %c8_i32_154 : i32 to vector<1x128xi32>
    %385 = arith.cmpi slt, %383, %384 : vector<1x128xi32>
    %386 = arith.andi %381, %385 : vector<1x128xi1>
    %387 = arith.extui %386 : vector<1x128xi1> to vector<1x128xi32>
    %388 = arith.sitofp %387 : vector<1x128xi32> to vector<1x128xf32>
    %c2_i32_155 = arith.constant 2 : i32
    %389 = vector.broadcast %c2_i32_155 : i32 to vector<1x128xi32>
    %390 = arith.addi %6, %389 : vector<1x128xi32>
    %c0_i32_156 = arith.constant 0 : i32
    %391 = vector.broadcast %c0_i32_156 : i32 to vector<1x128xi32>
    %392 = arith.cmpi sge, %390, %391 : vector<1x128xi32>
    %c2_i32_157 = arith.constant 2 : i32
    %393 = vector.broadcast %c2_i32_157 : i32 to vector<1x128xi32>
    %394 = arith.addi %6, %393 : vector<1x128xi32>
    %c8_i32_158 = arith.constant 8 : i32
    %395 = vector.broadcast %c8_i32_158 : i32 to vector<1x128xi32>
    %396 = arith.cmpi slt, %394, %395 : vector<1x128xi32>
    %397 = arith.andi %392, %396 : vector<1x128xi1>
    %c0_i32_159 = arith.constant 0 : i32
    %398 = vector.broadcast %c0_i32_159 : i32 to vector<1x128xi32>
    %399 = arith.addi %2, %398 : vector<1x128xi32>
    %c0_i32_160 = arith.constant 0 : i32
    %400 = vector.broadcast %c0_i32_160 : i32 to vector<1x128xi32>
    %401 = arith.cmpi sge, %399, %400 : vector<1x128xi32>
    %402 = arith.andi %397, %401 : vector<1x128xi1>
    %c0_i32_161 = arith.constant 0 : i32
    %403 = vector.broadcast %c0_i32_161 : i32 to vector<1x128xi32>
    %404 = arith.addi %2, %403 : vector<1x128xi32>
    %c8_i32_162 = arith.constant 8 : i32
    %405 = vector.broadcast %c8_i32_162 : i32 to vector<1x128xi32>
    %406 = arith.cmpi slt, %404, %405 : vector<1x128xi32>
    %407 = arith.andi %402, %406 : vector<1x128xi1>
    %408 = arith.extui %407 : vector<1x128xi1> to vector<1x128xi32>
    %409 = arith.sitofp %408 : vector<1x128xi32> to vector<1x128xf32>
    %c2_i32_163 = arith.constant 2 : i32
    %410 = vector.broadcast %c2_i32_163 : i32 to vector<1x128xi32>
    %411 = arith.addi %6, %410 : vector<1x128xi32>
    %c0_i32_164 = arith.constant 0 : i32
    %412 = vector.broadcast %c0_i32_164 : i32 to vector<1x128xi32>
    %413 = arith.cmpi sge, %411, %412 : vector<1x128xi32>
    %c2_i32_165 = arith.constant 2 : i32
    %414 = vector.broadcast %c2_i32_165 : i32 to vector<1x128xi32>
    %415 = arith.addi %6, %414 : vector<1x128xi32>
    %c8_i32_166 = arith.constant 8 : i32
    %416 = vector.broadcast %c8_i32_166 : i32 to vector<1x128xi32>
    %417 = arith.cmpi slt, %415, %416 : vector<1x128xi32>
    %418 = arith.andi %413, %417 : vector<1x128xi1>
    %c2_i32_167 = arith.constant 2 : i32
    %419 = vector.broadcast %c2_i32_167 : i32 to vector<1x128xi32>
    %420 = arith.addi %2, %419 : vector<1x128xi32>
    %c0_i32_168 = arith.constant 0 : i32
    %421 = vector.broadcast %c0_i32_168 : i32 to vector<1x128xi32>
    %422 = arith.cmpi sge, %420, %421 : vector<1x128xi32>
    %423 = arith.andi %418, %422 : vector<1x128xi1>
    %c2_i32_169 = arith.constant 2 : i32
    %424 = vector.broadcast %c2_i32_169 : i32 to vector<1x128xi32>
    %425 = arith.addi %2, %424 : vector<1x128xi32>
    %c8_i32_170 = arith.constant 8 : i32
    %426 = vector.broadcast %c8_i32_170 : i32 to vector<1x128xi32>
    %427 = arith.cmpi slt, %425, %426 : vector<1x128xi32>
    %428 = arith.andi %423, %427 : vector<1x128xi1>
    %429 = arith.extui %428 : vector<1x128xi1> to vector<1x128xi32>
    %430 = arith.sitofp %429 : vector<1x128xi32> to vector<1x128xf32>
    %c-4_i32 = arith.constant -4 : i32
    %431 = vector.broadcast %c-4_i32 : i32 to vector<1x128xi32>
    %432 = arith.addi %6, %431 : vector<1x128xi32>
    %c0_i32_171 = arith.constant 0 : i32
    %433 = vector.broadcast %c0_i32_171 : i32 to vector<1x128xi32>
    %434 = arith.cmpi sge, %432, %433 : vector<1x128xi32>
    %c-4_i32_172 = arith.constant -4 : i32
    %435 = vector.broadcast %c-4_i32_172 : i32 to vector<1x128xi32>
    %436 = arith.addi %6, %435 : vector<1x128xi32>
    %c8_i32_173 = arith.constant 8 : i32
    %437 = vector.broadcast %c8_i32_173 : i32 to vector<1x128xi32>
    %438 = arith.cmpi slt, %436, %437 : vector<1x128xi32>
    %439 = arith.andi %434, %438 : vector<1x128xi1>
    %c-4_i32_174 = arith.constant -4 : i32
    %440 = vector.broadcast %c-4_i32_174 : i32 to vector<1x128xi32>
    %441 = arith.addi %2, %440 : vector<1x128xi32>
    %c0_i32_175 = arith.constant 0 : i32
    %442 = vector.broadcast %c0_i32_175 : i32 to vector<1x128xi32>
    %443 = arith.cmpi sge, %441, %442 : vector<1x128xi32>
    %444 = arith.andi %439, %443 : vector<1x128xi1>
    %c-4_i32_176 = arith.constant -4 : i32
    %445 = vector.broadcast %c-4_i32_176 : i32 to vector<1x128xi32>
    %446 = arith.addi %2, %445 : vector<1x128xi32>
    %c8_i32_177 = arith.constant 8 : i32
    %447 = vector.broadcast %c8_i32_177 : i32 to vector<1x128xi32>
    %448 = arith.cmpi slt, %446, %447 : vector<1x128xi32>
    %449 = arith.andi %444, %448 : vector<1x128xi1>
    %450 = arith.extui %449 : vector<1x128xi1> to vector<1x128xi32>
    %451 = arith.sitofp %450 : vector<1x128xi32> to vector<1x128xf32>
    %c-4_i32_178 = arith.constant -4 : i32
    %452 = vector.broadcast %c-4_i32_178 : i32 to vector<1x128xi32>
    %453 = arith.addi %6, %452 : vector<1x128xi32>
    %c0_i32_179 = arith.constant 0 : i32
    %454 = vector.broadcast %c0_i32_179 : i32 to vector<1x128xi32>
    %455 = arith.cmpi sge, %453, %454 : vector<1x128xi32>
    %c-4_i32_180 = arith.constant -4 : i32
    %456 = vector.broadcast %c-4_i32_180 : i32 to vector<1x128xi32>
    %457 = arith.addi %6, %456 : vector<1x128xi32>
    %c8_i32_181 = arith.constant 8 : i32
    %458 = vector.broadcast %c8_i32_181 : i32 to vector<1x128xi32>
    %459 = arith.cmpi slt, %457, %458 : vector<1x128xi32>
    %460 = arith.andi %455, %459 : vector<1x128xi1>
    %c0_i32_182 = arith.constant 0 : i32
    %461 = vector.broadcast %c0_i32_182 : i32 to vector<1x128xi32>
    %462 = arith.addi %2, %461 : vector<1x128xi32>
    %c0_i32_183 = arith.constant 0 : i32
    %463 = vector.broadcast %c0_i32_183 : i32 to vector<1x128xi32>
    %464 = arith.cmpi sge, %462, %463 : vector<1x128xi32>
    %465 = arith.andi %460, %464 : vector<1x128xi1>
    %c0_i32_184 = arith.constant 0 : i32
    %466 = vector.broadcast %c0_i32_184 : i32 to vector<1x128xi32>
    %467 = arith.addi %2, %466 : vector<1x128xi32>
    %c8_i32_185 = arith.constant 8 : i32
    %468 = vector.broadcast %c8_i32_185 : i32 to vector<1x128xi32>
    %469 = arith.cmpi slt, %467, %468 : vector<1x128xi32>
    %470 = arith.andi %465, %469 : vector<1x128xi1>
    %471 = arith.extui %470 : vector<1x128xi1> to vector<1x128xi32>
    %472 = arith.sitofp %471 : vector<1x128xi32> to vector<1x128xf32>
    %c-4_i32_186 = arith.constant -4 : i32
    %473 = vector.broadcast %c-4_i32_186 : i32 to vector<1x128xi32>
    %474 = arith.addi %6, %473 : vector<1x128xi32>
    %c0_i32_187 = arith.constant 0 : i32
    %475 = vector.broadcast %c0_i32_187 : i32 to vector<1x128xi32>
    %476 = arith.cmpi sge, %474, %475 : vector<1x128xi32>
    %c-4_i32_188 = arith.constant -4 : i32
    %477 = vector.broadcast %c-4_i32_188 : i32 to vector<1x128xi32>
    %478 = arith.addi %6, %477 : vector<1x128xi32>
    %c8_i32_189 = arith.constant 8 : i32
    %479 = vector.broadcast %c8_i32_189 : i32 to vector<1x128xi32>
    %480 = arith.cmpi slt, %478, %479 : vector<1x128xi32>
    %481 = arith.andi %476, %480 : vector<1x128xi1>
    %c4_i32 = arith.constant 4 : i32
    %482 = vector.broadcast %c4_i32 : i32 to vector<1x128xi32>
    %483 = arith.addi %2, %482 : vector<1x128xi32>
    %c0_i32_190 = arith.constant 0 : i32
    %484 = vector.broadcast %c0_i32_190 : i32 to vector<1x128xi32>
    %485 = arith.cmpi sge, %483, %484 : vector<1x128xi32>
    %486 = arith.andi %481, %485 : vector<1x128xi1>
    %c4_i32_191 = arith.constant 4 : i32
    %487 = vector.broadcast %c4_i32_191 : i32 to vector<1x128xi32>
    %488 = arith.addi %2, %487 : vector<1x128xi32>
    %c8_i32_192 = arith.constant 8 : i32
    %489 = vector.broadcast %c8_i32_192 : i32 to vector<1x128xi32>
    %490 = arith.cmpi slt, %488, %489 : vector<1x128xi32>
    %491 = arith.andi %486, %490 : vector<1x128xi1>
    %492 = arith.extui %491 : vector<1x128xi1> to vector<1x128xi32>
    %493 = arith.sitofp %492 : vector<1x128xi32> to vector<1x128xf32>
    %c0_i32_193 = arith.constant 0 : i32
    %494 = vector.broadcast %c0_i32_193 : i32 to vector<1x128xi32>
    %495 = arith.addi %6, %494 : vector<1x128xi32>
    %c0_i32_194 = arith.constant 0 : i32
    %496 = vector.broadcast %c0_i32_194 : i32 to vector<1x128xi32>
    %497 = arith.cmpi sge, %495, %496 : vector<1x128xi32>
    %c0_i32_195 = arith.constant 0 : i32
    %498 = vector.broadcast %c0_i32_195 : i32 to vector<1x128xi32>
    %499 = arith.addi %6, %498 : vector<1x128xi32>
    %c8_i32_196 = arith.constant 8 : i32
    %500 = vector.broadcast %c8_i32_196 : i32 to vector<1x128xi32>
    %501 = arith.cmpi slt, %499, %500 : vector<1x128xi32>
    %502 = arith.andi %497, %501 : vector<1x128xi1>
    %c-4_i32_197 = arith.constant -4 : i32
    %503 = vector.broadcast %c-4_i32_197 : i32 to vector<1x128xi32>
    %504 = arith.addi %2, %503 : vector<1x128xi32>
    %c0_i32_198 = arith.constant 0 : i32
    %505 = vector.broadcast %c0_i32_198 : i32 to vector<1x128xi32>
    %506 = arith.cmpi sge, %504, %505 : vector<1x128xi32>
    %507 = arith.andi %502, %506 : vector<1x128xi1>
    %c-4_i32_199 = arith.constant -4 : i32
    %508 = vector.broadcast %c-4_i32_199 : i32 to vector<1x128xi32>
    %509 = arith.addi %2, %508 : vector<1x128xi32>
    %c8_i32_200 = arith.constant 8 : i32
    %510 = vector.broadcast %c8_i32_200 : i32 to vector<1x128xi32>
    %511 = arith.cmpi slt, %509, %510 : vector<1x128xi32>
    %512 = arith.andi %507, %511 : vector<1x128xi1>
    %513 = arith.extui %512 : vector<1x128xi1> to vector<1x128xi32>
    %514 = arith.sitofp %513 : vector<1x128xi32> to vector<1x128xf32>
    %c0_i32_201 = arith.constant 0 : i32
    %515 = vector.broadcast %c0_i32_201 : i32 to vector<1x128xi32>
    %516 = arith.addi %6, %515 : vector<1x128xi32>
    %c0_i32_202 = arith.constant 0 : i32
    %517 = vector.broadcast %c0_i32_202 : i32 to vector<1x128xi32>
    %518 = arith.cmpi sge, %516, %517 : vector<1x128xi32>
    %c0_i32_203 = arith.constant 0 : i32
    %519 = vector.broadcast %c0_i32_203 : i32 to vector<1x128xi32>
    %520 = arith.addi %6, %519 : vector<1x128xi32>
    %c8_i32_204 = arith.constant 8 : i32
    %521 = vector.broadcast %c8_i32_204 : i32 to vector<1x128xi32>
    %522 = arith.cmpi slt, %520, %521 : vector<1x128xi32>
    %523 = arith.andi %518, %522 : vector<1x128xi1>
    %c4_i32_205 = arith.constant 4 : i32
    %524 = vector.broadcast %c4_i32_205 : i32 to vector<1x128xi32>
    %525 = arith.addi %2, %524 : vector<1x128xi32>
    %c0_i32_206 = arith.constant 0 : i32
    %526 = vector.broadcast %c0_i32_206 : i32 to vector<1x128xi32>
    %527 = arith.cmpi sge, %525, %526 : vector<1x128xi32>
    %528 = arith.andi %523, %527 : vector<1x128xi1>
    %c4_i32_207 = arith.constant 4 : i32
    %529 = vector.broadcast %c4_i32_207 : i32 to vector<1x128xi32>
    %530 = arith.addi %2, %529 : vector<1x128xi32>
    %c8_i32_208 = arith.constant 8 : i32
    %531 = vector.broadcast %c8_i32_208 : i32 to vector<1x128xi32>
    %532 = arith.cmpi slt, %530, %531 : vector<1x128xi32>
    %533 = arith.andi %528, %532 : vector<1x128xi1>
    %534 = arith.extui %533 : vector<1x128xi1> to vector<1x128xi32>
    %535 = arith.sitofp %534 : vector<1x128xi32> to vector<1x128xf32>
    %c4_i32_209 = arith.constant 4 : i32
    %536 = vector.broadcast %c4_i32_209 : i32 to vector<1x128xi32>
    %537 = arith.addi %6, %536 : vector<1x128xi32>
    %c0_i32_210 = arith.constant 0 : i32
    %538 = vector.broadcast %c0_i32_210 : i32 to vector<1x128xi32>
    %539 = arith.cmpi sge, %537, %538 : vector<1x128xi32>
    %c4_i32_211 = arith.constant 4 : i32
    %540 = vector.broadcast %c4_i32_211 : i32 to vector<1x128xi32>
    %541 = arith.addi %6, %540 : vector<1x128xi32>
    %c8_i32_212 = arith.constant 8 : i32
    %542 = vector.broadcast %c8_i32_212 : i32 to vector<1x128xi32>
    %543 = arith.cmpi slt, %541, %542 : vector<1x128xi32>
    %544 = arith.andi %539, %543 : vector<1x128xi1>
    %c-4_i32_213 = arith.constant -4 : i32
    %545 = vector.broadcast %c-4_i32_213 : i32 to vector<1x128xi32>
    %546 = arith.addi %2, %545 : vector<1x128xi32>
    %c0_i32_214 = arith.constant 0 : i32
    %547 = vector.broadcast %c0_i32_214 : i32 to vector<1x128xi32>
    %548 = arith.cmpi sge, %546, %547 : vector<1x128xi32>
    %549 = arith.andi %544, %548 : vector<1x128xi1>
    %c-4_i32_215 = arith.constant -4 : i32
    %550 = vector.broadcast %c-4_i32_215 : i32 to vector<1x128xi32>
    %551 = arith.addi %2, %550 : vector<1x128xi32>
    %c8_i32_216 = arith.constant 8 : i32
    %552 = vector.broadcast %c8_i32_216 : i32 to vector<1x128xi32>
    %553 = arith.cmpi slt, %551, %552 : vector<1x128xi32>
    %554 = arith.andi %549, %553 : vector<1x128xi1>
    %555 = arith.extui %554 : vector<1x128xi1> to vector<1x128xi32>
    %556 = arith.sitofp %555 : vector<1x128xi32> to vector<1x128xf32>
    %c4_i32_217 = arith.constant 4 : i32
    %557 = vector.broadcast %c4_i32_217 : i32 to vector<1x128xi32>
    %558 = arith.addi %6, %557 : vector<1x128xi32>
    %c0_i32_218 = arith.constant 0 : i32
    %559 = vector.broadcast %c0_i32_218 : i32 to vector<1x128xi32>
    %560 = arith.cmpi sge, %558, %559 : vector<1x128xi32>
    %c4_i32_219 = arith.constant 4 : i32
    %561 = vector.broadcast %c4_i32_219 : i32 to vector<1x128xi32>
    %562 = arith.addi %6, %561 : vector<1x128xi32>
    %c8_i32_220 = arith.constant 8 : i32
    %563 = vector.broadcast %c8_i32_220 : i32 to vector<1x128xi32>
    %564 = arith.cmpi slt, %562, %563 : vector<1x128xi32>
    %565 = arith.andi %560, %564 : vector<1x128xi1>
    %c0_i32_221 = arith.constant 0 : i32
    %566 = vector.broadcast %c0_i32_221 : i32 to vector<1x128xi32>
    %567 = arith.addi %2, %566 : vector<1x128xi32>
    %c0_i32_222 = arith.constant 0 : i32
    %568 = vector.broadcast %c0_i32_222 : i32 to vector<1x128xi32>
    %569 = arith.cmpi sge, %567, %568 : vector<1x128xi32>
    %570 = arith.andi %565, %569 : vector<1x128xi1>
    %c0_i32_223 = arith.constant 0 : i32
    %571 = vector.broadcast %c0_i32_223 : i32 to vector<1x128xi32>
    %572 = arith.addi %2, %571 : vector<1x128xi32>
    %c8_i32_224 = arith.constant 8 : i32
    %573 = vector.broadcast %c8_i32_224 : i32 to vector<1x128xi32>
    %574 = arith.cmpi slt, %572, %573 : vector<1x128xi32>
    %575 = arith.andi %570, %574 : vector<1x128xi1>
    %576 = arith.extui %575 : vector<1x128xi1> to vector<1x128xi32>
    %577 = arith.sitofp %576 : vector<1x128xi32> to vector<1x128xf32>
    %c4_i32_225 = arith.constant 4 : i32
    %578 = vector.broadcast %c4_i32_225 : i32 to vector<1x128xi32>
    %579 = arith.addi %6, %578 : vector<1x128xi32>
    %c0_i32_226 = arith.constant 0 : i32
    %580 = vector.broadcast %c0_i32_226 : i32 to vector<1x128xi32>
    %581 = arith.cmpi sge, %579, %580 : vector<1x128xi32>
    %c4_i32_227 = arith.constant 4 : i32
    %582 = vector.broadcast %c4_i32_227 : i32 to vector<1x128xi32>
    %583 = arith.addi %6, %582 : vector<1x128xi32>
    %c8_i32_228 = arith.constant 8 : i32
    %584 = vector.broadcast %c8_i32_228 : i32 to vector<1x128xi32>
    %585 = arith.cmpi slt, %583, %584 : vector<1x128xi32>
    %586 = arith.andi %581, %585 : vector<1x128xi1>
    %c4_i32_229 = arith.constant 4 : i32
    %587 = vector.broadcast %c4_i32_229 : i32 to vector<1x128xi32>
    %588 = arith.addi %2, %587 : vector<1x128xi32>
    %c0_i32_230 = arith.constant 0 : i32
    %589 = vector.broadcast %c0_i32_230 : i32 to vector<1x128xi32>
    %590 = arith.cmpi sge, %588, %589 : vector<1x128xi32>
    %591 = arith.andi %586, %590 : vector<1x128xi1>
    %c4_i32_231 = arith.constant 4 : i32
    %592 = vector.broadcast %c4_i32_231 : i32 to vector<1x128xi32>
    %593 = arith.addi %2, %592 : vector<1x128xi32>
    %c8_i32_232 = arith.constant 8 : i32
    %594 = vector.broadcast %c8_i32_232 : i32 to vector<1x128xi32>
    %595 = arith.cmpi slt, %593, %594 : vector<1x128xi32>
    %596 = arith.andi %591, %595 : vector<1x128xi1>
    %597 = arith.extui %596 : vector<1x128xi1> to vector<1x128xi32>
    %598 = arith.sitofp %597 : vector<1x128xi32> to vector<1x128xf32>
    %c1_i32_233 = arith.constant 1 : i32
    %599 = vector.broadcast %c1_i32_233 : i32 to vector<1x128xi32>
    %600 = arith.andi %6, %599 : vector<1x128xi32>
    %c0_i32_234 = arith.constant 0 : i32
    %601 = vector.broadcast %c0_i32_234 : i32 to vector<1x128xi32>
    %602 = arith.cmpi eq, %600, %601 : vector<1x128xi32>
    %c1_i32_235 = arith.constant 1 : i32
    %603 = vector.broadcast %c1_i32_235 : i32 to vector<1x128xi32>
    %604 = arith.andi %2, %603 : vector<1x128xi32>
    %c0_i32_236 = arith.constant 0 : i32
    %605 = vector.broadcast %c0_i32_236 : i32 to vector<1x128xi32>
    %606 = arith.cmpi eq, %604, %605 : vector<1x128xi32>
    %607 = arith.andi %602, %606 : vector<1x128xi1>
    %608 = arith.extui %607 : vector<1x128xi1> to vector<1x128xi32>
    %609 = arith.sitofp %608 : vector<1x128xi32> to vector<1x128xf32>
    %c3_i32_237 = arith.constant 3 : i32
    %610 = vector.broadcast %c3_i32_237 : i32 to vector<1x128xi32>
    %611 = arith.andi %6, %610 : vector<1x128xi32>
    %c0_i32_238 = arith.constant 0 : i32
    %612 = vector.broadcast %c0_i32_238 : i32 to vector<1x128xi32>
    %613 = arith.cmpi eq, %611, %612 : vector<1x128xi32>
    %c3_i32_239 = arith.constant 3 : i32
    %614 = vector.broadcast %c3_i32_239 : i32 to vector<1x128xi32>
    %615 = arith.andi %2, %614 : vector<1x128xi32>
    %c0_i32_240 = arith.constant 0 : i32
    %616 = vector.broadcast %c0_i32_240 : i32 to vector<1x128xi32>
    %617 = arith.cmpi eq, %615, %616 : vector<1x128xi32>
    %618 = arith.andi %613, %617 : vector<1x128xi1>
    %619 = arith.extui %618 : vector<1x128xi1> to vector<1x128xi32>
    %620 = arith.sitofp %619 : vector<1x128xi32> to vector<1x128xf32>
    %c9_i32_241 = arith.constant 9 : i32
    %621 = tpu.dynamic_rotate %94 by %c9_i32_241 dim 1 : vector<128x128xf32>, i32 -> vector<128x128xf32>
    %622 = vector.broadcast %115 : vector<1x128xf32> to vector<128x128xf32>
    %623 = arith.mulf %621, %622 : vector<128x128xf32>
    %c0_242 = arith.constant 0 : index
    %c0_243 = arith.constant 0 : index
    %c0_244 = arith.constant 0 : index
    %624 = vector.load %arg4[%c0_242, %c0_243, %c0_244] : memref<9x64x128xbf16, #tpu.memory_space<vmem>>, vector<1x64x128xbf16>
    %625 = vector.shape_cast %624 : vector<1x64x128xbf16> to vector<64x128xbf16>
    %626 = arith.truncf %623 : vector<128x128xf32> to vector<128x128xbf16>
    %cst_245 = arith.constant dense<0.000000e+00> : vector<64x128xf32>
    %627 = tpu.matmul %625, %626, %cst_245 {dimension_numbers = #tpu.dot_dimension_numbers<[1], [0], [0], [1], [0, 0, 1, 1], [], []>} : vector<64x128xbf16>, vector<128x128xbf16>, vector<64x128xf32> -> vector<64x128xf32>
    %c8_i32_246 = arith.constant 8 : i32
    %628 = tpu.dynamic_rotate %94 by %c8_i32_246 dim 1 : vector<128x128xf32>, i32 -> vector<128x128xf32>
    %629 = vector.broadcast %136 : vector<1x128xf32> to vector<128x128xf32>
    %630 = arith.mulf %628, %629 : vector<128x128xf32>
    %c1_247 = arith.constant 1 : index
    %c0_248 = arith.constant 0 : index
    %c0_249 = arith.constant 0 : index
    %631 = vector.load %arg4[%c1_247, %c0_248, %c0_249] : memref<9x64x128xbf16, #tpu.memory_space<vmem>>, vector<1x64x128xbf16>
    %632 = vector.shape_cast %631 : vector<1x64x128xbf16> to vector<64x128xbf16>
    %633 = arith.truncf %630 : vector<128x128xf32> to vector<128x128xbf16>
    %cst_250 = arith.constant dense<0.000000e+00> : vector<64x128xf32>
    %634 = tpu.matmul %632, %633, %cst_250 {dimension_numbers = #tpu.dot_dimension_numbers<[1], [0], [0], [1], [0, 0, 1, 1], [], []>} : vector<64x128xbf16>, vector<128x128xbf16>, vector<64x128xf32> -> vector<64x128xf32>
    %635 = arith.addf %627, %634 : vector<64x128xf32>
    %c7_i32_251 = arith.constant 7 : i32
    %636 = tpu.dynamic_rotate %94 by %c7_i32_251 dim 1 : vector<128x128xf32>, i32 -> vector<128x128xf32>
    %637 = vector.broadcast %157 : vector<1x128xf32> to vector<128x128xf32>
    %638 = arith.mulf %636, %637 : vector<128x128xf32>
    %c2_252 = arith.constant 2 : index
    %c0_253 = arith.constant 0 : index
    %c0_254 = arith.constant 0 : index
    %639 = vector.load %arg4[%c2_252, %c0_253, %c0_254] : memref<9x64x128xbf16, #tpu.memory_space<vmem>>, vector<1x64x128xbf16>
    %640 = vector.shape_cast %639 : vector<1x64x128xbf16> to vector<64x128xbf16>
    %641 = arith.truncf %638 : vector<128x128xf32> to vector<128x128xbf16>
    %cst_255 = arith.constant dense<0.000000e+00> : vector<64x128xf32>
    %642 = tpu.matmul %640, %641, %cst_255 {dimension_numbers = #tpu.dot_dimension_numbers<[1], [0], [0], [1], [0, 0, 1, 1], [], []>} : vector<64x128xbf16>, vector<128x128xbf16>, vector<64x128xf32> -> vector<64x128xf32>
    %643 = arith.addf %635, %642 : vector<64x128xf32>
    %c1_i32_256 = arith.constant 1 : i32
    %644 = tpu.dynamic_rotate %94 by %c1_i32_256 dim 1 : vector<128x128xf32>, i32 -> vector<128x128xf32>
    %645 = vector.broadcast %178 : vector<1x128xf32> to vector<128x128xf32>
    %646 = arith.mulf %644, %645 : vector<128x128xf32>
    %c3_257 = arith.constant 3 : index
    %c0_258 = arith.constant 0 : index
    %c0_259 = arith.constant 0 : index
    %647 = vector.load %arg4[%c3_257, %c0_258, %c0_259] : memref<9x64x128xbf16, #tpu.memory_space<vmem>>, vector<1x64x128xbf16>
    %648 = vector.shape_cast %647 : vector<1x64x128xbf16> to vector<64x128xbf16>
    %649 = arith.truncf %646 : vector<128x128xf32> to vector<128x128xbf16>
    %cst_260 = arith.constant dense<0.000000e+00> : vector<64x128xf32>
    %650 = tpu.matmul %648, %649, %cst_260 {dimension_numbers = #tpu.dot_dimension_numbers<[1], [0], [0], [1], [0, 0, 1, 1], [], []>} : vector<64x128xbf16>, vector<128x128xbf16>, vector<64x128xf32> -> vector<64x128xf32>
    %651 = arith.addf %643, %650 : vector<64x128xf32>
    %c4_261 = arith.constant 4 : index
    %c0_262 = arith.constant 0 : index
    %c0_263 = arith.constant 0 : index
    %652 = vector.load %arg4[%c4_261, %c0_262, %c0_263] : memref<9x64x128xbf16, #tpu.memory_space<vmem>>, vector<1x64x128xbf16>
    %653 = vector.shape_cast %652 : vector<1x64x128xbf16> to vector<64x128xbf16>
    %654 = arith.truncf %94 : vector<128x128xf32> to vector<128x128xbf16>
    %cst_264 = arith.constant dense<0.000000e+00> : vector<64x128xf32>
    %655 = tpu.matmul %653, %654, %cst_264 {dimension_numbers = #tpu.dot_dimension_numbers<[1], [0], [0], [1], [0, 0, 1, 1], [], []>} : vector<64x128xbf16>, vector<128x128xbf16>, vector<64x128xf32> -> vector<64x128xf32>
    %656 = arith.addf %651, %655 : vector<64x128xf32>
    %c127_i32 = arith.constant 127 : i32
    %657 = tpu.dynamic_rotate %94 by %c127_i32 dim 1 : vector<128x128xf32>, i32 -> vector<128x128xf32>
    %658 = vector.broadcast %199 : vector<1x128xf32> to vector<128x128xf32>
    %659 = arith.mulf %657, %658 : vector<128x128xf32>
    %c5_265 = arith.constant 5 : index
    %c0_266 = arith.constant 0 : index
    %c0_267 = arith.constant 0 : index
    %660 = vector.load %arg4[%c5_265, %c0_266, %c0_267] : memref<9x64x128xbf16, #tpu.memory_space<vmem>>, vector<1x64x128xbf16>
    %661 = vector.shape_cast %660 : vector<1x64x128xbf16> to vector<64x128xbf16>
    %662 = arith.truncf %659 : vector<128x128xf32> to vector<128x128xbf16>
    %cst_268 = arith.constant dense<0.000000e+00> : vector<64x128xf32>
    %663 = tpu.matmul %661, %662, %cst_268 {dimension_numbers = #tpu.dot_dimension_numbers<[1], [0], [0], [1], [0, 0, 1, 1], [], []>} : vector<64x128xbf16>, vector<128x128xbf16>, vector<64x128xf32> -> vector<64x128xf32>
    %664 = arith.addf %656, %663 : vector<64x128xf32>
    %c121_i32 = arith.constant 121 : i32
    %665 = tpu.dynamic_rotate %94 by %c121_i32 dim 1 : vector<128x128xf32>, i32 -> vector<128x128xf32>
    %666 = vector.broadcast %220 : vector<1x128xf32> to vector<128x128xf32>
    %667 = arith.mulf %665, %666 : vector<128x128xf32>
    %c6_269 = arith.constant 6 : index
    %c0_270 = arith.constant 0 : index
    %c0_271 = arith.constant 0 : index
    %668 = vector.load %arg4[%c6_269, %c0_270, %c0_271] : memref<9x64x128xbf16, #tpu.memory_space<vmem>>, vector<1x64x128xbf16>
    %669 = vector.shape_cast %668 : vector<1x64x128xbf16> to vector<64x128xbf16>
    %670 = arith.truncf %667 : vector<128x128xf32> to vector<128x128xbf16>
    %cst_272 = arith.constant dense<0.000000e+00> : vector<64x128xf32>
    %671 = tpu.matmul %669, %670, %cst_272 {dimension_numbers = #tpu.dot_dimension_numbers<[1], [0], [0], [1], [0, 0, 1, 1], [], []>} : vector<64x128xbf16>, vector<128x128xbf16>, vector<64x128xf32> -> vector<64x128xf32>
    %672 = arith.addf %664, %671 : vector<64x128xf32>
    %c120_i32 = arith.constant 120 : i32
    %673 = tpu.dynamic_rotate %94 by %c120_i32 dim 1 : vector<128x128xf32>, i32 -> vector<128x128xf32>
    %674 = vector.broadcast %241 : vector<1x128xf32> to vector<128x128xf32>
    %675 = arith.mulf %673, %674 : vector<128x128xf32>
    %c7_273 = arith.constant 7 : index
    %c0_274 = arith.constant 0 : index
    %c0_275 = arith.constant 0 : index
    %676 = vector.load %arg4[%c7_273, %c0_274, %c0_275] : memref<9x64x128xbf16, #tpu.memory_space<vmem>>, vector<1x64x128xbf16>
    %677 = vector.shape_cast %676 : vector<1x64x128xbf16> to vector<64x128xbf16>
    %678 = arith.truncf %675 : vector<128x128xf32> to vector<128x128xbf16>
    %cst_276 = arith.constant dense<0.000000e+00> : vector<64x128xf32>
    %679 = tpu.matmul %677, %678, %cst_276 {dimension_numbers = #tpu.dot_dimension_numbers<[1], [0], [0], [1], [0, 0, 1, 1], [], []>} : vector<64x128xbf16>, vector<128x128xbf16>, vector<64x128xf32> -> vector<64x128xf32>
    %680 = arith.addf %672, %679 : vector<64x128xf32>
    %c119_i32 = arith.constant 119 : i32
    %681 = tpu.dynamic_rotate %94 by %c119_i32 dim 1 : vector<128x128xf32>, i32 -> vector<128x128xf32>
    %682 = vector.broadcast %262 : vector<1x128xf32> to vector<128x128xf32>
    %683 = arith.mulf %681, %682 : vector<128x128xf32>
    %c8_277 = arith.constant 8 : index
    %c0_278 = arith.constant 0 : index
    %c0_279 = arith.constant 0 : index
    %684 = vector.load %arg4[%c8_277, %c0_278, %c0_279] : memref<9x64x128xbf16, #tpu.memory_space<vmem>>, vector<1x64x128xbf16>
    %685 = vector.shape_cast %684 : vector<1x64x128xbf16> to vector<64x128xbf16>
    %686 = arith.truncf %683 : vector<128x128xf32> to vector<128x128xbf16>
    %cst_280 = arith.constant dense<0.000000e+00> : vector<64x128xf32>
    %687 = tpu.matmul %685, %686, %cst_280 {dimension_numbers = #tpu.dot_dimension_numbers<[1], [0], [0], [1], [0, 0, 1, 1], [], []>} : vector<64x128xbf16>, vector<128x128xbf16>, vector<64x128xf32> -> vector<64x128xf32>
    %688 = arith.addf %680, %687 : vector<64x128xf32>
    %689 = vector.broadcast %609 : vector<1x128xf32> to vector<64x128xf32>
    %690 = arith.mulf %688, %689 : vector<64x128xf32>
    %cst_281 = arith.constant dense<0.000000e+00> : vector<64xf32>
    %691 = vector.multi_reduction <add>, %690, %cst_281 [1] : vector<64x128xf32> to vector<64xf32>
    %692 = vector.shape_cast %691 : vector<64xf32> to vector<64x1xf32>
    %cst_282 = arith.constant 3.125000e-02 : f32
    %693 = vector.broadcast %cst_282 : f32 to vector<64x1xf32>
    %694 = arith.mulf %692, %693 : vector<64x1xf32>
    %695 = arith.mulf %690, %690 : vector<64x128xf32>
    %cst_283 = arith.constant dense<0.000000e+00> : vector<64xf32>
    %696 = vector.multi_reduction <add>, %695, %cst_283 [1] : vector<64x128xf32> to vector<64xf32>
    %697 = vector.shape_cast %696 : vector<64xf32> to vector<64x1xf32>
    %cst_284 = arith.constant 3.125000e-02 : f32
    %698 = vector.broadcast %cst_284 : f32 to vector<64x1xf32>
    %699 = arith.mulf %697, %698 : vector<64x1xf32>
    %700 = arith.mulf %694, %694 : vector<64x1xf32>
    %701 = arith.subf %699, %700 : vector<64x1xf32>
    %cst_285 = arith.constant 0.000000e+00 : f32
    %702 = vector.broadcast %cst_285 : f32 to vector<64x1xf32>
    %703 = arith.maximumf %701, %702 : vector<64x1xf32>
    %704 = vector.broadcast %694 : vector<64x1xf32> to vector<64x128xf32>
    %705 = arith.subf %688, %704 : vector<64x128xf32>
    %cst_286 = arith.constant 9.99999974E-6 : f32
    %706 = vector.broadcast %cst_286 : f32 to vector<64x1xf32>
    %707 = arith.addf %703, %706 : vector<64x1xf32>
    %708 = math.rsqrt %707 : vector<64x1xf32>
    %c0_287 = arith.constant 0 : index
    %c0_288 = arith.constant 0 : index
    %709 = vector.load %arg5[%c0_287, %c0_288] : memref<64x1xf32, #tpu.memory_space<vmem>>, vector<64x1xf32>
    %710 = arith.mulf %708, %709 : vector<64x1xf32>
    %711 = vector.broadcast %710 : vector<64x1xf32> to vector<64x128xf32>
    %712 = arith.mulf %705, %711 : vector<64x128xf32>
    %c0_289 = arith.constant 0 : index
    %c0_290 = arith.constant 0 : index
    %713 = vector.load %arg6[%c0_289, %c0_290] : memref<64x1xf32, #tpu.memory_space<vmem>>, vector<64x1xf32>
    %714 = vector.broadcast %713 : vector<64x1xf32> to vector<64x128xf32>
    %715 = arith.addf %712, %714 : vector<64x128xf32>
    %cst_291 = arith.constant 0.000000e+00 : f32
    %716 = vector.broadcast %cst_291 : f32 to vector<64x128xf32>
    %717 = arith.cmpf ogt, %715, %716 : vector<64x128xf32>
    %cst_292 = arith.constant 2.000000e-01 : f32
    %718 = vector.broadcast %cst_292 : f32 to vector<64x128xf32>
    %719 = arith.mulf %718, %715 : vector<64x128xf32>
    %720 = arith.select %717, %715, %719 : vector<64x128xi1>, vector<64x128xf32>
    %c18_i32 = arith.constant 18 : i32
    %721 = tpu.dynamic_rotate %720 by %c18_i32 dim 1 : vector<64x128xf32>, i32 -> vector<64x128xf32>
    %722 = vector.broadcast %283 : vector<1x128xf32> to vector<64x128xf32>
    %723 = arith.mulf %721, %722 : vector<64x128xf32>
    %c0_293 = arith.constant 0 : index
    %c0_294 = arith.constant 0 : index
    %c0_295 = arith.constant 0 : index
    %724 = vector.load %arg7[%c0_293, %c0_294, %c0_295] : memref<9x32x64xbf16, #tpu.memory_space<vmem>>, vector<1x32x64xbf16>
    %725 = vector.shape_cast %724 : vector<1x32x64xbf16> to vector<32x64xbf16>
    %726 = arith.truncf %723 : vector<64x128xf32> to vector<64x128xbf16>
    %cst_296 = arith.constant dense<0.000000e+00> : vector<32x128xf32>
    %727 = tpu.matmul %725, %726, %cst_296 {dimension_numbers = #tpu.dot_dimension_numbers<[1], [0], [0], [1], [0, 0, 1, 1], [], []>} : vector<32x64xbf16>, vector<64x128xbf16>, vector<32x128xf32> -> vector<32x128xf32>
    %c16_i32 = arith.constant 16 : i32
    %728 = tpu.dynamic_rotate %720 by %c16_i32 dim 1 : vector<64x128xf32>, i32 -> vector<64x128xf32>
    %729 = vector.broadcast %304 : vector<1x128xf32> to vector<64x128xf32>
    %730 = arith.mulf %728, %729 : vector<64x128xf32>
    %c1_297 = arith.constant 1 : index
    %c0_298 = arith.constant 0 : index
    %c0_299 = arith.constant 0 : index
    %731 = vector.load %arg7[%c1_297, %c0_298, %c0_299] : memref<9x32x64xbf16, #tpu.memory_space<vmem>>, vector<1x32x64xbf16>
    %732 = vector.shape_cast %731 : vector<1x32x64xbf16> to vector<32x64xbf16>
    %733 = arith.truncf %730 : vector<64x128xf32> to vector<64x128xbf16>
    %cst_300 = arith.constant dense<0.000000e+00> : vector<32x128xf32>
    %734 = tpu.matmul %732, %733, %cst_300 {dimension_numbers = #tpu.dot_dimension_numbers<[1], [0], [0], [1], [0, 0, 1, 1], [], []>} : vector<32x64xbf16>, vector<64x128xbf16>, vector<32x128xf32> -> vector<32x128xf32>
    %735 = arith.addf %727, %734 : vector<32x128xf32>
    %c14_i32 = arith.constant 14 : i32
    %736 = tpu.dynamic_rotate %720 by %c14_i32 dim 1 : vector<64x128xf32>, i32 -> vector<64x128xf32>
    %737 = vector.broadcast %325 : vector<1x128xf32> to vector<64x128xf32>
    %738 = arith.mulf %736, %737 : vector<64x128xf32>
    %c2_301 = arith.constant 2 : index
    %c0_302 = arith.constant 0 : index
    %c0_303 = arith.constant 0 : index
    %739 = vector.load %arg7[%c2_301, %c0_302, %c0_303] : memref<9x32x64xbf16, #tpu.memory_space<vmem>>, vector<1x32x64xbf16>
    %740 = vector.shape_cast %739 : vector<1x32x64xbf16> to vector<32x64xbf16>
    %741 = arith.truncf %738 : vector<64x128xf32> to vector<64x128xbf16>
    %cst_304 = arith.constant dense<0.000000e+00> : vector<32x128xf32>
    %742 = tpu.matmul %740, %741, %cst_304 {dimension_numbers = #tpu.dot_dimension_numbers<[1], [0], [0], [1], [0, 0, 1, 1], [], []>} : vector<32x64xbf16>, vector<64x128xbf16>, vector<32x128xf32> -> vector<32x128xf32>
    %743 = arith.addf %735, %742 : vector<32x128xf32>
    %c2_i32_305 = arith.constant 2 : i32
    %744 = tpu.dynamic_rotate %720 by %c2_i32_305 dim 1 : vector<64x128xf32>, i32 -> vector<64x128xf32>
    %745 = vector.broadcast %346 : vector<1x128xf32> to vector<64x128xf32>
    %746 = arith.mulf %744, %745 : vector<64x128xf32>
    %c3_306 = arith.constant 3 : index
    %c0_307 = arith.constant 0 : index
    %c0_308 = arith.constant 0 : index
    %747 = vector.load %arg7[%c3_306, %c0_307, %c0_308] : memref<9x32x64xbf16, #tpu.memory_space<vmem>>, vector<1x32x64xbf16>
    %748 = vector.shape_cast %747 : vector<1x32x64xbf16> to vector<32x64xbf16>
    %749 = arith.truncf %746 : vector<64x128xf32> to vector<64x128xbf16>
    %cst_309 = arith.constant dense<0.000000e+00> : vector<32x128xf32>
    %750 = tpu.matmul %748, %749, %cst_309 {dimension_numbers = #tpu.dot_dimension_numbers<[1], [0], [0], [1], [0, 0, 1, 1], [], []>} : vector<32x64xbf16>, vector<64x128xbf16>, vector<32x128xf32> -> vector<32x128xf32>
    %751 = arith.addf %743, %750 : vector<32x128xf32>
    %c4_310 = arith.constant 4 : index
    %c0_311 = arith.constant 0 : index
    %c0_312 = arith.constant 0 : index
    %752 = vector.load %arg7[%c4_310, %c0_311, %c0_312] : memref<9x32x64xbf16, #tpu.memory_space<vmem>>, vector<1x32x64xbf16>
    %753 = vector.shape_cast %752 : vector<1x32x64xbf16> to vector<32x64xbf16>
    %754 = arith.truncf %720 : vector<64x128xf32> to vector<64x128xbf16>
    %cst_313 = arith.constant dense<0.000000e+00> : vector<32x128xf32>
    %755 = tpu.matmul %753, %754, %cst_313 {dimension_numbers = #tpu.dot_dimension_numbers<[1], [0], [0], [1], [0, 0, 1, 1], [], []>} : vector<32x64xbf16>, vector<64x128xbf16>, vector<32x128xf32> -> vector<32x128xf32>
    %756 = arith.addf %751, %755 : vector<32x128xf32>
    %c126_i32 = arith.constant 126 : i32
    %757 = tpu.dynamic_rotate %720 by %c126_i32 dim 1 : vector<64x128xf32>, i32 -> vector<64x128xf32>
    %758 = vector.broadcast %367 : vector<1x128xf32> to vector<64x128xf32>
    %759 = arith.mulf %757, %758 : vector<64x128xf32>
    %c5_314 = arith.constant 5 : index
    %c0_315 = arith.constant 0 : index
    %c0_316 = arith.constant 0 : index
    %760 = vector.load %arg7[%c5_314, %c0_315, %c0_316] : memref<9x32x64xbf16, #tpu.memory_space<vmem>>, vector<1x32x64xbf16>
    %761 = vector.shape_cast %760 : vector<1x32x64xbf16> to vector<32x64xbf16>
    %762 = arith.truncf %759 : vector<64x128xf32> to vector<64x128xbf16>
    %cst_317 = arith.constant dense<0.000000e+00> : vector<32x128xf32>
    %763 = tpu.matmul %761, %762, %cst_317 {dimension_numbers = #tpu.dot_dimension_numbers<[1], [0], [0], [1], [0, 0, 1, 1], [], []>} : vector<32x64xbf16>, vector<64x128xbf16>, vector<32x128xf32> -> vector<32x128xf32>
    %764 = arith.addf %756, %763 : vector<32x128xf32>
    %c114_i32 = arith.constant 114 : i32
    %765 = tpu.dynamic_rotate %720 by %c114_i32 dim 1 : vector<64x128xf32>, i32 -> vector<64x128xf32>
    %766 = vector.broadcast %388 : vector<1x128xf32> to vector<64x128xf32>
    %767 = arith.mulf %765, %766 : vector<64x128xf32>
    %c6_318 = arith.constant 6 : index
    %c0_319 = arith.constant 0 : index
    %c0_320 = arith.constant 0 : index
    %768 = vector.load %arg7[%c6_318, %c0_319, %c0_320] : memref<9x32x64xbf16, #tpu.memory_space<vmem>>, vector<1x32x64xbf16>
    %769 = vector.shape_cast %768 : vector<1x32x64xbf16> to vector<32x64xbf16>
    %770 = arith.truncf %767 : vector<64x128xf32> to vector<64x128xbf16>
    %cst_321 = arith.constant dense<0.000000e+00> : vector<32x128xf32>
    %771 = tpu.matmul %769, %770, %cst_321 {dimension_numbers = #tpu.dot_dimension_numbers<[1], [0], [0], [1], [0, 0, 1, 1], [], []>} : vector<32x64xbf16>, vector<64x128xbf16>, vector<32x128xf32> -> vector<32x128xf32>
    %772 = arith.addf %764, %771 : vector<32x128xf32>
    %c112_i32 = arith.constant 112 : i32
    %773 = tpu.dynamic_rotate %720 by %c112_i32 dim 1 : vector<64x128xf32>, i32 -> vector<64x128xf32>
    %774 = vector.broadcast %409 : vector<1x128xf32> to vector<64x128xf32>
    %775 = arith.mulf %773, %774 : vector<64x128xf32>
    %c7_322 = arith.constant 7 : index
    %c0_323 = arith.constant 0 : index
    %c0_324 = arith.constant 0 : index
    %776 = vector.load %arg7[%c7_322, %c0_323, %c0_324] : memref<9x32x64xbf16, #tpu.memory_space<vmem>>, vector<1x32x64xbf16>
    %777 = vector.shape_cast %776 : vector<1x32x64xbf16> to vector<32x64xbf16>
    %778 = arith.truncf %775 : vector<64x128xf32> to vector<64x128xbf16>
    %cst_325 = arith.constant dense<0.000000e+00> : vector<32x128xf32>
    %779 = tpu.matmul %777, %778, %cst_325 {dimension_numbers = #tpu.dot_dimension_numbers<[1], [0], [0], [1], [0, 0, 1, 1], [], []>} : vector<32x64xbf16>, vector<64x128xbf16>, vector<32x128xf32> -> vector<32x128xf32>
    %780 = arith.addf %772, %779 : vector<32x128xf32>
    %c110_i32 = arith.constant 110 : i32
    %781 = tpu.dynamic_rotate %720 by %c110_i32 dim 1 : vector<64x128xf32>, i32 -> vector<64x128xf32>
    %782 = vector.broadcast %430 : vector<1x128xf32> to vector<64x128xf32>
    %783 = arith.mulf %781, %782 : vector<64x128xf32>
    %c8_326 = arith.constant 8 : index
    %c0_327 = arith.constant 0 : index
    %c0_328 = arith.constant 0 : index
    %784 = vector.load %arg7[%c8_326, %c0_327, %c0_328] : memref<9x32x64xbf16, #tpu.memory_space<vmem>>, vector<1x32x64xbf16>
    %785 = vector.shape_cast %784 : vector<1x32x64xbf16> to vector<32x64xbf16>
    %786 = arith.truncf %783 : vector<64x128xf32> to vector<64x128xbf16>
    %cst_329 = arith.constant dense<0.000000e+00> : vector<32x128xf32>
    %787 = tpu.matmul %785, %786, %cst_329 {dimension_numbers = #tpu.dot_dimension_numbers<[1], [0], [0], [1], [0, 0, 1, 1], [], []>} : vector<32x64xbf16>, vector<64x128xbf16>, vector<32x128xf32> -> vector<32x128xf32>
    %788 = arith.addf %780, %787 : vector<32x128xf32>
    %789 = vector.broadcast %620 : vector<1x128xf32> to vector<32x128xf32>
    %790 = arith.mulf %788, %789 : vector<32x128xf32>
    %cst_330 = arith.constant dense<0.000000e+00> : vector<32xf32>
    %791 = vector.multi_reduction <add>, %790, %cst_330 [1] : vector<32x128xf32> to vector<32xf32>
    %792 = vector.shape_cast %791 : vector<32xf32> to vector<32x1xf32>
    %cst_331 = arith.constant 1.250000e-01 : f32
    %793 = vector.broadcast %cst_331 : f32 to vector<32x1xf32>
    %794 = arith.mulf %792, %793 : vector<32x1xf32>
    %795 = arith.mulf %790, %790 : vector<32x128xf32>
    %cst_332 = arith.constant dense<0.000000e+00> : vector<32xf32>
    %796 = vector.multi_reduction <add>, %795, %cst_332 [1] : vector<32x128xf32> to vector<32xf32>
    %797 = vector.shape_cast %796 : vector<32xf32> to vector<32x1xf32>
    %cst_333 = arith.constant 1.250000e-01 : f32
    %798 = vector.broadcast %cst_333 : f32 to vector<32x1xf32>
    %799 = arith.mulf %797, %798 : vector<32x1xf32>
    %800 = arith.mulf %794, %794 : vector<32x1xf32>
    %801 = arith.subf %799, %800 : vector<32x1xf32>
    %cst_334 = arith.constant 0.000000e+00 : f32
    %802 = vector.broadcast %cst_334 : f32 to vector<32x1xf32>
    %803 = arith.maximumf %801, %802 : vector<32x1xf32>
    %804 = vector.broadcast %794 : vector<32x1xf32> to vector<32x128xf32>
    %805 = arith.subf %788, %804 : vector<32x128xf32>
    %cst_335 = arith.constant 9.99999974E-6 : f32
    %806 = vector.broadcast %cst_335 : f32 to vector<32x1xf32>
    %807 = arith.addf %803, %806 : vector<32x1xf32>
    %808 = math.rsqrt %807 : vector<32x1xf32>
    %c0_336 = arith.constant 0 : index
    %c0_337 = arith.constant 0 : index
    %809 = vector.load %arg8[%c0_336, %c0_337] : memref<32x1xf32, #tpu.memory_space<vmem>>, vector<32x1xf32>
    %810 = arith.mulf %808, %809 : vector<32x1xf32>
    %811 = vector.broadcast %810 : vector<32x1xf32> to vector<32x128xf32>
    %812 = arith.mulf %805, %811 : vector<32x128xf32>
    %c0_338 = arith.constant 0 : index
    %c0_339 = arith.constant 0 : index
    %813 = vector.load %arg9[%c0_338, %c0_339] : memref<32x1xf32, #tpu.memory_space<vmem>>, vector<32x1xf32>
    %814 = vector.broadcast %813 : vector<32x1xf32> to vector<32x128xf32>
    %815 = arith.addf %812, %814 : vector<32x128xf32>
    %cst_340 = arith.constant 0.000000e+00 : f32
    %816 = vector.broadcast %cst_340 : f32 to vector<32x128xf32>
    %817 = arith.cmpf ogt, %815, %816 : vector<32x128xf32>
    %cst_341 = arith.constant 2.000000e-01 : f32
    %818 = vector.broadcast %cst_341 : f32 to vector<32x128xf32>
    %819 = arith.mulf %818, %815 : vector<32x128xf32>
    %820 = arith.select %817, %815, %819 : vector<32x128xi1>, vector<32x128xf32>
    %c36_i32 = arith.constant 36 : i32
    %821 = tpu.dynamic_rotate %820 by %c36_i32 dim 1 : vector<32x128xf32>, i32 -> vector<32x128xf32>
    %822 = vector.broadcast %451 : vector<1x128xf32> to vector<32x128xf32>
    %823 = arith.mulf %821, %822 : vector<32x128xf32>
    %c0_342 = arith.constant 0 : index
    %c0_343 = arith.constant 0 : index
    %c0_344 = arith.constant 0 : index
    %824 = vector.load %arg10[%c0_342, %c0_343, %c0_344] : memref<9x16x32xbf16, #tpu.memory_space<vmem>>, vector<1x16x32xbf16>
    %825 = vector.shape_cast %824 : vector<1x16x32xbf16> to vector<16x32xbf16>
    %826 = arith.truncf %823 : vector<32x128xf32> to vector<32x128xbf16>
    %cst_345 = arith.constant dense<0.000000e+00> : vector<16x128xf32>
    %827 = tpu.matmul %825, %826, %cst_345 {dimension_numbers = #tpu.dot_dimension_numbers<[1], [0], [0], [1], [0, 0, 1, 1], [], []>} : vector<16x32xbf16>, vector<32x128xbf16>, vector<16x128xf32> -> vector<16x128xf32>
    %c32_i32 = arith.constant 32 : i32
    %828 = tpu.dynamic_rotate %820 by %c32_i32 dim 1 : vector<32x128xf32>, i32 -> vector<32x128xf32>
    %829 = vector.broadcast %472 : vector<1x128xf32> to vector<32x128xf32>
    %830 = arith.mulf %828, %829 : vector<32x128xf32>
    %c1_346 = arith.constant 1 : index
    %c0_347 = arith.constant 0 : index
    %c0_348 = arith.constant 0 : index
    %831 = vector.load %arg10[%c1_346, %c0_347, %c0_348] : memref<9x16x32xbf16, #tpu.memory_space<vmem>>, vector<1x16x32xbf16>
    %832 = vector.shape_cast %831 : vector<1x16x32xbf16> to vector<16x32xbf16>
    %833 = arith.truncf %830 : vector<32x128xf32> to vector<32x128xbf16>
    %cst_349 = arith.constant dense<0.000000e+00> : vector<16x128xf32>
    %834 = tpu.matmul %832, %833, %cst_349 {dimension_numbers = #tpu.dot_dimension_numbers<[1], [0], [0], [1], [0, 0, 1, 1], [], []>} : vector<16x32xbf16>, vector<32x128xbf16>, vector<16x128xf32> -> vector<16x128xf32>
    %835 = arith.addf %827, %834 : vector<16x128xf32>
    %c28_i32 = arith.constant 28 : i32
    %836 = tpu.dynamic_rotate %820 by %c28_i32 dim 1 : vector<32x128xf32>, i32 -> vector<32x128xf32>
    %837 = vector.broadcast %493 : vector<1x128xf32> to vector<32x128xf32>
    %838 = arith.mulf %836, %837 : vector<32x128xf32>
    %c2_350 = arith.constant 2 : index
    %c0_351 = arith.constant 0 : index
    %c0_352 = arith.constant 0 : index
    %839 = vector.load %arg10[%c2_350, %c0_351, %c0_352] : memref<9x16x32xbf16, #tpu.memory_space<vmem>>, vector<1x16x32xbf16>
    %840 = vector.shape_cast %839 : vector<1x16x32xbf16> to vector<16x32xbf16>
    %841 = arith.truncf %838 : vector<32x128xf32> to vector<32x128xbf16>
    %cst_353 = arith.constant dense<0.000000e+00> : vector<16x128xf32>
    %842 = tpu.matmul %840, %841, %cst_353 {dimension_numbers = #tpu.dot_dimension_numbers<[1], [0], [0], [1], [0, 0, 1, 1], [], []>} : vector<16x32xbf16>, vector<32x128xbf16>, vector<16x128xf32> -> vector<16x128xf32>
    %843 = arith.addf %835, %842 : vector<16x128xf32>
    %c4_i32_354 = arith.constant 4 : i32
    %844 = tpu.dynamic_rotate %820 by %c4_i32_354 dim 1 : vector<32x128xf32>, i32 -> vector<32x128xf32>
    %845 = vector.broadcast %514 : vector<1x128xf32> to vector<32x128xf32>
    %846 = arith.mulf %844, %845 : vector<32x128xf32>
    %c3_355 = arith.constant 3 : index
    %c0_356 = arith.constant 0 : index
    %c0_357 = arith.constant 0 : index
    %847 = vector.load %arg10[%c3_355, %c0_356, %c0_357] : memref<9x16x32xbf16, #tpu.memory_space<vmem>>, vector<1x16x32xbf16>
    %848 = vector.shape_cast %847 : vector<1x16x32xbf16> to vector<16x32xbf16>
    %849 = arith.truncf %846 : vector<32x128xf32> to vector<32x128xbf16>
    %cst_358 = arith.constant dense<0.000000e+00> : vector<16x128xf32>
    %850 = tpu.matmul %848, %849, %cst_358 {dimension_numbers = #tpu.dot_dimension_numbers<[1], [0], [0], [1], [0, 0, 1, 1], [], []>} : vector<16x32xbf16>, vector<32x128xbf16>, vector<16x128xf32> -> vector<16x128xf32>
    %851 = arith.addf %843, %850 : vector<16x128xf32>
    %c4_359 = arith.constant 4 : index
    %c0_360 = arith.constant 0 : index
    %c0_361 = arith.constant 0 : index
    %852 = vector.load %arg10[%c4_359, %c0_360, %c0_361] : memref<9x16x32xbf16, #tpu.memory_space<vmem>>, vector<1x16x32xbf16>
    %853 = vector.shape_cast %852 : vector<1x16x32xbf16> to vector<16x32xbf16>
    %854 = arith.truncf %820 : vector<32x128xf32> to vector<32x128xbf16>
    %cst_362 = arith.constant dense<0.000000e+00> : vector<16x128xf32>
    %855 = tpu.matmul %853, %854, %cst_362 {dimension_numbers = #tpu.dot_dimension_numbers<[1], [0], [0], [1], [0, 0, 1, 1], [], []>} : vector<16x32xbf16>, vector<32x128xbf16>, vector<16x128xf32> -> vector<16x128xf32>
    %856 = arith.addf %851, %855 : vector<16x128xf32>
    %c124_i32 = arith.constant 124 : i32
    %857 = tpu.dynamic_rotate %820 by %c124_i32 dim 1 : vector<32x128xf32>, i32 -> vector<32x128xf32>
    %858 = vector.broadcast %535 : vector<1x128xf32> to vector<32x128xf32>
    %859 = arith.mulf %857, %858 : vector<32x128xf32>
    %c5_363 = arith.constant 5 : index
    %c0_364 = arith.constant 0 : index
    %c0_365 = arith.constant 0 : index
    %860 = vector.load %arg10[%c5_363, %c0_364, %c0_365] : memref<9x16x32xbf16, #tpu.memory_space<vmem>>, vector<1x16x32xbf16>
    %861 = vector.shape_cast %860 : vector<1x16x32xbf16> to vector<16x32xbf16>
    %862 = arith.truncf %859 : vector<32x128xf32> to vector<32x128xbf16>
    %cst_366 = arith.constant dense<0.000000e+00> : vector<16x128xf32>
    %863 = tpu.matmul %861, %862, %cst_366 {dimension_numbers = #tpu.dot_dimension_numbers<[1], [0], [0], [1], [0, 0, 1, 1], [], []>} : vector<16x32xbf16>, vector<32x128xbf16>, vector<16x128xf32> -> vector<16x128xf32>
    %864 = arith.addf %856, %863 : vector<16x128xf32>
    %c100_i32 = arith.constant 100 : i32
    %865 = tpu.dynamic_rotate %820 by %c100_i32 dim 1 : vector<32x128xf32>, i32 -> vector<32x128xf32>
    %866 = vector.broadcast %556 : vector<1x128xf32> to vector<32x128xf32>
    %867 = arith.mulf %865, %866 : vector<32x128xf32>
    %c6_367 = arith.constant 6 : index
    %c0_368 = arith.constant 0 : index
    %c0_369 = arith.constant 0 : index
    %868 = vector.load %arg10[%c6_367, %c0_368, %c0_369] : memref<9x16x32xbf16, #tpu.memory_space<vmem>>, vector<1x16x32xbf16>
    %869 = vector.shape_cast %868 : vector<1x16x32xbf16> to vector<16x32xbf16>
    %870 = arith.truncf %867 : vector<32x128xf32> to vector<32x128xbf16>
    %cst_370 = arith.constant dense<0.000000e+00> : vector<16x128xf32>
    %871 = tpu.matmul %869, %870, %cst_370 {dimension_numbers = #tpu.dot_dimension_numbers<[1], [0], [0], [1], [0, 0, 1, 1], [], []>} : vector<16x32xbf16>, vector<32x128xbf16>, vector<16x128xf32> -> vector<16x128xf32>
    %872 = arith.addf %864, %871 : vector<16x128xf32>
    %c96_i32 = arith.constant 96 : i32
    %873 = tpu.dynamic_rotate %820 by %c96_i32 dim 1 : vector<32x128xf32>, i32 -> vector<32x128xf32>
    %874 = vector.broadcast %577 : vector<1x128xf32> to vector<32x128xf32>
    %875 = arith.mulf %873, %874 : vector<32x128xf32>
    %c7_371 = arith.constant 7 : index
    %c0_372 = arith.constant 0 : index
    %c0_373 = arith.constant 0 : index
    %876 = vector.load %arg10[%c7_371, %c0_372, %c0_373] : memref<9x16x32xbf16, #tpu.memory_space<vmem>>, vector<1x16x32xbf16>
    %877 = vector.shape_cast %876 : vector<1x16x32xbf16> to vector<16x32xbf16>
    %878 = arith.truncf %875 : vector<32x128xf32> to vector<32x128xbf16>
    %cst_374 = arith.constant dense<0.000000e+00> : vector<16x128xf32>
    %879 = tpu.matmul %877, %878, %cst_374 {dimension_numbers = #tpu.dot_dimension_numbers<[1], [0], [0], [1], [0, 0, 1, 1], [], []>} : vector<16x32xbf16>, vector<32x128xbf16>, vector<16x128xf32> -> vector<16x128xf32>
    %880 = arith.addf %872, %879 : vector<16x128xf32>
    %c92_i32 = arith.constant 92 : i32
    %881 = tpu.dynamic_rotate %820 by %c92_i32 dim 1 : vector<32x128xf32>, i32 -> vector<32x128xf32>
    %882 = vector.broadcast %598 : vector<1x128xf32> to vector<32x128xf32>
    %883 = arith.mulf %881, %882 : vector<32x128xf32>
    %c8_375 = arith.constant 8 : index
    %c0_376 = arith.constant 0 : index
    %c0_377 = arith.constant 0 : index
    %884 = vector.load %arg10[%c8_375, %c0_376, %c0_377] : memref<9x16x32xbf16, #tpu.memory_space<vmem>>, vector<1x16x32xbf16>
    %885 = vector.shape_cast %884 : vector<1x16x32xbf16> to vector<16x32xbf16>
    %886 = arith.truncf %883 : vector<32x128xf32> to vector<32x128xbf16>
    %cst_378 = arith.constant dense<0.000000e+00> : vector<16x128xf32>
    %887 = tpu.matmul %885, %886, %cst_378 {dimension_numbers = #tpu.dot_dimension_numbers<[1], [0], [0], [1], [0, 0, 1, 1], [], []>} : vector<16x32xbf16>, vector<32x128xbf16>, vector<16x128xf32> -> vector<16x128xf32>
    %888 = arith.addf %880, %887 : vector<16x128xf32>
    %889 = vector.broadcast %620 : vector<1x128xf32> to vector<16x128xf32>
    %890 = arith.mulf %888, %889 : vector<16x128xf32>
    %cst_379 = arith.constant dense<0.000000e+00> : vector<16xf32>
    %891 = vector.multi_reduction <add>, %890, %cst_379 [1] : vector<16x128xf32> to vector<16xf32>
    %892 = vector.shape_cast %891 : vector<16xf32> to vector<16x1xf32>
    %cst_380 = arith.constant 1.250000e-01 : f32
    %893 = vector.broadcast %cst_380 : f32 to vector<16x1xf32>
    %894 = arith.mulf %892, %893 : vector<16x1xf32>
    %895 = arith.mulf %890, %890 : vector<16x128xf32>
    %cst_381 = arith.constant dense<0.000000e+00> : vector<16xf32>
    %896 = vector.multi_reduction <add>, %895, %cst_381 [1] : vector<16x128xf32> to vector<16xf32>
    %897 = vector.shape_cast %896 : vector<16xf32> to vector<16x1xf32>
    %cst_382 = arith.constant 1.250000e-01 : f32
    %898 = vector.broadcast %cst_382 : f32 to vector<16x1xf32>
    %899 = arith.mulf %897, %898 : vector<16x1xf32>
    %900 = arith.mulf %894, %894 : vector<16x1xf32>
    %901 = arith.subf %899, %900 : vector<16x1xf32>
    %cst_383 = arith.constant 0.000000e+00 : f32
    %902 = vector.broadcast %cst_383 : f32 to vector<16x1xf32>
    %903 = arith.maximumf %901, %902 : vector<16x1xf32>
    %904 = vector.broadcast %894 : vector<16x1xf32> to vector<16x128xf32>
    %905 = arith.subf %888, %904 : vector<16x128xf32>
    %cst_384 = arith.constant 9.99999974E-6 : f32
    %906 = vector.broadcast %cst_384 : f32 to vector<16x1xf32>
    %907 = arith.addf %903, %906 : vector<16x1xf32>
    %908 = math.rsqrt %907 : vector<16x1xf32>
    %c0_385 = arith.constant 0 : index
    %c0_386 = arith.constant 0 : index
    %909 = vector.load %arg11[%c0_385, %c0_386] : memref<16x1xf32, #tpu.memory_space<vmem>>, vector<16x1xf32>
    %910 = arith.mulf %908, %909 : vector<16x1xf32>
    %911 = vector.broadcast %910 : vector<16x1xf32> to vector<16x128xf32>
    %912 = arith.mulf %905, %911 : vector<16x128xf32>
    %c0_387 = arith.constant 0 : index
    %c0_388 = arith.constant 0 : index
    %913 = vector.load %arg12[%c0_387, %c0_388] : memref<16x1xf32, #tpu.memory_space<vmem>>, vector<16x1xf32>
    %914 = vector.broadcast %913 : vector<16x1xf32> to vector<16x128xf32>
    %915 = arith.addf %912, %914 : vector<16x128xf32>
    %cst_389 = arith.constant 0.000000e+00 : f32
    %916 = vector.broadcast %cst_389 : f32 to vector<16x128xf32>
    %917 = arith.cmpf ogt, %915, %916 : vector<16x128xf32>
    %cst_390 = arith.constant 2.000000e-01 : f32
    %918 = vector.broadcast %cst_390 : f32 to vector<16x128xf32>
    %919 = arith.mulf %918, %915 : vector<16x128xf32>
    %920 = arith.select %917, %915, %919 : vector<16x128xi1>, vector<16x128xf32>
    %c36_i32_391 = arith.constant 36 : i32
    %921 = tpu.dynamic_rotate %920 by %c36_i32_391 dim 1 : vector<16x128xf32>, i32 -> vector<16x128xf32>
    %922 = vector.broadcast %451 : vector<1x128xf32> to vector<16x128xf32>
    %923 = arith.mulf %921, %922 : vector<16x128xf32>
    %c0_392 = arith.constant 0 : index
    %c0_393 = arith.constant 0 : index
    %c0_394 = arith.constant 0 : index
    %924 = vector.load %arg13[%c0_392, %c0_393, %c0_394] : memref<9x8x16xbf16, #tpu.memory_space<vmem>>, vector<1x8x16xbf16>
    %925 = vector.shape_cast %924 : vector<1x8x16xbf16> to vector<8x16xbf16>
    %926 = arith.truncf %923 : vector<16x128xf32> to vector<16x128xbf16>
    %cst_395 = arith.constant dense<0.000000e+00> : vector<8x128xf32>
    %927 = tpu.matmul %925, %926, %cst_395 {dimension_numbers = #tpu.dot_dimension_numbers<[1], [0], [0], [1], [0, 0, 1, 1], [], []>} : vector<8x16xbf16>, vector<16x128xbf16>, vector<8x128xf32> -> vector<8x128xf32>
    %c32_i32_396 = arith.constant 32 : i32
    %928 = tpu.dynamic_rotate %920 by %c32_i32_396 dim 1 : vector<16x128xf32>, i32 -> vector<16x128xf32>
    %929 = vector.broadcast %472 : vector<1x128xf32> to vector<16x128xf32>
    %930 = arith.mulf %928, %929 : vector<16x128xf32>
    %c1_397 = arith.constant 1 : index
    %c0_398 = arith.constant 0 : index
    %c0_399 = arith.constant 0 : index
    %931 = vector.load %arg13[%c1_397, %c0_398, %c0_399] : memref<9x8x16xbf16, #tpu.memory_space<vmem>>, vector<1x8x16xbf16>
    %932 = vector.shape_cast %931 : vector<1x8x16xbf16> to vector<8x16xbf16>
    %933 = arith.truncf %930 : vector<16x128xf32> to vector<16x128xbf16>
    %cst_400 = arith.constant dense<0.000000e+00> : vector<8x128xf32>
    %934 = tpu.matmul %932, %933, %cst_400 {dimension_numbers = #tpu.dot_dimension_numbers<[1], [0], [0], [1], [0, 0, 1, 1], [], []>} : vector<8x16xbf16>, vector<16x128xbf16>, vector<8x128xf32> -> vector<8x128xf32>
    %935 = arith.addf %927, %934 : vector<8x128xf32>
    %c28_i32_401 = arith.constant 28 : i32
    %936 = tpu.dynamic_rotate %920 by %c28_i32_401 dim 1 : vector<16x128xf32>, i32 -> vector<16x128xf32>
    %937 = vector.broadcast %493 : vector<1x128xf32> to vector<16x128xf32>
    %938 = arith.mulf %936, %937 : vector<16x128xf32>
    %c2_402 = arith.constant 2 : index
    %c0_403 = arith.constant 0 : index
    %c0_404 = arith.constant 0 : index
    %939 = vector.load %arg13[%c2_402, %c0_403, %c0_404] : memref<9x8x16xbf16, #tpu.memory_space<vmem>>, vector<1x8x16xbf16>
    %940 = vector.shape_cast %939 : vector<1x8x16xbf16> to vector<8x16xbf16>
    %941 = arith.truncf %938 : vector<16x128xf32> to vector<16x128xbf16>
    %cst_405 = arith.constant dense<0.000000e+00> : vector<8x128xf32>
    %942 = tpu.matmul %940, %941, %cst_405 {dimension_numbers = #tpu.dot_dimension_numbers<[1], [0], [0], [1], [0, 0, 1, 1], [], []>} : vector<8x16xbf16>, vector<16x128xbf16>, vector<8x128xf32> -> vector<8x128xf32>
    %943 = arith.addf %935, %942 : vector<8x128xf32>
    %c4_i32_406 = arith.constant 4 : i32
    %944 = tpu.dynamic_rotate %920 by %c4_i32_406 dim 1 : vector<16x128xf32>, i32 -> vector<16x128xf32>
    %945 = vector.broadcast %514 : vector<1x128xf32> to vector<16x128xf32>
    %946 = arith.mulf %944, %945 : vector<16x128xf32>
    %c3_407 = arith.constant 3 : index
    %c0_408 = arith.constant 0 : index
    %c0_409 = arith.constant 0 : index
    %947 = vector.load %arg13[%c3_407, %c0_408, %c0_409] : memref<9x8x16xbf16, #tpu.memory_space<vmem>>, vector<1x8x16xbf16>
    %948 = vector.shape_cast %947 : vector<1x8x16xbf16> to vector<8x16xbf16>
    %949 = arith.truncf %946 : vector<16x128xf32> to vector<16x128xbf16>
    %cst_410 = arith.constant dense<0.000000e+00> : vector<8x128xf32>
    %950 = tpu.matmul %948, %949, %cst_410 {dimension_numbers = #tpu.dot_dimension_numbers<[1], [0], [0], [1], [0, 0, 1, 1], [], []>} : vector<8x16xbf16>, vector<16x128xbf16>, vector<8x128xf32> -> vector<8x128xf32>
    %951 = arith.addf %943, %950 : vector<8x128xf32>
    %c4_411 = arith.constant 4 : index
    %c0_412 = arith.constant 0 : index
    %c0_413 = arith.constant 0 : index
    %952 = vector.load %arg13[%c4_411, %c0_412, %c0_413] : memref<9x8x16xbf16, #tpu.memory_space<vmem>>, vector<1x8x16xbf16>
    %953 = vector.shape_cast %952 : vector<1x8x16xbf16> to vector<8x16xbf16>
    %954 = arith.truncf %920 : vector<16x128xf32> to vector<16x128xbf16>
    %cst_414 = arith.constant dense<0.000000e+00> : vector<8x128xf32>
    %955 = tpu.matmul %953, %954, %cst_414 {dimension_numbers = #tpu.dot_dimension_numbers<[1], [0], [0], [1], [0, 0, 1, 1], [], []>} : vector<8x16xbf16>, vector<16x128xbf16>, vector<8x128xf32> -> vector<8x128xf32>
    %956 = arith.addf %951, %955 : vector<8x128xf32>
    %c124_i32_415 = arith.constant 124 : i32
    %957 = tpu.dynamic_rotate %920 by %c124_i32_415 dim 1 : vector<16x128xf32>, i32 -> vector<16x128xf32>
    %958 = vector.broadcast %535 : vector<1x128xf32> to vector<16x128xf32>
    %959 = arith.mulf %957, %958 : vector<16x128xf32>
    %c5_416 = arith.constant 5 : index
    %c0_417 = arith.constant 0 : index
    %c0_418 = arith.constant 0 : index
    %960 = vector.load %arg13[%c5_416, %c0_417, %c0_418] : memref<9x8x16xbf16, #tpu.memory_space<vmem>>, vector<1x8x16xbf16>
    %961 = vector.shape_cast %960 : vector<1x8x16xbf16> to vector<8x16xbf16>
    %962 = arith.truncf %959 : vector<16x128xf32> to vector<16x128xbf16>
    %cst_419 = arith.constant dense<0.000000e+00> : vector<8x128xf32>
    %963 = tpu.matmul %961, %962, %cst_419 {dimension_numbers = #tpu.dot_dimension_numbers<[1], [0], [0], [1], [0, 0, 1, 1], [], []>} : vector<8x16xbf16>, vector<16x128xbf16>, vector<8x128xf32> -> vector<8x128xf32>
    %964 = arith.addf %956, %963 : vector<8x128xf32>
    %c100_i32_420 = arith.constant 100 : i32
    %965 = tpu.dynamic_rotate %920 by %c100_i32_420 dim 1 : vector<16x128xf32>, i32 -> vector<16x128xf32>
    %966 = vector.broadcast %556 : vector<1x128xf32> to vector<16x128xf32>
    %967 = arith.mulf %965, %966 : vector<16x128xf32>
    %c6_421 = arith.constant 6 : index
    %c0_422 = arith.constant 0 : index
    %c0_423 = arith.constant 0 : index
    %968 = vector.load %arg13[%c6_421, %c0_422, %c0_423] : memref<9x8x16xbf16, #tpu.memory_space<vmem>>, vector<1x8x16xbf16>
    %969 = vector.shape_cast %968 : vector<1x8x16xbf16> to vector<8x16xbf16>
    %970 = arith.truncf %967 : vector<16x128xf32> to vector<16x128xbf16>
    %cst_424 = arith.constant dense<0.000000e+00> : vector<8x128xf32>
    %971 = tpu.matmul %969, %970, %cst_424 {dimension_numbers = #tpu.dot_dimension_numbers<[1], [0], [0], [1], [0, 0, 1, 1], [], []>} : vector<8x16xbf16>, vector<16x128xbf16>, vector<8x128xf32> -> vector<8x128xf32>
    %972 = arith.addf %964, %971 : vector<8x128xf32>
    %c96_i32_425 = arith.constant 96 : i32
    %973 = tpu.dynamic_rotate %920 by %c96_i32_425 dim 1 : vector<16x128xf32>, i32 -> vector<16x128xf32>
    %974 = vector.broadcast %577 : vector<1x128xf32> to vector<16x128xf32>
    %975 = arith.mulf %973, %974 : vector<16x128xf32>
    %c7_426 = arith.constant 7 : index
    %c0_427 = arith.constant 0 : index
    %c0_428 = arith.constant 0 : index
    %976 = vector.load %arg13[%c7_426, %c0_427, %c0_428] : memref<9x8x16xbf16, #tpu.memory_space<vmem>>, vector<1x8x16xbf16>
    %977 = vector.shape_cast %976 : vector<1x8x16xbf16> to vector<8x16xbf16>
    %978 = arith.truncf %975 : vector<16x128xf32> to vector<16x128xbf16>
    %cst_429 = arith.constant dense<0.000000e+00> : vector<8x128xf32>
    %979 = tpu.matmul %977, %978, %cst_429 {dimension_numbers = #tpu.dot_dimension_numbers<[1], [0], [0], [1], [0, 0, 1, 1], [], []>} : vector<8x16xbf16>, vector<16x128xbf16>, vector<8x128xf32> -> vector<8x128xf32>
    %980 = arith.addf %972, %979 : vector<8x128xf32>
    %c92_i32_430 = arith.constant 92 : i32
    %981 = tpu.dynamic_rotate %920 by %c92_i32_430 dim 1 : vector<16x128xf32>, i32 -> vector<16x128xf32>
    %982 = vector.broadcast %598 : vector<1x128xf32> to vector<16x128xf32>
    %983 = arith.mulf %981, %982 : vector<16x128xf32>
    %c8_431 = arith.constant 8 : index
    %c0_432 = arith.constant 0 : index
    %c0_433 = arith.constant 0 : index
    %984 = vector.load %arg13[%c8_431, %c0_432, %c0_433] : memref<9x8x16xbf16, #tpu.memory_space<vmem>>, vector<1x8x16xbf16>
    %985 = vector.shape_cast %984 : vector<1x8x16xbf16> to vector<8x16xbf16>
    %986 = arith.truncf %983 : vector<16x128xf32> to vector<16x128xbf16>
    %cst_434 = arith.constant dense<0.000000e+00> : vector<8x128xf32>
    %987 = tpu.matmul %985, %986, %cst_434 {dimension_numbers = #tpu.dot_dimension_numbers<[1], [0], [0], [1], [0, 0, 1, 1], [], []>} : vector<8x16xbf16>, vector<16x128xbf16>, vector<8x128xf32> -> vector<8x128xf32>
    %988 = arith.addf %980, %987 : vector<8x128xf32>
    %c0_435 = arith.constant 0 : index
    %c0_436 = arith.constant 0 : index
    %989 = vector.load %arg14[%c0_435, %c0_436] : memref<8x1xf32, #tpu.memory_space<vmem>>, vector<8x1xf32>
    %990 = vector.broadcast %989 : vector<8x1xf32> to vector<8x128xf32>
    %991 = arith.addf %988, %990 : vector<8x128xf32>
    %cst_437 = arith.constant 0.000000e+00 : f32
    %992 = vector.broadcast %cst_437 : f32 to vector<8x128xf32>
    %993 = arith.subf %992, %991 : vector<8x128xf32>
    %994 = math.exp %993 : vector<8x128xf32>
    %cst_438 = arith.constant 1.000000e+00 : f32
    %995 = vector.broadcast %cst_438 : f32 to vector<8x128xf32>
    %996 = arith.addf %995, %994 : vector<8x128xf32>
    %997 = tpu.reciprocal %996 {approx = true} : vector<8x128xf32> -> vector<8x128xf32>
    %cst_439 = arith.constant 0.000000e+00 : f32
    %cst_440 = arith.constant 1.000000e+00 : f32
    %998 = vector.broadcast %cst_439 : f32 to vector<8x128xf32>
    %999 = arith.maximumf %998, %997 : vector<8x128xf32>
    %1000 = vector.broadcast %cst_440 : f32 to vector<8x128xf32>
    %1001 = arith.minimumf %1000, %999 : vector<8x128xf32>
    %c0_441 = arith.constant 0 : index
    %c0_442 = arith.constant 0 : index
    %1002 = vector.load %arg15[%c0_441, %c0_442] : memref<8x128xf32, #tpu.memory_space<vmem>>, vector<8x128xf32>
    tpu.vector_store %arg15[%c0_441, %c0_442], %1001 {strides = array<i32>} : memref<8x128xf32, #tpu.memory_space<vmem>>, vector<8x128xf32>,
    return
  }
  func.func @transform_0(%arg0: i32) -> (i32, i32, i32) {
    %c0_i32 = arith.constant 0 : i32
    %c0_i32_0 = arith.constant 0 : i32
    %c0_i32_1 = arith.constant 0 : i32
    %c0_i32_2 = arith.constant 0 : i32
    return %c0_i32, %c0_i32_0, %c0_i32_1 : i32, i32, i32
  }
  func.func @transform_1(%arg0: i32) -> (i32, i32, i32) {
    %c0_i32 = arith.constant 0 : i32
    %c0_i32_0 = arith.constant 0 : i32
    %c0_i32_1 = arith.constant 0 : i32
    %c0_i32_2 = arith.constant 0 : i32
    return %c0_i32, %c0_i32_0, %c0_i32_1 : i32, i32, i32
  }
  func.func @transform_2(%arg0: i32) -> (i32, i32) {
    %c0_i32 = arith.constant 0 : i32
    %c0_i32_0 = arith.constant 0 : i32
    %c0_i32_1 = arith.constant 0 : i32
    return %c0_i32, %c0_i32_0 : i32, i32
  }
  func.func @transform_3(%arg0: i32) -> (i32, i32, i32) {
    %c0_i32 = arith.constant 0 : i32
    %c0_i32_0 = arith.constant 0 : i32
    %c0_i32_1 = arith.constant 0 : i32
    %c0_i32_2 = arith.constant 0 : i32
    return %c0_i32, %c0_i32_0, %c0_i32_1 : i32, i32, i32
  }
  func.func @transform_4(%arg0: i32) -> (i32, i32) {
    %c0_i32 = arith.constant 0 : i32
    %c0_i32_0 = arith.constant 0 : i32
    %c0_i32_1 = arith.constant 0 : i32
    return %c0_i32, %c0_i32_0 : i32, i32
  }
  func.func @transform_5(%arg0: i32) -> (i32, i32) {
    %c0_i32 = arith.constant 0 : i32
    %c0_i32_0 = arith.constant 0 : i32
    %c0_i32_1 = arith.constant 0 : i32
    return %c0_i32, %c0_i32_0 : i32, i32
  }
  func.func @transform_6(%arg0: i32) -> (i32, i32, i32) {
    %c0_i32 = arith.constant 0 : i32
    %c0_i32_0 = arith.constant 0 : i32
    %c0_i32_1 = arith.constant 0 : i32
    %c0_i32_2 = arith.constant 0 : i32
    return %c0_i32, %c0_i32_0, %c0_i32_1 : i32, i32, i32
  }
  func.func @transform_7(%arg0: i32) -> (i32, i32) {
    %c0_i32 = arith.constant 0 : i32
    %c0_i32_0 = arith.constant 0 : i32
    %c0_i32_1 = arith.constant 0 : i32
    return %c0_i32, %c0_i32_0 : i32, i32
  }
  func.func @transform_8(%arg0: i32) -> (i32, i32) {
    %c0_i32 = arith.constant 0 : i32
    %c0_i32_0 = arith.constant 0 : i32
    %c0_i32_1 = arith.constant 0 : i32
    return %c0_i32, %c0_i32_0 : i32, i32
  }
  func.func @transform_9(%arg0: i32) -> (i32, i32, i32) {
    %c0_i32 = arith.constant 0 : i32
    %c0_i32_0 = arith.constant 0 : i32
    %c0_i32_1 = arith.constant 0 : i32
    %c0_i32_2 = arith.constant 0 : i32
    return %c0_i32, %c0_i32_0, %c0_i32_1 : i32, i32, i32
  }
  func.func @transform_10(%arg0: i32) -> (i32, i32) {
    %c0_i32 = arith.constant 0 : i32
    %c0_i32_0 = arith.constant 0 : i32
    %c0_i32_1 = arith.constant 0 : i32
    return %c0_i32, %c0_i32_0 : i32, i32
  }
  func.func @transform_11(%arg0: i32) -> (i32, i32) {
    %c0_i32 = arith.constant 0 : i32
    %c0_i32_0 = arith.constant 0 : i32
    %c0_i32_1 = arith.constant 0 : i32
    return %c0_i32, %c0_i32_0 : i32, i32
  }
  func.func @transform_12(%arg0: i32) -> (i32, i32, i32) {
    %c0_i32 = arith.constant 0 : i32
    %c0_i32_0 = arith.constant 0 : i32
    %c0_i32_1 = arith.constant 0 : i32
    %c0_i32_2 = arith.constant 0 : i32
    return %c0_i32, %c0_i32_0, %c0_i32_1 : i32, i32, i32
  }
  func.func @transform_13(%arg0: i32) -> (i32, i32) {
    %c0_i32 = arith.constant 0 : i32
    %c0_i32_0 = arith.constant 0 : i32
    %c0_i32_1 = arith.constant 0 : i32
    return %c0_i32, %c0_i32_0 : i32, i32
  }
  func.func @transform_14(%arg0: i32) -> (i32, i32) {
    %c0_i32 = arith.constant 0 : i32
    %c0_i32_0 = arith.constant 0 : i32
    %c0_i32_1 = arith.constant 0 : i32
    return %c0_i32, %c0_i32_0 : i32, i32
  }
}

</mosaic_0001>

<bundles_post_ra>
// kernel: squeeze.1
= control target key start
LH: loop header
LB: loop body
LE: loop exit
PB: predicated region body
PF: predicated region fallthrough
CT: control target
= control target key end

     0   :  { %s130_s8 = smov 120   ;;  %s131_s9 = smov 88   ;;  %vm7_vm0 = vcmask 64512   ;;  %s221_s0 = inlined_call_operand.vmem [shape: f32[128], index: 0, kind: input, shape index: {}]   ;;  %s222_s1 = inlined_call_operand.vmem [shape: f32[2,8,8], index: 1, kind: output, shape index: {}]  }
   0x1   :  { %v4_v0 = vld [vmem:[%s221_s0] sm:$0x1]  ;;  %s129_s0 = smov 104   ;;  %s132_s10 = smov 96  }
   0x2   :  { %5 = vst [vmem:[#allocation0] sm:$0x1] %v4_v0  ;;  %s133_s11 = smov 112   ;;  %s134_s12 = smov 80  }
   0x3   :  { %s135_s13 = smov 64   ;;  %s136_s14 = smov 72  }
   0x4   :  { %s137_s15 = smov 56   ;;  %s138_s16 = smov 40  }
   0x5   :  { %s139_s17 = smov 48   ;;  %s140_s18 = smov 32  }
   0x6   :  { %s141_s19 = smov 16   ;;  %s142_s20 = smov 24  }
   0x7   :  { %s143_s21 = smov 8  }
   0x9   :  { %v21_v1 = vld [vmem:[#allocation0] sm:$0x1]  }
   0xa   :  { %v9_v2 = vld [vmem:[#allocation0] sm:$0x1]   ;;  %22 = vrot.lane.b32.xlu1 %v21_v1, %s129_s0 }
   0xb   :  { %10 = vrot.lane.b32.xlu0 %v9_v2, %s130_s8  ;;  %v33_v3 = vld [vmem:[#allocation0] sm:$0x1]  }
   0xc   :  { %34 = vrot.lane.b32.xlu2 %v33_v3, %s131_s9  ;;  %v27_v4 = vld [vmem:[#allocation0] sm:$0x1]  }
   0xd   :  { %v15_v5 = vld [vmem:[#allocation0] sm:$0x1]  }
   0xe   :  { %v39_v6 = vld [vmem:[#allocation0] sm:$0x1]  }
   0xf   :  { %v51_v7 = vld [vmem:[#allocation0] sm:$0x1]  }
  0x10   :  { %v45_v8 = vld [vmem:[#allocation0] sm:$0x1]  }
  0x11   :  { %v57_v9 = vld [vmem:[#allocation0] sm:$0x1]  }
  0x12   :  { %28 = vrot.lane.b32.xlu1 %v27_v4, %s132_s10  ;;  %v69_v10 = vld [vmem:[#allocation0] sm:$0x1]  }
  0x13   :  { %16 = vrot.lane.b32.xlu0 %v15_v5, %s133_s11  ;;  %v63_v11 = vld [vmem:[#allocation0] sm:$0x1]  }
  0x14   :  { %40 = vrot.lane.b32.xlu2 %v39_v6, %s134_s12  ;;  %v75_v12 = vld [vmem:[#allocation0] sm:$0x1]  }
  0x15   :  { %v87_v13 = vld [vmem:[#allocation0] sm:$0x1]  }
  0x16   :  { %v81_v14 = vld [vmem:[#allocation0] sm:$0x1]  }
  0x17   :  { %v93_v15 = vld [vmem:[#allocation0] sm:$0x1]  }
  0x18   :  { %v6_v21 = vld [vmem:[#allocation0] sm:$0x1]  }
  0x19   :  { %8 = vst.msk [vmem:[%s222_s1] sm:$0x1] %vm7_vm0, %v6_v21  }
  0x1a   :  { %52 = vrot.lane.b32.xlu1 %v51_v7, %s135_s13 }
  0x1b   :  { %46 = vrot.lane.b32.xlu0 %v45_v8, %s136_s14 }
  0x1c   :  { %58 = vrot.lane.b32.xlu2 %v57_v9, %s137_s15 }
  0x22   :  { %70 = vrot.lane.b32.xlu1 %v69_v10, %s138_s16 }
  0x23   :  { %64 = vrot.lane.b32.xlu0 %v63_v11, %s139_s17 }
  0x24   :  { %76 = vrot.lane.b32.xlu2 %v75_v12, %s140_s18 }
  0x2a   :  { %88 = vrot.lane.b32.xlu1 %v87_v13, %s141_s19 }
  0x2b   :  { %82 = vrot.lane.b32.xlu0 %v81_v14, %s142_s20 }
  0x2c   :  { %94 = vrot.lane.b32.xlu2 %v93_v15, %s143_s21 }
  0x66   :  { %v35_v16 = vpop.permute.xlu2 %34  }
  0x67   :  { %103 = vst.msk [vmem:[%s222_s1 + $0x5] sm:$0x1] %vm7_vm0, %v35_v16  }
  0x6e   :  { %v41_v17 = vpop.permute.xlu2 %40  }
  0x6f   :  { %104 = vst.msk [vmem:[%s222_s1 + $0x6] sm:$0x1] %vm7_vm0, %v41_v17  }
  0x76   :  { %v59_v18 = vpop.permute.xlu2 %58  }
  0x77   :  { %107 = vst.msk [vmem:[%s222_s1 + $0x9] sm:$0x1] %vm7_vm0, %v59_v18  }
  0x7c   :  { %v23_v19 = vpop.permute.xlu1 %22  }
  0x7d   :  { %v11_v20 = vpop.permute.xlu0 %10   ;;  %101 = vst.msk [vmem:[%s222_s1 + $0x3] sm:$0x1] %vm7_vm0, %v23_v19  }
  0x7e   :  { %99 = vst.msk [vmem:[%s222_s1 + $0x1] sm:$0x1] %vm7_vm0, %v11_v20   ;;  %v77_v22 = vpop.permute.xlu2 %76  }
  0x7f   :  { %110 = vst.msk [vmem:[%s222_s1 + $0xc] sm:$0x1] %vm7_vm0, %v77_v22  }
  0x84   :  { %v29_v23 = vpop.permute.xlu1 %28  }
  0x85   :  { %v17_v24 = vpop.permute.xlu0 %16   ;;  %102 = vst.msk [vmem:[%s222_s1 + $0x4] sm:$0x1] %vm7_vm0, %v29_v23  }
  0x86   :  { %100 = vst.msk [vmem:[%s222_s1 + $0x2] sm:$0x1] %vm7_vm0, %v17_v24   ;;  %v95_v25 = vpop.permute.xlu2 %94  }
  0x87   :  { %113 = vst.msk [vmem:[%s222_s1 + $0xf] sm:$0x1] %vm7_vm0, %v95_v25  }
  0x8c   :  { %v53_v26 = vpop.permute.xlu1 %52  }
  0x8d   :  { %v47_v27 = vpop.permute.xlu0 %46   ;;  %106 = vst.msk [vmem:[%s222_s1 + $0x8] sm:$0x1] %vm7_vm0, %v53_v26  }
  0x8e   :  { %105 = vst.msk [vmem:[%s222_s1 + $0x7] sm:$0x1] %vm7_vm0, %v47_v27  }
  0x94   :  { %v71_v28 = vpop.permute.xlu1 %70  }
  0x95   :  { %v65_v29 = vpop.permute.xlu0 %64   ;;  %109 = vst.msk [vmem:[%s222_s1 + $0xb] sm:$0x1] %vm7_vm0, %v71_v28  }
  0x96   :  { %108 = vst.msk [vmem:[%s222_s1 + $0xa] sm:$0x1] %vm7_vm0, %v65_v29  }
  0x9c   :  { %v89_v30 = vpop.permute.xlu1 %88  }
  0x9d   :  { %v83_v31 = vpop.permute.xlu0 %82   ;;  %112 = vst.msk [vmem:[%s222_s1 + $0xe] sm:$0x1] %vm7_vm0, %v89_v30  }
  0x9e   :  { %111 = vst.msk [vmem:[%s222_s1 + $0xd] sm:$0x1] %vm7_vm0, %v83_v31  }

// kernel: discriminator_forward.1
= control target key start
LH: loop header
LB: loop body
LE: loop exit
PB: predicated region body
PF: predicated region fallthrough
CT: control target
= control target key end

     0   :  { %s8495_s23 = smov 8   ;;  %s8496_s24 = smov 9   ;;  %s12535_s0 = inlined_call_operand.vmem [shape: bf16[4,256,128], index: 0, kind: input, shape index: {}]   ;;  %s12536_s1 = inlined_call_operand.vmem [shape: bf16[9,128,256], index: 1, kind: input, shape index: {}]   ;;  %s12537_s2 = inlined_call_operand.vmem [shape: f32[128,1], index: 2, kind: input, shape index: {}]   ;;  %s12538_s3 = inlined_call_operand.vmem [shape: bf16[9,64,128], index: 3, kind: input, shape index: {}]   ;;  %s12539_s5 = inlined_call_operand.vmem [shape: f32[64,1], index: 5, kind: input, shape index: {}]   ;;  %s12540_s4 = inlined_call_operand.vmem [shape: f32[64,1], index: 4, kind: input, shape index: {}]   ;;  %s12541_s6 = inlined_call_operand.vmem [shape: bf16[9,32,64], index: 6, kind: input, shape index: {}]   ;;  %s12542_s8 = inlined_call_operand.vmem [shape: f32[32,1], index: 8, kind: input, shape index: {}]   ;;  %s12543_s7 = inlined_call_operand.vmem [shape: f32[32,1], index: 7, kind: input, shape index: {}]   ;;  %s12544_s9 = inlined_call_operand.vmem [shape: bf16[9,16,32], index: 9, kind: input, shape index: {}]   ;;  %s12545_s11 = inlined_call_operand.vmem [shape: f32[16,1], index: 11, kind: input, shape index: {}]   ;;  %s12546_s10 = inlined_call_operand.vmem [shape: f32[16,1], index: 10, kind: input, shape index: {}]   ;;  %s12547_s13 = inlined_call_operand.vmem [shape: f32[8,1], index: 13, kind: input, shape index: {}]   ;;  %s12548_s12 = inlined_call_operand.vmem [shape: bf16[9,8,16], index: 12, kind: input, shape index: {}]   ;;  %s12549_s14 = inlined_call_operand.vmem [shape: f32[8,128], index: 14, kind: output, shape index: {}]  }
   0x1   :  { %v6319_v0 = vld [vmem:[%s12535_s0 + $0x138] sm:$0xff]   ;;  %v6317_v1 = vld [vmem:[%s12535_s0 + $0x130] sm:$0xff]   ;;  %v6315_v8 = vld [vmem:[%s12535_s0 + $0x128] sm:$0xff]   ;;  %s8498_s17 = smov 1   ;;  %s8501_s18 = smov 127  }
   0x2   :  { %v204_v2 = vunpack.c.l.bf16 %v6319_v0  ;;  %v205_v3 = vunpack.c.h.bf16 %v6319_v0  ;;  %v202_v4 = vunpack.c.l.bf16 %v6317_v1  ;;  %v203_v5 = vunpack.c.h.bf16 %v6317_v1  ;;  %v6335_v6 = vld [vmem:[%s12535_s0 + $0x178] sm:$0xff]   ;;  %v6333_v7 = vld [vmem:[%s12535_s0 + $0x170] sm:$0xff]   ;;  %v6331_v17 = vld [vmem:[%s12535_s0 + $0x168] sm:$0xff]   ;;  %s8502_s19 = smov 120   ;;  %s8503_s20 = smov 121  }
   0x3   :  { %v220_v11 = vunpack.c.l.bf16 %v6335_v6  ;;  %v221_v12 = vunpack.c.h.bf16 %v6335_v6  ;;  %v218_v13 = vunpack.c.l.bf16 %v6333_v7  ;;  %v219_v14 = vunpack.c.h.bf16 %v6333_v7  ;;  %v6329_v21 = vld [vmem:[%s12535_s0 + $0x160] sm:$0xff]   ;;  %v6311_v30 = vld [vmem:[%s12535_s0 + $0x118] sm:$0xff]   ;;  %v6309_v36 = vld [vmem:[%s12535_s0 + $0x110] sm:$0xff]   ;;  %s8505_s22 = smov 14   ;;  %s8507_s25 = smov 18  }
   0x4   :  { %v8060_v9 = vpack.i.bf16 %v205_v3, %v204_v2  ;;  %v8070_v10 = vpack.i.bf16 %v203_v5, %v202_v4  ;;  %v200_v15 = vunpack.c.l.bf16 %v6315_v8  ;;  %v201_v16 = vunpack.c.h.bf16 %v6315_v8  ;;  %v6313_v24 = vld [vmem:[%s12535_s0 + $0x120] sm:$0xff]   ;;  %v6327_v33 = vld [vmem:[%s12535_s0 + $0x158] sm:$0xff]   ;;  %v6325_v42 = vld [vmem:[%s12535_s0 + $0x150] sm:$0xff]   ;;  %s8508_s26 = smov 2   ;;  %s8509_s27 = smov 126  }
   0x5   :  { %v8065_v19 = vpack.i.bf16 %v221_v12, %v220_v11  ;;  %v8075_v20 = vpack.i.bf16 %v219_v14, %v218_v13  ;;  %v216_v22 = vunpack.c.l.bf16 %v6331_v17  ;;  %v217_v23 = vunpack.c.h.bf16 %v6331_v17  ;;  %v6323_v45 = vld [vmem:[%s12535_s0 + $0x148] sm:$0xff]   ;;  %v6305_v54 = vld [vmem:[%s12535_s0 + $0x100] sm:$0xff]   ;;  %v6351_v57 = vld [vmem:[%s12535_s0 + $0x1b8] sm:$0xff]   ;;  %s8510_s28 = smov 110   ;;  %s8512_s29 = smov 114  }
   0x6   :  { %8061 = vrot.lane.b32.xlu0 %v8060_v9, %s8495_s23  ;;  %8071 = vrot.lane.b32.xlu1 %v8070_v10, %s8495_s23  ;;  %v8080_v18 = vpack.i.bf16 %v201_v16, %v200_v15  ;;  %v214_v25 = vunpack.c.l.bf16 %v6329_v21  ;;  %v215_v26 = vunpack.c.h.bf16 %v6329_v21  ;;  %v198_v27 = vunpack.c.l.bf16 %v6313_v24  ;;  %v6307_v48 = vld [vmem:[%s12535_s0 + $0x108] sm:$0xff]   ;;  %v6321_v60 = vld [vmem:[%s12535_s0 + $0x140] sm:$0xff]  }
   0x7   :  { %v199_v28 = vunpack.c.h.bf16 %v6313_v24  ;;  %v8085_v29 = vpack.i.bf16 %v217_v23, %v216_v22  ;;  %v196_v34 = vunpack.c.l.bf16 %v6311_v30  ;;  %v197_v35 = vunpack.c.h.bf16 %v6311_v30  ;;  %v6367_v2 = vld [vmem:[%s12535_s0 + $0x1f8] sm:$0xff]   ;;  %v6365_v5 = vld [vmem:[%s12535_s0 + $0x1f0] sm:$0xff]   ;;  %v6347_v14 = vld [vmem:[%s12535_s0 + $0x1a8] sm:$0xff]  }
   0x8   :  { %8081 = vrot.lane.b32.xlu2 %v8080_v18, %s8495_s23  ;;  %v8095_v31 = vpack.i.bf16 %v215_v26, %v214_v25  ;;  %v212_v37 = vunpack.c.l.bf16 %v6327_v33  ;;  %v213_v38 = vunpack.c.h.bf16 %v6327_v33  ;;  %v194_v39 = vunpack.c.l.bf16 %v6309_v36  ;;  %v6349_v8 = vld [vmem:[%s12535_s0 + $0x1b0] sm:$0xff]   ;;  %v6361_v24 = vld [vmem:[%s12535_s0 + $0x1e0] sm:$0xff]  }
   0x9   :  { %v8090_v32 = vpack.i.bf16 %v199_v28, %v198_v27  ;;  %v195_v40 = vunpack.c.h.bf16 %v6309_v36  ;;  %v8100_v41 = vpack.i.bf16 %v197_v35, %v196_v34  ;;  %v210_v46 = vunpack.c.l.bf16 %v6325_v42  ;;  %v6345_v25 = vld [vmem:[%s12535_s0 + $0x1a0] sm:$0xff]   ;;  %v6359_v35 = vld [vmem:[%s12535_s0 + $0x1d8] sm:$0xff]  }
   0xa   :  { %v8105_v43 = vpack.i.bf16 %v213_v38, %v212_v37  ;;  %v211_v47 = vunpack.c.h.bf16 %v6325_v42  ;;  %v208_v49 = vunpack.c.l.bf16 %v6323_v45  ;;  %v209_v50 = vunpack.c.h.bf16 %v6323_v45 }
   0xb   :  { %v8110_v44 = vpack.i.bf16 %v195_v40, %v194_v39  ;;  %v192_v51 = vunpack.c.l.bf16 %v6307_v48  ;;  %v193_v52 = vunpack.c.h.bf16 %v6307_v48  ;;  %v190_v58 = vunpack.c.l.bf16 %v6305_v54  ;;  %v6341_v40 = vld [vmem:[%s12535_s0 + $0x190] sm:$0xff]   ;;  %v6355_v48 = vld [vmem:[%s12535_s0 + $0x1c8] sm:$0xff]  }
   0xc   :  { %v8115_v53 = vpack.i.bf16 %v211_v47, %v210_v46  ;;  %v8125_v55 = vpack.i.bf16 %v209_v50, %v208_v49  ;;  %v191_v59 = vunpack.c.h.bf16 %v6305_v54  ;;  %v269_v61 = vunpack.c.l.bf16 %v6351_v57  ;;  %v6339_v49 = vld [vmem:[%s12535_s0 + $0x188] sm:$0xff]  }
   0xd   :  { %v8120_v56 = vpack.i.bf16 %v193_v52, %v192_v51  ;;  %v270_v62 = vunpack.c.h.bf16 %v6351_v57  ;;  %v206_v63 = vunpack.c.l.bf16 %v6321_v60  ;;  %v207_v0 = vunpack.c.h.bf16 %v6321_v60 }
   0xe   :  { %8066 = vrot.lane.b32.xlu0 %v8065_v19, %s8495_s23  ;;  %8076 = vrot.lane.b32.xlu1 %v8075_v20, %s8495_s23  ;;  %v8130_v1 = vpack.i.bf16 %v191_v59, %v190_v58  ;;  %v285_v6 = vunpack.c.l.bf16 %v6367_v2  ;;  %v286_v7 = vunpack.c.h.bf16 %v6367_v2  ;;  %v283_v9 = vunpack.c.l.bf16 %v6365_v5  ;;  %v6363_v19 = vld [vmem:[%s12535_s0 + $0x1e8] sm:$0xff]  }
   0xf   :  { %v8664_v3 = vpack.i.bf16 %v270_v62, %v269_v61  ;;  %v8135_v4 = vpack.i.bf16 %v207_v0, %v206_v63  ;;  %v284_v10 = vunpack.c.h.bf16 %v6365_v5  ;;  %v267_v11 = vunpack.c.l.bf16 %v6349_v8  ;;  %v6353_v61 = vld [vmem:[%s12535_s0 + $0x1c0] sm:$0xff]  }
  0x10   :  { %8086 = vrot.lane.b32.xlu2 %v8085_v29, %s8495_s23  ;;  %v268_v12 = vunpack.c.h.bf16 %v6349_v8  ;;  %v8676_v13 = vpack.i.bf16 %v286_v7, %v285_v6  ;;  %v265_v17 = vunpack.c.l.bf16 %v6347_v14  ;;  %v266_v18 = vunpack.c.h.bf16 %v6347_v14 }
  0x11   :  { %v8681_v15 = vpack.i.bf16 %v284_v10, %v283_v9  ;;  %v281_v20 = vunpack.c.l.bf16 %v6363_v19  ;;  %v282_v21 = vunpack.c.h.bf16 %v6363_v19  ;;  %v279_v26 = vunpack.c.l.bf16 %v6361_v24 }
  0x12   :  { %v8683_v16 = vpack.i.bf16 %v268_v12, %v267_v11  ;;  %v8694_v22 = vpack.i.bf16 %v266_v18, %v265_v17  ;;  %v280_v27 = vunpack.c.h.bf16 %v6361_v24  ;;  %v263_v28 = vunpack.c.l.bf16 %v6345_v25 }
  0x13   :  { %v8696_v23 = vpack.i.bf16 %v282_v21, %v281_v20  ;;  %v264_v29 = vunpack.c.h.bf16 %v6345_v25  ;;  %v277_v37 = vunpack.c.l.bf16 %v6359_v35  ;;  %v278_v38 = vunpack.c.h.bf16 %v6359_v35 }
  0x14   :  { %v8710_v30 = vpack.i.bf16 %v280_v27, %v279_v26  ;;  %v260_v42 = vunpack.c.h.bf16 %v6341_v40  ;;  %v273_v50 = vunpack.c.l.bf16 %v6355_v48  ;;  %v274_v51 = vunpack.c.h.bf16 %v6355_v48 }
  0x15   :  { %v8734_v39 = vpack.i.bf16 %v278_v38, %v277_v37  ;;  %v257_v52 = vunpack.c.l.bf16 %v6339_v49  ;;  %v48_v58 = vlaneseq  ;;  %v271_v0 = vunpack.c.l.bf16 %v6353_v61 }
  0x16   :  { %8096 = vrot.lane.b32.xlu1 %v8095_v31, %s8495_s23  ;;  %8091 = vrot.lane.b32.xlu0 %v8090_v32, %s8495_s23  ;;  %v8712_v31 = vpack.i.bf16 %v264_v29, %v263_v28  ;;  %v6343_v32 = vld [vmem:[%s12535_s0 + $0x198] sm:$0xff]   ;;  %v8764_v54 = vpack.i.bf16 %v274_v51, %v273_v50  ;;  %v12550_v10 = vmov 0.0  }
  0x17   :  { %v261_v33 = vunpack.c.l.bf16 %v6343_v32  ;;  %v262_v34 = vunpack.c.h.bf16 %v6343_v32  ;;  %v8780_v62 = vand.u32 127, %v48_v58 }
  0x18   :  { %8101 = vrot.lane.b32.xlu2 %v8100_v41, %s8495_s23  ;;  %v259_v41 = vunpack.c.l.bf16 %v6341_v40 }
  0x19   :  { %v8726_v36 = vpack.i.bf16 %v262_v34, %v261_v33 }
  0x1a   :  { %v8748_v46 = vpack.i.bf16 %v260_v42, %v259_v41 }
  0x1e   :  { %8106 = vrot.lane.b32.xlu0 %v8105_v43, %s8495_s23  ;;  %8111 = vrot.lane.b32.xlu1 %v8110_v44, %s8495_s23  ;;  %v6357_v43 = vld [vmem:[%s12535_s0 + $0x1d0] sm:$0xff]  }
  0x1f   :  { %v275_v44 = vunpack.c.l.bf16 %v6357_v43  ;;  %v276_v45 = vunpack.c.h.bf16 %v6357_v43 }
  0x20   :  { %8116 = vrot.lane.b32.xlu2 %v8115_v53, %s8495_s23  ;;  %v258_v53 = vunpack.c.h.bf16 %v6339_v49 }
  0x21   :  { %v8750_v47 = vpack.i.bf16 %v276_v45, %v275_v44 }
  0x26   :  { %8126 = vrot.lane.b32.xlu1 %v8125_v55, %s8495_s23  ;;  %8121 = vrot.lane.b32.xlu0 %v8120_v56, %s8495_s23  ;;  %v8766_v55 = vpack.i.bf16 %v258_v53, %v257_v52  ;;  %v6337_v56 = vld [vmem:[%s12535_s0 + $0x180] sm:$0xff]  }
  0x27   :  { %v255_v59 = vunpack.c.l.bf16 %v6337_v56  ;;  %v256_v60 = vunpack.c.h.bf16 %v6337_v56 }
  0x28   :  { %8131 = vrot.lane.b32.xlu2 %v8130_v1, %s8495_s23  ;;  %v272_v1 = vunpack.c.h.bf16 %v6353_v61 }
  0x29   :  { %v8782_v63 = vpack.i.bf16 %v256_v60, %v255_v59 }
  0x2a   :  { %v8789_v5 = vpack.i.bf16 %v272_v1, %v271_v0 }
  0x2e   :  { %8141 = vrot.lane.b32.xlu1 %v8664_v3, %s8496_s24  ;;  %8136 = vrot.lane.b32.xlu0 %v8135_v4, %s8495_s23  ;;  %v51_v4 = vshra.s32 %v8780_v62, 3 }
  0x30   :  { %8146 = vrot.lane.b32.xlu2 %v8676_v13, %s8496_s24  ;;  %v8791_v6 = vand.u32 7, %v51_v4 }
  0x32   :  { %12556 = vst [vmem:[#allocation2_spill] sm:$0xff] %v8791_v6  ;;  %vm53_vm0 = vcmp.ge.s32.totalorder %v8791_v6, 1 }
  0x33   :  { %v8797_v11 = vsel %vm53_vm0, 1.0, %v12550_v10 }
  0x36   :  { %8156 = vrot.lane.b32.xlu1 %v8681_v15, %s8496_s24  ;;  %8151 = vrot.lane.b32.xlu0 %v8683_v16, %s8496_s24 }
  0x38   :  { %8161 = vrot.lane.b32.xlu2 %v8694_v22, %s8496_s24 }
  0x3e   :  { %8171 = vrot.lane.b32.xlu1 %v8664_v3, %s8495_s23  ;;  %8166 = vrot.lane.b32.xlu0 %v8696_v23, %s8496_s24 }
  0x40   :  { %8176 = vrot.lane.b32.xlu2 %v8676_v13, %s8495_s23 }
  0x46   :  { %8186 = vrot.lane.b32.xlu1 %v8710_v30, %s8496_s24  ;;  %8181 = vrot.lane.b32.xlu0 %v8712_v31, %s8496_s24 }
  0x48   :  { %8191 = vrot.lane.b32.xlu2 %v8683_v16, %s8495_s23 }
  0x4e   :  { %8201 = vrot.lane.b32.xlu1 %v8726_v36, %s8496_s24  ;;  %8196 = vrot.lane.b32.xlu0 %v8681_v15, %s8495_s23 }
  0x50   :  { %8206 = vrot.lane.b32.xlu2 %v8734_v39, %s8496_s24 }
  0x56   :  { %8216 = vrot.lane.b32.xlu1 %v8696_v23, %s8495_s23  ;;  %8211 = vrot.lane.b32.xlu0 %v8694_v22, %s8495_s23 }
  0x58   :  { %8221 = vrot.lane.b32.xlu2 %v8748_v46, %s8496_s24 }
  0x5e   :  { %8231 = vrot.lane.b32.xlu1 %v8712_v31, %s8495_s23  ;;  %8226 = vrot.lane.b32.xlu0 %v8750_v47, %s8496_s24 }
  0x60   :  { %8236 = vrot.lane.b32.xlu2 %v8710_v30, %s8495_s23 }
  0x62   :  { %v8082_v57 = vpop.permute.xlu2 %8081 }
  0x63   :  { %v8084_v19 = vunpack.i.h.bf16 %v8082_v57  ;;  %v8083_v20 = vunpack.i.l.bf16 %v8082_v57 }
  0x65   :  { %v489_v29 = vmul.f32 %v8083_v20, %v8797_v11  ;;  %v490_v32 = vmul.f32 %v8084_v19, %v8797_v11 }
  0x66   :  { %8246 = vrot.lane.b32.xlu1 %v8764_v54, %s8496_s24  ;;  %8241 = vrot.lane.b32.xlu0 %v8766_v55, %s8496_s24 }
  0x67   :  { %v533_v44 = vpack.c.bf16 %v490_v32, %v489_v29 }
  0x68   :  { %8251 = vrot.lane.b32.xlu2 %v8726_v36, %s8495_s23 }
  0x6a   :  { %v8087_v2 = vpop.permute.xlu2 %8086 }
  0x6b   :  { %v8089_v42 = vunpack.i.h.bf16 %v8087_v2  ;;  %v8088_v43 = vunpack.i.l.bf16 %v8087_v2 }
  0x6d   :  { %v505_v57 = vmul.f32 %v8088_v43, %v8797_v11  ;;  %v506_v58 = vmul.f32 %v8089_v42, %v8797_v11 }
  0x6e   :  { %8261 = vrot.lane.b32.xlu1 %v8782_v63, %s8496_s24  ;;  %8256 = vrot.lane.b32.xlu0 %v8734_v39, %s8495_s23 }
  0x70   :  { %8266 = vrot.lane.b32.xlu2 %v8789_v5, %s8496_s24 }
  0x72   :  { %v8102_v7 = vpop.permute.xlu2 %8101 }
  0x73   :  { %v8104_v53 = vunpack.i.h.bf16 %v8102_v7  ;;  %v8103_v56 = vunpack.i.l.bf16 %v8102_v7 }
  0x76   :  { %8276 = vrot.lane.b32.xlu1 %v8750_v47, %s8495_s23  ;;  %8271 = vrot.lane.b32.xlu0 %v8748_v46, %s8495_s23 }
  0x78   :  { %v8062_v8 = vpop.permute.xlu0 %8061  ;;  %v8072_v9 = vpop.permute.xlu1 %8071  ;;  %8281 = vrot.lane.b32.xlu2 %v8766_v55, %s8495_s23 }
  0x79   :  { %v8064_v12 = vunpack.i.h.bf16 %v8062_v8  ;;  %v8063_v14 = vunpack.i.l.bf16 %v8062_v8  ;;  %v8074_v17 = vunpack.i.h.bf16 %v8072_v9  ;;  %v8073_v18 = vunpack.i.l.bf16 %v8072_v9 }
  0x7a   :  { %v8805_v27 = vpop.permute.xlu2 %8116  ;;  %v541_v8 = vpack.c.bf16 %v506_v58, %v505_v57  ;;  %v485_v9 = vmul.f32 %v8103_v56, %v8797_v11 }
  0x7b   :  { %v493_v21 = vmul.f32 %v8063_v14, %v8797_v11  ;;  %v494_v24 = vmul.f32 %v8064_v12, %v8797_v11  ;;  %v491_v25 = vmul.f32 %v8073_v18, %v8797_v11  ;;  %v492_v26 = vmul.f32 %v8074_v17, %v8797_v11 }
  0x7c   :  { %v486_v12 = vmul.f32 %v8104_v53, %v8797_v11 }
  0x7d   :  { %v535_v28 = vpack.c.bf16 %v494_v24, %v493_v21  ;;  %v534_v33 = vpack.c.bf16 %v492_v26, %v491_v25  ;;  %v8119_v21 = vunpack.i.h.bf16 %v8805_v27  ;;  %v8118_v24 = vunpack.i.l.bf16 %v8805_v27 }
  0x7e   :  { %8291 = vrot.lane.b32.xlu1 %v8782_v63, %s8495_s23  ;;  %8286 = vrot.lane.b32.xlu0 %v8764_v54, %s8495_s23  ;;  %v531_v26 = vpack.c.bf16 %v486_v12, %v485_v9  ;;  %v6387_v12 = vld [vmem:[%s12536_s1 + $0x80] sm:$0xf] }
  0x7f   :  { %624 = vmatpush.bf16.msra.mxu0 %v535_v28 }
  0x80   :  { %v8067_v34 = vpop.permute.xlu0 %8066  ;;  %v8077_v35 = vpop.permute.xlu1 %8076  ;;  %8296 = vrot.lane.b32.xlu2 %v8789_v5, %s8495_s23 }
  0x81   :  { %v8069_v37 = vunpack.i.h.bf16 %v8067_v34  ;;  %v8068_v38 = vunpack.i.l.bf16 %v8067_v34  ;;  %v8079_v40 = vunpack.i.h.bf16 %v8077_v35  ;;  %v8078_v41 = vunpack.i.l.bf16 %v8077_v35 }
  0x82   :  { %v8817_v51 = vpop.permute.xlu2 %8131 }
  0x83   :  { %625 = vmatpush.bf16.msra.mxu0 %v534_v33  ;;  %v509_v45 = vmul.f32 %v8068_v38, %v8797_v11  ;;  %v510_v48 = vmul.f32 %v8069_v37, %v8797_v11  ;;  %v507_v49 = vmul.f32 %v8078_v41, %v8797_v11  ;;  %v508_v50 = vmul.f32 %v8079_v40, %v8797_v11 }
  0x84   :  { %v499_v37 = vmul.f32 %v8118_v24, %v8797_v11  ;;  %v500_v38 = vmul.f32 %v8119_v21, %v8797_v11 }
  0x85   :  { %v543_v52 = vpack.c.bf16 %v510_v48, %v509_v45  ;;  %v542_v59 = vpack.c.bf16 %v508_v50, %v507_v49  ;;  %v8134_v45 = vunpack.i.h.bf16 %v8817_v51  ;;  %v8133_v48 = vunpack.i.l.bf16 %v8817_v51 }
  0x86   :  { %v538_v50 = vpack.c.bf16 %v500_v38, %v499_v37  ;;  %v7843_v38 = vld [vmem:[%s12536_s1 + $0x84] sm:$0xf] }
  0x87   :  { %626 = vmatpush.bf16.msra.mxu0 %v533_v44  ;;  %673 = vmatpush.bf16.msra.mxu1 %v543_v52 }
  0x88   :  { %v8097_v60 = vpop.permute.xlu1 %8096  ;;  %v8092_v61 = vpop.permute.xlu0 %8091 }
  0x89   :  { %v8099_v0 = vunpack.i.h.bf16 %v8097_v60  ;;  %v8098_v1 = vunpack.i.l.bf16 %v8097_v60  ;;  %v8094_v2 = vunpack.i.h.bf16 %v8092_v61  ;;  %v8093_v4 = vunpack.i.l.bf16 %v8092_v61 }
  0x8a   :  { %v8831_v19 = vpop.permute.xlu2 %8146  ;;  %v479_v60 = vmul.f32 %v8133_v48, %v8797_v11  ;;  %v480_v61 = vmul.f32 %v8134_v45, %v8797_v11 }
  0x8b   :  { %674 = vmatpush.bf16.msra.mxu1 %v542_v59  ;;  %v487_v7 = vmul.f32 %v8093_v4, %v8797_v11  ;;  %v488_v14 = vmul.f32 %v8094_v2, %v8797_v11  ;;  %v503_v17 = vmul.f32 %v8098_v1, %v8797_v11  ;;  %v504_v18 = vmul.f32 %v8099_v0, %v8797_v11 }
  0x8d   :  { %v532_v20 = vpack.c.bf16 %v488_v14, %v487_v7  ;;  %v540_v25 = vpack.c.bf16 %v504_v18, %v503_v17  ;;  %v7844_v7 = vld [vmem:[%s12536_s1 + $0x84] sm:$0xf0]  ;;  %v8862_v14 = vand.u32 7, %v8780_v62  ;;  %v528_v17 = vpack.c.bf16 %v480_v61, %v479_v60 }
  0x8e   :  { %v6388_v21 = vor.u32 %v7844_v7, %v6387_v12 }
  0x8f   :  { %627 = vmatpush.bf16.msra.mxu0 %v532_v20  ;;  %675 = vmatpush.bf16.msra.mxu1 %v541_v8  ;;  %12557 = vst [vmem:[#allocation3_spill] sm:$0xff] %v8862_v14  ;;  %vm56_vm1 = vcmp.ge.s32.totalorder %v8862_v14, 1 }
  0x90   :  { %v8107_v28 = vpop.permute.xlu0 %8106  ;;  %v8112_v29 = vpop.permute.xlu1 %8111 }
  0x91   :  { %v8109_v32 = vunpack.i.h.bf16 %v8107_v28  ;;  %v8108_v33 = vunpack.i.l.bf16 %v8107_v28  ;;  %v8114_v34 = vunpack.i.h.bf16 %v8112_v29  ;;  %v8113_v35 = vunpack.i.l.bf16 %v8112_v29  ;;  %v6287_v29 = vld [vmem:[%s12535_s0 + $0xb8] sm:$0xff]  }
  0x92   :  { %v8841_v43 = vpop.permute.xlu2 %8161  ;;  %v8148_v28 = vunpack.i.l.bf16 %v8831_v19  ;;  %v140_v62 = vunpack.c.h.bf16 %v6287_v29 }
  0x93   :  { %676 = vmatpush.bf16.msra.mxu1 %v540_v25  ;;  %628 = vmatpush.bf16.msra.mxu0 %v531_v26  ;;  %v501_v40 = vmul.f32 %v8108_v33, %v8797_v11  ;;  %v502_v27 = vmul.f32 %v8109_v32, %v8797_v11  ;;  %v483_v41 = vmul.f32 %v8113_v35, %v8797_v11  ;;  %v8149_v26 = vunpack.i.h.bf16 %v8831_v19  ;;  %v6389_v19 = vld [vmem:[%s12536_s1 + $0x88] sm:$0xf0] }
  0x94   :  { %v484_v42 = vmul.f32 %v8114_v34, %v8797_v11  ;;  %v139_v33 = vunpack.c.l.bf16 %v6287_v29  ;;  %v6392_v48 = vor.u32 %v7843_v38, %v6389_v19  ;;  %v8163_v60 = vunpack.i.l.bf16 %v8841_v43 }
  0x95   :  { %v539_v44 = vpack.c.bf16 %v502_v27, %v501_v40 }
  0x96   :  { %v530_v49 = vpack.c.bf16 %v484_v42, %v483_v41  ;;  %v8300_v27 = vpack.i.bf16 %v140_v62, %v139_v33  ;;  %v8883_v41 = vsel %vm56_vm1, 1.0, %v12550_v10 }
  0x97   :  { %677 = vmatpush.bf16.msra.mxu1 %v539_v44  ;;  %v6303_v44 = vld [vmem:[%s12535_s0 + $0xf8] sm:$0xff]   ;;  %v8890_v45 = vmul.f32 %v8883_v41, %v8797_v11 }
  0x98   :  { %v8127_v52 = vpop.permute.xlu1 %8126  ;;  %v8122_v53 = vpop.permute.xlu0 %8121  ;;  %629 = vmatpush.bf16.msra.mxu0 %v530_v49  ;;  %8301 = vrot.lane.b32.xlu0 %v8300_v27, %s8498_s17  ;;  %v155_v49 = vunpack.c.l.bf16 %v6303_v44 }
  0x99   :  { %v8129_v56 = vunpack.i.h.bf16 %v8127_v52  ;;  %v8128_v57 = vunpack.i.l.bf16 %v8127_v52  ;;  %v8124_v58 = vunpack.i.h.bf16 %v8122_v53  ;;  %v8123_v59 = vunpack.i.l.bf16 %v8122_v53 }
  0x9a   :  { %v8851_v4 = vpop.permute.xlu2 %8176 }
  0x9b   :  { %v481_v0 = vmul.f32 %v8123_v59, %v8797_v11  ;;  %v482_v1 = vmul.f32 %v8124_v58, %v8797_v11  ;;  %678 = vmatpush.bf16.msra.mxu1 %v538_v50  ;;  %v497_v51 = vmul.f32 %v8128_v57, %v8797_v11  ;;  %v498_v2 = vmul.f32 %v8129_v56, %v8797_v11 }
  0x9c   :  { %v156_v50 = vunpack.c.h.bf16 %v6303_v44  ;;  %v381_v56 = vmul.f32 %v8148_v28, %v8890_v45  ;;  %v382_v57 = vmul.f32 %v8149_v26, %v8890_v45  ;;  %v8164_v59 = vunpack.i.h.bf16 %v8841_v43 }
  0x9d   :  { %v529_v8 = vpack.c.bf16 %v482_v1, %v481_v0  ;;  %v537_v9 = vpack.c.bf16 %v498_v2, %v497_v51 }
  0x9e   :  { %v8305_v0 = vpack.i.bf16 %v156_v50, %v155_v49  ;;  %v414_v7 = vpack.c.bf16 %v382_v57, %v381_v56  ;;  %v362_v38 = vmul.f32 %v8164_v59, %v8890_v45  ;;  %v6281_v49 = vld [vmem:[%s12535_s0 + $0xa0] sm:$0xff]  }
  0x9f   :  { %630 = vmatpush.bf16.msra.mxu0 %v529_v8  ;;  %679 = vmatpush.bf16.msra.mxu1 %v537_v9  ;;  %v6301_v9 = vld [vmem:[%s12535_s0 + $0xf0] sm:$0xff]   ;;  %v133_v57 = vunpack.c.l.bf16 %v6281_v49 }
  0xa0   :  { %v8142_v18 = vpop.permute.xlu1 %8141  ;;  %v8137_v20 = vpop.permute.xlu0 %8136  ;;  %8306 = vrot.lane.b32.xlu1 %v8305_v0, %s8498_s17  ;;  %851 = vmatpush.bf16.msra.mxu3 %v414_v7 }
  0xa1   :  { %v8139_v24 = vunpack.i.h.bf16 %v8137_v20  ;;  %v8138_v25 = vunpack.i.l.bf16 %v8137_v20  ;;  %v8144_v32 = vunpack.i.h.bf16 %v8142_v18  ;;  %v8143_v34 = vunpack.i.l.bf16 %v8142_v18 }
  0xa2   :  { %v8878_v40 = vpop.permute.xlu2 %8191  ;;  %v154_v18 = vunpack.c.h.bf16 %v6301_v9 }
  0xa3   :  { %631 = vmatpush.bf16.msra.mxu0 %v528_v17  ;;  %v495_v35 = vmul.f32 %v8138_v25, %v8797_v11  ;;  %v496_v37 = vmul.f32 %v8139_v24, %v8797_v11  ;;  %v365_v52 = vmul.f32 %v8143_v34, %v8890_v45  ;;  %v366_v53 = vmul.f32 %v8144_v32, %v8890_v45  ;;  %v6283_v32 = vld [vmem:[%s12535_s0 + $0xa8] sm:$0xff]   ;;  %v6395_v34 = vld [vmem:[%s12536_s1 + $0x90] sm:$0xf] }
  0xa4   :  { %v153_v17 = vunpack.c.l.bf16 %v6301_v9  ;;  %v135_v33 = vunpack.c.l.bf16 %v6283_v32  ;;  %v136_v62 = vunpack.c.h.bf16 %v6283_v32 }
  0xa5   :  { %v536_v42 = vpack.c.bf16 %v496_v37, %v495_v35  ;;  %v406_v12 = vpack.c.bf16 %v366_v53, %v365_v52  ;;  %v7846_v35 = vld [vmem:[%s12536_s1 + $0x94] sm:$0xf0]  ;;  %v361_v37 = vmul.f32 %v8163_v60, %v8890_v45  ;;  %v7845_v52 = vld [vmem:[%s12536_s1 + $0x94] sm:$0xf]  ;;  %v6397_v53 = vld [vmem:[%s12536_s1 + $0x98] sm:$0xf0] }
  0xa6   :  { %632 = vmatmul.bf16.vlgmr.msra.gmra.mxu0 %v6388_v21  ;;  %v8315_v26 = vpack.i.bf16 %v154_v18, %v153_v17  ;;  %v6396_v50 = vor.u32 %v7846_v35, %v6395_v34 }
  0xa7   :  { %680 = vmatpush.bf16.msra.mxu1 %v536_v42  ;;  %802 = vmatpush.bf16.msra.mxu2 %v406_v12  ;;  %v8320_v42 = vpack.i.bf16 %v136_v62, %v135_v33  ;;  %v404_v56 = vpack.c.bf16 %v362_v38, %v361_v37 }
  0xa8   :  { %v8157_v58 = vpop.permute.xlu1 %8156  ;;  %v8152_v61 = vpop.permute.xlu0 %8151  ;;  %8316 = vrot.lane.b32.xlu0 %v8315_v26, %s8498_s17 }
  0xa9   :  { %v8159_v1 = vunpack.i.h.bf16 %v8157_v58  ;;  %v8158_v51 = vunpack.i.l.bf16 %v8157_v58  ;;  %v8154_v2 = vunpack.i.h.bf16 %v8152_v61  ;;  %v8153_v8 = vunpack.i.l.bf16 %v8152_v61  ;;  %8321 = vrot.lane.b32.xlu1 %v8320_v42, %s8498_s17 }
  0xaa   :  { %681 = vmatmul.bf16.vlgmr.msra.gmra.mxu1 %v6392_v48  ;;  %v8207_v25 = vpop.permute.xlu2 %8206  ;;  %v134_v58 = vunpack.c.h.bf16 %v6281_v49  ;;  %v6403_v49 = vld [vmem:[%s12536_s1 + $0xa0] sm:$0xf] }
  0xab   :  { %v363_v20 = vmul.f32 %v8153_v8, %v8890_v45  ;;  %v364_v43 = vmul.f32 %v8154_v2, %v8890_v45  ;;  %v379_v21 = vmul.f32 %v8158_v51, %v8890_v45  ;;  %v380_v24 = vmul.f32 %v8159_v1, %v8890_v45  ;;  %v6297_v2 = vld [vmem:[%s12535_s0 + $0xe0] sm:$0xff]  }
  0xac   :  { %v8330_v0 = vpack.i.bf16 %v134_v58, %v133_v57  ;;  %v6400_v1 = vor.u32 %v7845_v52, %v6397_v53  ;;  %v8209_v8 = vunpack.i.h.bf16 %v8207_v25  ;;  %v8208_v9 = vunpack.i.l.bf16 %v8207_v25 }
  0xad   :  { %v405_v28 = vpack.c.bf16 %v364_v43, %v363_v20  ;;  %v413_v29 = vpack.c.bf16 %v380_v24, %v379_v21  ;;  %v149_v12 = vunpack.c.l.bf16 %v6297_v2  ;;  %v150_v7 = vunpack.c.h.bf16 %v6297_v2 }
  0xae   :  { %v373_v25 = vmul.f32 %v8208_v9, %v8890_v45 }
  0xaf   :  { %803 = vmatpush.bf16.msra.mxu2 %v405_v28  ;;  %852 = vmatpush.bf16.msra.mxu3 %v413_v29  ;;  %v8335_v20 = vpack.i.bf16 %v150_v7, %v149_v12  ;;  %v6295_v28 = vld [vmem:[%s12535_s0 + $0xd8] sm:$0xff]   ;;  %v374_v29 = vmul.f32 %v8209_v8, %v8890_v45  ;;  %v8179_v8 = vunpack.i.h.bf16 %v8851_v4  ;;  %v6285_v7 = vld [vmem:[%s12535_s0 + $0xb0] sm:$0xff]  }
  0xb0   :  { %v8919_v19 = vpop.permute.xlu1 %8171  ;;  %v8167_v27 = vpop.permute.xlu0 %8166  ;;  %8331 = vrot.lane.b32.xlu0 %v8330_v0, %s8498_s17  ;;  %v147_v32 = vunpack.c.l.bf16 %v6295_v28  ;;  %v148_v33 = vunpack.c.h.bf16 %v6295_v28  ;;  %v8178_v0 = vunpack.i.l.bf16 %v8851_v4  ;;  %v137_v4 = vunpack.c.l.bf16 %v6285_v7 }
  0xb1   :  { %v8169_v44 = vunpack.i.h.bf16 %v8167_v27  ;;  %v8168_v48 = vunpack.i.l.bf16 %v8167_v27  ;;  %8336 = vrot.lane.b32.xlu1 %v8335_v20, %s8498_s17  ;;  %v410_v58 = vpack.c.bf16 %v374_v29, %v373_v25 }
  0xb2   :  { %v8222_v61 = vpop.permute.xlu2 %8221  ;;  %v8345_v38 = vpack.i.bf16 %v148_v33, %v147_v32 }
  0xb3   :  { %v377_v59 = vmul.f32 %v8168_v48, %v8890_v45  ;;  %v378_v60 = vmul.f32 %v8169_v44, %v8890_v45  ;;  %804 = vmatpush.bf16.msra.mxu2 %v404_v56  ;;  %v6277_v48 = vld [vmem:[%s12535_s0 + $0x90] sm:$0xff]   ;;  %v8224_v52 = vunpack.i.h.bf16 %v8222_v61  ;;  %v8223_v53 = vunpack.i.l.bf16 %v8222_v61 }
  0xb4   :  { %v129_v56 = vunpack.c.l.bf16 %v6277_v48  ;;  %v130_v57 = vunpack.c.h.bf16 %v6277_v48 }
  0xb5   :  { %v412_v51 = vpack.c.bf16 %v378_v60, %v377_v59  ;;  %v8174_v59 = vunpack.i.h.bf16 %v8919_v19  ;;  %v8173_v60 = vunpack.i.l.bf16 %v8919_v19  ;;  %v6405_v19 = vld [vmem:[%s12536_s1 + $0xa8] sm:$0xf0]  ;;  %v356_v20 = vmul.f32 %v8224_v52, %v8890_v45 }
  0xb6   :  { %637 = vmatmul.bf16.gmra.mxu0 %v6396_v50  ;;  %v7848_v50 = vld [vmem:[%s12536_s1 + $0xa4] sm:$0xf0]  ;;  %v8350_v2 = vpack.i.bf16 %v130_v57, %v129_v56  ;;  %v8193_v52 = vunpack.i.l.bf16 %v8878_v40 }
  0xb7   :  { %853 = vmatpush.bf16.msra.mxu3 %v412_v51  ;;  %v6404_v12 = vor.u32 %v7848_v50, %v6403_v49  ;;  %v978_v32 = vmul.f32 %v8173_v60, %v8797_v11  ;;  %v979_v33 = vmul.f32 %v8174_v59, %v8797_v11  ;;  %v8194_v50 = vunpack.i.h.bf16 %v8878_v40  ;;  %v6289_v40 = vld [vmem:[%s12535_s0 + $0xc0] sm:$0xff]  }
  0xb8   :  { %v8187_v17 = vpop.permute.xlu1 %8186  ;;  %v8182_v18 = vpop.permute.xlu0 %8181  ;;  %8346 = vrot.lane.b32.xlu0 %v8345_v38, %s8498_s17  ;;  %v6291_v38 = vld [vmem:[%s12535_s0 + $0xc8] sm:$0xff]  }
  0xb9   :  { %v8189_v43 = vunpack.i.h.bf16 %v8187_v17  ;;  %v8188_v21 = vunpack.i.l.bf16 %v8187_v17  ;;  %v8184_v24 = vunpack.i.h.bf16 %v8182_v18  ;;  %v8183_v26 = vunpack.i.l.bf16 %v8182_v18  ;;  %v7847_v17 = vld [vmem:[%s12536_s1 + $0xa4] sm:$0xf]  ;;  %8351 = vrot.lane.b32.xlu1 %v8350_v2, %s8498_s17  ;;  %v6299_v2 = vld [vmem:[%s12535_s0 + $0xe8] sm:$0xff]  }
  0xba   :  { %686 = vmatmul.bf16.gmra.mxu1 %v6400_v1  ;;  %v8947_v27 = vpop.permute.xlu2 %8236  ;;  %v355_v18 = vmul.f32 %v8223_v53, %v8890_v45  ;;  %v143_v48 = vunpack.c.l.bf16 %v6291_v38  ;;  %v144_v49 = vunpack.c.h.bf16 %v6291_v38 }
  0xbb   :  { %v359_v62 = vmul.f32 %v8183_v26, %v8890_v45  ;;  %v360_v34 = vmul.f32 %v8184_v24, %v8890_v45  ;;  %v375_v35 = vmul.f32 %v8188_v21, %v8890_v45  ;;  %v376_v37 = vmul.f32 %v8189_v43, %v8890_v45  ;;  %v6275_v21 = vld [vmem:[%s12535_s0 + $0x88] sm:$0xff]  }
  0xbc   :  { %v138_v43 = vunpack.c.h.bf16 %v6285_v7  ;;  %v127_v28 = vunpack.c.l.bf16 %v6275_v21  ;;  %v128_v25 = vunpack.c.h.bf16 %v6275_v21  ;;  %v401_v56 = vpack.c.bf16 %v356_v20, %v355_v18  ;;  %v6411_v21 = vld [vmem:[%s12536_s1 + $0xb0] sm:$0xf] }
  0xbd   :  { %v403_v42 = vpack.c.bf16 %v360_v34, %v359_v62  ;;  %v411_v44 = vpack.c.bf16 %v376_v37, %v375_v35  ;;  %v994_v62 = vmul.f32 %v8178_v0, %v8797_v11  ;;  %v6408_v34 = vor.u32 %v7847_v17, %v6405_v19 }
  0xbe   :  { %v8310_v29 = vpack.i.bf16 %v138_v43, %v137_v4  ;;  %v8360_v37 = vpack.i.bf16 %v128_v25, %v127_v28  ;;  %v977_v7 = vmul.f32 %v8194_v50, %v8797_v11 }
  0xbf   :  { %805 = vmatpush.bf16.msra.mxu2 %v403_v42  ;;  %854 = vmatpush.bf16.msra.mxu3 %v411_v44  ;;  %v1020_v42 = vpack.c.bf16 %v979_v33, %v978_v32  ;;  %v995_v44 = vmul.f32 %v8179_v8, %v8797_v11  ;;  %v151_v8 = vunpack.c.l.bf16 %v6299_v2  ;;  %v6279_v33 = vld [vmem:[%s12535_s0 + $0x98] sm:$0xff]  }
  0xc0   :  { %v8202_v1 = vpop.permute.xlu1 %8201  ;;  %v8197_v51 = vpop.permute.xlu0 %8196  ;;  %8311 = vrot.lane.b32.xlu2 %v8310_v29, %s8498_s17  ;;  %8361 = vrot.lane.b32.xlu0 %v8360_v37, %s8498_s17 }
  0xc1   :  { %v8204_v9 = vunpack.i.h.bf16 %v8202_v1  ;;  %v8203_v61 = vunpack.i.l.bf16 %v8202_v1  ;;  %v8199_v57 = vunpack.i.h.bf16 %v8197_v51  ;;  %1109 = vmatpush.bf16.msrb.mxu0 %v1020_v42  ;;  %v1028_v0 = vpack.c.bf16 %v995_v44, %v994_v62  ;;  %v7849_v42 = vld [vmem:[%s12536_s1 + $0xb4] sm:$0xf]  ;;  %v6413_v44 = vld [vmem:[%s12536_s1 + $0xb8] sm:$0xf0] }
  0xc2   :  { %v8990_v53 = vpop.permute.xlu2 %8251  ;;  %v8365_v1 = vpack.i.bf16 %v144_v49, %v143_v48 }
  0xc3   :  { %v357_v24 = vmul.f32 %v8203_v61, %v8890_v45  ;;  %v358_v26 = vmul.f32 %v8204_v9, %v8890_v45  ;;  %855 = vmatpush.bf16.msra.mxu3 %v410_v58  ;;  %v8198_v58 = vunpack.i.l.bf16 %v8197_v51  ;;  %v152_v9 = vunpack.c.h.bf16 %v6299_v2  ;;  %1158 = vmatpush.bf16.msrb.mxu1 %v1028_v0 }
  0xc4   :  { %8366 = vrot.lane.b32.xlu1 %v8365_v1, %s8498_s17  ;;  %v141_v51 = vunpack.c.l.bf16 %v6289_v40  ;;  %v142_v61 = vunpack.c.h.bf16 %v6289_v40  ;;  %v993_v18 = vmul.f32 %v8199_v57, %v8797_v11  ;;  %v6416_v57 = vor.u32 %v7849_v42, %v6413_v44  ;;  %v7827_v44 = vld [vmem:[%s12536_s1 + $0x4] sm:$0xf] }
  0xc5   :  { %v402_v35 = vpack.c.bf16 %v358_v26, %v357_v24  ;;  %v8325_v17 = vpack.i.bf16 %v152_v9, %v151_v8  ;;  %v992_v19 = vmul.f32 %v8198_v58, %v8797_v11  ;;  %v7850_v24 = vld [vmem:[%s12536_s1 + $0xb4] sm:$0xf0] }
  0xc6   :  { %642 = vmatmul.bf16.gmra.mxu0 %v6404_v12  ;;  %v976_v12 = vmul.f32 %v8193_v52, %v8797_v11  ;;  %v8375_v20 = vpack.i.bf16 %v142_v61, %v141_v51  ;;  %v6412_v62 = vor.u32 %v7850_v24, %v6411_v21 }
  0xc7   :  { %806 = vmatpush.bf16.msra.mxu2 %v402_v35  ;;  %v1027_v43 = vpack.c.bf16 %v993_v18, %v992_v19  ;;  %v132_v35 = vunpack.c.h.bf16 %v6279_v33 }
  0xc8   :  { %v8993_v59 = vpop.permute.xlu1 %8216  ;;  %v8212_v60 = vpop.permute.xlu0 %8211  ;;  %v1019_v4 = vpack.c.bf16 %v977_v7, %v976_v12  ;;  %8326 = vrot.lane.b32.xlu2 %v8325_v17, %s8498_s17  ;;  %8376 = vrot.lane.b32.xlu0 %v8375_v20, %s8498_s17  ;;  %v6293_v17 = vld [vmem:[%s12535_s0 + $0xd0] sm:$0xff]  }
  0xc9   :  { %1159 = vmatpush.bf16.msrb.mxu1 %v1027_v43  ;;  %v8214_v37 = vunpack.i.h.bf16 %v8212_v60  ;;  %v8213_v38 = vunpack.i.l.bf16 %v8212_v60  ;;  %v8219_v1 = vunpack.i.h.bf16 %v8993_v59  ;;  %v8218_v2 = vunpack.i.l.bf16 %v8993_v59 }
  0xca   :  { %691 = vmatmul.bf16.gmra.mxu1 %v6408_v34  ;;  %1110 = vmatpush.bf16.msrb.mxu0 %v1019_v4  ;;  %v8267_v32 = vpop.permute.xlu2 %8266  ;;  %v131_v34 = vunpack.c.l.bf16 %v6279_v33  ;;  %v145_v20 = vunpack.c.l.bf16 %v6293_v17  ;;  %v146_v4 = vunpack.c.h.bf16 %v6293_v17 }
  0xcb   :  { %807 = vmatpush.bf16.msra.mxu2 %v401_v56  ;;  %v8268_v50 = vunpack.i.l.bf16 %v8267_v32  ;;  %v8269_v58 = vunpack.i.h.bf16 %v8267_v32  ;;  %v974_v60 = vmul.f32 %v8213_v38, %v8797_v11  ;;  %v975_v0 = vmul.f32 %v8214_v37, %v8797_v11  ;;  %v7852_v38 = vld [vmem:[%s12536_s1 + $0xc4] sm:$0xf0] }
  0xcc   :  { %v8340_v52 = vpack.i.bf16 %v132_v35, %v131_v34  ;;  %8381 = vrot.lane.b32.xlu1 %v8664_v3, %s8498_s17 }
  0xcd   :  { %v367_v9 = vmul.f32 %v8268_v50, %v8890_v45  ;;  %v368_v19 = vmul.f32 %v8269_v58, %v8890_v45  ;;  %v1018_v18 = vpack.c.bf16 %v975_v0, %v974_v60  ;;  %v8238_v50 = vunpack.i.l.bf16 %v8947_v27  ;;  %v7851_v60 = vld [vmem:[%s12536_s1 + $0xc4] sm:$0xf] }
  0xcf   :  { %1111 = vmatpush.bf16.msrb.mxu0 %v1018_v18  ;;  %v407_v42 = vpack.c.bf16 %v368_v19, %v367_v9  ;;  %v6451_v9 = vld [vmem:[%s12536_s1] sm:$0xf]  ;;  %v8254_v19 = vunpack.i.h.bf16 %v8990_v53 }
  0xd0   :  { %v9014_v26 = vpop.permute.xlu1 %8231  ;;  %v8227_v28 = vpop.permute.xlu0 %8226  ;;  %8341 = vrot.lane.b32.xlu2 %v8340_v52, %s8498_s17  ;;  %8391 = vrot.lane.b32.xlu0 %v8683_v16, %s8498_s17  ;;  %v7870_v16 = vld [vmem:[%s12536_s1 + $0x154] sm:$0xf0] }
  0xd1   :  { %v8229_v25 = vunpack.i.h.bf16 %v8227_v28  ;;  %v8228_v29 = vunpack.i.l.bf16 %v8227_v28  ;;  %v8355_v28 = vpack.i.bf16 %v146_v4, %v145_v20  ;;  %v8234_v35 = vunpack.i.h.bf16 %v9014_v26 }
  0xd2   :  { %v8233_v37 = vunpack.i.l.bf16 %v9014_v26  ;;  %v8253_v4 = vunpack.i.l.bf16 %v8990_v53 }
  0xd3   :  { %v371_v48 = vmul.f32 %v8228_v29, %v8890_v45  ;;  %v372_v49 = vmul.f32 %v8229_v25, %v8890_v45  ;;  %v990_v25 = vmul.f32 %v8218_v2, %v8797_v11  ;;  %v991_v29 = vmul.f32 %v8219_v1, %v8797_v11 }
  0xd4   :  { %8396 = vrot.lane.b32.xlu1 %v8681_v15, %s8498_s17  ;;  %v7869_v15 = vld [vmem:[%s12536_s1 + $0x154] sm:$0xf] }
  0xd5   :  { %v409_v56 = vpack.c.bf16 %v372_v49, %v371_v48  ;;  %v1026_v34 = vpack.c.bf16 %v991_v29, %v990_v25  ;;  %v6453_v48 = vld [vmem:[%s12536_s1 + $0x8] sm:$0xf0]  ;;  %v8239_v49 = vunpack.i.h.bf16 %v8947_v27 }
  0xd6   :  { %647 = vmatmul.bf16.gmra.mxu0 %v6412_v62  ;;  %v6419_v62 = vld [vmem:[%s12536_s1 + $0xc0] sm:$0xf]  ;;  %v6456_v0 = vor.u32 %v7827_v44, %v6453_v48  ;;  %v7853_v48 = vld [vmem:[%s12536_s1 + $0xd4] sm:$0xf] }
  0xd7   :  { %856 = vmatpush.bf16.msra.mxu3 %v409_v56  ;;  %1160 = vmatpush.bf16.msrb.mxu1 %v1026_v34  ;;  %v6420_v58 = vor.u32 %v7852_v38, %v6419_v62  ;;  %v989_v17 = vmul.f32 %v8239_v49, %v8797_v11  ;;  %v7854_v62 = vld [vmem:[%s12536_s1 + $0xd4] sm:$0xf0]  ;;  %v7829_v34 = vld [vmem:[%s12536_s1 + $0x14] sm:$0xf] }
  0xd8   :  { %v8247_v40 = vpop.permute.xlu1 %8246  ;;  %v8242_v8 = vpop.permute.xlu0 %8241  ;;  %8356 = vrot.lane.b32.xlu2 %v8355_v28, %s8498_s17  ;;  %v971_v28 = vmul.f32 %v8254_v19, %v8797_v11  ;;  %8406 = vrot.lane.b32.xlu0 %v8696_v23, %s8498_s17 }
  0xd9   :  { %v8249_v51 = vunpack.i.h.bf16 %v8247_v40  ;;  %v8248_v61 = vunpack.i.l.bf16 %v8247_v40  ;;  %v8244_v12 = vunpack.i.h.bf16 %v8242_v8  ;;  %v8243_v7 = vunpack.i.l.bf16 %v8242_v8  ;;  %v6421_v8 = vld [vmem:[%s12536_s1 + $0xc8] sm:$0xf0] }
  0xda   :  { %696 = vmatmul.bf16.gmra.mxu1 %v6416_v57  ;;  %v6273_v57 = vld [vmem:[%s12535_s0 + $0x80] sm:$0xff]  }
  0xdb   :  { %v353_v59 = vmul.f32 %v8243_v7, %v8890_v45  ;;  %v354_v43 = vmul.f32 %v8244_v12, %v8890_v45  ;;  %v369_v21 = vmul.f32 %v8248_v61, %v8890_v45  ;;  %v370_v24 = vmul.f32 %v8249_v51, %v8890_v45  ;;  %v7828_v51 = vld [vmem:[%s12536_s1 + $0x4] sm:$0xf0] }
  0xdc   :  { %v125_v1 = vunpack.c.l.bf16 %v6273_v57  ;;  %v126_v2 = vunpack.c.h.bf16 %v6273_v57  ;;  %v972_v61 = vmul.f32 %v8233_v37, %v8797_v11  ;;  %v973_v12 = vmul.f32 %v8234_v35, %v8797_v11  ;;  %v6461_v35 = vld [vmem:[%s12536_s1 + $0x18] sm:$0xf0]  ;;  %8411 = vrot.lane.b32.xlu1 %v8712_v31, %s8498_s17 }
  0xdd   :  { %v400_v32 = vpack.c.bf16 %v354_v43, %v353_v59  ;;  %v408_v33 = vpack.c.bf16 %v370_v24, %v369_v21  ;;  %v6424_v59 = vor.u32 %v7851_v60, %v6421_v8  ;;  %v6452_v43 = vor.u32 %v7828_v51, %v6451_v9 }
  0xde   :  { %v8370_v7 = vpack.i.bf16 %v126_v2, %v125_v1  ;;  %v1017_v20 = vpack.c.bf16 %v973_v12, %v972_v61  ;;  %v970_v24 = vmul.f32 %v8253_v4, %v8797_v11  ;;  %v6464_v49 = vor.u32 %v7829_v34, %v6461_v35 }
  0xdf   :  { %808 = vmatpush.bf16.msra.mxu2 %v400_v32  ;;  %857 = vmatpush.bf16.msra.mxu3 %v408_v33  ;;  %v6427_v33 = vld [vmem:[%s12536_s1 + $0xd0] sm:$0xf] }
  0xe0   :  { %v8262_v26 = vpop.permute.xlu1 %8261  ;;  %8371 = vrot.lane.b32.xlu2 %v8370_v7, %s8498_s17  ;;  %1112 = vmatpush.bf16.msrb.mxu0 %v1017_v20  ;;  %v8257_v25 = vpop.permute.xlu0 %8256  ;;  %v1016_v29 = vpack.c.bf16 %v971_v28, %v970_v24  ;;  %v6428_v44 = vor.u32 %v7854_v62, %v6427_v33  ;;  %v6435_v28 = vld [vmem:[%s12536_s1 + $0xe0] sm:$0xf]  ;;  %v6469_v33 = vld [vmem:[%s12536_s1 + $0x28] sm:$0xf0] }
  0xe1   :  { %v8264_v52 = vunpack.i.h.bf16 %v8262_v26  ;;  %v8263_v56 = vunpack.i.l.bf16 %v8262_v26  ;;  %v8259_v32 = vunpack.i.h.bf16 %v8257_v25  ;;  %v8258_v53 = vunpack.i.l.bf16 %v8257_v25  ;;  %v6459_v26 = vld [vmem:[%s12536_s1 + $0x10] sm:$0xf]  ;;  %8421 = vrot.lane.b32.xlu0 %v8726_v36, %s8498_s17  ;;  %v7872_v36 = vld [vmem:[%s12536_s1 + $0x164] sm:$0xf0] }
  0xe3   :  { %v351_v40 = vmul.f32 %v8263_v56, %v8890_v45  ;;  %v352_v27 = vmul.f32 %v8264_v52, %v8890_v45  ;;  %858 = vmatpush.bf16.msra.mxu3 %v407_v42  ;;  %v988_v45 = vmul.f32 %v8238_v50, %v8797_v11  ;;  %v986_v37 = vmul.f32 %v8258_v53, %v8797_v11  ;;  %v6429_v50 = vld [vmem:[%s12536_s1 + $0xd8] sm:$0xf0]  ;;  %v7830_v52 = vld [vmem:[%s12536_s1 + $0x14] sm:$0xf0]  ;;  %v7831_v53 = vld [vmem:[%s12536_s1 + $0x24] sm:$0xf] }
  0xe4   :  { %1113 = vmatpush.bf16.msrb.mxu0 %v1016_v29  ;;  %v987_v38 = vmul.f32 %v8259_v32, %v8797_v11  ;;  %v6460_v1 = vor.u32 %v7830_v52, %v6459_v26  ;;  %v7856_v32 = vld [vmem:[%s12536_s1 + $0xe4] sm:$0xf0]  ;;  %v6437_v52 = vld [vmem:[%s12536_s1 + $0xe8] sm:$0xf0]  ;;  %8426 = vrot.lane.b32.xlu1 %v8734_v39, %s8498_s17  ;;  %v7871_v39 = vld [vmem:[%s12536_s1 + $0x164] sm:$0xf] }
  0xe5   :  { %v399_v18 = vpack.c.bf16 %v352_v27, %v351_v40  ;;  %v1025_v21 = vpack.c.bf16 %v989_v17, %v988_v45  ;;  %v8282_v40 = vpop.permute.xlu2 %8281 }
  0xe6   :  { %652 = vmatmul.bf16.gmra.mxu0 %v6420_v58  ;;  %859 = vmatmul.bf16.vlgmr.msra.gmra.mxu3 %v6456_v0  ;;  %v1024_v42 = vpack.c.bf16 %v987_v38, %v986_v37  ;;  %v6432_v0 = vor.u32 %v7853_v48, %v6429_v50  ;;  %v8284_v8 = vunpack.i.h.bf16 %v8282_v40  ;;  %v8283_v9 = vunpack.i.l.bf16 %v8282_v40  ;;  %v6443_v40 = vld [vmem:[%s12536_s1 + $0xf0] sm:$0xf] }
  0xe7   :  { %809 = vmatpush.bf16.msra.mxu2 %v399_v18  ;;  %1161 = vmatpush.bf16.msrb.mxu1 %v1025_v21  ;;  %v6436_v48 = vor.u32 %v7856_v32, %v6435_v28  ;;  %v6472_v50 = vor.u32 %v7831_v53, %v6469_v33  ;;  %v7836_v32 = vld [vmem:[%s12536_s1 + $0x44] sm:$0xf0] }
  0xe8   :  { %v8277_v56 = vpop.permute.xlu1 %8276  ;;  %v8272_v57 = vpop.permute.xlu0 %8271  ;;  %v966_v7 = vmul.f32 %v8283_v9, %v8797_v11  ;;  %v967_v45 = vmul.f32 %v8284_v8, %v8797_v11  ;;  %v6477_v8 = vld [vmem:[%s12536_s1 + $0x38] sm:$0xf0]  ;;  %8386 = vrot.lane.b32.xlu2 %v8676_v13, %s8498_s17  ;;  %v7771_v13 = vld [vmem:[%s12535_s0 + $0x40] sm:$0xff] }
  0xe9   :  { %v8274_v58 = vunpack.i.h.bf16 %v8272_v57  ;;  %v8273_v60 = vunpack.i.l.bf16 %v8272_v57  ;;  %v8279_v2 = vunpack.i.h.bf16 %v8277_v56  ;;  %v8278_v27 = vunpack.i.l.bf16 %v8277_v56  ;;  %v6467_v56 = vld [vmem:[%s12536_s1 + $0x20] sm:$0xf]  ;;  %v7832_v57 = vld [vmem:[%s12536_s1 + $0x24] sm:$0xf0]  ;;  %8436 = vrot.lane.b32.xlu0 %v8750_v47, %s8498_s17 }
  0xea   :  { %701 = vmatmul.bf16.gmra.mxu1 %v6424_v59  ;;  %810 = vmatmul.bf16.vlgmr.msra.gmra.mxu2 %v6452_v43  ;;  %v1014_v4 = vpack.c.bf16 %v967_v45, %v966_v7  ;;  %v6475_v7 = vld [vmem:[%s12536_s1 + $0x30] sm:$0xf]  ;;  %v7834_v45 = vld [vmem:[%s12536_s1 + $0x34] sm:$0xf0] }
  0xeb   :  { %1162 = vmatpush.bf16.msrb.mxu1 %v1024_v42  ;;  %v968_v51 = vmul.f32 %v8273_v60, %v8797_v11  ;;  %v969_v61 = vmul.f32 %v8274_v58, %v8797_v11  ;;  %v984_v17 = vmul.f32 %v8278_v27, %v8797_v11  ;;  %v985_v19 = vmul.f32 %v8279_v2, %v8797_v11  ;;  %v7858_v27 = vld [vmem:[%s12536_s1 + $0xf4] sm:$0xf0] }
  0xec   :  { %v6468_v2 = vor.u32 %v7832_v57, %v6467_v56  ;;  %v6444_v9 = vor.u32 %v7858_v27, %v6443_v40  ;;  %8441 = vrot.lane.b32.xlu1 %v8766_v55, %s8498_s17  ;;  %v6587_v55 = vld [vmem:[%s12536_s1 + $0x170] sm:$0xf] }
  0xed   :  { %v1015_v12 = vpack.c.bf16 %v969_v61, %v968_v51  ;;  %v1023_v25 = vpack.c.bf16 %v985_v19, %v984_v17  ;;  %v8297_v29 = vpop.permute.xlu2 %8296  ;;  %v7857_v51 = vld [vmem:[%s12536_s1 + $0xf4] sm:$0xf]  ;;  %v6476_v19 = vor.u32 %v7834_v45, %v6475_v7 }
  0xee   :  { %v8299_v62 = vunpack.i.h.bf16 %v8297_v29  ;;  %v8298_v34 = vunpack.i.l.bf16 %v8297_v29  ;;  %v6483_v29 = vld [vmem:[%s12536_s1 + $0x40] sm:$0xf] }
  0xef   :  { %1114 = vmatpush.bf16.msrb.mxu0 %v1015_v12  ;;  %1163 = vmatpush.bf16.msrb.mxu1 %v1023_v25  ;;  %v6445_v12 = vld [vmem:[%s12536_s1 + $0xf8] sm:$0xf0] }
  0xf0   :  { %v8292_v18 = vpop.permute.xlu1 %8291  ;;  %v8287_v20 = vpop.permute.xlu0 %8286  ;;  %v980_v58 = vmul.f32 %v8298_v34, %v8797_v11  ;;  %v981_v60 = vmul.f32 %v8299_v62, %v8797_v11  ;;  %v6448_v17 = vor.u32 %v7857_v51, %v6445_v12  ;;  %v7859_v62 = vld [vmem:[%s12536_s1 + $0x104] sm:$0xf]  ;;  %v6533_v34 = vld [vmem:[%s12536_s1 + $0x108] sm:$0xf0]  ;;  %8401 = vrot.lane.b32.xlu2 %v8694_v22, %s8498_s17  ;;  %v6637_v22 = vld [vmem:[%s12536_s1 + $0x1b8] sm:$0xf0] }
  0xf1   :  { %v8294_v59 = vunpack.i.h.bf16 %v8292_v18  ;;  %v8293_v43 = vunpack.i.l.bf16 %v8292_v18  ;;  %v8289_v21 = vunpack.i.h.bf16 %v8287_v20  ;;  %v8288_v24 = vunpack.i.l.bf16 %v8287_v20  ;;  %8451 = vrot.lane.b32.xlu0 %v8782_v63, %s8498_s17 }
  0xf3   :  { %v964_v35 = vmul.f32 %v8293_v43, %v8797_v11  ;;  %v965_v37 = vmul.f32 %v8294_v59, %v8797_v11  ;;  %1115 = vmatpush.bf16.msrb.mxu0 %v1014_v4  ;;  %v982_v38 = vmul.f32 %v8288_v24, %v8797_v11  ;;  %v983_v42 = vmul.f32 %v8289_v21, %v8797_v11  ;;  %v7833_v11 = vld [vmem:[%s12536_s1 + $0x34] sm:$0xf]  ;;  %v6531_v4 = vld [vmem:[%s12536_s1 + $0x100] sm:$0xf]  ;;  %v7860_v59 = vld [vmem:[%s12536_s1 + $0x104] sm:$0xf0] }
  0xf4   :  { %v6480_v61 = vor.u32 %v7833_v11, %v6477_v8  ;;  %v7835_v43 = vld [vmem:[%s12536_s1 + $0x44] sm:$0xf]  ;;  %v6485_v21 = vld [vmem:[%s12536_s1 + $0x48] sm:$0xf0]  ;;  %v6532_v25 = vor.u32 %v7860_v59, %v6531_v4  ;;  %v6539_v4 = vld [vmem:[%s12536_s1 + $0x110] sm:$0xf]  ;;  %8456 = vrot.lane.b32.xlu1 %v8789_v5, %s8498_s17 }
  0xf5   :  { %v1022_v26 = vpack.c.bf16 %v983_v42, %v982_v38  ;;  %v6488_v53 = vor.u32 %v7835_v43, %v6485_v21  ;;  %v7862_v21 = vld [vmem:[%s12536_s1 + $0x114] sm:$0xf0]  ;;  %v6635_v5 = vld [vmem:[%s12536_s1 + $0x1b0] sm:$0xf] }
  0xf6   :  { %657 = vmatmul.bf16.gmra.mxu0 %v6428_v44  ;;  %864 = vmatmul.bf16.gmra.mxu3 %v6464_v49  ;;  %v1013_v44 = vpack.c.bf16 %v965_v37, %v964_v35  ;;  %v7855_v49 = vld [vmem:[%s12536_s1 + $0xe4] sm:$0xf] }
  0xf7   :  { %1164 = vmatpush.bf16.msrb.mxu1 %v1022_v26 }
  0xf8   :  { %1116 = vmatpush.bf16.msrb.mxu0 %v1013_v44  ;;  %8416 = vrot.lane.b32.xlu2 %v8710_v30, %s8498_s17 }
  0xfa   :  { %706 = vmatmul.bf16.gmra.mxu1 %v6432_v0  ;;  %815 = vmatmul.bf16.gmra.mxu2 %v6460_v1  ;;  %v1021_v0 = vpack.c.bf16 %v981_v60, %v980_v58  ;;  %v6440_v1 = vor.u32 %v7855_v49, %v6437_v52  ;;  %v6536_v49 = vor.u32 %v7859_v62, %v6533_v34 }
  0xfc   :  { %1165 = vmatpush.bf16.msrb.mxu1 %v1021_v0 }
 0x100   :  { %8431 = vrot.lane.b32.xlu2 %v8748_v46, %s8498_s17  ;;  %v6645_v46 = vld [vmem:[%s12536_s1 + $0x1c8] sm:$0xf0] }
 0x106   :  { %662 = vmatmul.bf16.gmra.mxu0 %v6436_v48  ;;  %869 = vmatmul.bf16.gmra.mxu3 %v6472_v50  ;;  %v6484_v48 = vor.u32 %v7836_v32, %v6483_v29 }
 0x108   :  { %8446 = vrot.lane.b32.xlu2 %v8764_v54, %s8498_s17  ;;  %v7794_v54 = vld [vmem:[%s12535_s0 + $0xf8] sm:$0xff] }
 0x10a   :  { %711 = vmatmul.bf16.gmra.mxu1 %v6440_v1  ;;  %820 = vmatmul.bf16.gmra.mxu2 %v6468_v2  ;;  %v8302_v18 = vpop.permute.xlu0 %8301 }
 0x10b   :  { %v8304_v35 = vunpack.i.h.bf16 %v8302_v18  ;;  %v8303_v37 = vunpack.i.l.bf16 %v8302_v18 }
 0x10d   :  { %v1301_v57 = vmul.f32 %v8303_v37, %v8883_v41  ;;  %v1302_v58 = vmul.f32 %v8304_v35, %v8883_v41 }
 0x112   :  { %v8307_v20 = vpop.permute.xlu1 %8306 }
 0x113   :  { %v8309_v38 = vunpack.i.h.bf16 %v8307_v20  ;;  %v8308_v42 = vunpack.i.l.bf16 %v8307_v20 }
 0x115   :  { %v1317_v60 = vmul.f32 %v8308_v42, %v8883_v41  ;;  %v1318_v0 = vmul.f32 %v8309_v38, %v8883_v41 }
 0x116   :  { %667 = vmatmul.bf16.gmra.mxu0 %v6444_v9  ;;  %874 = vmatmul.bf16.gmra.mxu3 %v6480_v61  ;;  %v1343_v61 = vpack.c.bf16 %v1302_v58, %v1301_v57 }
 0x117   :  { %v1351_v7 = vpack.c.bf16 %v1318_v0, %v1317_v60 }
 0x118   :  { %1432 = vmatpush.bf16.msrb.mxu2 %v1343_v61 }
 0x119   :  { %1481 = vmatpush.bf16.msrb.mxu3 %v1351_v7 }
 0x11a   :  { %716 = vmatmul.bf16.gmra.mxu1 %v6448_v17  ;;  %825 = vmatmul.bf16.gmra.mxu2 %v6476_v19  ;;  %v8317_v24 = vpop.permute.xlu0 %8316  ;;  %v8312_v28 = vpop.permute.xlu2 %8311 }
 0x11b   :  { %v8322_v44 = vpop.permute.xlu1 %8321  ;;  %v8318_v50 = vunpack.i.l.bf16 %v8317_v24  ;;  %v8314_v26 = vunpack.i.h.bf16 %v8312_v28  ;;  %v8313_v52 = vunpack.i.l.bf16 %v8312_v28  ;;  %v8319_v2 = vunpack.i.h.bf16 %v8317_v24  ;;  %v7837_v24 = vld [vmem:[%s12536_s1 + $0x54] sm:$0xf]  ;;  %v6493_v28 = vld [vmem:[%s12536_s1 + $0x58] sm:$0xf0] }
 0x11c   :  { %v8324_v11 = vunpack.i.h.bf16 %v8322_v44  ;;  %v8323_v8 = vunpack.i.l.bf16 %v8322_v44 }
 0x11d   :  { %v1299_v45 = vmul.f32 %v8313_v52, %v8883_v41  ;;  %v1300_v17 = vmul.f32 %v8314_v26, %v8883_v41  ;;  %v1315_v19 = vmul.f32 %v8318_v50, %v8883_v41  ;;  %v1316_v20 = vmul.f32 %v8319_v2, %v8883_v41  ;;  %v6491_v52 = vld [vmem:[%s12536_s1 + $0x50] sm:$0xf]  ;;  %v7838_v2 = vld [vmem:[%s12536_s1 + $0x54] sm:$0xf0] }
 0x11e   :  { %v1297_v62 = vmul.f32 %v8323_v8, %v8883_v41  ;;  %v1298_v34 = vmul.f32 %v8324_v11, %v8883_v41 }
 0x11f   :  { %v1342_v43 = vpack.c.bf16 %v1300_v17, %v1299_v45  ;;  %v6492_v45 = vor.u32 %v7838_v2, %v6491_v52 }
 0x120   :  { %v1341_v58 = vpack.c.bf16 %v1298_v34, %v1297_v62 }
 0x121   :  { %1433 = vmatpush.bf16.msrb.mxu2 %v1342_v43 }
 0x122   :  { %v8327_v40 = vpop.permute.xlu2 %8326  ;;  %v8332_v27 = vpop.permute.xlu0 %8331 }
 0x123   :  { %v633_v33 = vpop.f32.mrf.mxu0  ;;  %v8329_v9 = vunpack.i.h.bf16 %v8327_v40  ;;  %v8328_v51 = vunpack.i.l.bf16 %v8327_v40  ;;  %v8337_v18 = vpop.permute.xlu1 %8336  ;;  %v8334_v59 = vunpack.i.h.bf16 %v8332_v27  ;;  %v7861_v40 = vld [vmem:[%s12536_s1 + $0x114] sm:$0xf] }
 0x124   :  { %v8339_v29 = vunpack.i.h.bf16 %v8337_v18  ;;  %v8338_v32 = vunpack.i.l.bf16 %v8337_v18 }
 0x125   :  { %v1313_v35 = vmul.f32 %v8328_v51, %v8883_v41  ;;  %v1314_v37 = vmul.f32 %v8329_v9, %v8883_v41  ;;  %v1296_v8 = vmul.f32 %v8334_v59, %v8883_v41  ;;  %1434 = vmatpush.bf16.msrb.mxu2 %v1341_v58  ;;  %v7864_v58 = vld [vmem:[%s12536_s1 + $0x124] sm:$0xf0] }
 0x126   :  { %1117 = vmatmul.bf16.vlgmr.msrb.gmra.mxu0 %v6532_v25  ;;  %879 = vmatmul.bf16.gmra.mxu3 %v6488_v53  ;;  %v8333_v25 = vunpack.i.l.bf16 %v8332_v27  ;;  %v1350_v53 = vpack.c.bf16 %v1316_v20, %v1315_v19  ;;  %v6541_v27 = vld [vmem:[%s12536_s1 + $0x118] sm:$0xf0]  ;;  %v1311_v9 = vmul.f32 %v8338_v32, %v8883_v41  ;;  %v1312_v51 = vmul.f32 %v8339_v29, %v8883_v41 }
 0x127   :  { %v682_v56 = vpop.f32.mrf.mxu1  ;;  %v1349_v60 = vpack.c.bf16 %v1314_v37, %v1313_v35  ;;  %v6544_v17 = vor.u32 %v7861_v40, %v6541_v27 }
 0x128   :  { %v9200_v1 = vadd.f32 %v682_v56, %v633_v33  ;;  %1482 = vmatpush.bf16.msrb.mxu3 %v1350_v53  ;;  %v1295_v11 = vmul.f32 %v8333_v25, %v8883_v41  ;;  %v1348_v7 = vpack.c.bf16 %v1312_v51, %v1311_v9 }
 0x12a   :  { %830 = vmatmul.bf16.gmra.mxu2 %v6484_v48  ;;  %1166 = vmatmul.bf16.vlgmr.msrb.gmra.mxu1 %v6536_v49  ;;  %v8347_v42 = vpop.permute.xlu0 %8346  ;;  %v8342_v44 = vpop.permute.xlu2 %8341  ;;  %v6540_v48 = vor.u32 %v7862_v21, %v6539_v4  ;;  %v6496_v49 = vor.u32 %v7837_v24, %v6493_v28 }
 0x12b   :  { %v635_v12 = vpop.f32.mrf.mxu0  ;;  %v8349_v50 = vunpack.i.h.bf16 %v8347_v42  ;;  %v8348_v26 = vunpack.i.l.bf16 %v8347_v42  ;;  %v8344_v56 = vunpack.i.h.bf16 %v8342_v44  ;;  %v8343_v57 = vunpack.i.l.bf16 %v8342_v44  ;;  %v8352_v61 = vpop.permute.xlu1 %8351 }
 0x12c   :  { %1483 = vmatpush.bf16.msrb.mxu3 %v1349_v60  ;;  %v8354_v19 = vunpack.i.h.bf16 %v8352_v61  ;;  %v8353_v18 = vunpack.i.l.bf16 %v8352_v61  ;;  %v7839_v60 = vld [vmem:[%s12536_s1 + $0x64] sm:$0xf] }
 0x12d   :  { %v1293_v4 = vmul.f32 %v8343_v57, %v8883_v41  ;;  %v1294_v59 = vmul.f32 %v8344_v56, %v8883_v41  ;;  %v1309_v43 = vmul.f32 %v8348_v26, %v8883_v41  ;;  %v1310_v21 = vmul.f32 %v8349_v50, %v8883_v41  ;;  %v6547_v50 = vld [vmem:[%s12536_s1 + $0x120] sm:$0xf] }
 0x12e   :  { %v1291_v37 = vmul.f32 %v8353_v18, %v8883_v41  ;;  %v1292_v42 = vmul.f32 %v8354_v19, %v8883_v41  ;;  %v6548_v51 = vor.u32 %v7864_v58, %v6547_v50  ;;  %v6499_v19 = vld [vmem:[%s12536_s1 + $0x60] sm:$0xf] }
 0x12f   :  { %v684_v33 = vpop.f32.mrf.mxu1  ;;  %v1339_v62 = vpack.c.bf16 %v1294_v59, %v1293_v4  ;;  %v1347_v34 = vpack.c.bf16 %v1310_v21, %v1309_v43  ;;  %v7840_v21 = vld [vmem:[%s12536_s1 + $0x64] sm:$0xf0] }
 0x130   :  { %v9222_v38 = vadd.f32 %v684_v33, %v635_v12  ;;  %v1340_v12 = vpack.c.bf16 %v1296_v8, %v1295_v11  ;;  %1484 = vmatpush.bf16.msrb.mxu3 %v1348_v7  ;;  %v1338_v56 = vpack.c.bf16 %v1292_v42, %v1291_v37 }
 0x132   :  { %1435 = vmatpush.bf16.msrb.mxu2 %v1340_v12  ;;  %v8357_v28 = vpop.permute.xlu2 %8356  ;;  %v8362_v32 = vpop.permute.xlu0 %8361 }
 0x133   :  { %v638_v0 = vpop.f32.mrf.mxu0  ;;  %v8359_v25 = vunpack.i.h.bf16 %v8357_v28  ;;  %v8358_v29 = vunpack.i.l.bf16 %v8357_v28  ;;  %v8364_v53 = vunpack.i.h.bf16 %v8362_v32  ;;  %v8363_v33 = vunpack.i.l.bf16 %v8362_v32  ;;  %v7863_v28 = vld [vmem:[%s12536_s1 + $0x124] sm:$0xf] }
 0x134   :  { %1485 = vmatpush.bf16.msrb.mxu3 %v1347_v34 }
 0x135   :  { %v1307_v44 = vmul.f32 %v8358_v29, %v8883_v41  ;;  %v1289_v40 = vmul.f32 %v8363_v33, %v8883_v41  ;;  %v1290_v27 = vmul.f32 %v8364_v53, %v8883_v41 }
 0x136   :  { %1122 = vmatmul.bf16.gmra.mxu0 %v6540_v48  ;;  %884 = vmatmul.bf16.gmra.mxu3 %v6496_v49  ;;  %v1308_v48 = vmul.f32 %v8359_v25, %v8883_v41  ;;  %v8367_v49 = vpop.permute.xlu1 %8366  ;;  %v6549_v25 = vld [vmem:[%s12536_s1 + $0x128] sm:$0xf0] }
 0x137   :  { %v687_v20 = vpop.f32.mrf.mxu1  ;;  %1436 = vmatpush.bf16.msrb.mxu2 %v1339_v62  ;;  %v8369_v26 = vunpack.i.h.bf16 %v8367_v49  ;;  %v8368_v52 = vunpack.i.l.bf16 %v8367_v49  ;;  %v6500_v62 = vor.u32 %v7840_v21, %v6499_v19  ;;  %v6552_v34 = vor.u32 %v7863_v28, %v6549_v25  ;;  %v6555_v49 = vld [vmem:[%s12536_s1 + $0x130] sm:$0xf]  ;;  %v7868_v19 = vld [vmem:[%s12536_s1 + $0x144] sm:$0xf0]  ;;  %v6565_v25 = vld [vmem:[%s12536_s1 + $0x148] sm:$0xf0] }
 0x138   :  { %v9244_v24 = vadd.f32 %v687_v20, %v638_v0  ;;  %v1346_v57 = vpack.c.bf16 %v1308_v48, %v1307_v44  ;;  %v6501_v0 = vld [vmem:[%s12536_s1 + $0x68] sm:$0xf0] }
 0x139   :  { %v1305_v11 = vmul.f32 %v8368_v52, %v8883_v41  ;;  %v1306_v8 = vmul.f32 %v8369_v26, %v8883_v41  ;;  %v6504_v61 = vor.u32 %v7839_v60, %v6501_v0  ;;  %v7866_v26 = vld [vmem:[%s12536_s1 + $0x134] sm:$0xf0]  ;;  %v7841_v52 = vld [vmem:[%s12536_s1 + $0x74] sm:$0xf]  ;;  %v6507_v60 = vld [vmem:[%s12536_s1 + $0x70] sm:$0xf] }
 0x13a   :  { %835 = vmatmul.bf16.gmra.mxu2 %v6492_v45  ;;  %1171 = vmatmul.bf16.gmra.mxu1 %v6544_v17  ;;  %v8377_v12 = vpop.permute.xlu0 %8376  ;;  %v8372_v7 = vpop.permute.xlu2 %8371  ;;  %v1337_v45 = vpack.c.bf16 %v1290_v27, %v1289_v40  ;;  %v6556_v58 = vor.u32 %v7866_v26, %v6555_v49  ;;  %v7842_v40 = vld [vmem:[%s12536_s1 + $0x74] sm:$0xf0]  ;;  %v7865_v27 = vld [vmem:[%s12536_s1 + $0x134] sm:$0xf] }
 0x13b   :  { %v640_v35 = vpop.f32.mrf.mxu0  ;;  %1437 = vmatpush.bf16.msrb.mxu2 %v1338_v56  ;;  %1486 = vmatpush.bf16.msrb.mxu3 %v1346_v57  ;;  %v1345_v17 = vpack.c.bf16 %v1306_v8, %v1305_v11  ;;  %v8379_v18 = vunpack.i.h.bf16 %v8377_v12  ;;  %v8378_v20 = vunpack.i.l.bf16 %v8377_v12  ;;  %v8374_v4 = vunpack.i.h.bf16 %v8372_v7  ;;  %v6509_v56 = vld [vmem:[%s12536_s1 + $0x78] sm:$0xf0]  ;;  %v7777_v26 = vld [vmem:[%s12535_s0 + $0x70] sm:$0xff] }
 0x13c   :  { %v8373_v59 = vunpack.i.l.bf16 %v8372_v7  ;;  %v6512_v0 = vor.u32 %v7841_v52, %v6509_v56  ;;  %v6557_v11 = vld [vmem:[%s12536_s1 + $0x138] sm:$0xf0]  ;;  %v6508_v8 = vor.u32 %v7842_v40, %v6507_v60  ;;  %v6571_v56 = vld [vmem:[%s12536_s1 + $0x150] sm:$0xf]  ;;  %v7877_v60 = vld [vmem:[%s12536_s1 + $0x194] sm:$0xf] }
 0x13d   :  { %v1288_v32 = vmul.f32 %v8374_v4, %v8883_v41  ;;  %v1303_v53 = vmul.f32 %v8378_v20, %v8883_v41  ;;  %v1304_v33 = vmul.f32 %v8379_v18, %v8883_v41  ;;  %v7875_v18 = vld [vmem:[%s12536_s1 + $0x184] sm:$0xf]  ;;  %v6613_v20 = vld [vmem:[%s12536_s1 + $0x188] sm:$0xf0] }
 0x13e   :  { %v1287_v29 = vmul.f32 %v8373_v59, %v8883_v41  ;;  %v6616_v21 = vor.u32 %v7875_v18, %v6613_v20  ;;  %v7766_v18 = vld [vmem:[%s12535_s0 + $0x18] sm:$0xff]  ;;  %v7775_v20 = vld [vmem:[%s12535_s0 + $0x60] sm:$0xff] }
 0x13f   :  { %v689_v2 = vpop.f32.mrf.mxu1  ;;  %1438 = vmatpush.bf16.msrb.mxu2 %v1337_v45  ;;  %1487 = vmatpush.bf16.msrb.mxu3 %v1345_v17  ;;  %v1344_v42 = vpack.c.bf16 %v1304_v33, %v1303_v53  ;;  %v6563_v45 = vld [vmem:[%s12536_s1 + $0x140] sm:$0xf]  ;;  %v7770_v53 = vld [vmem:[%s12535_s0 + $0x38] sm:$0xff] }
 0x140   :  { %v9266_v9 = vadd.f32 %v689_v2, %v640_v35  ;;  %v1336_v35 = vpack.c.bf16 %v1288_v32, %v1287_v29  ;;  %v6564_v59 = vor.u32 %v7868_v19, %v6563_v45  ;;  %v6611_v29 = vld [vmem:[%s12536_s1 + $0x180] sm:$0xf]  ;;  %v7876_v32 = vld [vmem:[%s12536_s1 + $0x184] sm:$0xf0]  ;;  %1739 = vmatpush.bf16.msra.mxu0 %v7770_v53  ;;  %v6619_v45 = vld [vmem:[%s12536_s1 + $0x190] sm:$0xf] }
 0x143   :  { %v643_v43 = vpop.f32.mrf.mxu0  ;;  %1439 = vmatpush.bf16.msrb.mxu2 %v1336_v35  ;;  %1488 = vmatpush.bf16.msrb.mxu3 %v1344_v42 }
 0x146   :  { %1127 = vmatmul.bf16.gmra.mxu0 %v6548_v51  ;;  %889 = vmatmul.bf16.gmra.mxu3 %v6504_v61  ;;  %v6560_v51 = vor.u32 %v7865_v27, %v6557_v11  ;;  %v7767_v27 = vld [vmem:[%s12535_s0 + $0x20] sm:$0xff]  ;;  %v7776_v11 = vld [vmem:[%s12535_s0 + $0x68] sm:$0xff] }
 0x147   :  { %v692_v37 = vpop.f32.mrf.mxu1  ;;  %2095 = vmatpush.bf16.msra.mxu3 %v7794_v54 }
 0x148   :  { %v9284_v44 = vadd.f32 %v692_v37, %v643_v43  ;;  %v7867_v43 = vld [vmem:[%s12536_s1 + $0x144] sm:$0xf]  ;;  %v7778_v37 = vld [vmem:[%s12535_s0 + $0x78] sm:$0xff] }
 0x149   :  { %v6568_v33 = vor.u32 %v7867_v43, %v6565_v25  ;;  %1788 = vmatpush.bf16.msra.mxu1 %v7778_v37  ;;  %v6579_v37 = vld [vmem:[%s12536_s1 + $0x160] sm:$0xf] }
 0x14a   :  { %840 = vmatmul.bf16.gmra.mxu2 %v6500_v62  ;;  %1176 = vmatmul.bf16.gmra.mxu1 %v6552_v34  ;;  %v6612_v62 = vor.u32 %v7876_v32, %v6611_v29  ;;  %v7765_v32 = vld [vmem:[%s12535_s0 + $0x10] sm:$0xff] }
 0x14b   :  { %v645_v48 = vpop.f32.mrf.mxu0 }
 0x14d   :  { %1789 = vmatpush.bf16.msra.mxu1 %v7777_v26  ;;  %v7763_v26 = vld [vmem:[%s12535_s0] sm:$0xff] }
 0x14f   :  { %v694_v50 = vpop.f32.mrf.mxu1 }
 0x150   :  { %v9298_v57 = vadd.f32 %v694_v50, %v645_v48  ;;  %v7769_v48 = vld [vmem:[%s12535_s0 + $0x30] sm:$0xff]  ;;  %v7768_v50 = vld [vmem:[%s12535_s0 + $0x28] sm:$0xff] }
 0x151   :  { %1740 = vmatpush.bf16.msra.mxu0 %v7769_v48  ;;  %1790 = vmatpush.bf16.msra.mxu1 %v7776_v11  ;;  %v7879_v48 = vld [vmem:[%s12536_s1 + $0x1a4] sm:$0xf] }
 0x153   :  { %v648_v2 = vpop.f32.mrf.mxu0 }
 0x155   :  { %1741 = vmatpush.bf16.msra.mxu0 %v7768_v50  ;;  %1791 = vmatpush.bf16.msra.mxu1 %v7775_v20  ;;  %v7881_v20 = vld [vmem:[%s12536_s1 + $0x1b4] sm:$0xf] }
 0x156   :  { %1132 = vmatmul.bf16.gmra.mxu0 %v6556_v58  ;;  %894 = vmatmul.bf16.gmra.mxu3 %v6512_v0  ;;  %v6621_v0 = vld [vmem:[%s12536_s1 + $0x198] sm:$0xf0] }
 0x157   :  { %v697_v61 = vpop.f32.mrf.mxu1 }
 0x158   :  { %v9312_v12 = vadd.f32 %v697_v61, %v648_v2 }
 0x159   :  { %1742 = vmatpush.bf16.msra.mxu0 %v7767_v27 }
 0x15a   :  { %845 = vmatmul.bf16.gmra.mxu2 %v6508_v8  ;;  %1181 = vmatmul.bf16.gmra.mxu1 %v6560_v51  ;;  %v6572_v8 = vor.u32 %v7870_v16, %v6571_v56  ;;  %v6624_v51 = vor.u32 %v7877_v60, %v6621_v0  ;;  %v6580_v56 = vor.u32 %v7872_v36, %v6579_v37  ;;  %v6581_v60 = vld [vmem:[%s12536_s1 + $0x168] sm:$0xf0]  ;;  %v6627_v0 = vld [vmem:[%s12536_s1 + $0x1a0] sm:$0xf] }
 0x15b   :  { %v650_v7 = vpop.f32.mrf.mxu0 }
 0x15d   :  { %1743 = vmatpush.bf16.msra.mxu0 %v7766_v18  ;;  %v7874_v18 = vld [vmem:[%s12536_s1 + $0x174] sm:$0xf0] }
 0x15f   :  { %v699_v17 = vpop.f32.mrf.mxu1 }
 0x160   :  { %v9326_v4 = vadd.f32 %v699_v17, %v650_v7  ;;  %v6573_v7 = vld [vmem:[%s12536_s1 + $0x158] sm:$0xf0]  ;;  %v7878_v17 = vld [vmem:[%s12536_s1 + $0x194] sm:$0xf0] }
 0x161   :  { %v6576_v43 = vor.u32 %v7869_v15, %v6573_v7  ;;  %1744 = vmatpush.bf16.msra.mxu0 %v7765_v32  ;;  %v6589_v32 = vld [vmem:[%s12536_s1 + $0x178] sm:$0xf0] }
 0x163   :  { %v653_v28 = vpop.f32.mrf.mxu0 }
 0x166   :  { %1137 = vmatmul.bf16.gmra.mxu0 %v6564_v59  ;;  %1489 = vmatmul.bf16.vlgmr.msrb.gmra.mxu3 %v6616_v21  ;;  %v6620_v21 = vor.u32 %v7878_v17, %v6619_v45 }
 0x167   :  { %v702_v34 = vpop.f32.mrf.mxu1 }
 0x168   :  { %v9345_v35 = vadd.f32 %v702_v34, %v653_v28 }
 0x169   :  { %v860_v42 = vpop.f32.mrf.mxu3 }
 0x16a   :  { %1186 = vmatmul.bf16.gmra.mxu1 %v6568_v33  ;;  %1440 = vmatmul.bf16.vlgmr.msrb.gmra.mxu2 %v6612_v62  ;;  %v7764_v33 = vld [vmem:[%s12535_s0 + $0x8] sm:$0xff]  ;;  %v7773_v62 = vld [vmem:[%s12535_s0 + $0x50] sm:$0xff] }
 0x16b   :  { %v655_v49 = vpop.f32.mrf.mxu0  ;;  %1745 = vmatpush.bf16.msra.mxu0 %v7764_v33 }
 0x16d   :  { %v811_v3 = vpop.f32.mrf.mxu2 }
 0x16e   :  { %v812_v52 = vadd.f32 %v811_v3, %v9200_v1 }
 0x16f   :  { %v704_v58 = vpop.f32.mrf.mxu1  ;;  %1746 = vmatpush.bf16.msra.mxu0 %v7763_v26  ;;  %v7892_v26 = vld [vmem:[%s12536_s1 + $0x204] sm:$0xf0] }
 0x170   :  { %v9376_v1 = vadd.f32 %v860_v42, %v812_v52  ;;  %v9378_v2 = vadd.f32 %v704_v58, %v655_v49  ;;  %v6629_v49 = vld [vmem:[%s12536_s1 + $0x1a8] sm:$0xf0] }
 0x171   :  { %v862_v40 = vpop.f32.mrf.mxu3  ;;  %v7772_v52 = vld [vmem:[%s12535_s0 + $0x48] sm:$0xff]  ;;  %v6632_v58 = vor.u32 %v7879_v48, %v6629_v49 }
 0x173   :  { %v658_v61 = vpop.f32.mrf.mxu0 }
 0x175   :  { %v813_v19 = vpop.f32.mrf.mxu2 }
 0x176   :  { %v814_v59 = vadd.f32 %v813_v19, %v9222_v38  ;;  %1142 = vmatmul.bf16.gmra.mxu0 %v6572_v8  ;;  %1494 = vmatmul.bf16.gmra.mxu3 %v6624_v51  ;;  %v7774_v38 = vld [vmem:[%s12535_s0 + $0x58] sm:$0xff]  ;;  %v6584_v8 = vor.u32 %v7871_v39, %v6581_v60  ;;  %v6643_v60 = vld [vmem:[%s12536_s1 + $0x1c0] sm:$0xf] }
 0x177   :  { %v707_v28 = vpop.f32.mrf.mxu1  ;;  %1792 = vmatpush.bf16.msra.mxu1 %v7774_v38  ;;  %v7882_v38 = vld [vmem:[%s12536_s1 + $0x1b4] sm:$0xf0] }
 0x178   :  { %v9409_v23 = vadd.f32 %v862_v40, %v814_v59  ;;  %v9411_v25 = vadd.f32 %v707_v28, %v658_v61  ;;  %v7880_v40 = vld [vmem:[%s12536_s1 + $0x1a4] sm:$0xf0]  ;;  %v6640_v28 = vor.u32 %v7881_v20, %v6637_v22  ;;  %v7785_v20 = vld [vmem:[%s12535_s0 + $0xb0] sm:$0xff] }
 0x179   :  { %v865_v29 = vpop.f32.mrf.mxu3  ;;  %v6628_v15 = vor.u32 %v7880_v40, %v6627_v0  ;;  %v7884_v40 = vld [vmem:[%s12536_s1 + $0x1c4] sm:$0xf0]  ;;  %v7793_v22 = vld [vmem:[%s12535_s0 + $0xf0] sm:$0xff] }
 0x17a   :  { %1191 = vmatmul.bf16.gmra.mxu1 %v6576_v43  ;;  %1445 = vmatmul.bf16.gmra.mxu2 %v6620_v21  ;;  %v6588_v43 = vor.u32 %v7874_v18, %v6587_v55  ;;  %v7873_v21 = vld [vmem:[%s12536_s1 + $0x174] sm:$0xf]  ;;  %v7786_v55 = vld [vmem:[%s12535_s0 + $0xb8] sm:$0xff] }
 0x17b   :  { %v660_v53 = vpop.f32.mrf.mxu0  ;;  %1793 = vmatpush.bf16.msra.mxu1 %v7773_v62  ;;  %v6592_v33 = vor.u32 %v7873_v21, %v6589_v32  ;;  %v6636_v62 = vor.u32 %v7882_v38, %v6635_v5  ;;  %2046 = vmatpush.bf16.msra.mxu2 %v7786_v55  ;;  %v7894_v21 = vld [vmem:[%s12536_s1 + $0x214] sm:$0xf0]  ;;  %v7784_v38 = vld [vmem:[%s12535_s0 + $0xa8] sm:$0xff] }
 0x17c   :  { %2096 = vmatpush.bf16.msra.mxu3 %v7793_v22 }
 0x17d   :  { %v816_v31 = vpop.f32.mrf.mxu2 }
 0x17e   :  { %v817_v34 = vadd.f32 %v816_v31, %v9244_v24 }
 0x17f   :  { %v709_v42 = vpop.f32.mrf.mxu1  ;;  %1794 = vmatpush.bf16.msra.mxu1 %v7772_v52  ;;  %v7883_v52 = vld [vmem:[%s12536_s1 + $0x1c4] sm:$0xf]  ;;  %2047 = vmatpush.bf16.msra.mxu2 %v7785_v20 }
 0x180   :  { %v9442_v24 = vadd.f32 %v865_v29, %v817_v34  ;;  %v9444_v3 = vadd.f32 %v709_v42, %v660_v53 }
 0x181   :  { %v867_v50 = vpop.f32.mrf.mxu3 }
 0x183   :  { %v663_v16 = vpop.f32.mrf.mxu0  ;;  %1795 = vmatpush.bf16.msra.mxu1 %v7771_v13  ;;  %v6693_v13 = vld [vmem:[%s12536_s1 + $0x208] sm:$0xf0]  ;;  %2048 = vmatpush.bf16.msra.mxu2 %v7784_v38 }
 0x185   :  { %v818_v27 = vpop.f32.mrf.mxu2 }
 0x186   :  { %v819_v11 = vadd.f32 %v818_v27, %v9266_v9  ;;  %1147 = vmatmul.bf16.gmra.mxu0 %v6580_v56  ;;  %1499 = vmatmul.bf16.gmra.mxu3 %v6632_v58  ;;  %v7891_v27 = vld [vmem:[%s12536_s1 + $0x204] sm:$0xf] }
 0x187   :  { %v712_v51 = vpop.f32.mrf.mxu1 }
 0x188   :  { %v9474_v61 = vadd.f32 %v867_v50, %v819_v11  ;;  %v9476_v47 = vadd.f32 %v712_v51, %v663_v16  ;;  %v6648_v16 = vor.u32 %v7883_v52, %v6645_v46  ;;  %v6696_v51 = vor.u32 %v7891_v27, %v6693_v13 }
 0x189   :  { %v870_v7 = vpop.f32.mrf.mxu3 }
 0x18a   :  { %1196 = vmatmul.bf16.gmra.mxu1 %v6584_v8  ;;  %1450 = vmatmul.bf16.gmra.mxu2 %v6628_v15  ;;  %v6644_v15 = vor.u32 %v7884_v40, %v6643_v60  ;;  %v7790_v40 = vld [vmem:[%s12535_s0 + $0xd8] sm:$0xff] }
 0x18b   :  { %v665_v45 = vpop.f32.mrf.mxu0 }
 0x18d   :  { %v821_v9 = vpop.f32.mrf.mxu2 }
 0x18e   :  { %v822_v17 = vadd.f32 %v821_v9, %v9284_v44 }
 0x18f   :  { %v714_v19 = vpop.f32.mrf.mxu1 }
 0x190   :  { %v9497_v63 = vadd.f32 %v870_v7, %v822_v17  ;;  %v9499_v44 = vadd.f32 %v714_v19, %v665_v45 }
 0x191   :  { %v872_v59 = vpop.f32.mrf.mxu3 }
 0x193   :  { %v668_v29 = vpop.f32.mrf.mxu0 }
 0x195   :  { %v823_v53 = vpop.f32.mrf.mxu2 }
 0x196   :  { %v824_v31 = vadd.f32 %v823_v53, %v9298_v57  ;;  %1152 = vmatmul.bf16.gmra.mxu0 %v6588_v43  ;;  %1504 = vmatmul.bf16.gmra.mxu3 %v6640_v28  ;;  %v6691_v57 = vld [vmem:[%s12536_s1 + $0x200] sm:$0xf]  ;;  %v7885_v28 = vld [vmem:[%s12536_s1 + $0x1d4] sm:$0xf]  ;;  %v7792_v53 = vld [vmem:[%s12535_s0 + $0xe8] sm:$0xff] }
 0x197   :  { %v717_v34 = vpop.f32.mrf.mxu1  ;;  %v6692_v58 = vor.u32 %v7892_v26, %v6691_v57  ;;  %2097 = vmatpush.bf16.msra.mxu3 %v7792_v53  ;;  %v7783_v57 = vld [vmem:[%s12535_s0 + $0xa0] sm:$0xff] }
 0x198   :  { %v9516_v37 = vadd.f32 %v872_v59, %v824_v31  ;;  %v9518_v42 = vadd.f32 %v717_v34, %v668_v29  ;;  %v6653_v29 = vld [vmem:[%s12536_s1 + $0x1d8] sm:$0xf0]  ;;  %v6651_v34 = vld [vmem:[%s12536_s1 + $0x1d0] sm:$0xf]  ;;  %2049 = vmatpush.bf16.msra.mxu2 %v7783_v57 }
 0x199   :  { %v875_v36 = vpop.f32.mrf.mxu3  ;;  %v6715_v57 = vld [vmem:[%s12536_s1 + $0x230] sm:$0xf] }
 0x19a   :  { %1201 = vmatmul.bf16.gmra.mxu1 %v6592_v33  ;;  %1455 = vmatmul.bf16.gmra.mxu2 %v6636_v62  ;;  %v6656_v62 = vor.u32 %v7885_v28, %v6653_v29  ;;  %v7895_v28 = vld [vmem:[%s12536_s1 + $0x224] sm:$0xf] }
 0x19b   :  { %v670_v48 = vpop.f32.mrf.mxu0 }
 0x19d   :  { %v826_v30 = vpop.f32.mrf.mxu2 }
 0x19e   :  { %v827_v49 = vadd.f32 %v826_v30, %v9312_v12  ;;  %v7893_v30 = vld [vmem:[%s12536_s1 + $0x214] sm:$0xf] }
 0x19f   :  { %v719_v50 = vpop.f32.mrf.mxu1 }
 0x1a0   :  { %v9535_v56 = vadd.f32 %v875_v36, %v827_v49  ;;  %v9537_v12 = vadd.f32 %v719_v50, %v670_v48  ;;  %v7886_v48 = vld [vmem:[%s12536_s1 + $0x1d4] sm:$0xf0]  ;;  %v7791_v50 = vld [vmem:[%s12535_s0 + $0xe0] sm:$0xff] }
 0x1a1   :  { %v877_v39 = vpop.f32.mrf.mxu3  ;;  %v6652_v52 = vor.u32 %v7886_v48, %v6651_v34  ;;  %2098 = vmatpush.bf16.msra.mxu3 %v7791_v50 }
 0x1a3   :  { %v1118_v0 = vpop.f32.mrf.mxu0 }
 0x1a5   :  { %v828_v11 = vpop.f32.mrf.mxu2  ;;  %2099 = vmatpush.bf16.msra.mxu3 %v7790_v40 }
 0x1a6   :  { %v829_v8 = vadd.f32 %v828_v11, %v9326_v4  ;;  %1747 = vmatmul.bf16.vlgmr.msra.gmra.mxu0 %v6692_v58  ;;  %1509 = vmatmul.bf16.gmra.mxu3 %v6648_v16  ;;  %v7781_v11 = vld [vmem:[%s12535_s0 + $0x90] sm:$0xff] }
 0x1a7   :  { %v1167_v7 = vpop.f32.mrf.mxu1 }
 0x1a8   :  { %v9554_v45 = vadd.f32 %v877_v39, %v829_v8  ;;  %v1168_v9 = vadd.f32 %v1167_v7, %v1118_v0  ;;  %v7782_v0 = vld [vmem:[%s12535_s0 + $0x98] sm:$0xff]  ;;  %v7789_v8 = vld [vmem:[%s12535_s0 + $0xd0] sm:$0xff]  ;;  %v7896_v7 = vld [vmem:[%s12536_s1 + $0x224] sm:$0xf0] }
 0x1a9   :  { %v880_v17 = vpop.f32.mrf.mxu3  ;;  %2050 = vmatpush.bf16.msra.mxu2 %v7782_v0  ;;  %2100 = vmatpush.bf16.msra.mxu3 %v7789_v8  ;;  %v6667_v0 = vld [vmem:[%s12536_s1 + $0x1f0] sm:$0xf] }
 0x1aa   :  { %v9563_v19 = vadd.f32 %v1168_v9, %v9376_v1  ;;  %1460 = vmatmul.bf16.gmra.mxu2 %v6644_v15  ;;  %1796 = vmatmul.bf16.vlgmr.msra.gmra.mxu1 %v6696_v51  ;;  %v6699_v1 = vld [vmem:[%s12536_s1 + $0x210] sm:$0xf]  ;;  %v7887_v9 = vld [vmem:[%s12536_s1 + $0x1e4] sm:$0xf] }
 0x1ab   :  { %v1120_v4 = vpop.f32.mrf.mxu0  ;;  %v6700_v33 = vor.u32 %v7894_v21, %v6699_v1  ;;  %v7888_v21 = vld [vmem:[%s12536_s1 + $0x1e4] sm:$0xf0] }
 0x1ad   :  { %v831_v18 = vpop.f32.mrf.mxu2  ;;  %2051 = vmatpush.bf16.msra.mxu2 %v7781_v11  ;;  %v7897_v11 = vld [vmem:[%s12536_s1 + $0x234] sm:$0xf] }
 0x1ae   :  { %v832_v59 = vadd.f32 %v831_v18, %v9345_v35  ;;  %v7788_v18 = vld [vmem:[%s12535_s0 + $0xc8] sm:$0xff] }
 0x1af   :  { %v1169_v43 = vpop.f32.mrf.mxu1  ;;  %2101 = vmatpush.bf16.msra.mxu3 %v7788_v18 }
 0x1b0   :  { %v9584_v35 = vadd.f32 %v880_v17, %v832_v59  ;;  %v1170_v32 = vadd.f32 %v1169_v43, %v1120_v4  ;;  %v6661_v17 = vld [vmem:[%s12536_s1 + $0x1e8] sm:$0xf0]  ;;  %v6659_v59 = vld [vmem:[%s12536_s1 + $0x1e0] sm:$0xf] }
 0x1b1   :  { %v882_v5 = vpop.f32.mrf.mxu3  ;;  %v7780_v4 = vld [vmem:[%s12535_s0 + $0x88] sm:$0xff]  ;;  %v6664_v1 = vor.u32 %v7887_v9, %v6661_v17  ;;  %v6660_v53 = vor.u32 %v7888_v21, %v6659_v59 }
 0x1b2   :  { %v9593_v31 = vadd.f32 %v1170_v32, %v9409_v23  ;;  %v6701_v23 = vld [vmem:[%s12536_s1 + $0x218] sm:$0xf0]  ;;  %2052 = vmatpush.bf16.msra.mxu2 %v7780_v4  ;;  %v7779_v32 = vld [vmem:[%s12535_s0 + $0x80] sm:$0xff] }
 0x1b3   :  { %v1123_v36 = vpop.f32.mrf.mxu0  ;;  %v6704_v46 = vor.u32 %v7893_v30, %v6701_v23 }
 0x1b5   :  { %v833_v49 = vpop.f32.mrf.mxu2 }
 0x1b6   :  { %v834_v26 = vadd.f32 %v833_v49, %v9378_v2  ;;  %1752 = vmatmul.bf16.gmra.mxu0 %v6700_v33  ;;  %1514 = vmatmul.bf16.gmra.mxu3 %v6656_v62 }
 0x1b7   :  { %v1172_v39 = vpop.f32.mrf.mxu1  ;;  %2053 = vmatpush.bf16.msra.mxu2 %v7779_v32 }
 0x1b8   :  { %v9614_v58 = vadd.f32 %v882_v5, %v834_v26  ;;  %v1173_v16 = vadd.f32 %v1172_v39, %v1123_v36  ;;  %v7787_v5 = vld [vmem:[%s12535_s0 + $0xc0] sm:$0xff]  ;;  %v7898_v26 = vld [vmem:[%s12536_s1 + $0x234] sm:$0xf0] }
 0x1b9   :  { %v885_v60 = vpop.f32.mrf.mxu3  ;;  %2102 = vmatpush.bf16.msra.mxu3 %v7787_v5  ;;  %v7900_v5 = vld [vmem:[%s12536_s1 + $0x244] sm:$0xf0] }
 0x1ba   :  { %v9623_v2 = vadd.f32 %v1173_v16, %v9442_v24  ;;  %1465 = vmatmul.bf16.gmra.mxu2 %v6652_v52  ;;  %1801 = vmatmul.bf16.gmra.mxu1 %v6704_v46  ;;  %v6707_v24 = vld [vmem:[%s12536_s1 + $0x220] sm:$0xf]  ;;  %v6669_v52 = vld [vmem:[%s12536_s1 + $0x1f8] sm:$0xf0] }
 0x1bb   :  { %v1125_v27 = vpop.f32.mrf.mxu0  ;;  %v6708_v22 = vor.u32 %v7896_v7, %v6707_v24 }
 0x1bd   :  { %v836_v13 = vpop.f32.mrf.mxu2 }
 0x1be   :  { %v837_v15 = vadd.f32 %v836_v13, %v9411_v25  ;;  %v7890_v13 = vld [vmem:[%s12536_s1 + $0x1f4] sm:$0xf0] }
 0x1bf   :  { %v1174_v51 = vpop.f32.mrf.mxu1  ;;  %v6668_v24 = vor.u32 %v7890_v13, %v6667_v0  ;;  %v6725_v0 = vld [vmem:[%s12536_s1 + $0x248] sm:$0xf0] }
 0x1c0   :  { %v9644_v25 = vadd.f32 %v885_v60, %v837_v15  ;;  %v1175_v55 = vadd.f32 %v1174_v51, %v1125_v27  ;;  %v6716_v60 = vor.u32 %v7898_v26, %v6715_v57  ;;  %v7899_v26 = vld [vmem:[%s12536_s1 + $0x244] sm:$0xf] }
 0x1c1   :  { %v887_v54 = vpop.f32.mrf.mxu3 }
 0x1c2   :  { %v9653_v20 = vadd.f32 %v1175_v55, %v9474_v61  ;;  %v6709_v61 = vld [vmem:[%s12536_s1 + $0x228] sm:$0xf0] }
 0x1c3   :  { %v1128_v43 = vpop.f32.mrf.mxu0  ;;  %v6712_v33 = vor.u32 %v7895_v28, %v6709_v61  ;;  %v8392_v28 = vpop.permute.xlu0 %8391 }
 0x1c5   :  { %v838_v29 = vpop.f32.mrf.mxu2 }
 0x1c6   :  { %v839_v38 = vadd.f32 %v838_v29, %v9444_v3  ;;  %1757 = vmatmul.bf16.gmra.mxu0 %v6708_v22  ;;  %1519 = vmatmul.bf16.gmra.mxu3 %v6664_v1 }
 0x1c7   :  { %v1177_v62 = vpop.f32.mrf.mxu1 }
 0x1c8   :  { %v9674_v34 = vadd.f32 %v887_v54, %v839_v38  ;;  %v1178_v36 = vadd.f32 %v1177_v62, %v1128_v43  ;;  %v8382_v54 = vpop.permute.xlu1 %8381  ;;  %v8387_v43 = vpop.permute.xlu2 %8386  ;;  %v8394_v38 = vunpack.i.h.bf16 %v8392_v28 }
 0x1c9   :  { %v890_v48 = vpop.f32.mrf.mxu3  ;;  %v8384_v18 = vunpack.i.h.bf16 %v8382_v54  ;;  %v8383_v22 = vunpack.i.l.bf16 %v8382_v54  ;;  %v8389_v61 = vunpack.i.h.bf16 %v8387_v43  ;;  %v8388_v29 = vunpack.i.l.bf16 %v8387_v43 }
 0x1ca   :  { %v9677_v30 = vadd.f32 %v1178_v36, %v9497_v63  ;;  %1470 = vmatmul.bf16.gmra.mxu2 %v6660_v53  ;;  %1806 = vmatmul.bf16.gmra.mxu1 %v6712_v33  ;;  %v7889_v63 = vld [vmem:[%s12536_s1 + $0x1f4] sm:$0xf]  ;;  %v8393_v53 = vunpack.i.l.bf16 %v8392_v28  ;;  %v7907_v36 = vld [vmem:[%s12536_s1 + $0x284] sm:$0xf] }
 0x1cb   :  { %v1130_v23 = vpop.f32.mrf.mxu0  ;;  %v6672_v40 = vor.u32 %v7889_v63, %v6669_v52  ;;  %v2238_v1 = vmul.f32 %v8383_v22, %v8883_v41  ;;  %v2237_v63 = vmul.f32 %v8394_v38, %v8883_v41 }
 0x1cc   :  { %v2236_v52 = vmul.f32 %v8393_v53, %v8883_v41 }
 0x1cd   :  { %v841_v49 = vpop.f32.mrf.mxu2 }
 0x1ce   :  { %v842_v3 = vadd.f32 %v841_v49, %v9476_v47 }
 0x1cf   :  { %v1179_v50 = vpop.f32.mrf.mxu1 }
 0x1d0   :  { %v9692_v46 = vadd.f32 %v890_v48, %v842_v3  ;;  %v1180_v47 = vadd.f32 %v1179_v50, %v1130_v23  ;;  %v2255_v48 = vmul.f32 %v8389_v61, %v8883_v41  ;;  %v2254_v23 = vmul.f32 %v8388_v29, %v8883_v41 }
 0x1d1   :  { %v892_v39 = vpop.f32.mrf.mxu3 }
 0x1d2   :  { %v9695_v16 = vadd.f32 %v1180_v47, %v9516_v37  ;;  %v6717_v37 = vld [vmem:[%s12536_s1 + $0x238] sm:$0xf0]  ;;  %v8397_v47 = vpop.permute.xlu1 %8396 }
 0x1d3   :  { %v1133_v27 = vpop.f32.mrf.mxu0  ;;  %v6720_v51 = vor.u32 %v7897_v11, %v6717_v37  ;;  %v8399_v11 = vunpack.i.h.bf16 %v8397_v47  ;;  %v8398_v37 = vunpack.i.l.bf16 %v8397_v47 }
 0x1d5   :  { %v843_v8 = vpop.f32.mrf.mxu2 }
 0x1d6   :  { %v844_v15 = vadd.f32 %v843_v8, %v9499_v44  ;;  %1762 = vmatmul.bf16.gmra.mxu0 %v6716_v60  ;;  %1524 = vmatmul.bf16.gmra.mxu3 %v6672_v40  ;;  %v2239_v44 = vmul.f32 %v8384_v18, %v8883_v41  ;;  %v6835_v40 = vld [vmem:[%s12536_s1 + $0x280] sm:$0xf] }
 0x1d7   :  { %v1182_v7 = vpop.f32.mrf.mxu1 }
 0x1d8   :  { %v9710_v9 = vadd.f32 %v892_v39, %v844_v15  ;;  %v1183_v17 = vadd.f32 %v1182_v7, %v1133_v27  ;;  %v2280_v33 = vpack.c.bf16 %v2239_v44, %v2238_v1  ;;  %v2288_v39 = vpack.c.bf16 %v2255_v48, %v2254_v23  ;;  %v7908_v27 = vld [vmem:[%s12536_s1 + $0x284] sm:$0xf0] }
 0x1d9   :  { %v895_v55 = vpop.f32.mrf.mxu3  ;;  %v2252_v15 = vmul.f32 %v8398_v37, %v8883_v41  ;;  %v6836_v7 = vor.u32 %v7908_v27, %v6835_v40  ;;  %v7909_v27 = vld [vmem:[%s12536_s1 + $0x294] sm:$0xf] }
 0x1da   :  { %v9713_v4 = vadd.f32 %v1183_v17, %v9535_v56  ;;  %1475 = vmatmul.bf16.gmra.mxu2 %v6668_v24  ;;  %1811 = vmatmul.bf16.gmra.mxu1 %v6720_v51  ;;  %v6723_v56 = vld [vmem:[%s12536_s1 + $0x240] sm:$0xf]  ;;  %v6728_v51 = vor.u32 %v7899_v26, %v6725_v0  ;;  %v8407_v17 = vpop.permute.xlu0 %8406  ;;  %v8412_v38 = vpop.permute.xlu1 %8411 }
 0x1db   :  { %v1135_v59 = vpop.f32.mrf.mxu0  ;;  %2369 = vmatpush.bf16.msrb.mxu0 %v2280_v33  ;;  %v6724_v50 = vor.u32 %v7900_v5, %v6723_v56  ;;  %2418 = vmatpush.bf16.msrb.mxu1 %v2288_v39  ;;  %v8409_v18 = vunpack.i.h.bf16 %v8407_v17  ;;  %v8408_v22 = vunpack.i.l.bf16 %v8407_v17  ;;  %v8414_v33 = vunpack.i.h.bf16 %v8412_v38 }
 0x1dd   :  { %v846_v21 = vpop.f32.mrf.mxu2  ;;  %v2250_v56 = vmul.f32 %v8408_v22, %v8883_v41  ;;  %v2233_v48 = vmul.f32 %v8414_v33, %v8883_v41  ;;  %v6733_v22 = vld [vmem:[%s12536_s1 + $0x258] sm:$0xf0] }
 0x1de   :  { %v847_v32 = vadd.f32 %v846_v21, %v9518_v42  ;;  %v6837_v42 = vld [vmem:[%s12536_s1 + $0x288] sm:$0xf0] }
 0x1df   :  { %v1184_v62 = vpop.f32.mrf.mxu1  ;;  %v6840_v13 = vor.u32 %v7907_v36, %v6837_v42 }
 0x1e0   :  { %v9732_v49 = vadd.f32 %v895_v55, %v847_v32  ;;  %v1185_v3 = vadd.f32 %v1184_v62, %v1135_v59  ;;  %v2279_v55 = vpack.c.bf16 %v2237_v63, %v2236_v52  ;;  %v8402_v59 = vpop.permute.xlu2 %8401  ;;  %v2251_v32 = vmul.f32 %v8409_v18, %v8883_v41 }
 0x1e1   :  { %v897_v57 = vpop.f32.mrf.mxu3  ;;  %v8404_v43 = vunpack.i.h.bf16 %v8402_v59  ;;  %v8403_v21 = vunpack.i.l.bf16 %v8402_v59  ;;  %v8413_v62 = vunpack.i.l.bf16 %v8412_v38  ;;  %v6843_v59 = vld [vmem:[%s12536_s1 + $0x290] sm:$0xf] }
 0x1e2   :  { %v9740_v60 = vadd.f32 %v1185_v3, %v9554_v45  ;;  %v2253_v45 = vmul.f32 %v8399_v11, %v8883_v41  ;;  %2370 = vmatpush.bf16.msrb.mxu0 %v2279_v55  ;;  %v2286_v26 = vpack.c.bf16 %v2251_v32, %v2250_v56  ;;  %v8427_v18 = vpop.permute.xlu1 %8426 }
 0x1e3   :  { %v1138_v8 = vpop.f32.mrf.mxu0  ;;  %v2234_v5 = vmul.f32 %v8403_v21, %v8883_v41  ;;  %v2232_v23 = vmul.f32 %v8413_v62, %v8883_v41  ;;  %v8428_v21 = vunpack.i.l.bf16 %v8427_v18 }
 0x1e4   :  { %v2287_v44 = vpack.c.bf16 %v2253_v45, %v2252_v15 }
 0x1e5   :  { %v848_v24 = vpop.f32.mrf.mxu2  ;;  %v2277_v0 = vpack.c.bf16 %v2233_v48, %v2232_v23  ;;  %v2246_v32 = vmul.f32 %v8428_v21, %v8883_v41 }
 0x1e6   :  { %v849_v54 = vadd.f32 %v848_v24, %v9537_v12  ;;  %1767 = vmatmul.bf16.gmra.mxu0 %v6724_v50  ;;  %2103 = vmatmul.bf16.vlgmr.msra.gmra.mxu3 %v6840_v13  ;;  %v2235_v12 = vmul.f32 %v8404_v43, %v8883_v41  ;;  %v8422_v50 = vpop.permute.xlu0 %8421  ;;  %v6845_v13 = vld [vmem:[%s12536_s1 + $0x298] sm:$0xf0]  ;;  %v8429_v43 = vunpack.i.h.bf16 %v8427_v18  ;;  %v6853_v18 = vld [vmem:[%s12536_s1 + $0x2a8] sm:$0xf0] }
 0x1e7   :  { %v1187_v1 = vpop.f32.mrf.mxu1  ;;  %2419 = vmatpush.bf16.msrb.mxu1 %v2287_v44  ;;  %v8424_v52 = vunpack.i.h.bf16 %v8422_v50  ;;  %v8423_v47 = vunpack.i.l.bf16 %v8422_v50  ;;  %v7910_v44 = vld [vmem:[%s12536_s1 + $0x294] sm:$0xf0] }
 0x1e8   :  { %v9754_v28 = vadd.f32 %v897_v57, %v849_v54  ;;  %v1188_v61 = vadd.f32 %v1187_v1, %v1138_v8  ;;  %v2278_v42 = vpack.c.bf16 %v2235_v12, %v2234_v5  ;;  %v6731_v57 = vld [vmem:[%s12536_s1 + $0x250] sm:$0xf]  ;;  %v8417_v39 = vpop.permute.xlu2 %8416  ;;  %v6848_v1 = vor.u32 %v7909_v27, %v6845_v13 }
 0x1e9   :  { %v1490_v29 = vpop.f32.mrf.mxu3  ;;  %v8419_v11 = vunpack.i.h.bf16 %v8417_v39  ;;  %v8418_v37 = vunpack.i.l.bf16 %v8417_v39  ;;  %v2230_v17 = vmul.f32 %v8423_v47, %v8883_v41  ;;  %v6844_v5 = vor.u32 %v7910_v44, %v6843_v59 }
 0x1ea   :  { %v9761_v53 = vadd.f32 %v1188_v61, %v9584_v35  ;;  %1816 = vmatmul.bf16.gmra.mxu1 %v6728_v51  ;;  %2054 = vmatmul.bf16.vlgmr.msra.gmra.mxu2 %v6836_v7  ;;  %v7902_v35 = vld [vmem:[%s12536_s1 + $0x254] sm:$0xf0]  ;;  %v7901_v51 = vld [vmem:[%s12536_s1 + $0x254] sm:$0xf]  ;;  %v2231_v7 = vmul.f32 %v8424_v52, %v8883_v41 }
 0x1eb   :  { %v1140_v36 = vpop.f32.mrf.mxu0  ;;  %2371 = vmatpush.bf16.msrb.mxu0 %v2278_v42  ;;  %2420 = vmatpush.bf16.msrb.mxu1 %v2286_v26  ;;  %v6732_v15 = vor.u32 %v7902_v35, %v6731_v57  ;;  %v2249_v55 = vmul.f32 %v8419_v11, %v8883_v41  ;;  %v2248_v54 = vmul.f32 %v8418_v37, %v8883_v41 }
 0x1ec   :  { %v6736_v12 = vor.u32 %v7901_v51, %v6733_v22  ;;  %v2276_v33 = vpack.c.bf16 %v2231_v7, %v2230_v17  ;;  %v6739_v51 = vld [vmem:[%s12536_s1 + $0x260] sm:$0xf] }
 0x1ed   :  { %v1441_v3 = vpop.f32.mrf.mxu2 }
 0x1ee   :  { %v1491_v63 = vadd.f32 %v1490_v29, %v1441_v3  ;;  %v2285_v29 = vpack.c.bf16 %v2249_v55, %v2248_v54  ;;  %v8437_v38 = vpop.permute.xlu0 %8436  ;;  %v7904_v55 = vld [vmem:[%s12536_s1 + $0x264] sm:$0xf0]  ;;  %v7911_v54 = vld [vmem:[%s12536_s1 + $0x2a4] sm:$0xf] }
 0x1ef   :  { %v1189_v40 = vpop.f32.mrf.mxu1  ;;  %2372 = vmatpush.bf16.msrb.mxu0 %v2277_v0  ;;  %v8438_v42 = vunpack.i.l.bf16 %v8437_v38 }
 0x1f0   :  { %v9778_v8 = vadd.f32 %v1491_v63, %v9563_v19  ;;  %v1190_v45 = vadd.f32 %v1189_v40, %v1140_v36  ;;  %2421 = vmatpush.bf16.msrb.mxu1 %v2285_v29  ;;  %v8439_v36 = vunpack.i.h.bf16 %v8437_v38  ;;  %v8432_v48 = vpop.permute.xlu2 %8431  ;;  %v8442_v40 = vpop.permute.xlu1 %8441  ;;  %v6856_v38 = vor.u32 %v7911_v54, %v6853_v18 }
 0x1f1   :  { %v1492_v24 = vpop.f32.mrf.mxu3  ;;  %v8434_v57 = vunpack.i.h.bf16 %v8432_v48  ;;  %v8433_v35 = vunpack.i.l.bf16 %v8432_v48  ;;  %v2244_v47 = vmul.f32 %v8438_v42, %v8883_v41  ;;  %v8444_v13 = vunpack.i.h.bf16 %v8442_v40  ;;  %v6741_v48 = vld [vmem:[%s12536_s1 + $0x268] sm:$0xf0] }
 0x1f2   :  { %v9788_v19 = vadd.f32 %v1190_v45, %v9614_v58  ;;  %v2247_v58 = vmul.f32 %v8429_v43, %v8883_v41  ;;  %v2245_v52 = vmul.f32 %v8439_v36, %v8883_v41 }
 0x1f3   :  { %v1143_v61 = vpop.f32.mrf.mxu0  ;;  %2373 = vmatpush.bf16.msrb.mxu0 %v2276_v33  ;;  %v2229_v39 = vmul.f32 %v8434_v57, %v8883_v41  ;;  %v2228_v0 = vmul.f32 %v8433_v35, %v8883_v41  ;;  %v2227_v45 = vmul.f32 %v8444_v13, %v8883_v41 }
 0x1f4   :  { %v2284_v23 = vpack.c.bf16 %v2247_v58, %v2246_v32  ;;  %v2283_v17 = vpack.c.bf16 %v2245_v52, %v2244_v47 }
 0x1f5   :  { %v1443_v56 = vpop.f32.mrf.mxu2  ;;  %v2275_v37 = vpack.c.bf16 %v2229_v39, %v2228_v0 }
 0x1f6   :  { %v1493_v62 = vadd.f32 %v1492_v24, %v1443_v56  ;;  %1772 = vmatmul.bf16.gmra.mxu0 %v6732_v15  ;;  %2108 = vmatmul.bf16.gmra.mxu3 %v6848_v1  ;;  %v8452_v7 = vpop.permute.xlu0 %8451 }
 0x1f7   :  { %v1192_v3 = vpop.f32.mrf.mxu1  ;;  %2422 = vmatpush.bf16.msrb.mxu1 %v2284_v23  ;;  %2374 = vmatpush.bf16.msrb.mxu0 %v2275_v37  ;;  %v8454_v22 = vunpack.i.h.bf16 %v8452_v7  ;;  %v8453_v59 = vunpack.i.l.bf16 %v8452_v7 }
 0x1f8   :  { %v9802_v50 = vadd.f32 %v1493_v62, %v9593_v31  ;;  %v1193_v26 = vadd.f32 %v1192_v3, %v1143_v61  ;;  %v8443_v31 = vunpack.i.l.bf16 %v8442_v40  ;;  %v8447_v44 = vpop.permute.xlu2 %8446  ;;  %v8457_v36 = vpop.permute.xlu1 %8456 }
 0x1f9   :  { %v1495_v63 = vpop.f32.mrf.mxu3  ;;  %v8449_v21 = vunpack.i.h.bf16 %v8447_v44  ;;  %v8448_v61 = vunpack.i.l.bf16 %v8447_v44  ;;  %v2225_v32 = vmul.f32 %v8454_v22, %v8883_v41  ;;  %v2224_v56 = vmul.f32 %v8453_v59, %v8883_v41 }
 0x1fa   :  { %v9809_v27 = vadd.f32 %v1193_v26, %v9644_v25  ;;  %1821 = vmatmul.bf16.gmra.mxu1 %v6736_v12  ;;  %2059 = vmatmul.bf16.gmra.mxu2 %v6844_v5  ;;  %v2226_v15 = vmul.f32 %v8443_v31, %v8883_v41  ;;  %v6740_v5 = vor.u32 %v7904_v55, %v6739_v51  ;;  %v8459_v23 = vunpack.i.h.bf16 %v8457_v36  ;;  %v6851_v26 = vld [vmem:[%s12536_s1 + $0x2a0] sm:$0xf]  ;;  %v7913_v55 = vld [vmem:[%s12536_s1 + $0x2b4] sm:$0xf] }
 0x1fb   :  { %v1145_v11 = vpop.f32.mrf.mxu0  ;;  %2423 = vmatpush.bf16.msrb.mxu1 %v2283_v17  ;;  %v2243_v33 = vmul.f32 %v8449_v21, %v8883_v41  ;;  %v2242_v62 = vmul.f32 %v8448_v61, %v8883_v41  ;;  %v8458_v3 = vunpack.i.l.bf16 %v8457_v36  ;;  %v2273_v57 = vpack.c.bf16 %v2225_v32, %v2224_v56  ;;  %v6747_v17 = vld [vmem:[%s12536_s1 + $0x270] sm:$0xf]  ;;  %v6749_v61 = vld [vmem:[%s12536_s1 + $0x278] sm:$0xf0] }
 0x1fc   :  { %v2274_v1 = vpack.c.bf16 %v2227_v45, %v2226_v15  ;;  %v2241_v52 = vmul.f32 %v8459_v23, %v8883_v41 }
 0x1fd   :  { %v1446_v24 = vpop.f32.mrf.mxu2  ;;  %v2240_v47 = vmul.f32 %v8458_v3, %v8883_v41  ;;  %v6979_v3 = vld [vmem:[%s12536_s1 + $0x300] sm:$0xf] }
 0x1fe   :  { %v1496_v25 = vadd.f32 %v1495_v63, %v1446_v24  ;;  %2375 = vmatpush.bf16.msrb.mxu0 %v2274_v1  ;;  %v2282_v63 = vpack.c.bf16 %v2243_v33, %v2242_v62  ;;  %v7905_v1 = vld [vmem:[%s12536_s1 + $0x274] sm:$0xf] }
 0x1ff   :  { %v1194_v43 = vpop.f32.mrf.mxu1  ;;  %v2281_v31 = vpack.c.bf16 %v2241_v52, %v2240_v47  ;;  %v6752_v56 = vor.u32 %v7905_v1, %v6749_v61  ;;  %v6877_v61 = vld [vmem:[%s12536_s1 + $0x2d8] sm:$0xf0] }
 0x200   :  { %v9826_v29 = vadd.f32 %v1496_v25, %v9623_v2  ;;  %v1195_v58 = vadd.f32 %v1194_v43, %v1145_v11  ;;  %v7903_v2 = vld [vmem:[%s12536_s1 + $0x264] sm:$0xf]  ;;  %2424 = vmatpush.bf16.msrb.mxu1 %v2282_v63 }
 0x201   :  { %v1497_v12 = vpop.f32.mrf.mxu3  ;;  %v6744_v0 = vor.u32 %v7903_v2, %v6741_v48 }
 0x202   :  { %v9833_v42 = vadd.f32 %v1195_v58, %v9674_v34  ;;  %v7912_v34 = vld [vmem:[%s12536_s1 + $0x2a4] sm:$0xf0]  ;;  %2376 = vmatpush.bf16.msrb.mxu0 %v2273_v57 }
 0x203   :  { %v1148_v35 = vpop.f32.mrf.mxu0  ;;  %v6852_v13 = vor.u32 %v7912_v34, %v6851_v26 }
 0x204   :  { %2425 = vmatpush.bf16.msrb.mxu1 %v2281_v31 }
 0x205   :  { %v1448_v39 = vpop.f32.mrf.mxu2 }
 0x206   :  { %v1498_v40 = vadd.f32 %v1497_v12, %v1448_v39  ;;  %1777 = vmatmul.bf16.gmra.mxu0 %v6740_v5  ;;  %2113 = vmatmul.bf16.gmra.mxu3 %v6856_v38  ;;  %v6867_v39 = vld [vmem:[%s12536_s1 + $0x2c0] sm:$0xf] }
 0x207   :  { %v1197_v11 = vpop.f32.mrf.mxu1 }
 0x208   :  { %v9850_v37 = vadd.f32 %v1498_v40, %v9653_v20  ;;  %v1198_v45 = vadd.f32 %v1197_v11, %v1148_v35  ;;  %v7906_v20 = vld [vmem:[%s12536_s1 + $0x274] sm:$0xf0]  ;;  %v7915_v35 = vld [vmem:[%s12536_s1 + $0x2c4] sm:$0xf] }
 0x209   :  { %v1500_v15 = vpop.f32.mrf.mxu3  ;;  %v6748_v44 = vor.u32 %v7906_v20, %v6747_v17  ;;  %v7810_v20 = vld [vmem:[%s12535_s0 + $0x178] sm:$0xff] }
 0x20a   :  { %v9853_v24 = vadd.f32 %v1198_v45, %v9692_v46  ;;  %1826 = vmatmul.bf16.gmra.mxu1 %v6744_v0  ;;  %2064 = vmatmul.bf16.gmra.mxu2 %v6852_v13  ;;  %v6861_v46 = vld [vmem:[%s12536_s1 + $0x2b8] sm:$0xf0]  ;;  %v7916_v13 = vld [vmem:[%s12536_s1 + $0x2c4] sm:$0xf0] }
 0x20b   :  { %v1150_v41 = vpop.f32.mrf.mxu0  ;;  %v6864_v43 = vor.u32 %v7913_v55, %v6861_v46  ;;  %v6868_v45 = vor.u32 %v7916_v13, %v6867_v39  ;;  %2725 = vmatpush.bf16.msrb.mxu3 %v7810_v20 }
 0x20d   :  { %v1451_v51 = vpop.f32.mrf.mxu2 }
 0x20e   :  { %v1501_v7 = vadd.f32 %v1500_v15, %v1451_v51 }
 0x20f   :  { %v1199_v25 = vpop.f32.mrf.mxu1 }
 0x210   :  { %v9868_v54 = vadd.f32 %v1501_v7, %v9677_v30  ;;  %v1200_v18 = vadd.f32 %v1199_v25, %v1150_v41  ;;  %v6859_v30 = vld [vmem:[%s12536_s1 + $0x2b0] sm:$0xf]  ;;  %v7802_v25 = vld [vmem:[%s12535_s0 + $0x138] sm:$0xff] }
 0x211   :  { %v1502_v22 = vpop.f32.mrf.mxu3  ;;  %2676 = vmatpush.bf16.msrb.mxu2 %v7802_v25 }
 0x212   :  { %v9871_v59 = vadd.f32 %v1200_v18, %v9710_v9  ;;  %v7914_v9 = vld [vmem:[%s12536_s1 + $0x2b4] sm:$0xf0]  ;;  %v7801_v18 = vld [vmem:[%s12535_s0 + $0x130] sm:$0xff] }
 0x213   :  { %v1153_v21 = vpop.f32.mrf.mxu0  ;;  %v6860_v12 = vor.u32 %v7914_v9, %v6859_v30 }
 0x215   :  { %v1453_v58 = vpop.f32.mrf.mxu2  ;;  %2677 = vmatpush.bf16.msrb.mxu2 %v7801_v18 }
 0x216   :  { %v1503_v32 = vadd.f32 %v1502_v22, %v1453_v58  ;;  %1782 = vmatmul.bf16.gmra.mxu0 %v6748_v44  ;;  %2118 = vmatmul.bf16.gmra.mxu3 %v6864_v43  ;;  %v7809_v22 = vld [vmem:[%s12535_s0 + $0x170] sm:$0xff]  ;;  %v7926_v43 = vld [vmem:[%s12536_s1 + $0x314] sm:$0xf0] }
 0x217   :  { %v1202_v5 = vpop.f32.mrf.mxu1  ;;  %2726 = vmatpush.bf16.msrb.mxu3 %v7809_v22 }
 0x218   :  { %v9886_v38 = vadd.f32 %v1503_v32, %v9695_v16  ;;  %v1203_v33 = vadd.f32 %v1202_v5, %v1153_v21  ;;  %v7924_v16 = vld [vmem:[%s12536_s1 + $0x304] sm:$0xf0]  ;;  %v7917_v21 = vld [vmem:[%s12536_s1 + $0x2d4] sm:$0xf] }
 0x219   :  { %v1505_v62 = vpop.f32.mrf.mxu3  ;;  %v6980_v47 = vor.u32 %v7924_v16, %v6979_v3  ;;  %v7800_v32 = vld [vmem:[%s12535_s0 + $0x128] sm:$0xff]  ;;  %v7799_v3 = vld [vmem:[%s12535_s0 + $0x120] sm:$0xff] }
 0x21a   :  { %v9889_v36 = vadd.f32 %v1203_v33, %v9732_v49  ;;  %1831 = vmatmul.bf16.gmra.mxu1 %v6752_v56  ;;  %2069 = vmatmul.bf16.gmra.mxu2 %v6860_v12  ;;  %v6869_v49 = vld [vmem:[%s12536_s1 + $0x2c8] sm:$0xf0]  ;;  %v6875_v33 = vld [vmem:[%s12536_s1 + $0x2d0] sm:$0xf] }
 0x21b   :  { %v1155_v2 = vpop.f32.mrf.mxu0  ;;  %v6872_v0 = vor.u32 %v7915_v35, %v6869_v49  ;;  %v7808_v56 = vld [vmem:[%s12535_s0 + $0x168] sm:$0xff]  ;;  %2678 = vmatpush.bf16.msrb.mxu2 %v7800_v32 }
 0x21c   :  { %2727 = vmatpush.bf16.msrb.mxu3 %v7808_v56 }
 0x21d   :  { %v1456_v48 = vpop.f32.mrf.mxu2 }
 0x21e   :  { %v1506_v23 = vadd.f32 %v1505_v62, %v1456_v48  ;;  %v7925_v48 = vld [vmem:[%s12536_s1 + $0x314] sm:$0xf] }
 0x21f   :  { %v1204_v57 = vpop.f32.mrf.mxu1  ;;  %2679 = vmatpush.bf16.msrb.mxu2 %v7799_v3  ;;  %v7003_v3 = vld [vmem:[%s12536_s1 + $0x330] sm:$0xf] }
 0x220   :  { %v9904_v26 = vadd.f32 %v1506_v23, %v9713_v4  ;;  %v1205_v34 = vadd.f32 %v1204_v57, %v1155_v2  ;;  %v7923_v4 = vld [vmem:[%s12536_s1 + $0x304] sm:$0xf]  ;;  %v7918_v2 = vld [vmem:[%s12536_s1 + $0x2d4] sm:$0xf0] }
 0x221   :  { %v1507_v63 = vpop.f32.mrf.mxu3  ;;  %v7807_v57 = vld [vmem:[%s12535_s0 + $0x160] sm:$0xff]  ;;  %v6876_v35 = vor.u32 %v7918_v2, %v6875_v33 }
 0x222   :  { %v9907_v52 = vadd.f32 %v1205_v34, %v9754_v28  ;;  %v6981_v28 = vld [vmem:[%s12536_s1 + $0x308] sm:$0xf0]  ;;  %2728 = vmatpush.bf16.msrb.mxu3 %v7807_v57 }
 0x223   :  { %v1748_v40 = vpop.f32.mrf.mxu0  ;;  %v6984_v15 = vor.u32 %v7923_v4, %v6981_v28  ;;  %v7797_v28 = vld [vmem:[%s12535_s0 + $0x110] sm:$0xff] }
 0x225   :  { %v1458_v31 = vpop.f32.mrf.mxu2 }
 0x226   :  { %v1508_v11 = vadd.f32 %v1507_v63, %v1458_v31  ;;  %2377 = vmatmul.bf16.vlgmr.msrb.gmra.mxu0 %v6980_v47  ;;  %2123 = vmatmul.bf16.gmra.mxu3 %v6872_v0  ;;  %v7798_v0 = vld [vmem:[%s12535_s0 + $0x118] sm:$0xff]  ;;  %v7805_v31 = vld [vmem:[%s12535_s0 + $0x150] sm:$0xff] }
 0x227   :  { %v1797_v41 = vpop.f32.mrf.mxu1  ;;  %2680 = vmatpush.bf16.msrb.mxu2 %v7798_v0  ;;  %v6891_v0 = vld [vmem:[%s12536_s1 + $0x2f0] sm:$0xf] }
 0x228   :  { %v9922_v51 = vadd.f32 %v1508_v11, %v9740_v60  ;;  %v1798_v7 = vadd.f32 %v1797_v41, %v1748_v40  ;;  %v7806_v40 = vld [vmem:[%s12535_s0 + $0x158] sm:$0xff]  ;;  %v7919_v41 = vld [vmem:[%s12536_s1 + $0x2e4] sm:$0xf] }
 0x229   :  { %v1510_v17 = vpop.f32.mrf.mxu3  ;;  %2729 = vmatpush.bf16.msrb.mxu3 %v7806_v40 }
 0x22a   :  { %v9931_v55 = vadd.f32 %v1798_v7, %v9778_v8  ;;  %2074 = vmatmul.bf16.gmra.mxu2 %v6868_v45  ;;  %2426 = vmatmul.bf16.vlgmr.msrb.gmra.mxu1 %v6984_v15  ;;  %v6987_v8 = vld [vmem:[%s12536_s1 + $0x310] sm:$0xf]  ;;  %v7928_v15 = vld [vmem:[%s12536_s1 + $0x324] sm:$0xf0]  ;;  %v6885_v7 = vld [vmem:[%s12536_s1 + $0x2e8] sm:$0xf0] }
 0x22b   :  { %v1750_v46 = vpop.f32.mrf.mxu0  ;;  %v6988_v5 = vor.u32 %v7926_v43, %v6987_v8  ;;  %2681 = vmatpush.bf16.msrb.mxu2 %v7797_v28  ;;  %v7927_v43 = vld [vmem:[%s12536_s1 + $0x324] sm:$0xf] }
 0x22d   :  { %v1461_v60 = vpop.f32.mrf.mxu2  ;;  %2730 = vmatpush.bf16.msrb.mxu3 %v7805_v31 }
 0x22e   :  { %v1511_v44 = vadd.f32 %v1510_v17, %v1461_v60  ;;  %v7804_v60 = vld [vmem:[%s12535_s0 + $0x148] sm:$0xff] }
 0x22f   :  { %v1799_v1 = vpop.f32.mrf.mxu1 }
 0x230   :  { %v9952_v30 = vadd.f32 %v1511_v44, %v9761_v53  ;;  %v1800_v9 = vadd.f32 %v1799_v1, %v1750_v46  ;;  %v6880_v53 = vor.u32 %v7917_v21, %v6877_v61  ;;  %v7796_v46 = vld [vmem:[%s12535_s0 + $0x108] sm:$0xff]  ;;  %v6883_v44 = vld [vmem:[%s12536_s1 + $0x2e0] sm:$0xf] }
 0x231   :  { %v1512_v58 = vpop.f32.mrf.mxu3  ;;  %v7920_v1 = vld [vmem:[%s12536_s1 + $0x2e4] sm:$0xf0]  ;;  %2682 = vmatpush.bf16.msrb.mxu2 %v7796_v46  ;;  %2731 = vmatpush.bf16.msrb.mxu3 %v7804_v60  ;;  %v7795_v61 = vld [vmem:[%s12535_s0 + $0x100] sm:$0xff] }
 0x232   :  { %v9961_v12 = vadd.f32 %v1800_v9, %v9802_v50  ;;  %v6989_v50 = vld [vmem:[%s12536_s1 + $0x318] sm:$0xf0]  ;;  %v7803_v9 = vld [vmem:[%s12535_s0 + $0x140] sm:$0xff]  ;;  %v6884_v32 = vor.u32 %v7920_v1, %v6883_v44  ;;  %v7932_v44 = vld [vmem:[%s12536_s1 + $0x344] sm:$0xf0] }
 0x233   :  { %v1753_v62 = vpop.f32.mrf.mxu0  ;;  %v6992_v49 = vor.u32 %v7925_v48, %v6989_v50 }
 0x235   :  { %v1463_v23 = vpop.f32.mrf.mxu2  ;;  %2683 = vmatpush.bf16.msrb.mxu2 %v7795_v61  ;;  %2732 = vmatpush.bf16.msrb.mxu3 %v7803_v9 }
 0x236   :  { %v1513_v16 = vadd.f32 %v1512_v58, %v1463_v23  ;;  %2382 = vmatmul.bf16.gmra.mxu0 %v6988_v5  ;;  %2128 = vmatmul.bf16.gmra.mxu3 %v6880_v53 }
 0x237   :  { %v1802_v34 = vpop.f32.mrf.mxu1 }
 0x238   :  { %v9982_v63 = vadd.f32 %v1513_v16, %v9788_v19  ;;  %v1803_v47 = vadd.f32 %v1802_v34, %v1753_v62  ;;  %v7921_v16 = vld [vmem:[%s12536_s1 + $0x2f4] sm:$0xf] }
 0x239   :  { %v1515_v39 = vpop.f32.mrf.mxu3 }
 0x23a   :  { %v9991_v13 = vadd.f32 %v1803_v47, %v9826_v29  ;;  %2079 = vmatmul.bf16.gmra.mxu2 %v6876_v35  ;;  %2431 = vmatmul.bf16.gmra.mxu1 %v6992_v49  ;;  %v6995_v29 = vld [vmem:[%s12536_s1 + $0x320] sm:$0xf] }
 0x23b   :  { %v1755_v4 = vpop.f32.mrf.mxu0  ;;  %v6996_v22 = vor.u32 %v7928_v15, %v6995_v29 }
 0x23d   :  { %v1466_v19 = vpop.f32.mrf.mxu2 }
 0x23e   :  { %v1516_v11 = vadd.f32 %v1515_v39, %v1466_v19  ;;  %v7922_v19 = vld [vmem:[%s12536_s1 + $0x2f4] sm:$0xf0] }
 0x23f   :  { %v1804_v45 = vpop.f32.mrf.mxu1 }
 0x240   :  { %v10012_v17 = vadd.f32 %v1516_v11, %v9809_v27  ;;  %v1805_v25 = vadd.f32 %v1804_v45, %v1755_v4  ;;  %v6888_v27 = vor.u32 %v7919_v41, %v6885_v7  ;;  %v6892_v11 = vor.u32 %v7922_v19, %v6891_v0  ;;  %v7816_v19 = vld [vmem:[%s12535_s0 + $0x1a8] sm:$0xff] }
 0x241   :  { %v1517_v20 = vpop.f32.mrf.mxu3 }
 0x242   :  { %v10021_v18 = vadd.f32 %v1805_v25, %v9850_v37  ;;  %v6997_v37 = vld [vmem:[%s12536_s1 + $0x328] sm:$0xf0] }
 0x243   :  { %v1758_v8 = vpop.f32.mrf.mxu0  ;;  %v7000_v56 = vor.u32 %v7927_v43, %v6997_v37  ;;  %v8499_v43 = vmov 0   ;;  %v3111_v37 = vld [vmem:[%s12537_s2 + $0x70] sm:$0xff] }
 0x244   :  { %8460 = vset.pattern.permute.xlu2 %v8499_v43  ;;  %8461 = vset.pattern.permute.xlu0 %v8499_v43 }
 0x245   :  { %v1468_v21 = vpop.f32.mrf.mxu2  ;;  %3185 = vperm.xlu2 %8460, %v3111_v37   ;;  %8462 = vset.pattern.permute.xlu1 %v8499_v43  ;;  %v3104_v43 = vld [vmem:[%s12537_s2 + $0x38] sm:$0xff] }
 0x246   :  { %v1518_v58 = vadd.f32 %v1517_v20, %v1468_v21  ;;  %2387 = vmatmul.bf16.gmra.mxu0 %v6996_v22  ;;  %2133 = vmatmul.bf16.gmra.mxu3 %v6888_v27  ;;  %v7011_v22 = vld [vmem:[%s12536_s1 + $0x340] sm:$0xf]  ;;  %v7939_v27 = vld [vmem:[%s12536_s1 + $0x384] sm:$0xf] }
 0x247   :  { %v1807_v5 = vpop.f32.mrf.mxu1  ;;  %v7012_v9 = vor.u32 %v7932_v44, %v7011_v22  ;;  %v7933_v44 = vld [vmem:[%s12536_s1 + $0x354] sm:$0xf] }
 0x248   :  { %v10042_v33 = vadd.f32 %v1518_v58, %v9833_v42  ;;  %v1808_v53 = vadd.f32 %v1807_v5, %v1758_v8  ;;  %v7930_v42 = vld [vmem:[%s12536_s1 + $0x334] sm:$0xf0]  ;;  %v7059_v5 = vld [vmem:[%s12536_s1 + $0x380] sm:$0xf] }
 0x249   :  { %v1520_v62 = vpop.f32.mrf.mxu3  ;;  %v7004_v39 = vor.u32 %v7930_v42, %v7003_v3 }
 0x24a   :  { %v10045_v2 = vadd.f32 %v1808_v53, %v9868_v54  ;;  %2084 = vmatmul.bf16.gmra.mxu2 %v6884_v32  ;;  %2436 = vmatmul.bf16.gmra.mxu1 %v7000_v56  ;;  %v6893_v54 = vld [vmem:[%s12536_s1 + $0x2f8] sm:$0xf0]  ;;  %v7013_v56 = vld [vmem:[%s12536_s1 + $0x348] sm:$0xf0] }
 0x24b   :  { %v1760_v48 = vpop.f32.mrf.mxu0  ;;  %v6896_v40 = vor.u32 %v7921_v16, %v6893_v54  ;;  %v3112_v53 = vld [vmem:[%s12537_s2 + $0x78] sm:$0xff]  ;;  %v3110_v54 = vld [vmem:[%s12537_s2 + $0x68] sm:$0xff] }
 0x24c   :  { %3190 = vperm.xlu0 %8461, %v3112_v53   ;;  %v3109_v53 = vld [vmem:[%s12537_s2 + $0x60] sm:$0xff] }
 0x24d   :  { %v1471_v50 = vpop.f32.mrf.mxu2  ;;  %3180 = vperm.xlu2 %8460, %v3110_v54   ;;  %3175 = vperm.xlu1 %8462, %v3109_v53   ;;  %v7812_v54 = vld [vmem:[%s12535_s0 + $0x188] sm:$0xff] }
 0x24e   :  { %v1521_v23 = vadd.f32 %v1520_v62, %v1471_v50 }
 0x24f   :  { %v1809_v57 = vpop.f32.mrf.mxu1 }
 0x250   :  { %v10060_v35 = vadd.f32 %v1521_v23, %v9853_v24  ;;  %v1810_v49 = vadd.f32 %v1809_v57, %v1760_v48  ;;  %v7929_v24 = vld [vmem:[%s12536_s1 + $0x334] sm:$0xf]  ;;  %v7818_v48 = vld [vmem:[%s12535_s0 + $0x1b8] sm:$0xff] }
 0x251   :  { %v1522_v34 = vpop.f32.mrf.mxu3  ;;  %2983 = vmatpush.bf16.msra.mxu0 %v7818_v48 }
 0x252   :  { %v10063_v47 = vadd.f32 %v1810_v49, %v9886_v38  ;;  %v7005_v38 = vld [vmem:[%s12536_s1 + $0x338] sm:$0xf0] }
 0x253   :  { %v1763_v4 = vpop.f32.mrf.mxu0  ;;  %v7008_v29 = vor.u32 %v7929_v24, %v7005_v38  ;;  %v7825_v24 = vld [vmem:[%s12535_s0 + $0x1f0] sm:$0xff] }
 0x254   :  { %v7019_v38 = vld [vmem:[%s12536_s1 + $0x350] sm:$0xf] }
 0x255   :  { %v1473_v28 = vpop.f32.mrf.mxu2 }
 0x256   :  { %v1523_v31 = vadd.f32 %v1522_v34, %v1473_v28  ;;  %2392 = vmatmul.bf16.gmra.mxu0 %v7004_v39  ;;  %2138 = vmatmul.bf16.gmra.mxu3 %v6896_v40  ;;  %v7826_v34 = vld [vmem:[%s12535_s0 + $0x1f8] sm:$0xff]  ;;  %v7817_v39 = vld [vmem:[%s12535_s0 + $0x1b0] sm:$0xff]  ;;  %v3105_v40 = vld [vmem:[%s12537_s2 + $0x40] sm:$0xff] }
 0x257   :  { %v1812_v45 = vpop.f32.mrf.mxu1  ;;  %3032 = vmatpush.bf16.msra.mxu1 %v7826_v34  ;;  %2984 = vmatpush.bf16.msra.mxu0 %v7817_v39  ;;  %v7027_v34 = vld [vmem:[%s12536_s1 + $0x360] sm:$0xf] }
 0x258   :  { %v10078_v15 = vadd.f32 %v1523_v31, %v9871_v59  ;;  %v1813_v41 = vadd.f32 %v1812_v45, %v1763_v4  ;;  %3155 = vperm.xlu0 %8461, %v3105_v40   ;;  %v7934_v31 = vld [vmem:[%s12536_s1 + $0x354] sm:$0xf0]  ;;  %v7943_v40 = vld [vmem:[%s12536_s1 + $0x3a4] sm:$0xf] }
 0x259   :  { %v1525_v7 = vpop.f32.mrf.mxu3 }
 0x25a   :  { %v10081_v25 = vadd.f32 %v1813_v41, %v9904_v26  ;;  %2089 = vmatmul.bf16.gmra.mxu2 %v6892_v11  ;;  %2441 = vmatmul.bf16.gmra.mxu1 %v7008_v29  ;;  %v7061_v26 = vld [vmem:[%s12536_s1 + $0x388] sm:$0xf0]  ;;  %v7941_v11 = vld [vmem:[%s12536_s1 + $0x394] sm:$0xf]  ;;  %v7069_v29 = vld [vmem:[%s12536_s1 + $0x398] sm:$0xf0] }
 0x25b   :  { %v1765_v20 = vpop.f32.mrf.mxu0  ;;  %v7064_v58 = vor.u32 %v7939_v27, %v7061_v26  ;;  %2985 = vmatpush.bf16.msra.mxu0 %v7816_v19  ;;  %3033 = vmatpush.bf16.msra.mxu1 %v7825_v24  ;;  %v7021_v26 = vld [vmem:[%s12536_s1 + $0x358] sm:$0xf0] }
 0x25d   :  { %v1476_v46 = vpop.f32.mrf.mxu2 }
 0x25e   :  { %v1526_v60 = vadd.f32 %v1525_v7, %v1476_v46  ;;  %v3108_v7 = vld [vmem:[%s12537_s2 + $0x58] sm:$0xff]  ;;  %v7815_v46 = vld [vmem:[%s12535_s0 + $0x1a0] sm:$0xff] }
 0x25f   :  { %v1814_v59 = vpop.f32.mrf.mxu1  ;;  %3170 = vperm.xlu2 %8460, %v3108_v7   ;;  %2986 = vmatpush.bf16.msra.mxu0 %v7815_v46  ;;  %v7029_v46 = vld [vmem:[%s12536_s1 + $0x368] sm:$0xf0] }
 0x260   :  { %v10096_v8 = vadd.f32 %v1526_v60, %v9889_v36  ;;  %v1815_v1 = vadd.f32 %v1814_v59, %v1765_v20  ;;  %v7931_v36 = vld [vmem:[%s12536_s1 + $0x344] sm:$0xf]  ;;  %v7824_v60 = vld [vmem:[%s12535_s0 + $0x1e8] sm:$0xff]  ;;  %v7072_v59 = vor.u32 %v7941_v11, %v7069_v29  ;;  %3150 = vperm.xlu0 %8461, %v3104_v43  }
 0x261   :  { %v1527_v21 = vpop.f32.mrf.mxu3  ;;  %v7016_v23 = vor.u32 %v7931_v36, %v7013_v56  ;;  %3034 = vmatpush.bf16.msra.mxu1 %v7824_v60  ;;  %v7075_v60 = vld [vmem:[%s12536_s1 + $0x3a0] sm:$0xf] }
 0x262   :  { %v10102_v61 = vadd.f32 %v1815_v1, %v9922_v51  ;;  %v7940_v51 = vld [vmem:[%s12536_s1 + $0x384] sm:$0xf0]  ;;  %v7067_v1 = vld [vmem:[%s12536_s1 + $0x390] sm:$0xf] }
 0x263   :  { %v1768_v32 = vpop.f32.mrf.mxu0  ;;  %v7060_v3 = vor.u32 %v7940_v51, %v7059_v5 }
 0x265   :  { %v1478_v62 = vpop.f32.mrf.mxu2 }
 0x266   :  { %v1528_v50 = vadd.f32 %v1527_v21, %v1478_v62  ;;  %2397 = vmatmul.bf16.gmra.mxu0 %v7012_v9  ;;  %2733 = vmatmul.bf16.vlgmr.msrb.gmra.mxu3 %v7064_v58  ;;  %v7814_v21 = vld [vmem:[%s12535_s0 + $0x198] sm:$0xff]  ;;  %v7823_v9 = vld [vmem:[%s12535_s0 + $0x1e0] sm:$0xff]  ;;  %v7024_v58 = vor.u32 %v7933_v44, %v7021_v26  ;;  %v3103_v62 = vld [vmem:[%s12537_s2 + $0x30] sm:$0xff] }
 0x267   :  { %v1817_v57 = vpop.f32.mrf.mxu1  ;;  %2987 = vmatpush.bf16.msra.mxu0 %v7814_v21  ;;  %3035 = vmatpush.bf16.msra.mxu1 %v7823_v9  ;;  %v3106_v21 = vld [vmem:[%s12537_s2 + $0x48] sm:$0xff]  ;;  %v3097_v9 = vld [vmem:[%s12537_s2] sm:$0xff] }
 0x268   :  { %v10123_v42 = vadd.f32 %v1528_v50, %v9907_v52  ;;  %v1818_v16 = vadd.f32 %v1817_v57, %v1768_v32  ;;  %3145 = vperm.xlu2 %8460, %v3103_v62   ;;  %v7813_v50 = vld [vmem:[%s12535_s0 + $0x190] sm:$0xff]  ;;  %v7938_v62 = vld [vmem:[%s12536_s1 + $0x374] sm:$0xf0] }
 0x269   :  { %v2104_v49 = vpop.f32.mrf.mxu3  ;;  %v3099_v57 = vld [vmem:[%s12537_s2 + $0x10] sm:$0xff] }
 0x26a   :  { %v10135_v0 = vadd.f32 %v1818_v16, %v9952_v30  ;;  %2446 = vmatmul.bf16.gmra.mxu1 %v7016_v23  ;;  %2684 = vmatmul.bf16.vlgmr.msrb.gmra.mxu2 %v7060_v3 }
 0x26b   :  { %v1770_v52 = vpop.f32.mrf.mxu0  ;;  %2988 = vmatpush.bf16.msra.mxu0 %v7813_v50  ;;  %3125 = vperm.xlu0 %8461, %v3099_v57  }
 0x26d   :  { %v2055_v4 = vpop.f32.mrf.mxu2 }
 0x26e   :  { %v2105_v30 = vadd.f32 %v2104_v49, %v2055_v4  ;;  %v7077_v4 = vld [vmem:[%s12536_s1 + $0x3a8] sm:$0xf0] }
 0x26f   :  { %v1819_v28 = vpop.f32.mrf.mxu1  ;;  %2989 = vmatpush.bf16.msra.mxu0 %v7812_v54  ;;  %v7080_v7 = vor.u32 %v7943_v40, %v7077_v4 }
 0x270   :  { %v10159_v45 = vadd.f32 %v2105_v30, %v9931_v55  ;;  %v1820_v41 = vadd.f32 %v1819_v28, %v1770_v52  ;;  %v7020_v55 = vor.u32 %v7934_v31, %v7019_v38  ;;  %v7936_v52 = vld [vmem:[%s12536_s1 + $0x364] sm:$0xf0]  ;;  %v3107_v30 = vld [vmem:[%s12537_s2 + $0x50] sm:$0xff]  ;;  %v7811_v31 = vld [vmem:[%s12535_s0 + $0x180] sm:$0xff] }
 0x271   :  { %v2106_v20 = vpop.f32.mrf.mxu3  ;;  %v3102_v38 = vld [vmem:[%s12537_s2 + $0x28] sm:$0xff]  ;;  %3165 = vperm.xlu1 %8462, %v3107_v30   ;;  %v7028_v29 = vor.u32 %v7936_v52, %v7027_v34 }
 0x272   :  { %v10171_v22 = vadd.f32 %v1820_v41, %v9982_v63  ;;  %v7942_v63 = vld [vmem:[%s12536_s1 + $0x394] sm:$0xf0]  ;;  %3140 = vperm.xlu2 %8460, %v3102_v38   ;;  %v7935_v41 = vld [vmem:[%s12536_s1 + $0x364] sm:$0xf] }
 0x273   :  { %v1773_v27 = vpop.f32.mrf.mxu0  ;;  %v7068_v32 = vor.u32 %v7942_v63, %v7067_v1  ;;  %2990 = vmatpush.bf16.msra.mxu0 %v7811_v31  ;;  %v7032_v26 = vor.u32 %v7935_v41, %v7029_v46  ;;  %v3100_v31 = vld [vmem:[%s12537_s2 + $0x18] sm:$0xff] }
 0x275   :  { %v2057_v37 = vpop.f32.mrf.mxu2 }
 0x276   :  { %v2107_v36 = vadd.f32 %v2106_v20, %v2057_v37  ;;  %2402 = vmatmul.bf16.gmra.mxu0 %v7020_v55  ;;  %2738 = vmatmul.bf16.gmra.mxu3 %v7072_v59  ;;  %v3098_v55 = vld [vmem:[%s12537_s2 + $0x8] sm:$0xff]  ;;  %v7819_v59 = vld [vmem:[%s12535_s0 + $0x1c0] sm:$0xff] }
 0x277   :  { %v1822_v56 = vpop.f32.mrf.mxu1  ;;  %3120 = vperm.xlu0 %8461, %v3098_v55  }
 0x278   :  { %v10195_v5 = vadd.f32 %v2107_v36, %v9961_v12  ;;  %v1823_v51 = vadd.f32 %v1822_v56, %v1773_v27  ;;  %v7822_v12 = vld [vmem:[%s12535_s0 + $0x1d8] sm:$0xff] }
 0x279   :  { %v2109_v48 = vpop.f32.mrf.mxu3  ;;  %3036 = vmatpush.bf16.msra.mxu1 %v7822_v12  ;;  %3160 = vperm.xlu1 %8462, %v3106_v21   ;;  %v7948_v21 = vld [vmem:[%s12536_s1 + $0x3c4] sm:$0xf0] }
 0x27a   :  { %v10207_v23 = vadd.f32 %v1823_v51, %v10012_v17  ;;  %2451 = vmatmul.bf16.gmra.mxu1 %v7024_v58  ;;  %2689 = vmatmul.bf16.gmra.mxu2 %v7068_v32  ;;  %v7821_v17 = vld [vmem:[%s12535_s0 + $0x1d0] sm:$0xff] }
 0x27b   :  { %v1775_v3 = vpop.f32.mrf.mxu0  ;;  %3115 = vperm.xlu2 %8460, %v3097_v9   ;;  %v7035_v51 = vld [vmem:[%s12536_s1 + $0x370] sm:$0xf] }
 0x27c   :  { %v7036_v54 = vor.u32 %v7938_v62, %v7035_v51 }
 0x27d   :  { %v2060_v16 = vpop.f32.mrf.mxu2  ;;  %3037 = vmatpush.bf16.msra.mxu1 %v7821_v17  ;;  %v7937_v17 = vld [vmem:[%s12536_s1 + $0x374] sm:$0xf] }
 0x27e   :  { %v2110_v49 = vadd.f32 %v2109_v48, %v2060_v16  ;;  %v7945_v48 = vld [vmem:[%s12536_s1 + $0x3b4] sm:$0xf] }
 0x27f   :  { %v1824_v39 = vpop.f32.mrf.mxu1 }
 0x280   :  { %v10234_v19 = vadd.f32 %v2110_v49, %v9991_v13  ;;  %v1825_v24 = vadd.f32 %v1824_v39, %v1775_v3  ;;  %v7820_v13 = vld [vmem:[%s12535_s0 + $0x1c8] sm:$0xff]  ;;  %v3101_v3 = vld [vmem:[%s12537_s2 + $0x20] sm:$0xff]  ;;  %v7083_v39 = vld [vmem:[%s12536_s1 + $0x3b0] sm:$0xf]  ;;  %s8520_s0 = smov 100  }
 0x281   :  { %v2111_v28 = vpop.f32.mrf.mxu3  ;;  %3038 = vmatpush.bf16.msra.mxu1 %v7820_v13  ;;  %3135 = vperm.xlu1 %8462, %v3101_v3  }
 0x282   :  { %v10249_v11 = vadd.f32 %v1825_v24, %v10042_v33  ;;  %v7944_v33 = vld [vmem:[%s12536_s1 + $0x3a4] sm:$0xf0] }
 0x283   :  { %v1778_v20 = vpop.f32.mrf.mxu0  ;;  %v7076_v1 = vor.u32 %v7944_v33, %v7075_v60  ;;  %v7956_v60 = vld [vmem:[%s12536_s1 + $0x404] sm:$0xf0]  ;;  %v7947_v33 = vld [vmem:[%s12536_s1 + $0x3c4] sm:$0xf] }
 0x285   :  { %v2062_v44 = vpop.f32.mrf.mxu2  ;;  %3039 = vmatpush.bf16.msra.mxu1 %v7819_v59 }
 0x286   :  { %v2112_v27 = vadd.f32 %v2111_v28, %v2062_v44  ;;  %2407 = vmatmul.bf16.gmra.mxu0 %v7028_v29  ;;  %2743 = vmatmul.bf16.gmra.mxu3 %v7080_v7 }
 0x287   :  { %v1827_v63 = vpop.f32.mrf.mxu1 }
 0x288   :  { %v10270_v43 = vadd.f32 %v2112_v27, %v10021_v18  ;;  %v1828_v37 = vadd.f32 %v1827_v63, %v1778_v20 }
 0x289   :  { %v2114_v36 = vpop.f32.mrf.mxu3  ;;  %3130 = vperm.xlu1 %8462, %v3100_v31  }
 0x28a   :  { %v10279_v58 = vadd.f32 %v1828_v37, %v10060_v35  ;;  %2456 = vmatmul.bf16.gmra.mxu1 %v7032_v26  ;;  %2694 = vmatmul.bf16.gmra.mxu2 %v7076_v1  ;;  %v7085_v35 = vld [vmem:[%s12536_s1 + $0x3b8] sm:$0xf0]  ;;  %v7091_v1 = vld [vmem:[%s12536_s1 + $0x3c0] sm:$0xf] }
 0x28b   :  { %v1780_v18 = vpop.f32.mrf.mxu0  ;;  %v7088_v49 = vor.u32 %v7945_v48, %v7085_v35 }
 0x28d   :  { %v2065_v32 = vpop.f32.mrf.mxu2 }
 0x28e   :  { %v2115_v56 = vadd.f32 %v2114_v36, %v2065_v32 }
 0x28f   :  { %v1829_v53 = vpop.f32.mrf.mxu1 }
 0x290   :  { %v10294_v50 = vadd.f32 %v2115_v56, %v10045_v2  ;;  %v1830_v12 = vadd.f32 %v1829_v53, %v1780_v18  ;;  %v7037_v2 = vld [vmem:[%s12536_s1 + $0x378] sm:$0xf0]  ;;  %v7092_v18 = vor.u32 %v7948_v21, %v7091_v1  ;;  %v7107_v21 = vld [vmem:[%s12536_s1 + $0x3e0] sm:$0xf] }
 0x291   :  { %v2116_v57 = vpop.f32.mrf.mxu3  ;;  %v7040_v4 = vor.u32 %v7937_v17, %v7037_v2  ;;  %v7101_v17 = vld [vmem:[%s12536_s1 + $0x3d8] sm:$0xf0] }
 0x292   :  { %v10300_v16 = vadd.f32 %v1830_v12, %v10078_v15  ;;  %v7946_v15 = vld [vmem:[%s12536_s1 + $0x3b4] sm:$0xf0] }
 0x293   :  { %v1783_v34 = vpop.f32.mrf.mxu0  ;;  %v7084_v24 = vor.u32 %v7946_v15, %v7083_v39  ;;  %v7099_v15 = vld [vmem:[%s12536_s1 + $0x3d0] sm:$0xf] }
 0x295   :  { %v2067_v52 = vpop.f32.mrf.mxu2 }
 0x296   :  { %v2117_v40 = vadd.f32 %v2116_v57, %v2067_v52  ;;  %2412 = vmatmul.bf16.gmra.mxu0 %v7036_v54  ;;  %2748 = vmatmul.bf16.gmra.mxu3 %v7088_v49  ;;  %v7211_v57 = vld [vmem:[%s12536_s1 + $0x410] sm:$0xf] }
 0x297   :  { %v1832_v30 = vpop.f32.mrf.mxu1 }
 0x298   :  { %v10315_v38 = vadd.f32 %v2117_v40, %v10063_v47  ;;  %v1833_v28 = vadd.f32 %v1832_v30, %v1783_v34  ;;  %v7203_v47 = vld [vmem:[%s12536_s1 + $0x400] sm:$0xf] }
 0x299   :  { %v2119_v13 = vpop.f32.mrf.mxu3  ;;  %v7204_v26 = vor.u32 %v7956_v60, %v7203_v47 }
 0x29a   :  { %v10321_v29 = vadd.f32 %v1833_v28, %v10096_v8  ;;  %2461 = vmatmul.bf16.gmra.mxu1 %v7040_v4  ;;  %2699 = vmatmul.bf16.gmra.mxu2 %v7084_v24  ;;  %v7093_v8 = vld [vmem:[%s12536_s1 + $0x3c8] sm:$0xf0]  ;;  %v7950_v24 = vld [vmem:[%s12536_s1 + $0x3d4] sm:$0xf0] }
 0x29b   :  { %v1785_v41 = vpop.f32.mrf.mxu0  ;;  %v7096_v63 = vor.u32 %v7947_v33, %v7093_v8  ;;  %v7100_v28 = vor.u32 %v7950_v24, %v7099_v15  ;;  %v7951_v33 = vld [vmem:[%s12536_s1 + $0x3e4] sm:$0xf]  ;;  %v7115_v24 = vld [vmem:[%s12536_s1 + $0x3f0] sm:$0xf] }
 0x29d   :  { %v2070_v7 = vpop.f32.mrf.mxu2 }
 0x29e   :  { %v2120_v20 = vadd.f32 %v2119_v13, %v2070_v7 }
 0x29f   :  { %v1834_v46 = vpop.f32.mrf.mxu1 }
 0x2a0   :  { %v10336_v55 = vadd.f32 %v2120_v20, %v10081_v25  ;;  %v1835_v44 = vadd.f32 %v1834_v46, %v1785_v41  ;;  %v7955_v25 = vld [vmem:[%s12536_s1 + $0x404] sm:$0xf] }
 0x2a1   :  { %v2121_v59 = vpop.f32.mrf.mxu3 }
 0x2a2   :  { %v10339_v27 = vadd.f32 %v1835_v44, %v10123_v42  ;;  %v7205_v42 = vld [vmem:[%s12536_s1 + $0x408] sm:$0xf0] }
 0x2a3   :  { %v2378_v37 = vpop.f32.mrf.mxu0  ;;  %v7208_v32 = vor.u32 %v7955_v25, %v7205_v42  ;;  %v7109_v44 = vld [vmem:[%s12536_s1 + $0x3e8] sm:$0xf0] }
 0x2a4   :  { %v7112_v25 = vor.u32 %v7951_v33, %v7109_v44 }
 0x2a5   :  { %v2072_v9 = vpop.f32.mrf.mxu2 }
 0x2a6   :  { %v2122_v36 = vadd.f32 %v2121_v59, %v2072_v9  ;;  %2991 = vmatmul.bf16.vlgmr.msra.gmra.mxu0 %v7204_v26  ;;  %2753 = vmatmul.bf16.gmra.mxu3 %v7096_v63  ;;  %v7219_v59 = vld [vmem:[%s12536_s1 + $0x420] sm:$0xf] }
 0x2a7   :  { %v2427_v56 = vpop.f32.mrf.mxu1 }
 0x2a8   :  { %v10354_v51 = vadd.f32 %v2122_v36, %v10102_v61  ;;  %v2428_v53 = vadd.f32 %v2427_v56, %v2378_v37  ;;  %v7949_v61 = vld [vmem:[%s12536_s1 + $0x3d4] sm:$0xf]  ;;  %v7952_v36 = vld [vmem:[%s12536_s1 + $0x3e4] sm:$0xf0] }
 0x2a9   :  { %v2124_v62 = vpop.f32.mrf.mxu3  ;;  %v7104_v52 = vor.u32 %v7949_v61, %v7101_v17  ;;  %v7953_v61 = vld [vmem:[%s12536_s1 + $0x3f4] sm:$0xf] }
 0x2aa   :  { %v10357_v48 = vadd.f32 %v2428_v53, %v10159_v45  ;;  %2704 = vmatmul.bf16.gmra.mxu2 %v7092_v18  ;;  %3040 = vmatmul.bf16.vlgmr.msra.gmra.mxu1 %v7208_v32  ;;  %v7958_v45 = vld [vmem:[%s12536_s1 + $0x414] sm:$0xf0]  ;;  %v7108_v32 = vor.u32 %v7952_v36, %v7107_v21  ;;  %v7964_v21 = vld [vmem:[%s12536_s1 + $0x444] sm:$0xf0] }
 0x2ab   :  { %v2380_v35 = vpop.f32.mrf.mxu0  ;;  %v7212_v40 = vor.u32 %v7958_v45, %v7211_v57  ;;  %v7117_v45 = vld [vmem:[%s12536_s1 + $0x3f8] sm:$0xf0] }
 0x2ad   :  { %v2075_v12 = vpop.f32.mrf.mxu2 }
 0x2ae   :  { %v2125_v3 = vadd.f32 %v2124_v62, %v2075_v12 }
 0x2af   :  { %v2429_v54 = vpop.f32.mrf.mxu1 }
 0x2b0   :  { %v10372_v49 = vadd.f32 %v2125_v3, %v10135_v0  ;;  %v2430_v34 = vadd.f32 %v2429_v54, %v2380_v35  ;;  %v7957_v0 = vld [vmem:[%s12536_s1 + $0x414] sm:$0xf] }
 0x2b1   :  { %v10374_v2 = vpop.f32.mrf.mxu3 }
 0x2b2   :  { %v10377_v39 = vadd.f32 %v2430_v34, %v10195_v5  ;;  %v7213_v5 = vld [vmem:[%s12536_s1 + $0x418] sm:$0xf0]  ;;  %v7227_v34 = vld [vmem:[%s12536_s1 + $0x430] sm:$0xf] }
 0x2b3   :  { %v2383_v4 = vpop.f32.mrf.mxu0  ;;  %v7216_v31 = vor.u32 %v7957_v0, %v7213_v5  ;;  %v7120_v0 = vor.u32 %v7953_v61, %v7117_v45  ;;  %v7245_v61 = vld [vmem:[%s12536_s1 + $0x458] sm:$0xf0] }
 0x2b5   :  { %v10391_v30 = vpop.f32.mrf.mxu2 }
 0x2b6   :  { %2758 = vmatmul.bf16.gmra.mxu3 %v7104_v52  ;;  %2996 = vmatmul.bf16.gmra.mxu0 %v7212_v40 }
 0x2b7   :  { %v2432_v13 = vpop.f32.mrf.mxu1 }
 0x2b8   :  { %v2433_v41 = vadd.f32 %v2432_v13, %v2383_v4 }
 0x2b9   :  { %v2129_v7 = vpop.f32.mrf.mxu3 }
 0x2ba   :  { %v10394_v20 = vadd.f32 %v2433_v41, %v10234_v19  ;;  %2709 = vmatmul.bf16.gmra.mxu2 %v7100_v28  ;;  %3045 = vmatmul.bf16.gmra.mxu1 %v7216_v31  ;;  %v7960_v19 = vld [vmem:[%s12536_s1 + $0x424] sm:$0xf0]  ;;  %v7954_v31 = vld [vmem:[%s12536_s1 + $0x3f4] sm:$0xf0] }
 0x2bb   :  { %v2385_v47 = vpop.f32.mrf.mxu0  ;;  %v7220_v42 = vor.u32 %v7960_v19, %v7219_v59  ;;  %v7116_v41 = vor.u32 %v7954_v31, %v7115_v24  ;;  %v10511_v24 = vpop.permute.xlu2 %3185  ;;  %v7251_v31 = vld [vmem:[%s12536_s1 + $0x460] sm:$0xf] }
 0x2bd   :  { %v2080_v46 = vpop.f32.mrf.mxu2 }
 0x2be   :  { %v2130_v60 = vadd.f32 %v2129_v7, %v2080_v46 }
 0x2bf   :  { %v2434_v8 = vpop.f32.mrf.mxu1 }
 0x2c0   :  { %v10409_v26 = vadd.f32 %v2130_v60, %v10207_v23  ;;  %v2435_v1 = vadd.f32 %v2434_v8, %v2385_v47  ;;  %v7959_v23 = vld [vmem:[%s12536_s1 + $0x424] sm:$0xf] }
 0x2c1   :  { %v10411_v63 = vpop.f32.mrf.mxu3 }
 0x2c2   :  { %v10414_v37 = vadd.f32 %v2435_v1, %v10270_v43  ;;  %v7221_v43 = vld [vmem:[%s12536_s1 + $0x428] sm:$0xf0]  ;;  %v7235_v1 = vld [vmem:[%s12536_s1 + $0x440] sm:$0xf] }
 0x2c3   :  { %v2388_v9 = vpop.f32.mrf.mxu0  ;;  %v7224_v56 = vor.u32 %v7959_v23, %v7221_v43  ;;  %v7963_v23 = vld [vmem:[%s12536_s1 + $0x444] sm:$0xf]  ;;  %v7237_v43 = vld [vmem:[%s12536_s1 + $0x448] sm:$0xf0] }
 0x2c5   :  { %v10428_v18 = vpop.f32.mrf.mxu2 }
 0x2c6   :  { %2763 = vmatmul.bf16.gmra.mxu3 %v7112_v25  ;;  %3001 = vmatmul.bf16.gmra.mxu0 %v7220_v42 }
 0x2c7   :  { %v2437_v53 = vpop.f32.mrf.mxu1 }
 0x2c8   :  { %v2438_v62 = vadd.f32 %v2437_v53, %v2388_v9  ;;  %v7236_v9 = vor.u32 %v7964_v21, %v7235_v1 }
 0x2c9   :  { %v2134_v35 = vpop.f32.mrf.mxu3 }
 0x2ca   :  { %v10431_v12 = vadd.f32 %v2438_v62, %v10294_v50  ;;  %2714 = vmatmul.bf16.gmra.mxu2 %v7108_v32  ;;  %3050 = vmatmul.bf16.gmra.mxu1 %v7224_v56  ;;  %v7962_v50 = vld [vmem:[%s12536_s1 + $0x434] sm:$0xf0]  ;;  %v7240_v32 = vor.u32 %v7963_v23, %v7237_v43  ;;  %v7259_v43 = vld [vmem:[%s12536_s1 + $0x470] sm:$0xf] }
 0x2cb   :  { %v2390_v3 = vpop.f32.mrf.mxu0  ;;  %v7228_v5 = vor.u32 %v7962_v50, %v7227_v34 }
 0x2cd   :  { %v2085_v57 = vpop.f32.mrf.mxu2 }
 0x2ce   :  { %v2135_v54 = vadd.f32 %v2134_v35, %v2085_v57  ;;  %v7243_v35 = vld [vmem:[%s12536_s1 + $0x450] sm:$0xf] }
 0x2cf   :  { %v2439_v17 = vpop.f32.mrf.mxu1 }
 0x2d0   :  { %v10446_v15 = vadd.f32 %v2135_v54, %v10279_v58  ;;  %v2440_v52 = vadd.f32 %v2439_v17, %v2390_v3  ;;  %v7961_v58 = vld [vmem:[%s12536_s1 + $0x434] sm:$0xf]  ;;  %v7966_v3 = vld [vmem:[%s12536_s1 + $0x454] sm:$0xf0] }
 0x2d1   :  { %v10448_v40 = vpop.f32.mrf.mxu3  ;;  %v7244_v57 = vor.u32 %v7966_v3, %v7243_v35  ;;  %v7261_v35 = vld [vmem:[%s12536_s1 + $0x478] sm:$0xf0] }
 0x2d2   :  { %v10451_v4 = vadd.f32 %v2440_v52, %v10315_v38  ;;  %v7229_v38 = vld [vmem:[%s12536_s1 + $0x438] sm:$0xf0] }
 0x2d3   :  { %v2393_v28 = vpop.f32.mrf.mxu0  ;;  %v7232_v7 = vor.u32 %v7961_v58, %v7229_v38  ;;  %v7968_v58 = vld [vmem:[%s12536_s1 + $0x464] sm:$0xf0] }
 0x2d5   :  { %v10465_v13 = vpop.f32.mrf.mxu2 }
 0x2d6   :  { %2768 = vmatmul.bf16.gmra.mxu3 %v7120_v0  ;;  %3006 = vmatmul.bf16.gmra.mxu0 %v7228_v5 }
 0x2d7   :  { %v2442_v47 = vpop.f32.mrf.mxu1 }
 0x2d8   :  { %v2443_v46 = vadd.f32 %v2442_v47, %v2393_v28  ;;  %v10526_v47 = vpop.permute.xlu2 %3180 }
 0x2d9   :  { %v2139_v8 = vpop.f32.mrf.mxu3 }
 0x2da   :  { %v10468_v60 = vadd.f32 %v2443_v46, %v10336_v55  ;;  %2719 = vmatmul.bf16.gmra.mxu2 %v7116_v41  ;;  %3055 = vmatmul.bf16.gmra.mxu1 %v7232_v7  ;;  %v7252_v7 = vor.u32 %v7968_v58, %v7251_v31  ;;  %v7967_v46 = vld [vmem:[%s12536_s1 + $0x464] sm:$0xf] }
 0x2db   :  { %v2395_v33 = vpop.f32.mrf.mxu0 }
 0x2dd   :  { %v2090_v44 = vpop.f32.mrf.mxu2 }
 0x2de   :  { %v2140_v59 = vadd.f32 %v2139_v8, %v2090_v44 }
 0x2df   :  { %v2444_v19 = vpop.f32.mrf.mxu1 }
 0x2e0   :  { %v10477_v25 = vadd.f32 %v2140_v59, %v10321_v29  ;;  %v2445_v55 = vadd.f32 %v2444_v19, %v2395_v33  ;;  %v7253_v33 = vld [vmem:[%s12536_s1 + $0x468] sm:$0xf0]  ;;  %v10534_v19 = vpop.permute.xlu0 %3190 }
 0x2e1   :  { %v10509_v50 = vpop.f32.mrf.mxu3  ;;  %v7256_v8 = vor.u32 %v7967_v46, %v7253_v33  ;;  %12558 = vst [vmem:[#allocation4_spill] sm:$0xff] %v10534_v19 }
 0x2e2   :  { %v10480_v42 = vadd.f32 %v2445_v55, %v10354_v51 }
 0x2e3   :  { %v2398_v36 = vpop.f32.mrf.mxu0 }
 0x2e5   :  { %v10507_v34 = vpop.f32.mrf.mxu2 }
 0x2e6   :  { %3011 = vmatmul.bf16.gmra.mxu0 %v7236_v9 }
 0x2e7   :  { %v2447_v56 = vpop.f32.mrf.mxu1 }
 0x2e8   :  { %v2448_v53 = vadd.f32 %v2447_v56, %v2398_v36  ;;  %v10541_v36 = vpop.permute.xlu2 %3170  ;;  %v10557_v3 = vpop.permute.xlu0 %3155 }
 0x2e9   :  { %v2734_v41 = vpop.f32.mrf.mxu3 }
 0x2ea   :  { %v10489_v29 = vadd.f32 %v2448_v53, %v10372_v49  ;;  %3060 = vmatmul.bf16.gmra.mxu1 %v7240_v32  ;;  %v7965_v49 = vld [vmem:[%s12536_s1 + $0x454] sm:$0xf]  ;;  %v7970_v32 = vld [vmem:[%s12536_s1 + $0x474] sm:$0xf0] }
 0x2eb   :  { %v10491_v51 = vpop.f32.mrf.mxu0  ;;  %v7248_v17 = vor.u32 %v7965_v49, %v7245_v61  ;;  %v7260_v56 = vor.u32 %v7970_v32, %v7259_v43  ;;  %v7969_v53 = vld [vmem:[%s12536_s1 + $0x474] sm:$0xf]  ;;  %s8500_s1 = smov 7  }
 0x2ec   :  { %v7264_v49 = vor.u32 %v7969_v53, %v7261_v35 }
 0x2ed   :  { %v2685_v38 = vpop.f32.mrf.mxu2 }
 0x2ef   :  { %v10493_v62 = vpop.f32.mrf.mxu1 }
 0x2f0   :  { %v10559_v61 = vpop.permute.xlu2 %3145  ;;  %v10566_v58 = vpop.permute.xlu0 %3150 }
 0x2f1   :  { %v2736_v9 = vpop.f32.mrf.mxu3 }
 0x2f3   :  { %v2403_v54 = vpop.f32.mrf.mxu0 }
 0x2f5   :  { %v2687_v55 = vpop.f32.mrf.mxu2 }
 0x2f6   :  { %3016 = vmatmul.bf16.gmra.mxu0 %v7244_v57  ;;  %v2737_v10 = vadd.f32 %v2736_v9, %v2687_v55 }
 0x2f7   :  { %v2452_v45 = vpop.f32.mrf.mxu1 }
 0x2f8   :  { %v2453_v52 = vadd.f32 %v2452_v45, %v2403_v54 }
 0x2f9   :  { %v2739_v54 = vpop.f32.mrf.mxu3 }
 0x2fa   :  { %v10514_v0 = vadd.f32 %v2453_v52, %v10409_v26  ;;  %3065 = vmatmul.bf16.gmra.mxu1 %v7248_v17 }
 0x2fb   :  { %v10516_v5 = vpop.f32.mrf.mxu0 }
 0x2fd   :  { %v2690_v57 = vpop.f32.mrf.mxu2 }
 0x2ff   :  { %v10518_v28 = vpop.f32.mrf.mxu1 }
 0x301   :  { %v2741_v33 = vpop.f32.mrf.mxu3 }
 0x303   :  { %v2408_v26 = vpop.f32.mrf.mxu0 }
 0x305   :  { %v2692_v46 = vpop.f32.mrf.mxu2 }
 0x306   :  { %3021 = vmatmul.bf16.gmra.mxu0 %v7252_v7  ;;  %v10568_v7 = vpop.permute.xlu1 %3175 }
 0x307   :  { %v2457_v44 = vpop.f32.mrf.mxu1  ;;  %12559 = vst [vmem:[#allocation5_spill] sm:$0xff] %v10568_v7  ;;  %v2775_v7 = vadd.f32 %v2737_v10, %v10377_v39 }
 0x308   :  { %v2458_v59 = vadd.f32 %v2457_v44, %v2408_v26 }
 0x309   :  { %v2744_v35 = vpop.f32.mrf.mxu3 }
 0x30a   :  { %v10537_v1 = vadd.f32 %v2458_v59, %v10446_v15  ;;  %3070 = vmatmul.bf16.gmra.mxu1 %v7256_v8  ;;  %v10572_v8 = vpop.permute.xlu2 %3140  ;;  %v2735_v59 = vadd.f32 %v2734_v41, %v2685_v38 }
 0x30b   :  { %v10539_v21 = vpop.f32.mrf.mxu0 }
 0x30c   :  { %v2774_v32 = vadd.f32 %v2735_v59, %v10357_v48  ;;  %v2740_v59 = vadd.f32 %v2739_v54, %v2690_v57 }
 0x30d   :  { %v2695_v53 = vpop.f32.mrf.mxu2 }
 0x30f   :  { %v10543_v23 = vpop.f32.mrf.mxu1 }
 0x311   :  { %v2746_v10 = vpop.f32.mrf.mxu3 }
 0x313   :  { %v2413_v15 = vpop.f32.mrf.mxu0 }
 0x316   :  { %3026 = vmatmul.bf16.gmra.mxu0 %v7260_v56 }
 0x317   :  { %v2462_v17 = vpop.f32.mrf.mxu1 }
 0x318   :  { %v2463_v45 = vadd.f32 %v2462_v17, %v2413_v15  ;;  %v10575_v15 = vpop.permute.xlu1 %3165  ;;  %v3116_v17 = vpop.permute.xlu2 %3115 }
 0x31a   :  { %v10562_v52 = vadd.f32 %v2463_v45, %v10477_v25  ;;  %3075 = vmatmul.bf16.gmra.mxu1 %v7264_v49  ;;  %v3126_v25 = vpop.permute.xlu0 %3125 }
 0x31b   :  { %v10564_v31 = vpop.f32.mrf.mxu0 }
 0x31f   :  { %v10570_v26 = vpop.f32.mrf.mxu1 }
 0x320   :  { %v10586_v55 = vpop.permute.xlu1 %3160 }
 0x322   :  { %v3121_v48 = vpop.permute.xlu0 %3120 }
 0x323   :  { %v2992_v44 = vpop.f32.mrf.mxu0 }
 0x327   :  { %v3041_v43 = vpop.f32.mrf.mxu1 }
 0x328   :  { %v3042_v56 = vadd.f32 %v3041_v43, %v2992_v44  ;;  %v2697_v43 = vpop.f32.mrf.mxu2 }
 0x32a   :  { %v3081_v49 = vadd.f32 %v3042_v56, %v2774_v32 }
 0x32b   :  { %v2994_v45 = vpop.f32.mrf.mxu0 }
 0x32c   :  { %v3193_v14 = vadd.f32 %v3116_v17, %v3081_v49  ;;  %v3136_v49 = vpop.permute.xlu1 %3135  ;;  %v2742_v17 = vadd.f32 %v2741_v33, %v2692_v46 }
 0x32e   :  { %vm3209_vm2 = vcmp.gt.f32.partialorder %v3193_v14, 0.0  ;;  %v3225_v6 = vmul.f32 0.2, %v3193_v14 }
 0x32f   :  { %v3043_v19 = vpop.f32.mrf.mxu1 }
 0x330   :  { %v10578_v38 = vsel %vm3209_vm2, %v3193_v14, %v3225_v6  ;;  %v3044_v41 = vadd.f32 %v3043_v19, %v2994_v45  ;;  %v2776_v19 = vadd.f32 %v2740_v59, %v10394_v20  ;;  %v2700_v45 = vpop.f32.mrf.mxu2  ;;  %v2749_v20 = vpop.f32.mrf.mxu3  ;;  %v2777_v59 = vadd.f32 %v2742_v17, %v10414_v37 }
 0x331   :  { %3775 = vrot.lane.b32.xlu0 %v10578_v38, %s8498_s17  ;;  %3414 = vrot.lane.b32.xlu1 %v10578_v38, %s8496_s24 }
 0x332   :  { %v3082_v44 = vadd.f32 %v3044_v41, %v2775_v7  ;;  %3478 = vrot.lane.b32.xlu2 %v10578_v38, %s8495_s23 }
 0x333   :  { %v2997_v9 = vpop.f32.mrf.mxu0 }
 0x334   :  { %v3194_v6 = vadd.f32 %v3121_v48, %v3082_v44 }
 0x336   :  { %vm3210_vm3 = vcmp.gt.f32.partialorder %v3194_v6, 0.0  ;;  %v3226_v14 = vmul.f32 0.2, %v3194_v6 }
 0x337   :  { %v3046_v39 = vpop.f32.mrf.mxu1 }
 0x338   :  { %v10589_v32 = vsel %vm3210_vm3, %v3194_v6, %v3226_v14  ;;  %v3047_v56 = vadd.f32 %v3046_v39, %v2997_v9  ;;  %v3131_v6 = vpop.permute.xlu1 %3130  ;;  %v2702_v39 = vpop.f32.mrf.mxu2 }
 0x339   :  { %3649 = vrot.lane.b32.xlu1 %v10578_v38, %s8500_s1  ;;  %3480 = vrot.lane.b32.xlu0 %v10589_v32, %s8495_s23 }
 0x33a   :  { %v3083_v7 = vadd.f32 %v3047_v56, %v2776_v19  ;;  %3416 = vrot.lane.b32.xlu2 %v10589_v32, %s8496_s24  ;;  %v2751_v19 = vpop.f32.mrf.mxu3 }
 0x33b   :  { %v2999_v57 = vpop.f32.mrf.mxu0 }
 0x33c   :  { %v3195_v54 = vadd.f32 %v3126_v25, %v3083_v7  ;;  %v2745_v25 = vadd.f32 %v2744_v35, %v2695_v53  ;;  %v2747_v35 = vadd.f32 %v2746_v10, %v2697_v43 }
 0x33e   :  { %vm3211_vm4 = vcmp.gt.f32.partialorder %v3195_v54, 0.0  ;;  %v3227_v41 = vmul.f32 0.2, %v3195_v54  ;;  %v2778_v37 = vadd.f32 %v2745_v25, %v10431_v12  ;;  %v2779_v12 = vadd.f32 %v2747_v35, %v10451_v4 }
 0x33f   :  { %v3048_v48 = vpop.f32.mrf.mxu1 }
 0x340   :  { %v10597_v44 = vsel %vm3211_vm4, %v3195_v54, %v3227_v41  ;;  %v3049_v9 = vadd.f32 %v3048_v48, %v2999_v57 }
 0x341   :  { %3777 = vrot.lane.b32.xlu1 %v10589_v32, %s8498_s17  ;;  %3418 = vrot.lane.b32.xlu0 %v10597_v44, %s8496_s24 }
 0x342   :  { %3651 = vrot.lane.b32.xlu2 %v10589_v32, %s8500_s1  ;;  %v3084_v33 = vadd.f32 %v3049_v9, %v2777_v59  ;;  %v2705_v59 = vpop.f32.mrf.mxu2 }
 0x343   :  { %v3002_v46 = vpop.f32.mrf.mxu0 }
 0x344   :  { %v3196_v56 = vadd.f32 %v3131_v6, %v3084_v33 }
 0x346   :  { %v3228_v54 = vmul.f32 0.2, %v3196_v56  ;;  %vm3212_vm5 = vcmp.gt.f32.partialorder %v3196_v56, 0.0 }
 0x347   :  { %v3051_v14 = vpop.f32.mrf.mxu1 }
 0x348   :  { %v3052_v7 = vadd.f32 %v3051_v14, %v3002_v46  ;;  %v10613_v41 = vsel %vm3212_vm5, %v3196_v56, %v3228_v54  ;;  %v2754_v46 = vpop.f32.mrf.mxu3 }
 0x349   :  { %3653 = vrot.lane.b32.xlu0 %v10597_v44, %s8500_s1  ;;  %3482 = vrot.lane.b32.xlu1 %v10597_v44, %s8495_s23 }
 0x34a   :  { %3779 = vrot.lane.b32.xlu2 %v10597_v44, %s8498_s17  ;;  %v3085_v53 = vadd.f32 %v3052_v7, %v2778_v37  ;;  %v2707_v14 = vpop.f32.mrf.mxu2  ;;  %v2750_v37 = vadd.f32 %v2749_v20, %v2700_v45 }
 0x34b   :  { %v3004_v57 = vpop.f32.mrf.mxu0 }
 0x34c   :  { %v3197_v48 = vadd.f32 %v3136_v49, %v3085_v53 }
 0x34e   :  { %v3229_v43 = vmul.f32 0.2, %v3197_v48  ;;  %vm3213_vm6 = vcmp.gt.f32.partialorder %v3197_v48, 0.0 }
 0x34f   :  { %v3053_v17 = vpop.f32.mrf.mxu1 }
 0x350   :  { %v3054_v9 = vadd.f32 %v3053_v17, %v3004_v57  ;;  %v10622_v49 = vsel %vm3213_vm6, %v3197_v48, %v3229_v43  ;;  %v2756_v56 = vpop.f32.mrf.mxu3  ;;  %v2752_v48 = vadd.f32 %v2751_v19, %v2702_v39  ;;  %v2755_v19 = vadd.f32 %v2754_v46, %v2705_v59 }
 0x351   :  { %3781 = vrot.lane.b32.xlu0 %v10613_v41, %s8498_s17  ;;  %3420 = vrot.lane.b32.xlu1 %v10613_v41, %s8496_s24 }
 0x352   :  { %3484 = vrot.lane.b32.xlu2 %v10613_v41, %s8495_s23  ;;  %v3086_v10 = vadd.f32 %v3054_v9, %v2779_v12  ;;  %v2710_v9 = vpop.f32.mrf.mxu2 }
 0x353   :  { %v3007_v33 = vpop.f32.mrf.mxu0 }
 0x354   :  { %v3198_v6 = vadd.f32 %v10572_v8, %v3086_v10  ;;  %v2780_v8 = vadd.f32 %v2750_v37, %v10468_v60  ;;  %v2781_v60 = vadd.f32 %v2752_v48, %v10480_v42  ;;  %v2782_v42 = vadd.f32 %v2755_v19, %v10489_v29 }
 0x355   :  { %v2127_v29 = vadd.f32 %v10374_v2, %v10391_v30 }
 0x356   :  { %v3230_v7 = vmul.f32 0.2, %v3198_v6  ;;  %vm3214_vm7 = vcmp.gt.f32.partialorder %v3198_v6, 0.0 }
 0x357   :  { %v3056_v25 = vpop.f32.mrf.mxu1 }
 0x358   :  { %v10631_v54 = vsel %vm3214_vm7, %v3198_v6, %v3230_v7  ;;  %v3057_v53 = vadd.f32 %v3056_v25, %v3007_v33  ;;  %v2759_v45 = vpop.f32.mrf.mxu3 }
 0x359   :  { %3655 = vrot.lane.b32.xlu1 %v10613_v41, %s8500_s1  ;;  %3486 = vrot.lane.b32.xlu0 %v10622_v49, %s8495_s23 }
 0x35a   :  { %3422 = vrot.lane.b32.xlu2 %v10622_v49, %s8496_s24  ;;  %v3087_v17 = vadd.f32 %v3057_v53, %v2780_v8  ;;  %v2712_v6 = vpop.f32.mrf.mxu2 }
 0x35b   :  { %v3009_v4 = vpop.f32.mrf.mxu0 }
 0x35c   :  { %v3199_v12 = vadd.f32 %v10559_v61, %v3087_v17 }
 0x35e   :  { %v3231_v10 = vmul.f32 0.2, %v3199_v12  ;;  %vm3215_vm8 = vcmp.gt.f32.partialorder %v3199_v12, 0.0 }
 0x35f   :  { %v3058_v57 = vpop.f32.mrf.mxu1 }
 0x360   :  { %v3059_v33 = vadd.f32 %v3058_v57, %v3009_v4  ;;  %v2761_v61 = vpop.f32.mrf.mxu3  ;;  %v10648_v4 = vsel %vm3215_vm8, %v3199_v12, %v3231_v10  ;;  %v2153_v12 = vadd.f32 %v2127_v29, %v10171_v22 }
 0x361   :  { %3783 = vrot.lane.b32.xlu1 %v10622_v49, %s8498_s17  ;;  %3424 = vrot.lane.b32.xlu0 %v10631_v54, %s8496_s24 }
 0x362   :  { %3657 = vrot.lane.b32.xlu2 %v10622_v49, %s8500_s1  ;;  %v3088_v39 = vadd.f32 %v3059_v33, %v2781_v60  ;;  %v2757_v33 = vadd.f32 %v2756_v56, %v2707_v14  ;;  %v2760_v14 = vadd.f32 %v2759_v45, %v2710_v9  ;;  %v2455_v9 = vadd.f32 %v10518_v28, %v10516_v5 }
 0x363   :  { %v3012_v35 = vpop.f32.mrf.mxu0 }
 0x364   :  { %v3200_v7 = vadd.f32 %v10566_v58, %v3088_v39 }
 0x366   :  { %v3232_v46 = vmul.f32 0.2, %v3200_v7  ;;  %vm3216_vm9 = vcmp.gt.f32.partialorder %v3200_v7, 0.0 }
 0x367   :  { %v3061_v20 = vpop.f32.mrf.mxu1 }
 0x368   :  { %v3062_v37 = vadd.f32 %v3061_v20, %v3012_v35  ;;  %v10658_v8 = vsel %vm3216_vm9, %v3200_v7, %v3232_v46  ;;  %v10667_v35 = vpop.f32.mrf.mxu2  ;;  %v10669_v17 = vpop.f32.mrf.mxu3 }
 0x369   :  { %3659 = vrot.lane.b32.xlu0 %v10631_v54, %s8500_s1  ;;  %3488 = vrot.lane.b32.xlu1 %v10631_v54, %s8495_s23 }
 0x36a   :  { %3785 = vrot.lane.b32.xlu2 %v10631_v54, %s8498_s17  ;;  %v3089_v57 = vadd.f32 %v3062_v37, %v2782_v42 }
 0x36b   :  { %v3014_v43 = vpop.f32.mrf.mxu0 }
 0x36c   :  { %v3201_v58 = vadd.f32 %v10557_v3, %v3089_v57  ;;  %v2450_v3 = vadd.f32 %v10493_v62, %v10491_v51  ;;  %v2762_v57 = vadd.f32 %v2761_v61, %v2712_v6 }
 0x36e   :  { %v3233_v20 = vmul.f32 0.2, %v3201_v58  ;;  %vm3217_vm10 = vcmp.gt.f32.partialorder %v3201_v58, 0.0  ;;  %v2476_v10 = vadd.f32 %v2450_v3, %v2153_v12 }
 0x36f   :  { %v3063_v25 = vpop.f32.mrf.mxu1 }
 0x370   :  { %v10676_v39 = vsel %vm3217_vm10, %v3201_v58, %v3233_v20  ;;  %v3064_v2 = vadd.f32 %v3063_v25, %v3014_v43  ;;  %v2783_v30 = vadd.f32 %v2757_v33, %v2476_v10  ;;  %v2717_v62 = vpop.f32.mrf.mxu2  ;;  %v2766_v19 = vpop.f32.mrf.mxu3  ;;  %v2132_v43 = vadd.f32 %v10411_v63, %v10428_v18 }
 0x371   :  { %3787 = vrot.lane.b32.xlu0 %v10648_v4, %s8498_s17  ;;  %3426 = vrot.lane.b32.xlu1 %v10648_v4, %s8496_s24  ;;  %v2784_v25 = vadd.f32 %v2760_v14, %v10514_v0  ;;  %v2142_v33 = vadd.f32 %v10509_v50, %v10507_v34  ;;  %v2767_v10 = vadd.f32 %v2766_v19, %v2717_v62 }
 0x372   :  { %3490 = vrot.lane.b32.xlu2 %v10648_v4, %s8495_s23  ;;  %v3090_v22 = vadd.f32 %v3064_v2, %v2783_v30  ;;  %v2155_v46 = vadd.f32 %v2132_v43, %v10249_v11  ;;  %v2137_v11 = vadd.f32 %v10448_v40, %v10465_v13  ;;  %v2465_v14 = vadd.f32 %v10570_v26, %v10564_v31 }
 0x373   :  { %v3017_v59 = vpop.f32.mrf.mxu0  ;;  %v2765_v34 = vadd.f32 %v10669_v17, %v10667_v35 }
 0x374   :  { %v3202_v7 = vadd.f32 %v10586_v55, %v3090_v22  ;;  %v2478_v18 = vadd.f32 %v2455_v9, %v2155_v46  ;;  %v2157_v12 = vadd.f32 %v2137_v11, %v10300_v16  ;;  %v12562_v46 = vld [vmem:[#allocation5_spill] sm:$0xff] }
 0x375   :  { %v2786_v35 = vadd.f32 %v2765_v34, %v10537_v1  ;;  %v3912_v34 = vpack.c.bf16 %v10631_v54, %v10622_v49 }
 0x376   :  { %v3234_v55 = vmul.f32 0.2, %v3202_v7  ;;  %vm3218_vm11 = vcmp.gt.f32.partialorder %v3202_v7, 0.0  ;;  %v2785_v5 = vadd.f32 %v2762_v57, %v2478_v18 }
 0x377   :  { %v3066_v53 = vpop.f32.mrf.mxu1 }
 0x378   :  { %v3067_v37 = vadd.f32 %v3066_v53, %v3017_v59  ;;  %v2720_v53 = vpop.f32.mrf.mxu2  ;;  %v2769_v58 = vpop.f32.mrf.mxu3  ;;  %v10699_v0 = vsel %vm3218_vm11, %v3202_v7, %v3234_v55 }
 0x379   :  { %3661 = vrot.lane.b32.xlu1 %v10648_v4, %s8500_s1  ;;  %3492 = vrot.lane.b32.xlu0 %v10658_v8, %s8495_s23 }
 0x37a   :  { %3428 = vrot.lane.b32.xlu2 %v10658_v8, %s8496_s24  ;;  %v3091_v45 = vadd.f32 %v3067_v37, %v2784_v25 }
 0x37b   :  { %v3019_v48 = vpop.f32.mrf.mxu0 }
 0x37c   :  { %v3203_v29 = vadd.f32 %v10575_v15, %v3091_v45  ;;  %v2460_v15 = vadd.f32 %v10543_v23, %v10539_v21 }
 0x37e   :  { %v3235_v6 = vmul.f32 0.2, %v3203_v29  ;;  %vm3219_vm12 = vcmp.gt.f32.partialorder %v3203_v29, 0.0  ;;  %v2480_v16 = vadd.f32 %v2460_v15, %v2157_v12 }
 0x37f   :  { %v3068_v60 = vpop.f32.mrf.mxu1 }
 0x380   :  { %v3069_v3 = vadd.f32 %v3068_v60, %v3019_v48  ;;  %v2770_v48 = vadd.f32 %v2769_v58, %v2720_v53  ;;  %v2722_v2 = vpop.f32.mrf.mxu2  ;;  %v2771_v30 = vpop.f32.mrf.mxu3  ;;  %v10717_v40 = vsel %vm3219_vm12, %v3203_v29, %v3235_v6  ;;  %v2787_v31 = vadd.f32 %v2767_v10, %v2480_v16  ;;  %v12563_v53 = vld [vmem:[#allocation4_spill] sm:$0xff] }
 0x381   :  { %3789 = vrot.lane.b32.xlu1 %v10658_v8, %s8498_s17  ;;  %3430 = vrot.lane.b32.xlu0 %v10676_v39, %s8496_s24  ;;  %v2772_v23 = vadd.f32 %v2771_v30, %v2722_v2  ;;  %v3914_v30 = vpack.c.bf16 %v10699_v0, %v10676_v39 }
 0x382   :  { %3663 = vrot.lane.b32.xlu2 %v10658_v8, %s8500_s1  ;;  %v3092_v61 = vadd.f32 %v3069_v3, %v2785_v5  ;;  %v2788_v50 = vadd.f32 %v2770_v48, %v10562_v52 }
 0x383   :  { %v3022_v51 = vpop.f32.mrf.mxu0 }
 0x384   :  { %v3204_v13 = vadd.f32 %v10541_v36, %v3092_v61  ;;  %v2159_v36 = vadd.f32 %v2142_v33, %v10339_v27 }
 0x386   :  { %v3236_v26 = vmul.f32 0.2, %v3204_v13  ;;  %v2482_v37 = vadd.f32 %v2465_v14, %v2159_v36  ;;  %vm3220_vm13 = vcmp.gt.f32.partialorder %v3204_v13, 0.0 }
 0x387   :  { %v3071_v56 = vpop.f32.mrf.mxu1 }
 0x388   :  { %v3072_v62 = vadd.f32 %v3071_v56, %v3022_v51  ;;  %v2789_v52 = vadd.f32 %v2772_v23, %v2482_v37 }
 0x389   :  { %3665 = vrot.lane.b32.xlu0 %v10676_v39, %s8500_s1  ;;  %3494 = vrot.lane.b32.xlu1 %v10676_v39, %s8495_s23 }
 0x38a   :  { %3791 = vrot.lane.b32.xlu2 %v10676_v39, %s8498_s17  ;;  %v3093_v9 = vadd.f32 %v3072_v62, %v2786_v35 }
 0x38b   :  { %v3024_v42 = vpop.f32.mrf.mxu0 }
 0x38c   :  { %v10696_v59 = vpop.permute.xlu2 %3478  ;;  %v3205_v57 = vadd.f32 %v12562_v46, %v3093_v9 }
 0x38e   :  { %vm3221_vm1 = vcmp.gt.f32.partialorder %v3205_v57, 0.0 }
 0x38f   :  { %v3073_v63 = vpop.f32.mrf.mxu1 }
 0x390   :  { %v3074_v21 = vadd.f32 %v3073_v63, %v3024_v42  ;;  %v10735_v42 = vsel %vm3220_vm13, %v3204_v13, %v3236_v26  ;;  %v3913_v13 = vpack.c.bf16 %v10658_v8, %v10648_v4 }
 0x391   :  { %3793 = vrot.lane.b32.xlu0 %v10699_v0, %s8498_s17  ;;  %3432 = vrot.lane.b32.xlu1 %v10699_v0, %s8496_s24  ;;  %v3915_v33 = vpack.c.bf16 %v10735_v42, %v10717_v40 }
 0x392   :  { %3496 = vrot.lane.b32.xlu2 %v10699_v0, %s8495_s23  ;;  %v3094_v17 = vadd.f32 %v3074_v21, %v2787_v31  ;;  %v3910_v31 = vpack.c.bf16 %v10589_v32, %v10578_v38 }
 0x393   :  { %v3027_v28 = vpop.f32.mrf.mxu0 }
 0x394   :  { %v10710_v20 = vpop.permute.xlu2 %3416  ;;  %v3206_v51 = vadd.f32 %v10526_v47, %v3094_v17  ;;  %v3237_v47 = vmul.f32 0.2, %v3205_v57 }
 0x396   :  { %v3238_v18 = vmul.f32 0.2, %v3206_v51  ;;  %vm3222_vm0 = vcmp.gt.f32.partialorder %v3206_v51, 0.0  ;;  %v10771_v15 = vsel %vm3221_vm1, %v3205_v57, %v3237_v47 }
 0x397   :  { %v3076_v60 = vpop.f32.mrf.mxu1 }
 0x398   :  { %v3077_v22 = vadd.f32 %v3076_v60, %v3027_v28  ;;  %v10763_v28 = vsel %vm3222_vm0, %v3206_v51, %v3238_v18 }
 0x399   :  { %3667 = vrot.lane.b32.xlu1 %v10699_v0, %s8500_s1  ;;  %3498 = vrot.lane.b32.xlu0 %v10717_v40, %s8495_s23  ;;  %v3916_v12 = vpack.c.bf16 %v10763_v28, %v10771_v15 }
 0x39a   :  { %3434 = vrot.lane.b32.xlu2 %v10717_v40, %s8496_s24  ;;  %v3095_v19 = vadd.f32 %v3077_v22, %v2788_v50  ;;  %v3911_v50 = vpack.c.bf16 %v10613_v41, %v10597_v44 }
 0x39b   :  { %v3029_v43 = vpop.f32.mrf.mxu0 }
 0x39c   :  { %v10732_v7 = vpop.permute.xlu2 %3651  ;;  %v3207_v27 = vadd.f32 %v10511_v24, %v3095_v19 }
 0x39d   :  { %12560 = vst [vmem:[#allocation6_spill] sm:$0xff] %v10732_v7 }
 0x39e   :  { %v3239_v24 = vmul.f32 0.2, %v3207_v27  ;;  %vm3223_vm14 = vcmp.gt.f32.partialorder %v3207_v27, 0.0 }
 0x39f   :  { %v3078_v25 = vpop.f32.mrf.mxu1 }
 0x3a0   :  { %v3079_v55 = vadd.f32 %v3078_v25, %v3029_v43  ;;  %v10753_v3 = vsel %vm3223_vm14, %v3207_v27, %v3239_v24 }
 0x3a1   :  { %3795 = vrot.lane.b32.xlu1 %v10717_v40, %s8498_s17  ;;  %3436 = vrot.lane.b32.xlu0 %v10735_v42, %s8496_s24 }
 0x3a2   :  { %v3096_v56 = vadd.f32 %v3079_v55, %v2789_v52  ;;  %3669 = vrot.lane.b32.xlu2 %v10717_v40, %s8500_s1 }
 0x3a3   :  { %v10745_v1 = vpop.permute.xlu0 %3775  ;;  %v10747_v45 = vpop.permute.xlu1 %3414 }
 0x3a4   :  { %12561 = vst [vmem:[#allocation7_spill] sm:$0xff] %v10745_v1  ;;  %v3208_v58 = vadd.f32 %v12563_v53, %v3096_v56  ;;  %v10751_v63 = vpop.permute.xlu2 %3779 }
 0x3a5   :  { %12564 = vst [vmem:[#allocation5_spill] sm:$0xff] %v10751_v63  ;;  %v12581_v63 = vld [vmem:[#allocation2_spill] sm:$0xff] }
 0x3a6   :  { %vm3224_vm15 = vcmp.gt.f32.partialorder %v3208_v58, 0.0  ;;  %v3240_v29 = vmul.f32 0.2, %v3208_v58  ;;  %vm3281_vm7 = vcmp.ge.s32.totalorder %v12581_v63, 0  ;;  %vm3282_vm8 = vcmp.lt.s32.totalorder %v12581_v63, 8 }
 0x3a7   :  { %vm11196_vm10 = vmand %vm3281_vm7, %vm3282_vm8 }
 0x3a8   :  { %v10755_v5 = vsel %vm3224_vm15, %v3208_v58, %v3240_v29 }
 0x3a9   :  { %3671 = vrot.lane.b32.xlu0 %v10735_v42, %s8500_s1  ;;  %3500 = vrot.lane.b32.xlu1 %v10735_v42, %s8495_s23  ;;  %v3917_v11 = vpack.c.bf16 %v10755_v5, %v10753_v3 }
 0x3aa   :  { %3797 = vrot.lane.b32.xlu2 %v10735_v42, %s8498_s17 }
 0x3ab   :  { %v10767_v6 = vpop.permute.xlu1 %3649  ;;  %v10769_v61 = vpop.permute.xlu0 %3480  ;;  %3942 = vmatpush.bf16.msrb.mxu0 %v3917_v11 }
 0x3ac   :  { %12565 = vst [vmem:[#allocation4_spill] sm:$0xff] %v10767_v6  ;;  %v10773_v48 = vpop.permute.xlu2 %3484 }
 0x3af   :  { %3943 = vmatpush.bf16.msrb.mxu0 %v3916_v12 }
 0x3b1   :  { %3799 = vrot.lane.b32.xlu0 %v10771_v15, %s8498_s17  ;;  %3438 = vrot.lane.b32.xlu1 %v10771_v15, %s8496_s24 }
 0x3b2   :  { %3502 = vrot.lane.b32.xlu2 %v10771_v15, %s8495_s23 }
 0x3b3   :  { %v10785_v60 = vpop.permute.xlu1 %3777  ;;  %v10787_v10 = vpop.permute.xlu0 %3418  ;;  %3944 = vmatpush.bf16.msrb.mxu0 %v3915_v33 }
 0x3b4   :  { %12566 = vst [vmem:[#allocation8_spill] sm:$0xff] %v10785_v60  ;;  %v10789_v2 = vpop.permute.xlu2 %3422 }
 0x3b7   :  { %3945 = vmatpush.bf16.msrb.mxu0 %v3914_v30 }
 0x3b9   :  { %3673 = vrot.lane.b32.xlu1 %v10771_v15, %s8500_s1  ;;  %3504 = vrot.lane.b32.xlu0 %v10763_v28, %s8495_s23 }
 0x3ba   :  { %3440 = vrot.lane.b32.xlu2 %v10763_v28, %s8496_s24 }
 0x3bb   :  { %v10801_v22 = vpop.permute.xlu0 %3653  ;;  %v10803_v14 = vpop.permute.xlu1 %3482  ;;  %3946 = vmatpush.bf16.msrb.mxu0 %v3913_v13 }
 0x3bc   :  { %12567 = vst [vmem:[#allocation9_spill] sm:$0xff] %v10801_v22  ;;  %v10805_v16 = vpop.permute.xlu2 %3657 }
 0x3bd   :  { %12568 = vst [vmem:[#allocation10_spill] sm:$0xff] %v10805_v16 }
 0x3bf   :  { %3947 = vmatpush.bf16.msrb.mxu0 %v3912_v34 }
 0x3c1   :  { %3801 = vrot.lane.b32.xlu1 %v10763_v28, %s8498_s17  ;;  %3442 = vrot.lane.b32.xlu0 %v10753_v3, %s8496_s24 }
 0x3c2   :  { %3675 = vrot.lane.b32.xlu2 %v10763_v28, %s8500_s1 }
 0x3c3   :  { %v10817_v21 = vpop.permute.xlu0 %3781  ;;  %v10819_v36 = vpop.permute.xlu1 %3420  ;;  %3948 = vmatpush.bf16.msrb.mxu0 %v3911_v50 }
 0x3c4   :  { %12569 = vst [vmem:[#allocation11_spill] sm:$0xff] %v10817_v21  ;;  %v10821_v23 = vpop.permute.xlu2 %3785 }
 0x3c5   :  { %12570 = vst [vmem:[#allocation12_spill] sm:$0xff] %v10821_v23 }
 0x3c7   :  { %3949 = vmatpush.bf16.msrb.mxu0 %v3910_v31 }
 0x3c9   :  { %3677 = vrot.lane.b32.xlu0 %v10753_v3, %s8500_s1  ;;  %3506 = vrot.lane.b32.xlu1 %v10753_v3, %s8495_s23 }
 0x3ca   :  { %3803 = vrot.lane.b32.xlu2 %v10753_v3, %s8498_s17 }
 0x3cb   :  { %v10831_v26 = vpop.permute.xlu1 %3655  ;;  %v10833_v62 = vpop.permute.xlu0 %3486 }
 0x3cc   :  { %12571 = vst [vmem:[#allocation13_spill] sm:$0xff] %v10831_v26  ;;  %v10835_v19 = vpop.permute.xlu2 %3490  ;;  %v3257_v26 = vadd.s32 4294967295, %v12581_v63 }
 0x3ce   :  { %vm3258_vm2 = vcmp.ge.s32.totalorder %v3257_v26, 0  ;;  %vm3259_vm3 = vcmp.lt.s32.totalorder %v3257_v26, 8 }
 0x3cf   :  { %vm10982_vm4 = vmand %vm3258_vm2, %vm3259_vm3 }
 0x3d1   :  { %4007 = vrot.lane.b32.xlu0 %v10753_v3, %s8501_s18  ;;  %4259 = vrot.lane.b32.xlu1 %v10753_v3, %s8502_s19 }
 0x3d2   :  { %4133 = vrot.lane.b32.xlu2 %v10753_v3, %s8503_s20 }
 0x3d3   :  { %v10843_v37 = vpop.permute.xlu1 %3783  ;;  %v10845_v43 = vpop.permute.xlu0 %3424 }
 0x3d4   :  { %12572 = vst [vmem:[#allocation14_spill] sm:$0xff] %v10843_v37  ;;  %v10847_v35 = vpop.permute.xlu2 %3428 }
 0x3d9   :  { %4131 = vrot.lane.b32.xlu0 %v10763_v28, %s8503_s20  ;;  %3444 = vrot.lane.b32.xlu1 %v10755_v5, %s8496_s24  ;;  %s8518_s24 = smov 124  }
 0x3da   :  { %3508 = vrot.lane.b32.xlu2 %v10755_v5, %s8495_s23  ;;  %s8504_s23 = smov 119  }
 0x3db   :  { %v10855_v17 = vpop.permute.xlu0 %3659  ;;  %v10857_v52 = vpop.permute.xlu1 %3488 }
 0x3dc   :  { %12573 = vst [vmem:[#allocation15_spill] sm:$0xff] %v10855_v17  ;;  %v10859_v25 = vpop.permute.xlu2 %3663 }
 0x3dd   :  { %12574 = vst [vmem:[#allocation16_spill] sm:$0xff] %v10859_v25 }
 0x3e1   :  { %4003 = vrot.lane.b32.xlu0 %v10771_v15, %s8501_s18  ;;  %4255 = vrot.lane.b32.xlu1 %v10771_v15, %s8502_s19 }
 0x3e2   :  { %4129 = vrot.lane.b32.xlu2 %v10771_v15, %s8503_s20 }
 0x3e3   :  { %v10867_v9 = vpop.permute.xlu0 %3787  ;;  %v10869_v27 = vpop.permute.xlu1 %3426 }
 0x3e4   :  { %12575 = vst [vmem:[#allocation17_spill] sm:$0xff] %v10867_v9  ;;  %v10871_v55 = vpop.permute.xlu2 %3791 }
 0x3e5   :  { %12576 = vst [vmem:[#allocation18_spill] sm:$0xff] %v10871_v55 }
 0x3e9   :  { %4127 = vrot.lane.b32.xlu0 %v10735_v42, %s8503_s20  ;;  %4005 = vrot.lane.b32.xlu1 %v10763_v28, %s8501_s18 }
 0x3ea   :  { %4257 = vrot.lane.b32.xlu2 %v10763_v28, %s8502_s19 }
 0x3eb   :  { %v10879_v51 = vpop.permute.xlu1 %3661  ;;  %v10881_v56 = vpop.permute.xlu0 %3492 }
 0x3ec   :  { %12577 = vst [vmem:[#allocation19_spill] sm:$0xff] %v10879_v51  ;;  %v10883_v46 = vpop.permute.xlu2 %3496 }
 0x3f1   :  { %4385 = vrot.lane.b32.xlu0 %v10753_v3, %s8504_s23  ;;  %4251 = vrot.lane.b32.xlu1 %v10717_v40, %s8502_s19 }
 0x3f2   :  { %4125 = vrot.lane.b32.xlu2 %v10717_v40, %s8503_s20 }
 0x3f3   :  { %v10891_v57 = vpop.permute.xlu1 %3789  ;;  %v10893_v24 = vpop.permute.xlu0 %3430 }
 0x3f4   :  { %12578 = vst [vmem:[#allocation20_spill] sm:$0xff] %v10891_v57  ;;  %v10895_v53 = vpop.permute.xlu2 %3434 }
 0x3f9   :  { %4001 = vrot.lane.b32.xlu0 %v10735_v42, %s8501_s18  ;;  %4121 = vrot.lane.b32.xlu1 %v10676_v39, %s8503_s20 }
 0x3fa   :  { %4253 = vrot.lane.b32.xlu2 %v10735_v42, %s8502_s19 }
 0x3fb   :  { %v10903_v58 = vpop.permute.xlu0 %3665  ;;  %v10905_v18 = vpop.permute.xlu1 %3494 }
 0x3fc   :  { %12579 = vst [vmem:[#allocation21_spill] sm:$0xff] %v10903_v58  ;;  %v10907_v29 = vpop.permute.xlu2 %3669  ;;  %v12586_v58 = vld [vmem:[#allocation3_spill] sm:$0xff] }
 0x3fd   :  { %v11006_v55 = vadd.s32 4294967295, %v12586_v58 }
 0x3ff   :  { %vm3262_vm5 = vcmp.ge.s32.totalorder %v11006_v55, 0  ;;  %v7990_v55 = vld [vmem:[%s12538_s3 + $0x98] sm:$0xff] }
 0x400   :  { %vm3263_vm6 = vmand %vm10982_vm4, %vm3262_vm5 }
 0x401   :  { %4247 = vrot.lane.b32.xlu0 %v10676_v39, %s8502_s19  ;;  %4249 = vrot.lane.b32.xlu1 %v10699_v0, %s8502_s19  ;;  %vm3284_vm12 = vmand %vm11196_vm10, %vm3262_vm5 }
 0x402   :  { %3999 = vrot.lane.b32.xlu2 %v10717_v40, %s8501_s18 }
 0x403   :  { %v10915_v47 = vpop.permute.xlu0 %3793  ;;  %v10917_v3 = vpop.permute.xlu1 %3432 }
 0x404   :  { %v10919_v11 = vpop.permute.xlu2 %3797 }
 0x409   :  { %4383 = vrot.lane.b32.xlu0 %v10763_v28, %s8504_s23  ;;  %3995 = vrot.lane.b32.xlu1 %v10676_v39, %s8501_s18 }
 0x40a   :  { %4123 = vrot.lane.b32.xlu2 %v10699_v0, %s8503_s20 }
 0x40b   :  { %v10927_v12 = vpop.permute.xlu1 %3667  ;;  %v3499_v33 = vpop.permute.xlu0 %3498 }
 0x40c   :  { %v3503_v30 = vpop.permute.xlu2 %3502 }
 0x411   :  { %4117 = vrot.lane.b32.xlu0 %v10648_v4, %s8503_s20  ;;  %4119 = vrot.lane.b32.xlu1 %v10658_v8, %s8503_s20 }
 0x412   :  { %4381 = vrot.lane.b32.xlu2 %v10771_v15, %s8504_s23 }
 0x413   :  { %v10935_v28 = vpop.permute.xlu1 %3795  ;;  %v10937_v13 = vpop.permute.xlu0 %3436 }
 0x414   :  { %v10939_v34 = vpop.permute.xlu2 %3440 }
 0x419   :  { %3805 = vrot.lane.b32.xlu0 %v10755_v5, %s8498_s17  ;;  %3679 = vrot.lane.b32.xlu1 %v10755_v5, %s8500_s1  ;;  %s8519_s17 = smov 96  }
 0x41a   :  { %3997 = vrot.lane.b32.xlu2 %v10699_v0, %s8501_s18 }
 0x41b   :  { %v10947_v50 = vpop.permute.xlu0 %3671  ;;  %v3501_v31 = vpop.permute.xlu1 %3500 }
 0x41c   :  { %v10949_v1 = vpop.permute.xlu2 %3675 }
 0x421   :  { %4245 = vrot.lane.b32.xlu0 %v10658_v8, %s8502_s19  ;;  %4377 = vrot.lane.b32.xlu1 %v10717_v40, %s8504_s23 }
 0x422   :  { %4243 = vrot.lane.b32.xlu2 %v10648_v4, %s8502_s19 }
 0x423   :  { %v10957_v15 = vpop.permute.xlu0 %3799  ;;  %v10959_v7 = vpop.permute.xlu1 %3438 }
 0x424   :  { %v10961_v60 = vpop.permute.xlu2 %3803 }
 0x429   :  { %3991 = vrot.lane.b32.xlu0 %v10648_v4, %s8501_s18  ;;  %3993 = vrot.lane.b32.xlu1 %v10658_v8, %s8501_s18 }
 0x42a   :  { %4379 = vrot.lane.b32.xlu2 %v10735_v42, %s8504_s23 }
 0x42b   :  { %v10969_v6 = vpop.permute.xlu1 %3673  ;;  %v3505_v40 = vpop.permute.xlu0 %3504 }
 0x42c   :  { %v10971_v22 = vpop.permute.xlu2 %4133 }
 0x42d   :  { %12580 = vst [vmem:[#allocation22_spill] sm:$0xff] %v10971_v22  ;;  %v12584_v22 = vmov 0.0  }
 0x42e   :  { %v10995_v17 = vsel %vm10982_vm4, 1.0, %v12584_v22 }
 0x42f   :  { %v3522_v51 = vmul.f32 %v10995_v17, %v3503_v30 }
 0x431   :  { %4115 = vrot.lane.b32.xlu0 %v10631_v54, %s8503_s20  ;;  %4239 = vrot.lane.b32.xlu1 %v10622_v49, %s8502_s19 }
 0x432   :  { %4113 = vrot.lane.b32.xlu2 %v10622_v49, %s8503_s20 }
 0x433   :  { %v10980_v21 = vpop.permute.xlu1 %3801  ;;  %v3443_v23 = vpop.permute.xlu0 %3442 }
 0x434   :  { %v3509_v42 = vpop.permute.xlu2 %3508 }
 0x435   :  { %v3525_v9 = vmul.f32 %v10995_v17, %v3509_v42  ;;  %v3521_v42 = vmul.f32 %v10995_v17, %v3501_v31  ;;  %v11040_v31 = vsel %vm3263_vm6, 1.0, %v12584_v22 }
 0x439   :  { %4373 = vrot.lane.b32.xlu0 %v10676_v39, %s8504_s23  ;;  %4375 = vrot.lane.b32.xlu1 %v10699_v0, %s8504_s23  ;;  %v3523_v39 = vmul.f32 %v10995_v17, %v3505_v40 }
 0x43a   :  { %4241 = vrot.lane.b32.xlu2 %v10631_v54, %s8502_s19 }
 0x43b   :  { %v10997_v37 = vpop.permute.xlu0 %3677  ;;  %v3507_v26 = vpop.permute.xlu1 %3506 }
 0x43c   :  { %v3524_v25 = vmul.f32 %v10995_v17, %v3507_v26  ;;  %v11001_v57 = vpop.permute.xlu2 %4129  ;;  %v3541_v26 = vpack.c.bf16 %v3523_v39, %v3522_v51  ;;  %v3519_v51 = vmul.f32 %v10995_v17, %v10883_v46 }
 0x43d   :  { %12585 = vst [vmem:[#allocation2_spill] sm:$0xff] %v11001_v57 }
 0x43e   :  { %v3542_v0 = vpack.c.bf16 %v3525_v9, %v3524_v25  ;;  %v3520_v9 = vmul.f32 %v10995_v17, %v3499_v33  ;;  %v3517_v33 = vmul.f32 %v10995_v17, %v10881_v56  ;;  %v3515_v56 = vmul.f32 %v10995_v17, %v10857_v52 }
 0x440   :  { %3567 = vmatpush.bf16.msra.mxu2 %v3542_v0  ;;  %v3518_v0 = vmul.f32 %v10995_v17, %v10905_v18  ;;  %v3540_v57 = vpack.c.bf16 %v3521_v42, %v3520_v9  ;;  %v3460_v42 = vmul.f32 %v11040_v31, %v3443_v23  ;;  %v3512_v23 = vmul.f32 %v10995_v17, %v10803_v14 }
 0x441   :  { %3989 = vrot.lane.b32.xlu0 %v10631_v54, %s8501_s18  ;;  %4109 = vrot.lane.b32.xlu1 %v10597_v44, %s8503_s20  ;;  %v3511_v14 = vmul.f32 %v10995_v17, %v10769_v61 }
 0x442   :  { %3987 = vrot.lane.b32.xlu2 %v10622_v49, %s8501_s18  ;;  %v3539_v18 = vpack.c.bf16 %v3519_v51, %v3518_v0  ;;  %v3458_v51 = vmul.f32 %v11040_v31, %v10959_v7  ;;  %v3457_v7 = vmul.f32 %v11040_v31, %v10937_v13 }
 0x443   :  { %v11015_v40 = vpop.permute.xlu0 %4007  ;;  %v11017_v25 = vpop.permute.xlu1 %4259 }
 0x444   :  { %12587 = vst [vmem:[#allocation3_spill] sm:$0xff] %v11015_v40  ;;  %v11020_v30 = vpop.permute.xlu2 %4257  ;;  %3568 = vmatpush.bf16.msra.mxu2 %v3541_v26 }
 0x448   :  { %3569 = vmatpush.bf16.msra.mxu2 %v3540_v57  ;;  %v3516_v57 = vmul.f32 %v10995_v17, %v10835_v19  ;;  %v3459_v19 = vmul.f32 %v11040_v31, %v10939_v34 }
 0x449   :  { %4235 = vrot.lane.b32.xlu0 %v10597_v44, %s8502_s19  ;;  %4237 = vrot.lane.b32.xlu1 %v10613_v41, %s8502_s19 }
 0x44a   :  { %4111 = vrot.lane.b32.xlu2 %v10613_v41, %s8503_s20  ;;  %v3538_v0 = vpack.c.bf16 %v3517_v33, %v3516_v57  ;;  %v3476_v33 = vpack.c.bf16 %v3459_v19, %v3458_v51  ;;  %v3510_v57 = vmul.f32 %v10995_v17, %v10696_v59 }
 0x44b   :  { %v11042_v39 = vpop.permute.xlu0 %4131  ;;  %v3445_v46 = vpop.permute.xlu1 %3444 }
 0x44c   :  { %12588 = vst [vmem:[#allocation23_spill] sm:$0xff] %v11042_v39  ;;  %v3461_v26 = vmul.f32 %v11040_v31, %v3445_v46  ;;  %v11048_v9 = vpop.permute.xlu2 %4125  ;;  %3570 = vmatpush.bf16.msra.mxu2 %v3539_v18  ;;  %v3514_v39 = vmul.f32 %v10995_v17, %v10833_v62  ;;  %v3456_v18 = vmul.f32 %v11040_v31, %v10895_v53 }
 0x44d   :  { %v3535_v61 = vpack.c.bf16 %v3511_v14, %v3510_v57  ;;  %v3452_v53 = vmul.f32 %v11040_v31, %v10869_v27  ;;  %v3451_v27 = vmul.f32 %v11040_v31, %v10845_v43 }
 0x44e   :  { %v3477_v40 = vpack.c.bf16 %v3461_v26, %v3460_v42  ;;  %v3537_v52 = vpack.c.bf16 %v3515_v56, %v3514_v39  ;;  %v3475_v39 = vpack.c.bf16 %v3457_v7, %v3456_v18  ;;  %v3450_v56 = vmul.f32 %v11040_v31, %v10789_v2 }
 0x44f   :  { %v3448_v2 = vmul.f32 %v11040_v31, %v10787_v10 }
 0x450   :  { %3571 = vmatpush.bf16.msra.mxu2 %v3538_v0  ;;  %3620 = vmatpush.bf16.msra.mxu3 %v3477_v40  ;;  %v3513_v40 = vmul.f32 %v10995_v17, %v10773_v48  ;;  %v3454_v48 = vmul.f32 %v11040_v31, %v10893_v24  ;;  %v7975_v24 = vld [vmem:[%s12538_s3 + $0x20] sm:$0xff]  ;;  %v3472_v0 = vpack.c.bf16 %v3451_v27, %v3450_v56  ;;  %v7973_v27 = vld [vmem:[%s12538_s3 + $0x10] sm:$0xff] }
 0x451   :  { %4135 = vrot.lane.b32.xlu0 %v10755_v5, %s8503_s20  ;;  %3983 = vrot.lane.b32.xlu1 %v10597_v44, %s8501_s18 }
 0x452   :  { %4369 = vrot.lane.b32.xlu2 %v10648_v4, %s8504_s23  ;;  %v3536_v13 = vpack.c.bf16 %v3513_v40, %v3512_v23  ;;  %v3455_v4 = vmul.f32 %v11040_v31, %v10917_v3 }
 0x453   :  { %v11068_v62 = vpop.permute.xlu0 %4003  ;;  %v11070_v34 = vpop.permute.xlu1 %4255 }
 0x454   :  { %v11076_v46 = vpop.permute.xlu2 %4253  ;;  %3572 = vmatpush.bf16.msra.mxu2 %v3537_v52  ;;  %3621 = vmatpush.bf16.msra.mxu3 %v3476_v33  ;;  %v3474_v3 = vpack.c.bf16 %v3455_v4, %v3454_v48 }
 0x458   :  { %3573 = vmatpush.bf16.msra.mxu2 %v3536_v13  ;;  %3622 = vmatpush.bf16.msra.mxu3 %v3475_v39  ;;  %v7977_v13 = vld [vmem:[%s12538_s3 + $0x30] sm:$0xff] }
 0x459   :  { %4371 = vrot.lane.b32.xlu0 %v10658_v8, %s8504_s23  ;;  %4009 = vrot.lane.b32.xlu1 %v10755_v5, %s8501_s18  ;;  %v3453_v8 = vmul.f32 %v11040_v31, %v10847_v35  ;;  %v3449_v35 = vmul.f32 %v11040_v31, %v10819_v36  ;;  %v3447_v36 = vmul.f32 %v11040_v31, %v10710_v20  ;;  %v7976_v20 = vld [vmem:[%s12538_s3 + $0x28] sm:$0xff] }
 0x45a   :  { %4261 = vrot.lane.b32.xlu2 %v10755_v5, %s8502_s19 }
 0x45b   :  { %v11094_v59 = vpop.permute.xlu0 %4127  ;;  %v11096_v17 = vpop.permute.xlu1 %4005  ;;  %v3473_v26 = vpack.c.bf16 %v3453_v8, %v3452_v53  ;;  %v3471_v23 = vpack.c.bf16 %v3449_v35, %v3448_v2  ;;  %v4737_v53 = vld [vmem:[%s12539_s5 + $0x30] sm:$0xff] }
 0x45c   :  { %v11103_v42 = vpop.permute.xlu2 %3999  ;;  %3574 = vmatpush.bf16.msra.mxu2 %v3535_v61  ;;  %3623 = vmatpush.bf16.msra.mxu3 %v3474_v3 }
 0x45f   :  { %3575 = vmatmul.bf16.vlgmr.msra.gmra.mxu2 %v7975_v24  ;;  %v11221_v24 = vsel %vm3284_vm12, 1.0, %v12584_v22 }
 0x460   :  { %3624 = vmatpush.bf16.msra.mxu3 %v3473_v26  ;;  %v7978_v26 = vld [vmem:[%s12538_s3 + $0x38] sm:$0xff]  ;;  %v3821_v56 = vmul.f32 %v11221_v24, %v10961_v60  ;;  %v4731_v60 = vld [vmem:[%s12539_s5] sm:$0xff] }
 0x461   :  { %4105 = vrot.lane.b32.xlu0 %v10578_v38, %s8503_s20  ;;  %4387 = vrot.lane.b32.xlu1 %v10755_v5, %s8504_s23  ;;  %v3446_v5 = vmul.f32 %v11040_v31, %v10747_v45  ;;  %v7971_v45 = vld [vmem:[%s12538_s3] sm:$0xff] }
 0x462   :  { %3985 = vrot.lane.b32.xlu2 %v10613_v41, %s8501_s18 }
 0x463   :  { %v11117_v43 = vpop.permute.xlu0 %4385  ;;  %v11119_v51 = vpop.permute.xlu1 %4251  ;;  %v3470_v52 = vpack.c.bf16 %v3447_v36, %v3446_v5  ;;  %v3820_v36 = vmul.f32 %v11221_v24, %v10980_v21  ;;  %v3819_v21 = vmul.f32 %v11221_v24, %v10957_v15 }
 0x464   :  { %v11123_v19 = vpop.permute.xlu2 %4123  ;;  %3625 = vmatpush.bf16.msra.mxu3 %v3472_v0 }
 0x468   :  { %3626 = vmatpush.bf16.msra.mxu3 %v3471_v23 }
 0x469   :  { %4233 = vrot.lane.b32.xlu0 %v10589_v32, %s8502_s19  ;;  %4107 = vrot.lane.b32.xlu1 %v10589_v32, %s8503_s20  ;;  %s8516_s20 = smov 4  }
 0x46a   :  { %4231 = vrot.lane.b32.xlu2 %v10578_v38, %s8502_s19  ;;  %s8515_s19 = smov 28  }
 0x46b   :  { %v11135_v10 = vpop.permute.xlu0 %4001  ;;  %v11137_v7 = vpop.permute.xlu1 %4121 }
 0x46c   :  { %v11145_v31 = vpop.permute.xlu2 %4381  ;;  %3627 = vmatpush.bf16.msra.mxu3 %v3470_v52 }
 0x46f   :  { %3628 = vmatmul.bf16.vlgmr.msra.gmra.mxu3 %v7971_v45  ;;  %3580 = vmatmul.bf16.gmra.mxu2 %v7976_v20  ;;  %v4735_v20 = vld [vmem:[%s12539_s5 + $0x20] sm:$0xff] }
 0x471   :  { %3979 = vrot.lane.b32.xlu0 %v10578_v38, %s8501_s18  ;;  %4365 = vrot.lane.b32.xlu1 %v10622_v49, %s8504_s23 }
 0x472   :  { %4367 = vrot.lane.b32.xlu2 %v10631_v54, %s8504_s23  ;;  %v7972_v54 = vld [vmem:[%s12538_s3 + $0x8] sm:$0xff] }
 0x473   :  { %v11153_v33 = vpop.permute.xlu0 %4247  ;;  %v11155_v40 = vpop.permute.xlu1 %4249 }
 0x474   :  { %v11157_v18 = vpop.permute.xlu2 %3997 }
 0x479   :  { %4363 = vrot.lane.b32.xlu0 %v10613_v41, %s8504_s23  ;;  %3981 = vrot.lane.b32.xlu1 %v10589_v32, %s8501_s18  ;;  %v4738_v41 = vld [vmem:[%s12539_s5 + $0x38] sm:$0xff] }
 0x47a   :  { %4361 = vrot.lane.b32.xlu2 %v10597_v44, %s8504_s23  ;;  %v11181_v44 = vadd.s32 1, %v12586_v58 }
 0x47b   :  { %v11165_v14 = vpop.permute.xlu0 %4383  ;;  %v11167_v49 = vpop.permute.xlu1 %3995 }
 0x47c   :  { %v11175_v4 = vpop.permute.xlu2 %4243  ;;  %vm3277_vm9 = vcmp.lt.s32.totalorder %v11181_v44, 8 }
 0x47d   :  { %vm3278_vm11 = vmand %vm10982_vm4, %vm3277_vm9 }
 0x47e   :  { %v11218_v3 = vsel %vm3278_vm11, 1.0, %v12584_v22  ;;  %vm3289_vm1 = vmand %vm11196_vm10, %vm3277_vm9 }
 0x47f   :  { %3633 = vmatmul.bf16.gmra.mxu3 %v7972_v54  ;;  %3585 = vmatmul.bf16.gmra.mxu2 %v7977_v13  ;;  %v3695_v35 = vmul.f32 %v11218_v3, %v10997_v37  ;;  %v3693_v23 = vmul.f32 %v11218_v3, %v10969_v6  ;;  %v4733_v37 = vld [vmem:[%s12539_s5 + $0x10] sm:$0xff]  ;;  %v3694_v6 = vmul.f32 %v11218_v3, %v10949_v1  ;;  %v7987_v1 = vld [vmem:[%s12538_s3 + $0x80] sm:$0xff] }
 0x480   :  { %v3817_v54 = vmul.f32 %v11221_v24, %v10935_v28  ;;  %v3692_v13 = vmul.f32 %v11218_v3, %v10947_v50  ;;  %v3818_v28 = vmul.f32 %v11221_v24, %v10919_v11  ;;  %3950 = vmatmul.bf16.vlgmr.msrb.gmra.mxu0 %v7987_v1  ;;  %v3816_v50 = vmul.f32 %v11221_v24, %v10915_v47  ;;  %v12598_v1 = vld [vmem:[#allocation15_spill] sm:$0xff] }
 0x481   :  { %4776 = vperm.xlu0 %8461, %v4738_v41   ;;  %4357 = vrot.lane.b32.xlu1 %v10578_v38, %s8504_s23  ;;  %v4734_v38 = vld [vmem:[%s12539_s5 + $0x18] sm:$0xff]  ;;  %v3712_v41 = vpack.c.bf16 %v3694_v6, %v3693_v23  ;;  %v12594_v23 = vld [vmem:[#allocation20_spill] sm:$0xff] }
 0x482   :  { %4359 = vrot.lane.b32.xlu2 %v10589_v32, %s8504_s23  ;;  %v4736_v32 = vld [vmem:[%s12539_s5 + $0x28] sm:$0xff]  ;;  %s8517_s23 = smov 92  }
 0x483   :  { %v11189_v39 = vpop.permute.xlu0 %4117  ;;  %v11191_v57 = vpop.permute.xlu1 %4119 }
 0x484   :  { %v11194_v48 = vpop.permute.xlu2 %4379 }
 0x489   :  { %4756 = vperm.xlu0 %8461, %v4734_v38   ;;  %4766 = vperm.xlu1 %8462, %v4736_v32   ;;  %v3838_v38 = vpack.c.bf16 %v3820_v36, %v3819_v21  ;;  %v12596_v21 = vld [vmem:[#allocation17_spill] sm:$0xff] }
 0x48a   :  { %4771 = vperm.xlu2 %8460, %v4737_v53   ;;  %v3691_v53 = vmul.f32 %v11218_v3, %v10907_v29  ;;  %v4732_v29 = vld [vmem:[%s12539_s5 + $0x8] sm:$0xff] }
 0x48b   :  { %v3806_v16 = vpop.permute.xlu0 %3805  ;;  %v3680_v8 = vpop.permute.xlu1 %3679 }
 0x48c   :  { %v3822_v0 = vmul.f32 %v11221_v24, %v3806_v16  ;;  %v3696_v2 = vmul.f32 %v11218_v3, %v3680_v8  ;;  %v11235_v5 = vpop.permute.xlu2 %4113  ;;  %v3690_v8 = vmul.f32 %v11218_v3, %v10927_v12  ;;  %v3814_v12 = vmul.f32 %v11221_v24, %v12594_v23 }
 0x48e   :  { %v3839_v52 = vpack.c.bf16 %v3822_v0, %v3821_v56  ;;  %v3713_v45 = vpack.c.bf16 %v3696_v2, %v3695_v35  ;;  %v12591_v56 = vld [vmem:[#allocation18_spill] sm:$0xff]  ;;  %v12592_v35 = vld [vmem:[#allocation21_spill] sm:$0xff]  ;;  %v12593_v2 = vld [vmem:[#allocation19_spill] sm:$0xff] }
 0x48f   :  { %3638 = vmatmul.bf16.gmra.mxu3 %v7973_v27  ;;  %3590 = vmatmul.bf16.gmra.mxu2 %v7978_v26  ;;  %v3837_v27 = vpack.c.bf16 %v3818_v28, %v3817_v54  ;;  %v3711_v26 = vpack.c.bf16 %v3692_v13, %v3691_v53  ;;  %v3815_v11 = vmul.f32 %v11221_v24, %v12591_v56  ;;  %v12601_v56 = vld [vmem:[#allocation11_spill] sm:$0xff] }
 0x490   :  { %3738 = vmatpush.bf16.msrb.mxu2 %v3713_v45  ;;  %3864 = vmatpush.bf16.msrb.mxu3 %v3839_v52  ;;  %v3689_v0 = vmul.f32 %v11218_v3, %v12592_v35  ;;  %v3687_v47 = vmul.f32 %v11218_v3, %v12593_v2  ;;  %v3813_v54 = vmul.f32 %v11221_v24, %v12596_v21  ;;  %v12602_v35 = vld [vmem:[#allocation13_spill] sm:$0xff] }
 0x491   :  { %4741 = vperm.xlu0 %8461, %v4731_v60   ;;  %4751 = vperm.xlu1 %8462, %v4733_v37   ;;  %v3836_v36 = vpack.c.bf16 %v3816_v50, %v3815_v11  ;;  %v7974_v37 = vld [vmem:[%s12538_s3 + $0x18] sm:$0xff]  ;;  %v3686_v53 = vmul.f32 %v11218_v3, %v12598_v1  ;;  %v3810_v11 = vmul.f32 %v11221_v24, %v12601_v56 }
 0x492   :  { %4761 = vperm.xlu2 %8460, %v4735_v20   ;;  %v3710_v52 = vpack.c.bf16 %v3690_v8, %v3689_v0  ;;  %v12595_v20 = vld [vmem:[#allocation16_spill] sm:$0xff]  ;;  %v3835_v50 = vpack.c.bf16 %v3814_v12, %v3813_v54  ;;  %v12599_v8 = vld [vmem:[#allocation10_spill] sm:$0xff]  ;;  %v3684_v0 = vmul.f32 %v11218_v3, %v12602_v35  ;;  %v3292_v35 = vadd.s32 1, %v12581_v63 }
 0x493   :  { %v11261_v32 = vpop.permute.xlu0 %4245  ;;  %v11263_v15 = vpop.permute.xlu1 %4377  ;;  %v3688_v6 = vmul.f32 %v11218_v3, %v12595_v20  ;;  %v12604_v20 = vld [vmem:[#allocation9_spill] sm:$0xff]  ;;  %v12605_v54 = vld [vmem:[#allocation4_spill] sm:$0xff] }
 0x494   :  { %v11269_v16 = vpop.permute.xlu2 %4241  ;;  %3739 = vmatpush.bf16.msrb.mxu2 %v3712_v41  ;;  %3865 = vmatpush.bf16.msrb.mxu3 %v3838_v38  ;;  %v12597_v41 = vld [vmem:[#allocation14_spill] sm:$0xff]  ;;  %vm3293_vm13 = vcmp.ge.s32.totalorder %v3292_v35, 0  ;;  %vm3294_vm14 = vcmp.lt.s32.totalorder %v3292_v35, 8 }
 0x495   :  { %v3811_v38 = vmul.f32 %v11221_v24, %v12597_v41  ;;  %v3709_v28 = vpack.c.bf16 %v3688_v6, %v3687_v47  ;;  %v7988_v47 = vld [vmem:[%s12538_s3 + $0x88] sm:$0xff]  ;;  %v3683_v6 = vmul.f32 %v11218_v3, %v12604_v20  ;;  %v3681_v41 = vmul.f32 %v11218_v3, %v12605_v54  ;;  %vm11345_vm15 = vmand %vm3293_vm13, %vm3294_vm14 }
 0x496   :  { %3955 = vmatmul.bf16.gmra.mxu0 %v7988_v47  ;;  %v11352_v47 = vsel %vm11345_vm15, 1.0, %v12584_v22  ;;  %vm3296_vm0 = vmand %vm11345_vm15, %vm3262_vm5 }
 0x497   :  { %v4277_v54 = vmul.f32 %v11352_v47, %v11017_v25  ;;  %v7980_v25 = vld [vmem:[%s12538_s3 + $0x48] sm:$0xff]  ;;  %v4270_v35 = vmul.f32 %v11352_v47, %v11261_v32  ;;  %vm3305_vm2 = vmand %vm11345_vm15, %vm3277_vm9 }
 0x498   :  { %3740 = vmatpush.bf16.msrb.mxu2 %v3711_v26  ;;  %3866 = vmatpush.bf16.msrb.mxu3 %v3837_v27  ;;  %v3685_v27 = vmul.f32 %v11218_v3, %v12599_v8  ;;  %v12600_v26 = vld [vmem:[#allocation12_spill] sm:$0xff] }
 0x49a   :  { %4746 = vperm.xlu2 %8460, %v4732_v29   ;;  %v3812_v29 = vmul.f32 %v11221_v24, %v12600_v26  ;;  %v3708_v23 = vpack.c.bf16 %v3686_v53, %v3685_v27  ;;  %v12608_v27 = vld [vmem:[#allocation7_spill] sm:$0xff] }
 0x49b   :  { %v11286_v45 = vpop.permute.xlu0 %3991  ;;  %v11288_v60 = vpop.permute.xlu1 %3993  ;;  %v3807_v26 = vmul.f32 %v11221_v24, %v12608_v27 }
 0x49c   :  { %v11297_v13 = vpop.permute.xlu2 %3987  ;;  %3741 = vmatpush.bf16.msrb.mxu2 %v3710_v52  ;;  %3867 = vmatpush.bf16.msrb.mxu3 %v3836_v36  ;;  %v3834_v2 = vpack.c.bf16 %v3812_v29, %v3811_v38  ;;  %v12603_v52 = vld [vmem:[#allocation5_spill] sm:$0xff]  ;;  %v12606_v38 = vld [vmem:[#allocation8_spill] sm:$0xff] }
 0x49d   :  { %v3808_v1 = vmul.f32 %v11221_v24, %v12606_v38  ;;  %v4275_v38 = vmul.f32 %v11352_v47, %v11070_v34  ;;  %v4274_v34 = vmul.f32 %v11352_v47, %v11076_v46 }
 0x49f   :  { %3643 = vmatmul.bf16.gmra.mxu3 %v7974_v37  ;;  %v3809_v37 = vmul.f32 %v11221_v24, %v12603_v52  ;;  %v3832_v56 = vpack.c.bf16 %v3808_v1, %v3807_v26  ;;  %v7989_v52 = vld [vmem:[%s12538_s3 + $0x90] sm:$0xff]  ;;  %v7984_v26 = vld [vmem:[%s12538_s3 + $0x68] sm:$0xff] }
 0x4a0   :  { %3742 = vmatpush.bf16.msrb.mxu2 %v3709_v28  ;;  %3868 = vmatpush.bf16.msrb.mxu3 %v3835_v50  ;;  %v3707_v28 = vpack.c.bf16 %v3684_v0, %v3683_v6  ;;  %v12607_v50 = vld [vmem:[#allocation6_spill] sm:$0xff] }
 0x4a1   :  { %v3833_v53 = vpack.c.bf16 %v3810_v11, %v3809_v37  ;;  %v3682_v8 = vmul.f32 %v11218_v3, %v12607_v50  ;;  %v7979_v11 = vld [vmem:[%s12538_s3 + $0x40] sm:$0xff]  ;;  %v4273_v50 = vmul.f32 %v11352_v47, %v11119_v51  ;;  %v4271_v51 = vmul.f32 %v11352_v47, %v11153_v33 }
 0x4a2   :  { %v7983_v3 = vld [vmem:[%s12538_s3 + $0x60] sm:$0xff] }
 0x4a3   :  { %v11314_v12 = vpop.permute.xlu0 %4115  ;;  %v11316_v36 = vpop.permute.xlu1 %4239  ;;  %v3706_v29 = vpack.c.bf16 %v3682_v8, %v3681_v41  ;;  %v12611_v33 = vld [vmem:[#allocation22_spill] sm:$0xff] }
 0x4a4   :  { %v11322_v21 = vpop.permute.xlu2 %4111  ;;  %3743 = vmatpush.bf16.msrb.mxu2 %v3708_v23  ;;  %3869 = vmatpush.bf16.msrb.mxu3 %v3834_v2 }
 0x4a6   :  { %3960 = vmatmul.bf16.gmra.mxu0 %v7989_v52 }
 0x4a8   :  { %3744 = vmatpush.bf16.msrb.mxu2 %v3707_v28  ;;  %3870 = vmatpush.bf16.msrb.mxu3 %v3833_v53  ;;  %v4276_v53 = vmul.f32 %v11352_v47, %v11020_v30  ;;  %v4293_v30 = vpack.c.bf16 %v4274_v34, %v4273_v50 }
 0x4aa   :  { %v4294_v28 = vpack.c.bf16 %v4276_v53, %v4275_v38  ;;  %v12613_v53 = vld [vmem:[#allocation2_spill] sm:$0xff] }
 0x4ab   :  { %v11333_v2 = vpop.permute.xlu0 %4373  ;;  %v11335_v23 = vpop.permute.xlu1 %4375 }
 0x4ac   :  { %v11343_v0 = vpop.permute.xlu2 %4369  ;;  %3745 = vmatpush.bf16.msrb.mxu2 %v3706_v29  ;;  %3871 = vmatpush.bf16.msrb.mxu3 %v3832_v56  ;;  %v4272_v29 = vmul.f32 %v11352_v47, %v11155_v40  ;;  %v11387_v56 = vsel %vm3296_vm0, 1.0, %v12584_v22 }
 0x4ad   :  { %v4151_v40 = vmul.f32 %v11387_v56, %v12611_v33  ;;  %v4148_v34 = vmul.f32 %v11387_v56, %v11094_v59  ;;  %v4147_v59 = vmul.f32 %v11387_v56, %v11048_v9 }
 0x4ae   :  { %v4292_v46 = vpack.c.bf16 %v4272_v29, %v4271_v51 }
 0x4af   :  { %3746 = vmatmul.bf16.vlgmr.msrb.gmra.mxu2 %v7979_v11  ;;  %3872 = vmatmul.bf16.vlgmr.msrb.gmra.mxu3 %v7983_v3 }
 0x4b3   :  { %v11357_v37 = vpop.permute.xlu0 %3989  ;;  %v11359_v20 = vpop.permute.xlu1 %4109 }
 0x4b4   :  { %v4262_v6 = vpop.permute.xlu2 %4261 }
 0x4b5   :  { %v4278_v41 = vmul.f32 %v11352_v47, %v4262_v6  ;;  %v4269_v6 = vmul.f32 %v11352_v47, %v11175_v4  ;;  %v11414_v4 = vsel %vm3289_vm1, 1.0, %v12584_v22 }
 0x4b6   :  { %3965 = vmatmul.bf16.gmra.mxu0 %v7990_v55  ;;  %v4024_v33 = vmul.f32 %v11414_v4, %v11096_v17  ;;  %v4023_v9 = vmul.f32 %v11414_v4, %v11068_v62  ;;  %v11448_v17 = vsel %vm3305_vm2, 1.0, %v12584_v22  ;;  %v4022_v44 = vmul.f32 %v11414_v4, %v11135_v10 }
 0x4b7   :  { %v4295_v1 = vpack.c.bf16 %v4278_v41, %v4277_v54  ;;  %v12612_v54 = vld [vmem:[#allocation23_spill] sm:$0xff]  ;;  %v4291_v38 = vpack.c.bf16 %v4270_v35, %v4269_v6  ;;  %v4144_v62 = vmul.f32 %v11387_v56, %v11191_v57  ;;  %v4142_v57 = vmul.f32 %v11387_v56, %v11314_v12 }
 0x4b8   :  { %v4150_v32 = vmul.f32 %v11387_v56, %v12612_v54  ;;  %v12614_v35 = vld [vmem:[#allocation3_spill] sm:$0xff]  ;;  %v4146_v54 = vmul.f32 %v11387_v56, %v11123_v19  ;;  %v4021_v19 = vmul.f32 %v11414_v4, %v11103_v42  ;;  %v4402_v42 = vmul.f32 %v11448_v17, %v11165_v14 }
 0x4b9   :  { %4320 = vmatpush.bf16.msra.mxu3 %v4295_v1  ;;  %v4267_v1 = vmul.f32 %v11352_v47, %v11316_v36  ;;  %v4018_v12 = vmul.f32 %v11414_v4, %v11288_v60  ;;  %v4140_v60 = vmul.f32 %v11387_v56, %v11322_v21 }
 0x4bb   :  { %v4236_v8 = vpop.permute.xlu0 %4235  ;;  %v4238_v27 = vpop.permute.xlu1 %4237 }
 0x4bc   :  { %v11411_v50 = vpop.permute.xlu2 %3985  ;;  %v4265_v36 = vmul.f32 %v11352_v47, %v4236_v8  ;;  %v4266_v51 = vmul.f32 %v11352_v47, %v4238_v27  ;;  %v4167_v27 = vpack.c.bf16 %v4148_v34, %v4147_v59  ;;  %v4020_v34 = vmul.f32 %v11414_v4, %v11157_v18 }
 0x4bd   :  { %4321 = vmatpush.bf16.msra.mxu3 %v4294_v28  ;;  %v4149_v28 = vmul.f32 %v11387_v56, %v12613_v53  ;;  %v4403_v53 = vmul.f32 %v11448_v17, %v11117_v43  ;;  %v4141_v43 = vmul.f32 %v11387_v56, %v11235_v5  ;;  %v4139_v18 = vmul.f32 %v11387_v56, %v11359_v20 }
 0x4be   :  { %v4289_v6 = vpack.c.bf16 %v4266_v51, %v4265_v36  ;;  %v4399_v5 = vmul.f32 %v11448_v17, %v11263_v15  ;;  %v4400_v15 = vmul.f32 %v11448_v17, %v11194_v48  ;;  %v4016_v59 = vmul.f32 %v11414_v4, %v11357_v37 }
 0x4bf   :  { %3751 = vmatmul.bf16.gmra.mxu2 %v7980_v25  ;;  %3877 = vmatmul.bf16.gmra.mxu3 %v7984_v26  ;;  %v4268_v25 = vmul.f32 %v11352_v47, %v11269_v16  ;;  %v4168_v26 = vpack.c.bf16 %v4150_v32, %v4149_v28  ;;  %v7985_v16 = vld [vmem:[%s12538_s3 + $0x70] sm:$0xff]  ;;  %v4143_v32 = vmul.f32 %v11387_v56, %v11189_v39 }
 0x4c0   :  { %v4041_v28 = vpack.c.bf16 %v4022_v44, %v4021_v19  ;;  %v4019_v39 = vmul.f32 %v11414_v4, %v11167_v49  ;;  %v4017_v49 = vmul.f32 %v11414_v4, %v11286_v45  ;;  %v4164_v14 = vpack.c.bf16 %v4142_v57, %v4141_v43  ;;  %v7986_v45 = vld [vmem:[%s12538_s3 + $0x78] sm:$0xff] }
 0x4c1   :  { %4322 = vmatpush.bf16.msra.mxu3 %v4293_v30  ;;  %v4290_v30 = vpack.c.bf16 %v4268_v25, %v4267_v1  ;;  %v4165_v25 = vpack.c.bf16 %v4144_v62, %v4143_v32  ;;  %v4419_v21 = vpack.c.bf16 %v4400_v15, %v4399_v5  ;;  %v4015_v48 = vmul.f32 %v11414_v4, %v11297_v13  ;;  %v8000_v5 = vld [vmem:[%s12538_s3 + $0xe8] sm:$0xff] }
 0x4c2   :  { %v4040_v36 = vpack.c.bf16 %v4020_v34, %v4019_v39  ;;  %v4014_v13 = vmul.f32 %v11414_v4, %v11411_v50  ;;  %v7995_v50 = vld [vmem:[%s12538_s3 + $0xc0] sm:$0xff] }
 0x4c3   :  { %v4136_v11 = vpop.permute.xlu0 %4135  ;;  %v11394_v3 = vpop.permute.xlu1 %3983  ;;  %v4038_v37 = vpack.c.bf16 %v4016_v59, %v4015_v48 }
 0x4c4   :  { %v4152_v52 = vmul.f32 %v11387_v56, %v4136_v11  ;;  %v4025_v11 = vmul.f32 %v11414_v4, %v12614_v35  ;;  %v4039_v35 = vpack.c.bf16 %v4018_v12, %v4017_v49 }
 0x4c5   :  { %4323 = vmatpush.bf16.msra.mxu3 %v4292_v46  ;;  %v7981_v46 = vld [vmem:[%s12538_s3 + $0x50] sm:$0xff] }
 0x4c6   :  { %v4169_v41 = vpack.c.bf16 %v4152_v52, %v4151_v40  ;;  %v4145_v40 = vmul.f32 %v11387_v56, %v11137_v7  ;;  %v4042_v7 = vpack.c.bf16 %v4024_v33, %v4023_v9 }
 0x4c8   :  { %4194 = vmatpush.bf16.msra.mxu2 %v4169_v41  ;;  %v4166_v24 = vpack.c.bf16 %v4146_v54, %v4145_v40  ;;  %v4232_v41 = vpop.permute.xlu2 %4231  ;;  %v4397_v40 = vmul.f32 %v11448_v17, %v11333_v2 }
 0x4c9   :  { %4324 = vmatpush.bf16.msra.mxu3 %v4291_v38 }
 0x4cb   :  { %v11422_v29 = vpop.permute.xlu0 %4371  ;;  %v4010_v55 = vpop.permute.xlu1 %4009 }
 0x4cc   :  { %v4026_v8 = vmul.f32 %v11414_v4, %v4010_v55  ;;  %4195 = vmatpush.bf16.msra.mxu2 %v4168_v26 }
 0x4cd   :  { %4325 = vmatpush.bf16.msra.mxu3 %v4290_v30  ;;  %v4401_v30 = vmul.f32 %v11448_v17, %v11145_v31  ;;  %v7982_v31 = vld [vmem:[%s12538_s3 + $0x58] sm:$0xff] }
 0x4ce   :  { %v4043_v52 = vpack.c.bf16 %v4026_v8, %v4025_v11  ;;  %v4163_v8 = vpack.c.bf16 %v4140_v60, %v4139_v18 }
 0x4cf   :  { %3756 = vmatmul.bf16.gmra.mxu2 %v7981_v46  ;;  %3882 = vmatmul.bf16.gmra.mxu3 %v7985_v16  ;;  %v4420_v51 = vpack.c.bf16 %v4402_v42, %v4401_v30  ;;  %v4263_v16 = vmul.f32 %v11352_v47, %v4232_v41 }
 0x4d0   :  { %4068 = vmatpush.bf16.msrb.mxu1 %v4043_v52  ;;  %4196 = vmatpush.bf16.msra.mxu2 %v4167_v27  ;;  %v4368_v11 = vpop.permute.xlu2 %4367 }
 0x4d1   :  { %4326 = vmatpush.bf16.msra.mxu3 %v4289_v6  ;;  %v4013_v6 = vmul.f32 %v11414_v4, %v11394_v3 }
 0x4d3   :  { %v4106_v38 = vpop.permute.xlu0 %4105  ;;  %v4388_v1 = vpop.permute.xlu1 %4387 }
 0x4d4   :  { %v4404_v10 = vmul.f32 %v11448_v17, %v4388_v1  ;;  %4069 = vmatpush.bf16.msrb.mxu1 %v4042_v7  ;;  %4197 = vmatpush.bf16.msra.mxu2 %v4166_v24  ;;  %v4137_v52 = vmul.f32 %v11387_v56, %v4106_v38  ;;  %v4395_v7 = vmul.f32 %v11448_v17, %v11343_v0  ;;  %v7999_v0 = vld [vmem:[%s12538_s3 + $0xe0] sm:$0xff] }
 0x4d5   :  { %v4037_v24 = vpack.c.bf16 %v4014_v13, %v4013_v6  ;;  %v8006_v6 = vld [vmem:[%s12538_s3 + $0x118] sm:$0xff] }
 0x4d6   :  { %v4421_v26 = vpack.c.bf16 %v4404_v10, %v4403_v53 }
 0x4d8   :  { %4070 = vmatpush.bf16.msrb.mxu1 %v4041_v28  ;;  %4198 = vmatpush.bf16.msra.mxu2 %v4165_v25  ;;  %v4362_v3 = vpop.permute.xlu2 %4361 }
 0x4d9   :  { %4446 = vmatpush.bf16.msra.mxu0 %v4421_v26  ;;  %v4391_v1 = vmul.f32 %v11448_v17, %v4362_v3  ;;  %v7991_v26 = vld [vmem:[%s12538_s3 + $0xa0] sm:$0xff] }
 0x4db   :  { %v4234_v55 = vpop.permute.xlu0 %4233  ;;  %v4108_v46 = vpop.permute.xlu1 %4107 }
 0x4dc   :  { %v4264_v20 = vmul.f32 %v11352_v47, %v4234_v55  ;;  %4071 = vmatpush.bf16.msrb.mxu1 %v4040_v36  ;;  %4199 = vmatpush.bf16.msra.mxu2 %v4164_v14  ;;  %v4138_v33 = vmul.f32 %v11387_v56, %v4108_v46  ;;  %v4398_v47 = vmul.f32 %v11448_v17, %v11335_v23  ;;  %v8003_v36 = vld [vmem:[%s12538_s3 + $0x100] sm:$0xff] }
 0x4dd   :  { %4447 = vmatpush.bf16.msra.mxu0 %v4420_v51  ;;  %v4396_v23 = vmul.f32 %v11448_v17, %v11422_v29  ;;  %v4394_v29 = vmul.f32 %v11448_v17, %v4368_v11  ;;  %v7996_v51 = vld [vmem:[%s12538_s3 + $0xc8] sm:$0xff] }
 0x4de   :  { %v4288_v27 = vpack.c.bf16 %v4264_v20, %v4263_v16  ;;  %v4162_v9 = vpack.c.bf16 %v4138_v33, %v4137_v52  ;;  %v4418_v2 = vpack.c.bf16 %v4398_v47, %v4397_v40  ;;  %v7997_v16 = vld [vmem:[%s12538_s3 + $0xd0] sm:$0xff]  ;;  %v8002_v40 = vld [vmem:[%s12538_s3 + $0xf8] sm:$0xff] }
 0x4df   :  { %3761 = vmatmul.bf16.gmra.mxu2 %v7982_v31  ;;  %3887 = vmatmul.bf16.gmra.mxu3 %v7986_v45  ;;  %v4417_v32 = vpack.c.bf16 %v4396_v23, %v4395_v7  ;;  %v8004_v45 = vld [vmem:[%s12538_s3 + $0x108] sm:$0xff]  ;;  %v8001_v20 = vld [vmem:[%s12538_s3 + $0xf0] sm:$0xff]  ;;  %v7994_v47 = vld [vmem:[%s12538_s3 + $0xb8] sm:$0xff] }
 0x4e0   :  { %4072 = vmatpush.bf16.msrb.mxu1 %v4039_v35  ;;  %4200 = vmatpush.bf16.msra.mxu2 %v4163_v8  ;;  %v4360_v42 = vpop.permute.xlu2 %4359  ;;  %v7993_v35 = vld [vmem:[%s12538_s3 + $0xb0] sm:$0xff] }
 0x4e1   :  { %4327 = vmatpush.bf16.msra.mxu3 %v4288_v27  ;;  %4448 = vmatpush.bf16.msra.mxu0 %v4419_v21  ;;  %v8005_v27 = vld [vmem:[%s12538_s3 + $0x110] sm:$0xff]  ;;  %v7998_v21 = vld [vmem:[%s12538_s3 + $0xd8] sm:$0xff] }
 0x4e2   :  { %v3576_v56 = vpop.f32.mrf.mxu2 }
 0x4e3   :  { %v3980_v54 = vpop.permute.xlu0 %3979  ;;  %v4366_v44 = vpop.permute.xlu1 %4365 }
 0x4e4   :  { %4073 = vmatpush.bf16.msrb.mxu1 %v4038_v37  ;;  %4201 = vmatpush.bf16.msra.mxu2 %v4162_v9  ;;  %v4393_v62 = vmul.f32 %v11448_v17, %v4366_v44  ;;  %v4011_v53 = vmul.f32 %v11414_v4, %v3980_v54 }
 0x4e5   :  { %4449 = vmatpush.bf16.msra.mxu0 %v4418_v2 }
 0x4e6   :  { %v4416_v41 = vpack.c.bf16 %v4394_v29, %v4393_v62 }
 0x4e8   :  { %4074 = vmatpush.bf16.msrb.mxu1 %v4037_v24 }
 0x4e9   :  { %4450 = vmatpush.bf16.msra.mxu0 %v4417_v32 }
 0x4ea   :  { %v11523_v57 = vpop.f32.mrf.mxu2 }
 0x4eb   :  { %v4364_v19 = vpop.permute.xlu0 %4363  ;;  %v3982_v38 = vpop.permute.xlu1 %3981 }
 0x4ec   :  { %v4392_v10 = vmul.f32 %v11448_v17, %v4364_v19  ;;  %v4012_v28 = vmul.f32 %v11414_v4, %v3982_v38  ;;  %v4390_v4 = vmul.f32 %v11448_v17, %v4360_v42 }
 0x4ed   :  { %4451 = vmatpush.bf16.msra.mxu0 %v4416_v41 }
 0x4ee   :  { %v4415_v39 = vpack.c.bf16 %v4392_v10, %v4391_v1  ;;  %v4036_v25 = vpack.c.bf16 %v4012_v28, %v4011_v53 }
 0x4ef   :  { %4202 = vmatmul.bf16.vlgmr.msra.gmra.mxu2 %v7995_v50  ;;  %4328 = vmatmul.bf16.vlgmr.msra.gmra.mxu3 %v7999_v0 }
 0x4f0   :  { %4075 = vmatpush.bf16.msrb.mxu1 %v4036_v25 }
 0x4f1   :  { %4452 = vmatpush.bf16.msra.mxu0 %v4415_v39 }
 0x4f2   :  { %v3629_v34 = vpop.f32.mrf.mxu3  ;;  %v3581_v14 = vpop.f32.mrf.mxu2 }
 0x4f3   :  { %v4358_v43 = vpop.permute.xlu1 %4357  ;;  %4076 = vmatmul.bf16.vlgmr.msrb.gmra.mxu1 %v7991_v26  ;;  %v11528_v30 = vadd.f32 %v3629_v34, %v3576_v56 }
 0x4f4   :  { %v4389_v49 = vmul.f32 %v11448_v17, %v4358_v43  ;;  %v7992_v17 = vld [vmem:[%s12538_s3 + $0xa8] sm:$0xff]  ;;  %s8511_s3 = smov 112  }
 0x4f6   :  { %v4414_v12 = vpack.c.bf16 %v4390_v4, %v4389_v49  ;;  %v3400_v4 = vand.u32 1, %v12581_v63  ;;  %v3402_v49 = vand.u32 1, %v12586_v58 }
 0x4f8   :  { %4453 = vmatpush.bf16.msra.mxu0 %v4414_v12  ;;  %vm3401_vm3 = vcmp.eq.s32.totalorder %v3400_v4, 0  ;;  %vm3403_vm4 = vcmp.eq.s32.totalorder %v3402_v49, 0 }
 0x4f9   :  { %vm3404_vm5 = vmand %vm3401_vm3, %vm3403_vm4 }
 0x4fa   :  { %v11535_v18 = vpop.f32.mrf.mxu3  ;;  %v11546_v46 = vpop.f32.mrf.mxu2 }
 0x4fb   :  { %4454 = vmatmul.bf16.vlgmr.msra.gmra.mxu0 %v8003_v36  ;;  %v3632_v43 = vadd.f32 %v11535_v18, %v11523_v57 }
 0x4fd   :  { %v3951_v9 = vpop.f32.mrf.mxu0 }
 0x4ff   :  { %4207 = vmatmul.bf16.gmra.mxu2 %v7996_v51  ;;  %4333 = vmatmul.bf16.gmra.mxu3 %v8000_v5 }
 0x502   :  { %v3634_v55 = vpop.f32.mrf.mxu3  ;;  %v3586_v15 = vpop.f32.mrf.mxu2 }
 0x503   :  { %4081 = vmatmul.bf16.gmra.mxu1 %v7992_v17  ;;  %v11548_v31 = vadd.f32 %v3634_v55, %v3581_v14 }
 0x505   :  { %v3953_v13 = vpop.f32.mrf.mxu0 }
 0x50a   :  { %v11553_v60 = vpop.f32.mrf.mxu3  ;;  %v11566_v8 = vpop.f32.mrf.mxu2 }
 0x50b   :  { %4459 = vmatmul.bf16.gmra.mxu0 %v8004_v45 }
 0x50f   :  { %4212 = vmatmul.bf16.gmra.mxu2 %v7997_v16  ;;  %4338 = vmatmul.bf16.gmra.mxu3 %v8001_v20 }
 0x512   :  { %v3639_v11 = vpop.f32.mrf.mxu3  ;;  %v3591_v48 = vpop.f32.mrf.mxu2 }
 0x513   :  { %4086 = vmatmul.bf16.gmra.mxu1 %v7993_v35  ;;  %v11564_v59 = vadd.f32 %v3639_v11, %v3586_v15  ;;  %v3956_v24 = vpop.f32.mrf.mxu0  ;;  %v11620_v15 = vsel %vm3404_vm5, 1.0, %v12584_v22 }
 0x51a   :  { %v11571_v33 = vpop.f32.mrf.mxu3  ;;  %v11587_v2 = vpop.f32.mrf.mxu2 }
 0x51b   :  { %4464 = vmatmul.bf16.gmra.mxu0 %v8005_v27  ;;  %v3958_v62 = vpop.f32.mrf.mxu0 }
 0x51f   :  { %4217 = vmatmul.bf16.gmra.mxu2 %v7998_v21  ;;  %4343 = vmatmul.bf16.gmra.mxu3 %v8002_v40 }
 0x522   :  { %v3644_v52 = vpop.f32.mrf.mxu3 }
 0x523   :  { %4091 = vmatmul.bf16.gmra.mxu1 %v7994_v47  ;;  %v11582_v37 = vadd.f32 %v3644_v52, %v3591_v48  ;;  %v11591_v19 = vpop.f32.mrf.mxu0 }
 0x52a   :  { %v11589_v23 = vpop.f32.mrf.mxu3 }
 0x52b   :  { %4469 = vmatmul.bf16.gmra.mxu0 %v8006_v6  ;;  %v11599_v53 = vpop.f32.mrf.mxu0  ;;  %v3637_v6 = vadd.f32 %v11553_v60, %v11546_v46 }
 0x532   :  { %v3747_v54 = vpop.f32.mrf.mxu2  ;;  %v3873_v44 = vpop.f32.mrf.mxu3 }
 0x533   :  { %v11605_v39 = vpop.f32.mrf.mxu0  ;;  %v3767_v25 = vadd.f32 %v3747_v54, %v11528_v30 }
 0x535   :  { %v3893_v34 = vadd.f32 %v3873_v44, %v3767_v25 }
 0x537   :  { %v3971_v12 = vadd.f32 %v3951_v9, %v3893_v34 }
 0x53a   :  { %v3749_v56 = vpop.f32.mrf.mxu2  ;;  %v3875_v7 = vpop.f32.mrf.mxu3 }
 0x53b   :  { %v3768_v36 = vadd.f32 %v3749_v56, %v3632_v43  ;;  %v11616_v14 = vpop.f32.mrf.mxu0 }
 0x53d   :  { %v3894_v55 = vadd.f32 %v3875_v7, %v3768_v36 }
 0x53f   :  { %v3972_v16 = vadd.f32 %v3953_v13, %v3894_v55 }
 0x542   :  { %v3752_v32 = vpop.f32.mrf.mxu2  ;;  %v3878_v3 = vpop.f32.mrf.mxu3 }
 0x543   :  { %v3769_v57 = vadd.f32 %v3752_v32, %v11548_v31 }
 0x545   :  { %v3895_v47 = vadd.f32 %v3878_v3, %v3769_v57 }
 0x547   :  { %v3973_v9 = vadd.f32 %v3956_v24, %v3895_v47 }
 0x54a   :  { %v3754_v29 = vpop.f32.mrf.mxu2  ;;  %v3880_v41 = vpop.f32.mrf.mxu3 }
 0x54b   :  { %v3770_v54 = vadd.f32 %v3754_v29, %v3637_v6 }
 0x54d   :  { %v3896_v34 = vadd.f32 %v3880_v41, %v3770_v54 }
 0x54f   :  { %v3974_v60 = vadd.f32 %v3958_v62, %v3896_v34  ;;  %v3642_v62 = vadd.f32 %v11571_v33, %v11566_v8 }
 0x552   :  { %v3757_v38 = vpop.f32.mrf.mxu2  ;;  %v11593_v50 = vpop.f32.mrf.mxu3 }
 0x553   :  { %v3771_v24 = vadd.f32 %v3757_v38, %v11564_v59 }
 0x555   :  { %v3897_v41 = vadd.f32 %v11593_v50, %v3771_v24 }
 0x557   :  { %v3975_v38 = vadd.f32 %v11591_v19, %v3897_v41 }
 0x55a   :  { %v11595_v0 = vpop.f32.mrf.mxu2  ;;  %v11597_v1 = vpop.f32.mrf.mxu3 }
 0x562   :  { %v11601_v10 = vpop.f32.mrf.mxu2  ;;  %v11603_v28 = vpop.f32.mrf.mxu3 }
 0x56a   :  { %v11608_v26 = vpop.f32.mrf.mxu2  ;;  %v11610_v42 = vpop.f32.mrf.mxu3 }
 0x570   :  { %v4077_v51 = vpop.f32.mrf.mxu1 }
 0x571   :  { %v4097_v5 = vadd.f32 %v4077_v51, %v3971_v12 }
 0x572   :  { %v4203_v17 = vpop.f32.mrf.mxu2  ;;  %v4329_v30 = vpop.f32.mrf.mxu3 }
 0x573   :  { %v4223_v45 = vadd.f32 %v4203_v17, %v4097_v5 }
 0x575   :  { %v4349_v18 = vadd.f32 %v4329_v30, %v4223_v45  ;;  %v3772_v45 = vadd.f32 %v11595_v0, %v3642_v62  ;;  %v3773_v0 = vadd.f32 %v11601_v10, %v11582_v37 }
 0x577   :  { %v3899_v54 = vadd.f32 %v11603_v28, %v3773_v0 }
 0x578   :  { %v4079_v20 = vpop.f32.mrf.mxu1  ;;  %v4455_v35 = vpop.f32.mrf.mxu0 }
 0x579   :  { %v4098_v11 = vadd.f32 %v4079_v20, %v3972_v16  ;;  %v11622_v27 = vadd.f32 %v4455_v35, %v4349_v18  ;;  %v3977_v10 = vadd.f32 %v11605_v39, %v3899_v54 }
 0x57a   :  { %v4205_v21 = vpop.f32.mrf.mxu2  ;;  %v4331_v40 = vpop.f32.mrf.mxu3 }
 0x57b   :  { %v4483_v48 = vmul.f32 %v11620_v15, %v11622_v27  ;;  %v4224_v52 = vadd.f32 %v4205_v21, %v4098_v11  ;;  %v3898_v21 = vadd.f32 %v11597_v1, %v3772_v45  ;;  %v11675_v45 = vpop.permute.xlu0 %4776 }
 0x57d   :  { %4491 = vadd.xlane.f32.xlu2 %v4483_v48  ;;  %v4515_v31 = vmul.f32 %v4483_v48, %v4483_v48  ;;  %v4350_v44 = vadd.f32 %v4331_v40, %v4224_v52  ;;  %v3976_v19 = vadd.f32 %v11599_v53, %v3898_v21  ;;  %v3647_v53 = vadd.f32 %v11589_v23, %v11587_v2 }
 0x57f   :  { %4523 = vadd.xlane.f32.xlu1 %v4515_v31 }
 0x580   :  { %v4082_v13 = vpop.f32.mrf.mxu1  ;;  %v4457_v56 = vpop.f32.mrf.mxu0 }
 0x581   :  { %v4099_v7 = vadd.f32 %v4082_v13, %v3973_v9  ;;  %v11628_v32 = vadd.f32 %v4457_v56, %v4350_v44  ;;  %v3774_v56 = vadd.f32 %v11608_v26, %v3647_v53 }
 0x582   :  { %v4208_v25 = vpop.f32.mrf.mxu2  ;;  %v4334_v3 = vpop.f32.mrf.mxu3 }
 0x583   :  { %v4484_v43 = vmul.f32 %v11620_v15, %v11628_v32  ;;  %v4225_v4 = vadd.f32 %v4208_v25, %v4099_v7 }
 0x585   :  { %4493 = vadd.xlane.f32.xlu0 %v4484_v43  ;;  %v4516_v46 = vmul.f32 %v4484_v43, %v4484_v43  ;;  %v4351_v29 = vadd.f32 %v4334_v3, %v4225_v4 }
 0x587   :  { %4525 = vadd.xlane.f32.xlu2 %v4516_v46  ;;  %v3900_v46 = vadd.f32 %v11610_v42, %v3774_v56 }
 0x588   :  { %v4084_v49 = vpop.f32.mrf.mxu1  ;;  %v4460_v12 = vpop.f32.mrf.mxu0 }
 0x589   :  { %v4100_v36 = vadd.f32 %v4084_v49, %v3974_v60  ;;  %v11633_v51 = vadd.f32 %v4460_v12, %v4351_v29  ;;  %v3978_v39 = vadd.f32 %v11616_v14, %v3900_v46 }
 0x58a   :  { %v4210_v5 = vpop.f32.mrf.mxu2  ;;  %v4336_v17 = vpop.f32.mrf.mxu3 }
 0x58b   :  { %v4485_v30 = vmul.f32 %v11620_v15, %v11633_v51  ;;  %v4226_v55 = vadd.f32 %v4210_v5, %v4100_v36 }
 0x58d   :  { %4495 = vadd.xlane.f32.xlu1 %v4485_v30  ;;  %v4517_v59 = vmul.f32 %v4485_v30, %v4485_v30  ;;  %v4352_v16 = vadd.f32 %v4336_v17, %v4226_v55 }
 0x58f   :  { %4527 = vadd.xlane.f32.xlu0 %v4517_v59 }
 0x590   :  { %v4087_v57 = vpop.f32.mrf.mxu1  ;;  %v4462_v18 = vpop.f32.mrf.mxu0 }
 0x591   :  { %v4101_v20 = vadd.f32 %v4087_v57, %v3975_v38  ;;  %v11642_v35 = vadd.f32 %v4462_v18, %v4352_v16  ;;  %v11673_v38 = vpop.permute.xlu2 %4771  ;;  %v11679_v57 = vpop.permute.xlu1 %4766 }
 0x592   :  { %v4213_v50 = vpop.f32.mrf.mxu2  ;;  %v4339_v11 = vpop.f32.mrf.mxu3 }
 0x593   :  { %v4486_v8 = vmul.f32 %v11620_v15, %v11642_v35  ;;  %v4227_v33 = vadd.f32 %v4213_v50, %v4101_v20  ;;  %v11681_v18 = vpop.permute.xlu0 %4756 }
 0x595   :  { %4497 = vadd.xlane.f32.xlu2 %v4486_v8  ;;  %v4518_v40 = vmul.f32 %v4486_v8, %v4486_v8  ;;  %v4353_v47 = vadd.f32 %v4339_v11, %v4227_v33 }
 0x597   :  { %4529 = vadd.xlane.f32.xlu1 %v4518_v40 }
 0x598   :  { %v4089_v48 = vpop.f32.mrf.mxu1  ;;  %v4465_v52 = vpop.f32.mrf.mxu0 }
 0x599   :  { %v4102_v6 = vadd.f32 %v4089_v48, %v3976_v19  ;;  %v11650_v31 = vadd.f32 %v4465_v52, %v4353_v47  ;;  %v11677_v16 = vpop.permute.xlu2 %4761  ;;  %v11685_v50 = vpop.permute.xlu1 %4751 }
 0x59a   :  { %v4215_v9 = vpop.f32.mrf.mxu2  ;;  %v4341_v1 = vpop.f32.mrf.mxu3 }
 0x59b   :  { %v4487_v44 = vmul.f32 %v11620_v15, %v11650_v31  ;;  %v4228_v13 = vadd.f32 %v4215_v9, %v4102_v6  ;;  %v11687_v11 = vpop.permute.xlu0 %4741 }
 0x59d   :  { %4499 = vadd.xlane.f32.xlu0 %v4487_v44  ;;  %v4519_v37 = vmul.f32 %v4487_v44, %v4487_v44  ;;  %v4354_v7 = vadd.f32 %v4341_v1, %v4228_v13 }
 0x59f   :  { %4531 = vadd.xlane.f32.xlu2 %v4519_v37 }
 0x5a0   :  { %v4092_v25 = vpop.f32.mrf.mxu1  ;;  %v4467_v3 = vpop.f32.mrf.mxu0 }
 0x5a1   :  { %v4103_v34 = vadd.f32 %v4092_v25, %v3977_v10  ;;  %v11659_v43 = vadd.f32 %v4467_v3, %v4354_v7  ;;  %v11683_v20 = vpop.permute.xlu2 %4746 }
 0x5a2   :  { %v4218_v28 = vpop.f32.mrf.mxu2  ;;  %v4344_v4 = vpop.f32.mrf.mxu3 }
 0x5a3   :  { %v4488_v2 = vmul.f32 %v11620_v15, %v11659_v43  ;;  %v4229_v23 = vadd.f32 %v4218_v28, %v4103_v34 }
 0x5a5   :  { %4501 = vadd.xlane.f32.xlu1 %v4488_v2  ;;  %v4520_v60 = vmul.f32 %v4488_v2, %v4488_v2  ;;  %v4355_v26 = vadd.f32 %v4344_v4, %v4229_v23 }
 0x5a7   :  { %4533 = vadd.xlane.f32.xlu0 %v4520_v60 }
 0x5a8   :  { %v4094_v24 = vpop.f32.mrf.mxu1  ;;  %v4470_v29 = vpop.f32.mrf.mxu0 }
 0x5a9   :  { %v4104_v49 = vadd.f32 %v4094_v24, %v3978_v39  ;;  %v11665_v12 = vadd.f32 %v4470_v29, %v4355_v26 }
 0x5aa   :  { %v4220_v36 = vpop.f32.mrf.mxu2  ;;  %v4346_v17 = vpop.f32.mrf.mxu3 }
 0x5ab   :  { %v4489_v5 = vmul.f32 %v11620_v15, %v11665_v12  ;;  %v4230_v42 = vadd.f32 %v4220_v36, %v4104_v49  ;;  %v4667_v36 = vld [vmem:[%s12540_s4] sm:$0xff] }
 0x5ad   :  { %v4521_v41 = vmul.f32 %v4489_v5, %v4489_v5  ;;  %v4356_v30 = vadd.f32 %v4346_v17, %v4230_v42 }
 0x5af   :  { %4503 = vadd.xlane.f32.xlu0 %v4489_v5  ;;  %4535 = vadd.xlane.f32.xlu2 %v4521_v41 }
 0x5b0   :  { %v4472_v55 = vpop.f32.mrf.mxu0 }
 0x5b1   :  { %v11669_v62 = vadd.f32 %v4472_v55, %v4356_v30 }
 0x5b3   :  { %v4490_v14 = vmul.f32 %v11620_v15, %v11669_v62 }
 0x5b5   :  { %4505 = vadd.xlane.f32.xlu1 %v4490_v14  ;;  %v4522_v59 = vmul.f32 %v4490_v14, %v4490_v14 }
 0x5b7   :  { %4537 = vadd.xlane.f32.xlu2 %v4522_v59 }
 0x5f0   :  { %v4492_v15 = vpop.xlane.xlu2 %4491 }
 0x5f1   :  { %v11689_v21 = vmul.f32 0.03125, %v4492_v15 }
 0x5f2   :  { %v4524_v8 = vpop.xlane.xlu1 %4523 }
 0x5f3   :  { %v4547_v33 = vmul.f32 %v11689_v21, %v11689_v21  ;;  %v4539_v40 = vmul.f32 0.03125, %v4524_v8 }
 0x5f5   :  { %v4555_v19 = vsub.f32 %v4539_v40, %v4547_v33 }
 0x5f7   :  { %v4563_v0 = vmax.f32 %v4555_v19, 0.0 }
 0x5f8   :  { %v4494_v47 = vpop.xlane.xlu0 %4493 }
 0x5f9   :  { %v4579_v48 = vadd.f32 1e-05, %v4563_v0  ;;  %v11693_v52 = vmul.f32 0.03125, %v4494_v47 }
 0x5fa   :  { %v4526_v6 = vpop.xlane.xlu2 %4525 }
 0x5fb   :  { %8463 = vrsqrt.f32 %v4579_v48  ;;  %v4548_v9 = vmul.f32 %v11693_v52, %v11693_v52  ;;  %v4540_v1 = vmul.f32 0.03125, %v4526_v6  ;;  %vm4593_vm7 = vweird.f32 %v4579_v48  ;;  %v4668_v6 = vld [vmem:[%s12540_s4 + $0x8] sm:$0xff] }
 0x5fd   :  { %v4556_v54 = vsub.f32 %v4540_v1, %v4548_v9 }
 0x5ff   :  { %v4564_v44 = vmax.f32 %v4556_v54, 0.0 }
 0x600   :  { %v4496_v13 = vpop.xlane.xlu1 %4495 }
 0x601   :  { %v8464_v53 = vpop.eup %8463  ;;  %v4580_v37 = vadd.f32 1e-05, %v4564_v44  ;;  %v11697_v10 = vmul.f32 0.03125, %v4496_v13 }
 0x602   :  { %v4588_v56 = vmul.f32 %v8464_v53, %v4579_v48  ;;  %v4528_v7 = vpop.xlane.xlu0 %4527  ;;  %vm4594_vm6 = vweird.f32 %v8464_v53 }
 0x603   :  { %8465 = vrsqrt.f32 %v4580_v37  ;;  %v4549_v25 = vmul.f32 %v11697_v10, %v11697_v10  ;;  %v4541_v3 = vmul.f32 0.03125, %v4528_v7  ;;  %vm4595_vm8 = vmor %vm4593_vm7, %vm4594_vm6  ;;  %vm4603_vm11 = vweird.f32 %v4580_v37 }
 0x604   :  { %v4589_v34 = vmul.f32 %v8464_v53, %v4588_v56 }
 0x605   :  { %v4557_v28 = vsub.f32 %v4541_v3, %v4549_v25 }
 0x606   :  { %v4590_v4 = vmul.f32 0.5, %v4589_v34 }
 0x607   :  { %v4565_v46 = vmax.f32 %v4557_v28, 0.0 }
 0x608   :  { %v4591_v2 = vsub.f32 1.5, %v4590_v4  ;;  %v4498_v23 = vpop.xlane.xlu2 %4497 }
 0x609   :  { %v8466_v60 = vpop.eup %8465  ;;  %v4581_v39 = vadd.f32 1e-05, %v4565_v46  ;;  %v11701_v26 = vmul.f32 0.03125, %v4498_v23  ;;  %v4669_v23 = vld [vmem:[%s12540_s4 + $0x10] sm:$0xff] }
 0x60a   :  { %v4598_v24 = vmul.f32 %v8466_v60, %v4580_v37  ;;  %v4530_v29 = vpop.xlane.xlu1 %4529  ;;  %v4592_v49 = vmul.f32 %v8464_v53, %v4591_v2  ;;  %vm4604_vm9 = vweird.f32 %v8466_v60 }
 0x60b   :  { %8467 = vrsqrt.f32 %v4581_v39  ;;  %v4550_v5 = vmul.f32 %v11701_v26, %v11701_v26  ;;  %v4542_v42 = vmul.f32 0.03125, %v4530_v29  ;;  %vm4605_vm12 = vmor %vm4603_vm11, %vm4604_vm9  ;;  %vm4613_vm14 = vweird.f32 %v4581_v39 }
 0x60c   :  { %v4599_v17 = vmul.f32 %v8466_v60, %v4598_v24  ;;  %v4596_v41 = vsel %vm4595_vm8, %v8464_v53, %v4592_v49 }
 0x60d   :  { %v4558_v30 = vsub.f32 %v4542_v42, %v4550_v5  ;;  %v4675_v55 = vmul.f32 %v4667_v36, %v4596_v41 }
 0x60e   :  { %v4600_v14 = vmul.f32 0.5, %v4599_v17 }
 0x60f   :  { %v4566_v59 = vmax.f32 %v4558_v30, 0.0  ;;  %4685 = vperm.xlu2 %8460, %v4675_v55  }
 0x610   :  { %v4601_v15 = vsub.f32 1.5, %v4600_v14  ;;  %v4500_v8 = vpop.xlane.xlu0 %4499 }
 0x611   :  { %v8468_v33 = vpop.eup %8467  ;;  %v4582_v40 = vadd.f32 1e-05, %v4566_v59  ;;  %v11708_v19 = vmul.f32 0.03125, %v4500_v8  ;;  %v4670_v8 = vld [vmem:[%s12540_s4 + $0x18] sm:$0xff] }
 0x612   :  { %v4608_v0 = vmul.f32 %v8468_v33, %v4581_v39  ;;  %v4532_v47 = vpop.xlane.xlu2 %4531  ;;  %v4602_v48 = vmul.f32 %v8466_v60, %v4601_v15  ;;  %vm4614_vm13 = vweird.f32 %v8468_v33 }
 0x613   :  { %8469 = vrsqrt.f32 %v4582_v40  ;;  %v4551_v9 = vmul.f32 %v11708_v19, %v11708_v19  ;;  %v4543_v1 = vmul.f32 0.03125, %v4532_v47  ;;  %vm4615_vm15 = vmor %vm4613_vm14, %vm4614_vm13  ;;  %vm4623_vm1 = vweird.f32 %v4582_v40 }
 0x614   :  { %v4609_v54 = vmul.f32 %v8468_v33, %v4608_v0  ;;  %v4606_v44 = vsel %vm4605_vm12, %v8466_v60, %v4602_v48 }
 0x615   :  { %v4559_v13 = vsub.f32 %v4543_v1, %v4551_v9  ;;  %v4676_v53 = vmul.f32 %v4668_v6, %v4606_v44 }
 0x616   :  { %v4610_v56 = vmul.f32 0.5, %v4609_v54 }
 0x617   :  { %v4567_v7 = vmax.f32 %v4559_v13, 0.0  ;;  %4690 = vperm.xlu1 %8462, %v4676_v53  }
 0x618   :  { %v4611_v37 = vsub.f32 1.5, %v4610_v56  ;;  %v4502_v25 = vpop.xlane.xlu1 %4501 }
 0x619   :  { %v8470_v3 = vpop.eup %8469  ;;  %v4583_v34 = vadd.f32 1e-05, %v4567_v7  ;;  %v11715_v28 = vmul.f32 0.03125, %v4502_v25 }
 0x61a   :  { %v4618_v4 = vmul.f32 %v8470_v3, %v4582_v40  ;;  %v4534_v46 = vpop.xlane.xlu0 %4533  ;;  %v4612_v2 = vmul.f32 %v8468_v33, %v4611_v37  ;;  %vm4624_vm0 = vweird.f32 %v8470_v3 }
 0x61b   :  { %8471 = vrsqrt.f32 %v4583_v34  ;;  %v4552_v60 = vmul.f32 %v11715_v28, %v11715_v28  ;;  %v4544_v24 = vmul.f32 0.03125, %v4534_v46  ;;  %vm4625_vm2 = vmor %vm4623_vm1, %vm4624_vm0  ;;  %vm4633_vm4 = vweird.f32 %v4583_v34 }
 0x61c   :  { %v4619_v29 = vmul.f32 %v8470_v3, %v4618_v4  ;;  %v4616_v49 = vsel %vm4615_vm15, %v8468_v33, %v4612_v2 }
 0x61d   :  { %v4560_v36 = vsub.f32 %v4544_v24, %v4552_v60  ;;  %v4677_v5 = vmul.f32 %v4669_v23, %v4616_v49 }
 0x61e   :  { %v4620_v42 = vmul.f32 0.5, %v4619_v29 }
 0x61f   :  { %v4568_v17 = vmax.f32 %v4560_v36, 0.0  ;;  %4695 = vperm.xlu0 %8461, %v4677_v5  }
 0x620   :  { %v4621_v39 = vsub.f32 1.5, %v4620_v42 }
 0x621   :  { %v8472_v41 = vpop.eup %8471  ;;  %v4584_v30 = vadd.f32 1e-05, %v4568_v17  ;;  %v4672_v17 = vld [vmem:[%s12540_s4 + $0x28] sm:$0xff] }
 0x622   :  { %v4628_v55 = vmul.f32 %v8472_v41, %v4583_v34  ;;  %v4504_v14 = vpop.xlane.xlu0 %4503  ;;  %v4536_v59 = vpop.xlane.xlu2 %4535  ;;  %v4622_v15 = vmul.f32 %v8470_v3, %v4621_v39  ;;  %vm4634_vm3 = vweird.f32 %v8472_v41 }
 0x623   :  { %8473 = vrsqrt.f32 %v4584_v30  ;;  %v11725_v33 = vmul.f32 0.03125, %v4504_v14  ;;  %v4545_v6 = vmul.f32 0.03125, %v4536_v59  ;;  %vm4635_vm5 = vmor %vm4633_vm4, %vm4634_vm3  ;;  %vm4643_vm7 = vweird.f32 %v4584_v30 }
 0x624   :  { %v4629_v0 = vmul.f32 %v8472_v41, %v4628_v55  ;;  %v4626_v47 = vsel %vm4625_vm2, %v8470_v3, %v4622_v15  ;;  %v4671_v3 = vld [vmem:[%s12540_s4 + $0x20] sm:$0xff] }
 0x625   :  { %v4553_v48 = vmul.f32 %v11725_v33, %v11725_v33  ;;  %v4678_v9 = vmul.f32 %v4670_v8, %v4626_v47 }
 0x626   :  { %v4630_v40 = vmul.f32 0.5, %v4629_v0 }
 0x627   :  { %v4561_v1 = vsub.f32 %v4545_v6, %v4553_v48  ;;  %4700 = vperm.xlu2 %8460, %v4678_v9   ;;  %v4673_v6 = vld [vmem:[%s12540_s4 + $0x30] sm:$0xff] }
 0x628   :  { %v4631_v54 = vsub.f32 1.5, %v4630_v40  ;;  %v4506_v44 = vpop.xlane.xlu1 %4505 }
 0x629   :  { %v8474_v13 = vpop.eup %8473  ;;  %v4569_v53 = vmax.f32 %v4561_v1, 0.0  ;;  %v11729_v56 = vmul.f32 0.03125, %v4506_v44 }
 0x62a   :  { %v4638_v7 = vmul.f32 %v8474_v13, %v4584_v30  ;;  %v4538_v37 = vpop.xlane.xlu2 %4537  ;;  %v4632_v25 = vmul.f32 %v8472_v41, %v4631_v54  ;;  %vm4644_vm6 = vweird.f32 %v8474_v13 }
 0x62b   :  { %v4585_v4 = vadd.f32 1e-05, %v4569_v53  ;;  %v4554_v46 = vmul.f32 %v11729_v56, %v11729_v56  ;;  %v4546_v2 = vmul.f32 0.03125, %v4538_v37  ;;  %vm4645_vm8 = vmor %vm4643_vm7, %vm4644_vm6  ;;  %v4571_v37 = vsub.f32 %v11622_v27, %v11689_v21 }
 0x62c   :  { %v4639_v23 = vmul.f32 %v8474_v13, %v4638_v7  ;;  %v4636_v60 = vsel %vm4635_vm5, %v8472_v41, %v4632_v25  ;;  %v4572_v27 = vsub.f32 %v11628_v32, %v11693_v52  ;;  %v4574_v32 = vsub.f32 %v11642_v35, %v11701_v26 }
 0x62d   :  { %8475 = vrsqrt.f32 %v4585_v4  ;;  %v4562_v24 = vsub.f32 %v4546_v2, %v4554_v46  ;;  %v4679_v29 = vmul.f32 %v4671_v3, %v4636_v60  ;;  %vm4653_vm11 = vweird.f32 %v4585_v4 }
 0x62e   :  { %v4640_v49 = vmul.f32 0.5, %v4639_v23 }
 0x62f   :  { %v4570_v34 = vmax.f32 %v4562_v24, 0.0  ;;  %4705 = vperm.xlu1 %8462, %v4679_v29   ;;  %v4573_v29 = vsub.f32 %v11633_v51, %v11697_v10 }
 0x630   :  { %v4641_v36 = vsub.f32 1.5, %v4640_v49 }
 0x631   :  { %v4586_v5 = vadd.f32 1e-05, %v4570_v34 }
 0x632   :  { %v4642_v42 = vmul.f32 %v8474_v13, %v4641_v36 }
 0x633   :  { %v8476_v39 = vpop.eup %8475  ;;  %8477 = vrsqrt.f32 %v4586_v5  ;;  %vm4663_vm14 = vweird.f32 %v4586_v5 }
 0x634   :  { %v4648_v55 = vmul.f32 %v8476_v39, %v4585_v4  ;;  %v4646_v41 = vsel %vm4645_vm8, %v8474_v13, %v4642_v42  ;;  %vm4654_vm9 = vweird.f32 %v8476_v39  ;;  %v4674_v13 = vld [vmem:[%s12540_s4 + $0x38] sm:$0xff]  ;;  %s8506_s4 = smov 16  }
 0x635   :  { %v4680_v14 = vmul.f32 %v4672_v17, %v4646_v41  ;;  %vm4655_vm12 = vmor %vm4653_vm11, %vm4654_vm9 }
 0x636   :  { %v4649_v59 = vmul.f32 %v8476_v39, %v4648_v55 }
 0x637   :  { %4710 = vperm.xlu0 %8461, %v4680_v14   ;;  %v4577_v14 = vsub.f32 %v11665_v12, %v11725_v33  ;;  %v4578_v33 = vsub.f32 %v11669_v62, %v11729_v56  ;;  %v3308_v62 = vadd.s32 4294967294, %v12581_v63 }
 0x638   :  { %v4650_v15 = vmul.f32 0.5, %v4649_v59 }
 0x639   :  { %v8478_v8 = vpop.eup %8477  ;;  %vm3309_vm8 = vcmp.ge.s32.totalorder %v3308_v62, 0  ;;  %vm3310_vm9 = vcmp.lt.s32.totalorder %v3308_v62, 8 }
 0x63a   :  { %v4651_v0 = vsub.f32 1.5, %v4650_v15  ;;  %v4658_v47 = vmul.f32 %v8478_v8, %v4586_v5  ;;  %vm4664_vm13 = vweird.f32 %v8478_v8 }
 0x63b   :  { %vm4665_vm15 = vmor %vm4663_vm14, %vm4664_vm13 }
 0x63c   :  { %v4659_v30 = vmul.f32 %v8478_v8, %v4658_v47  ;;  %v4652_v48 = vmul.f32 %v8476_v39, %v4651_v0 }
 0x63e   :  { %v4660_v9 = vmul.f32 0.5, %v4659_v30  ;;  %v4656_v40 = vsel %vm4655_vm12, %v8476_v39, %v4652_v48  ;;  %vm11866_vm12 = vmand %vm3309_vm8, %vm3310_vm9 }
 0x63f   :  { %v4681_v1 = vmul.f32 %v4673_v6, %v4656_v40 }
 0x640   :  { %v4661_v54 = vsub.f32 1.5, %v4660_v9 }
 0x641   :  { %4715 = vperm.xlu0 %8461, %v4681_v1  }
 0x642   :  { %v4662_v44 = vmul.f32 %v8478_v8, %v4661_v54 }
 0x644   :  { %v4666_v53 = vsel %vm4665_vm15, %v8478_v8, %v4662_v44 }
 0x645   :  { %v4682_v7 = vmul.f32 %v4674_v13, %v4666_v53 }
 0x647   :  { %4720 = vperm.xlu1 %8462, %v4682_v7  }
 0x669   :  { %v4686_v25 = vpop.permute.xlu2 %4685 }
 0x66a   :  { %v4723_v3 = vmul.f32 %v4686_v25, %v4571_v37  ;;  %v11900_v37 = vadd.s32 2, %v12586_v58 }
 0x66c   :  { %v4779_v4 = vadd.f32 %v11687_v11, %v4723_v3  ;;  %vm3326_vm14 = vcmp.lt.s32.totalorder %v11900_v37, 8 }
 0x66d   :  { %vm3327_vm15 = vmand %vm11866_vm12, %vm3326_vm14 }
 0x66e   :  { %vm4787_vm0 = vcmp.gt.f32.partialorder %v4779_v4, 0.0  ;;  %v4795_v46 = vmul.f32 0.2, %v4779_v4 }
 0x670   :  { %v11748_v2 = vsel %vm4787_vm0, %v4779_v4, %v4795_v46  ;;  %v11918_v4 = vsel %vm3327_vm15, 1.0, %v12584_v22 }
 0x671   :  { %4947 = vrot.lane.b32.xlu1 %v11748_v2, %s8505_s22  ;;  %4843 = vrot.lane.b32.xlu2 %v11748_v2, %s8506_s4 }
 0x672   :  { %4811 = vrot.lane.b32.xlu0 %v11748_v2, %s8507_s25 }
 0x679   :  { %5019 = vrot.lane.b32.xlu1 %v11748_v2, %s8508_s26 }
 0x681   :  { %v4701_v49 = vpop.permute.xlu2 %4700 }
 0x689   :  { %v4691_v11 = vpop.permute.xlu1 %4690 }
 0x68a   :  { %v4724_v21 = vmul.f32 %v4691_v11, %v4572_v27 }
 0x68c   :  { %v4780_v23 = vadd.f32 %v11683_v20, %v4724_v21  ;;  %v4726_v20 = vmul.f32 %v4701_v49, %v4574_v32 }
 0x68e   :  { %vm4788_vm1 = vcmp.gt.f32.partialorder %v4780_v23, 0.0  ;;  %v4796_v60 = vmul.f32 0.2, %v4780_v23  ;;  %v4782_v10 = vadd.f32 %v11681_v18, %v4726_v20 }
 0x690   :  { %v11761_v24 = vsel %vm4788_vm1, %v4780_v23, %v4796_v60  ;;  %v4798_v35 = vmul.f32 0.2, %v4782_v10  ;;  %vm4790_vm3 = vcmp.gt.f32.partialorder %v4782_v10, 0.0  ;;  %vm4886_vm1 = vcmask 523264  }
 0x691   :  { %v4696_v34 = vpop.permute.xlu0 %4695  ;;  %4845 = vrot.lane.b32.xlu1 %v11761_v24, %s8506_s4  ;;  %4813 = vrot.lane.b32.xlu2 %v11761_v24, %s8507_s25 }
 0x692   :  { %v4725_v52 = vmul.f32 %v4696_v34, %v4573_v29  ;;  %4949 = vrot.lane.b32.xlu0 %v11761_v24, %s8505_s22  ;;  %v11783_v26 = vsel %vm4790_vm3, %v4782_v10, %v4798_v35 }
 0x694   :  { %v4781_v36 = vadd.f32 %v11685_v50, %v4725_v52  ;;  %v4575_v50 = vsub.f32 %v11650_v31, %v11708_v19  ;;  %v4576_v31 = vsub.f32 %v11659_v43, %v11715_v28 }
 0x696   :  { %vm4789_vm2 = vcmp.gt.f32.partialorder %v4781_v36, 0.0  ;;  %v4797_v51 = vmul.f32 0.2, %v4781_v36 }
 0x698   :  { %v11775_v5 = vsel %vm4789_vm2, %v4781_v36, %v4797_v51 }
 0x699   :  { %4815 = vrot.lane.b32.xlu1 %v11775_v5, %s8507_s25  ;;  %4951 = vrot.lane.b32.xlu2 %v11775_v5, %s8505_s22 }
 0x69a   :  { %5021 = vrot.lane.b32.xlu0 %v11761_v24, %s8508_s26 }
 0x6a1   :  { %v4706_v42 = vpop.permute.xlu1 %4705  ;;  %4847 = vrot.lane.b32.xlu1 %v11775_v5, %s8506_s4  ;;  %5025 = vrot.lane.b32.xlu2 %v11783_v26, %s8508_s26 }
 0x6a2   :  { %v4727_v18 = vmul.f32 %v4706_v42, %v4575_v50  ;;  %5023 = vrot.lane.b32.xlu0 %v11775_v5, %s8508_s26 }
 0x6a4   :  { %v4783_v17 = vadd.f32 %v11677_v16, %v4727_v18 }
 0x6a6   :  { %vm4791_vm4 = vcmp.gt.f32.partialorder %v4783_v17, 0.0  ;;  %v4799_v39 = vmul.f32 0.2, %v4783_v17 }
 0x6a8   :  { %v11794_v55 = vsel %vm4791_vm4, %v4783_v17, %v4799_v39 }
 0x6a9   :  { %v4711_v41 = vpop.permute.xlu0 %4710  ;;  %4819 = vrot.lane.b32.xlu2 %v11794_v55, %s8507_s25  ;;  %4953 = vrot.lane.b32.xlu1 %v11783_v26, %s8505_s22 }
 0x6aa   :  { %4817 = vrot.lane.b32.xlu0 %v11783_v26, %s8507_s25  ;;  %v4728_v19 = vmul.f32 %v4711_v41, %v4576_v31 }
 0x6ac   :  { %v4784_v16 = vadd.f32 %v11679_v57, %v4728_v19 }
 0x6ae   :  { %v4800_v43 = vmul.f32 0.2, %v4784_v16  ;;  %vm4792_vm5 = vcmp.gt.f32.partialorder %v4784_v16, 0.0 }
 0x6b0   :  { %v11813_v15 = vsel %vm4792_vm5, %v4784_v16, %v4800_v43 }
 0x6b1   :  { %4851 = vrot.lane.b32.xlu2 %v11794_v55, %s8506_s4  ;;  %4955 = vrot.lane.b32.xlu1 %v11794_v55, %s8505_s22 }
 0x6b2   :  { %4849 = vrot.lane.b32.xlu0 %v11783_v26, %s8506_s4 }
 0x6b3   :  { %v4716_v59 = vpop.permute.xlu0 %4715 }
 0x6b4   :  { %v4729_v28 = vmul.f32 %v4716_v59, %v4577_v14 }
 0x6b6   :  { %v4785_v57 = vadd.f32 %v11673_v38, %v4729_v28  ;;  %v7338_v28 = vsel %vm11866_vm12, 1.0, %v12584_v22 }
 0x6b8   :  { %v4801_v8 = vmul.f32 0.2, %v4785_v57  ;;  %vm4793_vm6 = vcmp.gt.f32.partialorder %v4785_v57, 0.0 }
 0x6b9   :  { %5027 = vrot.lane.b32.xlu2 %v11794_v55, %s8508_s26  ;;  %4821 = vrot.lane.b32.xlu1 %v11813_v15, %s8507_s25  ;;  %v4721_v38 = vpop.permute.xlu1 %4720 }
 0x6ba   :  { %4957 = vrot.lane.b32.xlu0 %v11813_v15, %s8505_s22  ;;  %v11822_v12 = vsel %vm4793_vm6, %v4785_v57, %v4801_v8  ;;  %v4730_v0 = vmul.f32 %v4721_v38, %v4578_v33  ;;  %vm3335_vm6 = vmand %vm11196_vm10, %vm3326_vm14 }
 0x6bc   :  { %v4786_v47 = vadd.f32 %v11675_v45, %v4730_v0  ;;  %v11855_v45 = vadd.s32 4294967294, %v12586_v58 }
 0x6be   :  { %v4802_v30 = vmul.f32 0.2, %v4786_v47  ;;  %vm4794_vm7 = vcmp.gt.f32.partialorder %v4786_v47, 0.0  ;;  %vm3313_vm11 = vcmp.ge.s32.totalorder %v11855_v45, 0  ;;  %v8014_v45 = vld [vmem:[%s12541_s6 + $0x38] sm:$0xff] }
 0x6bf   :  { %vm3314_vm13 = vmand %vm11866_vm12, %vm3313_vm11 }
 0x6c0   :  { %v11845_v48 = vsel %vm4794_vm7, %v4786_v47, %v4802_v30  ;;  %v11875_v9 = vsel %vm3314_vm13, 1.0, %v12584_v22  ;;  %vm3330_vm0 = vmand %vm11196_vm10, %vm3313_vm11 }
 0x6c1   :  { %5151 = vrot.lane.b32.xlu2 %v11822_v12, %s8509_s27  ;;  %4853 = vrot.lane.b32.xlu1 %v11813_v15, %s8506_s4  ;;  %v11941_v29 = vsel %vm3330_vm0, 1.0, %v12584_v22 }
 0x6c2   :  { %4855 = vrot.lane.b32.xlu0 %v11822_v12, %s8506_s4 }
 0x6c9   :  { %5149 = vrot.lane.b32.xlu2 %v11813_v15, %s8509_s27  ;;  %5029 = vrot.lane.b32.xlu1 %v11813_v15, %s8508_s26 }
 0x6ca   :  { %4959 = vrot.lane.b32.xlu0 %v11822_v12, %s8505_s22 }
 0x6cb   :  { %v11863_v56 = vpop.permute.xlu2 %4843 }
 0x6d1   :  { %5143 = vrot.lane.b32.xlu2 %v11775_v5, %s8509_s27  ;;  %4823 = vrot.lane.b32.xlu1 %v11822_v12, %s8507_s25 }
 0x6d2   :  { %5031 = vrot.lane.b32.xlu0 %v11822_v12, %s8508_s26 }
 0x6d9   :  { %4857 = vrot.lane.b32.xlu2 %v11845_v48, %s8506_s4  ;;  %5367 = vrot.lane.b32.xlu1 %v11822_v12, %s8510_s28 }
 0x6da   :  { %4825 = vrot.lane.b32.xlu0 %v11845_v48, %s8507_s25 }
 0x6e1   :  { %5363 = vrot.lane.b32.xlu2 %v11794_v55, %s8510_s28  ;;  %5145 = vrot.lane.b32.xlu1 %v11783_v26, %s8509_s27 }
 0x6e2   :  { %5147 = vrot.lane.b32.xlu0 %v11794_v55, %s8509_s27 }
 0x6e3   :  { %v4948_v53 = vpop.permute.xlu1 %4947 }
 0x6e4   :  { %v4812_v40 = vpop.permute.xlu0 %4811  ;;  %v11925_v21 = vmul.f32 %v11918_v4, %v4948_v53 }
 0x6e5   :  { %v11884_v54 = vmul.f32 %v11875_v9, %v4812_v40 }
 0x6e9   :  { %5141 = vrot.lane.b32.xlu2 %v11761_v24, %s8509_s27  ;;  %5295 = vrot.lane.b32.xlu1 %v11822_v12, %s8511_s3 }
 0x6ea   :  { %5223 = vrot.lane.b32.xlu0 %v11822_v12, %s8512_s29 }
 0x6eb   :  { %v4814_v1 = vpop.permute.xlu2 %4813  ;;  %v5020_v25 = vpop.permute.xlu1 %5019 }
 0x6ec   :  { %v11887_v44 = vmul.f32 %v11875_v9, %v4814_v1  ;;  %v11948_v52 = vmul.f32 %v11941_v29, %v5020_v25 }
 0x6ee   :  { %v4839_v13 = vpack.c.bf16 %v11887_v44, %v11884_v54  ;;  %v5097_v44 = vpack.c.bf16 %v11783_v26, %v11775_v5 }
 0x6f1   :  { %4961 = vrot.lane.b32.xlu2 %v11845_v48, %s8505_s22  ;;  %5365 = vrot.lane.b32.xlu1 %v11813_v15, %s8510_s28 }
 0x6f2   :  { %5139 = vrot.lane.b32.xlu0 %v11748_v2, %s8509_s27 }
 0x6f3   :  { %v11897_v7 = vpop.permute.xlu2 %4951 }
 0x6f9   :  { %5033 = vrot.lane.b32.xlu2 %v11845_v48, %s8508_s26  ;;  %5219 = vrot.lane.b32.xlu1 %v11794_v55, %s8512_s29 }
 0x6fa   :  { %5221 = vrot.lane.b32.xlu0 %v11813_v15, %s8512_s29 }
 0x6fb   :  { %v5026_v3 = vpop.permute.xlu2 %5025 }
 0x6fc   :  { %v11964_v50 = vmul.f32 %v11941_v29, %v5026_v3 }
 0x701   :  { %5291 = vrot.lane.b32.xlu2 %v11794_v55, %s8511_s3  ;;  %5293 = vrot.lane.b32.xlu1 %v11813_v15, %s8511_s3 }
 0x702   :  { %5359 = vrot.lane.b32.xlu0 %v11775_v5, %s8510_s28 }
 0x703   :  { %v4846_v46 = vpop.permute.xlu1 %4845  ;;  %v11922_v27 = vpop.permute.xlu2 %4819 }
 0x704   :  { %v4950_v11 = vpop.permute.xlu0 %4949 }
 0x705   :  { %v11928_v23 = vmul.f32 %v11918_v4, %v4950_v11 }
 0x707   :  { %v4976_v60 = vpack.c.bf16 %v11928_v23, %v11925_v21 }
 0x709   :  { %5361 = vrot.lane.b32.xlu2 %v11783_v26, %s8510_s28  ;;  %5215 = vrot.lane.b32.xlu1 %v11775_v5, %s8512_s29 }
 0x70a   :  { %5217 = vrot.lane.b32.xlu0 %v11783_v26, %s8512_s29 }
 0x70b   :  { %v11945_v49 = vpop.permute.xlu1 %4815  ;;  %v4852_v34 = vpop.permute.xlu2 %4851 }
 0x70c   :  { %v5022_v32 = vpop.permute.xlu0 %5021  ;;  %v4863_v62 = vmul.f32 %v7338_v28, %v4852_v34  ;;  %v8009_v34 = vld [vmem:[%s12541_s6 + $0x10] sm:$0xff] }
 0x70d   :  { %v11951_v20 = vmul.f32 %v11941_v29, %v5022_v32  ;;  %v4860_v32 = vmul.f32 %v7338_v28, %v4846_v46 }
 0x70f   :  { %v12617_v54 = vpack.c.bf16 %v11951_v20, %v11948_v52  ;;  %v8008_v20 = vld [vmem:[%s12541_s6 + $0x8] sm:$0xff] }
 0x711   :  { %5287 = vrot.lane.b32.xlu2 %v11775_v5, %s8511_s3  ;;  %5153 = vrot.lane.b32.xlu1 %v11845_v48, %s8509_s27  ;;  %v8012_v5 = vld [vmem:[%s12541_s6 + $0x28] sm:$0xff] }
 0x712   :  { %5369 = vrot.lane.b32.xlu0 %v11845_v48, %s8510_s28 }
 0x713   :  { %v4848_v51 = vpop.permute.xlu1 %4847  ;;  %v11961_v10 = vpop.permute.xlu2 %5027 }
 0x714   :  { %v5024_v35 = vpop.permute.xlu0 %5023  ;;  %v4861_v11 = vmul.f32 %v7338_v28, %v4848_v51 }
 0x715   :  { %v11967_v42 = vmul.f32 %v11941_v29, %v5024_v35  ;;  %v4859_v35 = vmul.f32 %v7338_v28, %v11863_v56 }
 0x717   :  { %v5049_v18 = vpack.c.bf16 %v11964_v50, %v11967_v42  ;;  %v4872_v36 = vpack.c.bf16 %v4860_v32, %v4859_v35 }
 0x719   :  { %5225 = vrot.lane.b32.xlu2 %v11845_v48, %s8512_s29  ;;  %5289 = vrot.lane.b32.xlu1 %v11783_v26, %s8511_s3 }
 0x71a   :  { %5297 = vrot.lane.b32.xlu0 %v11845_v48, %s8511_s3 }
 0x71b   :  { %v4954_v17 = vpop.permute.xlu1 %4953  ;;  %v11977_v39 = vpop.permute.xlu2 %5151 }
 0x71c   :  { %v4818_v41 = vpop.permute.xlu0 %4817 }
 0x71d   :  { %v4830_v32 = vmul.f32 %v11875_v9, %v4818_v41 }
 0x721   :  { %5357 = vrot.lane.b32.xlu2 %v11761_v24, %s8510_s28  ;;  %5211 = vrot.lane.b32.xlu1 %v11748_v2, %s8512_s29 }
 0x722   :  { %5355 = vrot.lane.b32.xlu0 %v11748_v2, %s8510_s28 }
 0x723   :  { %v4956_v31 = vpop.permute.xlu1 %4955  ;;  %v11985_v19 = vpop.permute.xlu2 %5149 }
 0x724   :  { %v4850_v16 = vpop.permute.xlu0 %4849 }
 0x725   :  { %v4862_v40 = vmul.f32 %v7338_v28, %v4850_v16 }
 0x727   :  { %v4873_v6 = vpack.c.bf16 %v4862_v40, %v4861_v11  ;;  %v4967_v40 = vmul.f32 %v11918_v4, %v4956_v31 }
 0x729   :  { %5283 = vrot.lane.b32.xlu2 %v11748_v2, %s8511_s3  ;;  %5285 = vrot.lane.b32.xlu1 %v11761_v24, %s8511_s3 }
 0x72a   :  { %5213 = vrot.lane.b32.xlu0 %v11761_v24, %s8512_s29 }
 0x72b   :  { %v4822_v14 = vpop.permute.xlu1 %4821  ;;  %v11993_v59 = vpop.permute.xlu2 %5143 }
 0x72c   :  { %v4958_v43 = vpop.permute.xlu0 %4957 }
 0x733   :  { %v4854_v57 = vpop.permute.xlu1 %4853  ;;  %v4858_v8 = vpop.permute.xlu2 %4857 }
 0x734   :  { %v4856_v38 = vpop.permute.xlu0 %4855  ;;  %v4866_v33 = vmul.f32 %v7338_v28, %v4858_v8  ;;  %v4864_v47 = vmul.f32 %v7338_v28, %v4854_v57 }
 0x735   :  { %v4865_v0 = vmul.f32 %v7338_v28, %v4856_v38 }
 0x736   :  { %v4874_v1 = vpack.c.bf16 %v4864_v47, %v4863_v62  ;;  %v4968_v47 = vmul.f32 %v11918_v4, %v4958_v43 }
 0x737   :  { %v4875_v30 = vpack.c.bf16 %v4866_v33, %v4865_v0 }
 0x738   :  { %v4978_v11 = vpack.c.bf16 %v4968_v47, %v4967_v40 }
 0x739   :  { %4897 = vmatpush.bf16.msra.mxu1 %v4875_v30 }
 0x73b   :  { %v5030_v53 = vpop.permute.xlu1 %5029  ;;  %v11998_v25 = vpop.permute.xlu2 %5363 }
 0x73c   :  { %v4960_v3 = vpop.permute.xlu0 %4959 }
 0x73d   :  { %4898 = vmatpush.bf16.msra.mxu1 %v4874_v1  ;;  %v4969_v16 = vmul.f32 %v11918_v4, %v4960_v3  ;;  %v4831_v1 = vmul.f32 %v11875_v9, %v11922_v27  ;;  %v4966_v3 = vmul.f32 %v11918_v4, %v4954_v17  ;;  %v4829_v27 = vmul.f32 %v11875_v9, %v11945_v49  ;;  %v8010_v17 = vld [vmem:[%s12541_s6 + $0x18] sm:$0xff] }
 0x741   :  { %4899 = vmatpush.bf16.msra.mxu1 %v4873_v6 }
 0x743   :  { %v4824_v8 = vpop.permute.xlu1 %4823  ;;  %v12001_v38 = vpop.permute.xlu2 %5141 }
 0x744   :  { %v5032_v57 = vpop.permute.xlu0 %5031  ;;  %v4833_v33 = vmul.f32 %v11875_v9, %v4824_v8 }
 0x745   :  { %4900 = vmatpush.bf16.msra.mxu1 %v4872_v36  ;;  %v4832_v36 = vmul.f32 %v11875_v9, %v4822_v14  ;;  %v4965_v14 = vmul.f32 %v11918_v4, %v11897_v7  ;;  %v5041_v8 = vmul.f32 %v11941_v29, %v5032_v57  ;;  %v4840_v7 = vpack.c.bf16 %v4830_v32, %v4829_v27 }
 0x747   :  { %v4841_v6 = vpack.c.bf16 %v4832_v36, %v4831_v1  ;;  %v4977_v41 = vpack.c.bf16 %v4966_v3, %v4965_v14  ;;  %v8015_v3 = vld [vmem:[%s12541_s6 + $0x40] sm:$0xff] }
 0x748   :  { %7575 = vmatmul.msk.bf16.vlgmr.msra.gmra.mxu1 %vm4886_vm1, %v8009_v34 }
 0x74b   :  { %v12007_v51 = vpop.permute.xlu1 %5367  ;;  %v4962_v46 = vpop.permute.xlu2 %4961 }
 0x74c   :  { %v4826_v56 = vpop.permute.xlu0 %4825  ;;  %v4970_v28 = vmul.f32 %v11918_v4, %v4962_v46  ;;  %v5040_v46 = vmul.f32 %v11941_v29, %v5030_v53  ;;  %v5039_v4 = vmul.f32 %v11941_v29, %v11961_v10  ;;  %v8007_v10 = vld [vmem:[%s12541_s6] sm:$0xff] }
 0x74d   :  { %v4834_v0 = vmul.f32 %v11875_v9, %v4826_v56  ;;  %v8011_v56 = vld [vmem:[%s12541_s6 + $0x20] sm:$0xff] }
 0x74e   :  { %v4979_v30 = vpack.c.bf16 %v4970_v28, %v4969_v16  ;;  %v5050_v57 = vpack.c.bf16 %v5040_v46, %v5039_v4 }
 0x74f   :  { %v4842_v62 = vpack.c.bf16 %v4834_v0, %v4833_v33 }
 0x750   :  { %5000 = vmatpush.bf16.msrb.mxu3 %v4979_v30 }
 0x751   :  { %4932 = vmatpush.bf16.msrb.mxu2 %v4842_v62 }
 0x753   :  { %v12020_v35 = vpop.permute.xlu1 %5145  ;;  %v5034_v43 = vpop.permute.xlu2 %5033 }
 0x754   :  { %v12025_v31 = vpop.permute.xlu0 %5147  ;;  %v5042_v34 = vmul.f32 %v11941_v29, %v5034_v43  ;;  %5001 = vmatpush.bf16.msrb.mxu3 %v4978_v11  ;;  %v5099_v29 = vpack.c.bf16 %v11845_v48, %v11822_v12  ;;  %v5098_v12 = vpack.c.bf16 %v11813_v15, %v11794_v55  ;;  %v5096_v55 = vpack.c.bf16 %v11761_v24, %v11748_v2 }
 0x755   :  { %4933 = vmatpush.bf16.msrb.mxu2 %v4841_v6  ;;  %v7341_v6 = vsel %vm3335_vm6, 1.0, %v12584_v22 }
 0x756   :  { %v5051_v16 = vpack.c.bf16 %v5042_v34, %v5041_v8  ;;  %v5161_v14 = vmul.f32 %v7341_v6, %v11977_v39  ;;  %v5159_v46 = vmul.f32 %v7341_v6, %v12025_v31  ;;  %v5160_v37 = vmul.f32 %v7341_v6, %v11985_v19  ;;  %v8016_v19 = vld [vmem:[%s12541_s6 + $0x48] sm:$0xff] }
 0x757   :  { %v5158_v39 = vmul.f32 %v7341_v6, %v12020_v35  ;;  %v5157_v31 = vmul.f32 %v7341_v6, %v11993_v59  ;;  %v5156_v59 = vmul.f32 %v7341_v6, %v12001_v38 }
 0x758   :  { %5002 = vmatpush.bf16.msrb.mxu3 %v4977_v41  ;;  %5072 = vmatpush.bf16.msrb.mxu1 %v5051_v16 }
 0x759   :  { %4934 = vmatpush.bf16.msrb.mxu2 %v4840_v7  ;;  %7576 = vmatmul.msk.bf16.gmra.mxu1 %vm4886_vm1, %v8010_v17 }
 0x75b   :  { %v12037_v9 = vpop.permute.xlu1 %5295  ;;  %v12039_v49 = vpop.permute.xlu2 %5291 }
 0x75c   :  { %v5224_v53 = vpop.permute.xlu0 %5223  ;;  %5003 = vmatpush.bf16.msrb.mxu3 %v4976_v60  ;;  %5073 = vmatpush.bf16.msrb.mxu1 %v5050_v57  ;;  %v3338_v60 = vadd.s32 2, %v12581_v63 }
 0x75d   :  { %4935 = vmatpush.bf16.msrb.mxu2 %v4839_v13  ;;  %v8013_v13 = vld [vmem:[%s12541_s6 + $0x30] sm:$0xff] }
 0x75e   :  { %vm3339_vm2 = vcmp.ge.s32.totalorder %v3338_v60, 0  ;;  %vm3340_vm3 = vcmp.lt.s32.totalorder %v3338_v60, 8 }
 0x75f   :  { %7599 = vmatmul.msk.bf16.vlgmr.msrb.gmra.mxu3 %vm4886_vm1, %v8011_v56  ;;  %vm12086_vm4 = vmand %vm3339_vm2, %vm3340_vm3  ;;  %v5170_v56 = vpack.c.bf16 %v5160_v37, %v5159_v46 }
 0x760   :  { %5074 = vmatpush.bf16.msrb.mxu1 %v5049_v18  ;;  %7585 = vmatmul.msk.bf16.vlgmr.msrb.gmra.mxu2 %vm4886_vm1, %v8007_v10  ;;  %vm3342_vm5 = vmand %vm12086_vm4, %vm3313_vm11 }
 0x761   :  { %5120 = vmatpush.bf16.msra.mxu2 %v5099_v29  ;;  %v12097_v2 = vsel %vm3342_vm5, 1.0, %v12584_v22  ;;  %vm3351_vm7 = vmand %vm12086_vm4, %vm3326_vm14 }
 0x762   :  { %v5233_v18 = vmul.f32 %v12097_v2, %v5224_v53  ;;  %v7344_v8 = vsel %vm3351_vm7, 1.0, %v12584_v22  ;;  %v7343_v53 = vsel %vm12086_vm4, 1.0, %v12584_v22 }
 0x763   :  { %v5366_v48 = vpop.permute.xlu1 %5365  ;;  %v12062_v21 = vpop.permute.xlu2 %5361  ;;  %v5377_v17 = vmul.f32 %v7344_v8, %v12007_v51  ;;  %v5375_v57 = vmul.f32 %v7344_v8, %v11998_v25  ;;  %v5305_v25 = vmul.f32 %v7343_v53, %v12037_v9 }
 0x764   :  { %v12064_v23 = vpop.permute.xlu0 %5139  ;;  %5075 = vmatpush.bf16.msrb.mxu1 %v12617_v54  ;;  %v5376_v7 = vmul.f32 %v7344_v8, %v5366_v48  ;;  %v5374_v35 = vmul.f32 %v7344_v8, %v12062_v21  ;;  %v5169_v54 = vpack.c.bf16 %v5158_v39, %v5157_v31 }
 0x765   :  { %5121 = vmatpush.bf16.msra.mxu2 %v5098_v12 }
 0x766   :  { %v5386_v51 = vpack.c.bf16 %v5376_v7, %v5375_v57 }
 0x769   :  { %5122 = vmatpush.bf16.msra.mxu2 %v5097_v44  ;;  %7613 = vmatmul.msk.bf16.vlgmr.msrb.gmra.mxu1 %vm4886_vm1, %v8013_v13  ;;  %v5155_v44 = vmul.f32 %v7341_v6, %v12064_v23  ;;  %v8017_v23 = vld [vmem:[%s12541_s6 + $0x50] sm:$0xff] }
 0x76b   :  { %v5220_v15 = vpop.permute.xlu1 %5219  ;;  %v12078_v52 = vpop.permute.xlu2 %5287  ;;  %v5168_v9 = vpack.c.bf16 %v5156_v59, %v5155_v44 }
 0x76c   :  { %v5222_v26 = vpop.permute.xlu0 %5221  ;;  %v5231_v0 = vmul.f32 %v12097_v2, %v5220_v15 }
 0x76d   :  { %5123 = vmatpush.bf16.msra.mxu2 %v5096_v55  ;;  %v5232_v47 = vmul.f32 %v12097_v2, %v5222_v26 }
 0x76f   :  { %7600 = vmatmul.msk.bf16.gmra.mxu3 %vm4886_vm1, %v8012_v5  ;;  %v5242_v36 = vpack.c.bf16 %v5232_v47, %v5231_v0  ;;  %v5303_v5 = vmul.f32 %v7343_v53, %v12039_v49 }
 0x770   :  { %7586 = vmatmul.msk.bf16.gmra.mxu2 %vm4886_vm1, %v8008_v20 }
 0x773   :  { %v5294_v24 = vpop.permute.xlu1 %5293  ;;  %v5226_v42 = vpop.permute.xlu2 %5225 }
 0x774   :  { %v5360_v28 = vpop.permute.xlu0 %5359  ;;  %v5234_v33 = vmul.f32 %v12097_v2, %v5226_v42  ;;  %v5304_v13 = vmul.f32 %v7343_v53, %v5294_v24  ;;  %v5301_v24 = vmul.f32 %v7343_v53, %v12078_v52 }
 0x775   :  { %v5373_v29 = vmul.f32 %v7344_v8, %v5360_v28 }
 0x776   :  { %v5243_v30 = vpack.c.bf16 %v5234_v33, %v5233_v18  ;;  %v5314_v21 = vpack.c.bf16 %v5304_v13, %v5303_v5 }
 0x777   :  { %v5385_v60 = vpack.c.bf16 %v5374_v35, %v5373_v29 }
 0x778   :  { %5264 = vmatpush.bf16.msrb.mxu0 %v5243_v30  ;;  %v8023_v30 = vld [vmem:[%s12541_s6 + $0x80] sm:$0xff] }
 0x779   :  { %7614 = vmatmul.msk.bf16.gmra.mxu1 %vm4886_vm1, %v8014_v45 }
 0x77b   :  { %v5216_v62 = vpop.permute.xlu1 %5215  ;;  %v5358_v55 = vpop.permute.xlu2 %5357 }
 0x77c   :  { %v5229_v40 = vmul.f32 %v12097_v2, %v5216_v62  ;;  %v5218_v1 = vpop.permute.xlu0 %5217  ;;  %5265 = vmatpush.bf16.msrb.mxu0 %v5242_v36  ;;  %v5372_v38 = vmul.f32 %v7344_v8, %v5358_v55 }
 0x77d   :  { %v5230_v11 = vmul.f32 %v12097_v2, %v5218_v1  ;;  %v8021_v1 = vld [vmem:[%s12541_s6 + $0x70] sm:$0xff] }
 0x77f   :  { %v5241_v32 = vpack.c.bf16 %v5230_v11, %v5229_v40  ;;  %v8024_v11 = vld [vmem:[%s12541_s6 + $0x88] sm:$0xff] }
 0x780   :  { %7627 = vmatmul.msk.bf16.vlgmr.msra.gmra.mxu2 %vm4886_vm1, %v8015_v3  ;;  %v8019_v3 = vld [vmem:[%s12541_s6 + $0x60] sm:$0xff] }
 0x781   :  { %5266 = vmatpush.bf16.msrb.mxu0 %v5241_v32  ;;  %v8022_v32 = vld [vmem:[%s12541_s6 + $0x78] sm:$0xff] }
 0x783   :  { %v5154_v43 = vpop.permute.xlu1 %5153  ;;  %v5284_v49 = vpop.permute.xlu2 %5283 }
 0x784   :  { %v5162_v34 = vmul.f32 %v7341_v6, %v5154_v43  ;;  %v5370_v27 = vpop.permute.xlu0 %5369  ;;  %v5299_v45 = vmul.f32 %v7343_v53, %v5284_v49  ;;  %v8020_v6 = vld [vmem:[%s12541_s6 + $0x68] sm:$0xff] }
 0x785   :  { %v5378_v41 = vmul.f32 %v7344_v8, %v5370_v27 }
 0x786   :  { %v5171_v16 = vpack.c.bf16 %v5162_v34, %v5161_v14 }
 0x787   :  { %v5387_v4 = vpack.c.bf16 %v5378_v41, %v5377_v17 }
 0x788   :  { %5192 = vmatpush.bf16.msra.mxu3 %v5171_v16 }
 0x789   :  { %5408 = vmatpush.bf16.msrb.mxu2 %v5387_v4 }
 0x78b   :  { %v5290_v10 = vpop.permute.xlu1 %5289 }
 0x78c   :  { %v5298_v12 = vpop.permute.xlu0 %5297  ;;  %5193 = vmatpush.bf16.msra.mxu3 %v5170_v56  ;;  %v5302_v26 = vmul.f32 %v7343_v53, %v5290_v10 }
 0x78d   :  { %v5306_v48 = vmul.f32 %v7343_v53, %v5298_v12  ;;  %5409 = vmatpush.bf16.msrb.mxu2 %v5386_v51 }
 0x78e   :  { %v5313_v18 = vpack.c.bf16 %v5302_v26, %v5301_v24 }
 0x78f   :  { %v5315_v15 = vpack.c.bf16 %v5306_v48, %v5305_v25  ;;  %v3407_v48 = vand.u32 3, %v12581_v63 }
 0x790   :  { %5194 = vmatpush.bf16.msra.mxu3 %v5169_v54  ;;  %7628 = vmatmul.msk.bf16.gmra.mxu2 %vm4886_vm1, %v8016_v19  ;;  %v3409_v54 = vand.u32 3, %v12586_v58 }
 0x791   :  { %5336 = vmatpush.bf16.msra.mxu1 %v5315_v15  ;;  %5410 = vmatpush.bf16.msrb.mxu2 %v5385_v60  ;;  %vm3408_vm8 = vcmp.eq.s32.totalorder %v3407_v48, 0 }
 0x792   :  { %vm3410_vm9 = vcmp.eq.s32.totalorder %v3409_v54, 0 }
 0x793   :  { %v5212_v20 = vpop.permute.xlu1 %5211  ;;  %vm3411_vm11 = vmand %vm3408_vm8, %vm3410_vm9 }
 0x794   :  { %v5356_v50 = vpop.permute.xlu0 %5355  ;;  %5195 = vmatpush.bf16.msra.mxu3 %v5168_v9  ;;  %v5227_v52 = vmul.f32 %v12097_v2, %v5212_v20  ;;  %v12180_v20 = vsel %vm3411_vm11, 1.0, %v12584_v22 }
 0x795   :  { %v5371_v42 = vmul.f32 %v7344_v8, %v5356_v50  ;;  %5337 = vmatpush.bf16.msra.mxu1 %v5314_v21 }
 0x797   :  { %v5384_v28 = vpack.c.bf16 %v5372_v38, %v5371_v42  ;;  %7641 = vmatmul.msk.bf16.vlgmr.msra.gmra.mxu3 %vm4886_vm1, %v8017_v23 }
 0x799   :  { %5338 = vmatpush.bf16.msra.mxu1 %v5313_v18  ;;  %5411 = vmatpush.bf16.msrb.mxu2 %v5384_v28 }
 0x79b   :  { %v5286_v33 = vpop.permute.xlu1 %5285 }
 0x79c   :  { %v5300_v0 = vmul.f32 %v7343_v53, %v5286_v33  ;;  %v5214_v47 = vpop.permute.xlu0 %5213 }
 0x79d   :  { %v5228_v36 = vmul.f32 %v12097_v2, %v5214_v47  ;;  %v8018_v2 = vld [vmem:[%s12541_s6 + $0x58] sm:$0xff] }
 0x79e   :  { %v5312_v62 = vpack.c.bf16 %v5300_v0, %v5299_v45 }
 0x79f   :  { %v5240_v40 = vpack.c.bf16 %v5228_v36, %v5227_v52 }
 0x7a0   :  { %5339 = vmatpush.bf16.msra.mxu1 %v5312_v62  ;;  %7683 = vmatmul.msk.bf16.vlgmr.msrb.gmra.mxu2 %vm4886_vm1, %v8023_v30 }
 0x7a1   :  { %5267 = vmatpush.bf16.msrb.mxu0 %v5240_v40 }
 0x7a3   :  { %7669 = vmatmul.msk.bf16.vlgmr.msra.gmra.mxu1 %vm4886_vm1, %v8021_v1 }
 0x7a4   :  { %7655 = vmatmul.msk.bf16.vlgmr.msrb.gmra.mxu0 %vm4886_vm1, %v8019_v3 }
 0x7a7   :  { %7642 = vmatmul.msk.bf16.gmra.mxu3 %vm4886_vm1, %v8018_v2 }
 0x7b0   :  { %7684 = vmatmul.msk.bf16.gmra.mxu2 %vm4886_vm1, %v8024_v11 }
 0x7b3   :  { %7670 = vmatmul.msk.bf16.gmra.mxu1 %vm4886_vm1, %v8022_v32 }
 0x7b4   :  { %7656 = vmatmul.msk.bf16.gmra.mxu0 %vm4886_vm1, %v8020_v6 }
 0x7c5   :  { %v4902_v43 = vpop.f32.mrf.mxu1 }
 0x7cd   :  { %v4904_v14 = vpop.f32.mrf.mxu1 }
 0x7d6   :  { %v4907_v34 = vpop.f32.mrf.mxu1 }
 0x7de   :  { %v4909_v41 = vpop.f32.mrf.mxu1 }
 0x7e2   :  { %v5005_v16 = vpop.f32.mrf.mxu3 }
 0x7e3   :  { %v4937_v8 = vpop.f32.mrf.mxu2 }
 0x7e4   :  { %v4938_v31 = vadd.f32 %v4937_v8, %v4902_v43 }
 0x7e6   :  { %v5077_v7 = vpop.f32.mrf.mxu1  ;;  %v5015_v12 = vadd.f32 %v5005_v16, %v4938_v31  ;;  %v5554_v31 = vld [vmem:[%s12542_s8 + $0x18] sm:$0xff] }
 0x7e8   :  { %v5087_v44 = vadd.f32 %v5077_v7, %v5015_v12  ;;  %v5553_v12 = vld [vmem:[%s12542_s8 + $0x10] sm:$0xff] }
 0x7ea   :  { %v5007_v37 = vpop.f32.mrf.mxu3 }
 0x7eb   :  { %v4939_v27 = vpop.f32.mrf.mxu2 }
 0x7ec   :  { %v4940_v17 = vadd.f32 %v4939_v27, %v4904_v14 }
 0x7ee   :  { %v5079_v39 = vpop.f32.mrf.mxu1  ;;  %v5016_v33 = vadd.f32 %v5007_v37, %v4940_v17 }
 0x7f0   :  { %v5088_v47 = vadd.f32 %v5079_v39, %v5016_v33 }
 0x7f2   :  { %v5010_v56 = vpop.f32.mrf.mxu3 }
 0x7f3   :  { %v4942_v46 = vpop.f32.mrf.mxu2 }
 0x7f4   :  { %v4943_v21 = vadd.f32 %v4942_v46, %v4907_v34 }
 0x7f6   :  { %v5082_v51 = vpop.f32.mrf.mxu1  ;;  %v5017_v50 = vadd.f32 %v5010_v56, %v4943_v21 }
 0x7f8   :  { %v5089_v45 = vadd.f32 %v5082_v51, %v5017_v50 }
 0x7fa   :  { %v5012_v29 = vpop.f32.mrf.mxu3 }
 0x7fb   :  { %v4944_v4 = vpop.f32.mrf.mxu2 }
 0x7fc   :  { %v4945_v49 = vadd.f32 %v4944_v4, %v4909_v41 }
 0x7fe   :  { %v5084_v19 = vpop.f32.mrf.mxu1  ;;  %v5018_v30 = vadd.f32 %v5012_v29, %v4945_v49 }
 0x800   :  { %v5090_v2 = vadd.f32 %v5084_v19, %v5018_v30 }
 0x803   :  { %v5125_v57 = vpop.f32.mrf.mxu2 }
 0x804   :  { %v5135_v13 = vadd.f32 %v5125_v57, %v5087_v44 }
 0x80b   :  { %v5127_v53 = vpop.f32.mrf.mxu2 }
 0x80c   :  { %v5136_v40 = vadd.f32 %v5127_v53, %v5088_v47 }
 0x813   :  { %v5130_v10 = vpop.f32.mrf.mxu2 }
 0x814   :  { %v5137_v0 = vadd.f32 %v5130_v10, %v5089_v45 }
 0x81a   :  { %v5197_v25 = vpop.f32.mrf.mxu3 }
 0x81b   :  { %v5132_v35 = vpop.f32.mrf.mxu2  ;;  %v5207_v60 = vadd.f32 %v5197_v25, %v5135_v13 }
 0x81c   :  { %v5138_v43 = vadd.f32 %v5132_v35, %v5090_v2 }
 0x820   :  { %v5341_v55 = vpop.f32.mrf.mxu1 }
 0x821   :  { %v5269_v15 = vpop.f32.mrf.mxu0 }
 0x822   :  { %v5279_v59 = vadd.f32 %v5269_v15, %v5207_v60  ;;  %v5199_v5 = vpop.f32.mrf.mxu3 }
 0x823   :  { %v5413_v9 = vpop.f32.mrf.mxu2  ;;  %v5208_v11 = vadd.f32 %v5199_v5, %v5136_v40 }
 0x824   :  { %v5351_v26 = vadd.f32 %v5341_v55, %v5279_v59 }
 0x826   :  { %v12182_v23 = vadd.f32 %v5413_v9, %v5351_v26 }
 0x828   :  { %v5427_v24 = vmul.f32 %v12180_v20, %v12182_v23  ;;  %v5343_v38 = vpop.f32.mrf.mxu1 }
 0x829   :  { %v5271_v42 = vpop.f32.mrf.mxu0 }
 0x82a   :  { %5431 = vadd.xlane.f32.xlu2 %v5427_v24  ;;  %v5202_v28 = vpop.f32.mrf.mxu3  ;;  %v5280_v14 = vadd.f32 %v5271_v42, %v5208_v11  ;;  %v5443_v10 = vmul.f32 %v5427_v24, %v5427_v24 }
 0x82b   :  { %v5415_v18 = vpop.f32.mrf.mxu2  ;;  %v5209_v52 = vadd.f32 %v5202_v28, %v5137_v0 }
 0x82c   :  { %v5352_v41 = vadd.f32 %v5343_v38, %v5280_v14 }
 0x82e   :  { %v12190_v57 = vadd.f32 %v5415_v18, %v5352_v41 }
 0x830   :  { %v5346_v62 = vpop.f32.mrf.mxu1  ;;  %v5428_v53 = vmul.f32 %v12180_v20, %v12190_v57 }
 0x831   :  { %v5274_v36 = vpop.f32.mrf.mxu0 }
 0x832   :  { %v5281_v1 = vadd.f32 %v5274_v36, %v5209_v52  ;;  %v5204_v6 = vpop.f32.mrf.mxu3  ;;  %v5444_v29 = vmul.f32 %v5428_v53, %v5428_v53 }
 0x833   :  { %v5418_v3 = vpop.f32.mrf.mxu2  ;;  %v5210_v27 = vadd.f32 %v5204_v6, %v5138_v43 }
 0x834   :  { %v5353_v32 = vadd.f32 %v5346_v62, %v5281_v1 }
 0x836   :  { %v12186_v8 = vadd.f32 %v5418_v3, %v5353_v32 }
 0x838   :  { %v5429_v34 = vmul.f32 %v12180_v20, %v12186_v8  ;;  %v5348_v7 = vpop.f32.mrf.mxu1 }
 0x839   :  { %v5276_v17 = vpop.f32.mrf.mxu0 }
 0x83a   :  { %v5282_v46 = vadd.f32 %v5276_v17, %v5210_v27  ;;  %5435 = vadd.xlane.f32.xlu0 %v5429_v34  ;;  %v5445_v16 = vmul.f32 %v5429_v34, %v5429_v34 }
 0x83b   :  { %v5420_v37 = vpop.f32.mrf.mxu2 }
 0x83c   :  { %v5354_v4 = vadd.f32 %v5348_v7, %v5282_v46  ;;  %5451 = vadd.xlane.f32.xlu1 %v5445_v16 }
 0x83e   :  { %v12192_v39 = vadd.f32 %v5420_v37, %v5354_v4  ;;  %v5522_v4 = vld [vmem:[%s12543_s7 + $0x18] sm:$0xff] }
 0x840   :  { %v5430_v56 = vmul.f32 %v12180_v20, %v12192_v39 }
 0x842   :  { %5437 = vadd.xlane.f32.xlu2 %v5430_v56  ;;  %v5446_v51 = vmul.f32 %v5430_v56, %v5430_v56 }
 0x844   :  { %5433 = vadd.xlane.f32.xlu1 %v5428_v53  ;;  %5453 = vadd.xlane.f32.xlu0 %v5446_v51 }
 0x84a   :  { %5449 = vadd.xlane.f32.xlu2 %v5444_v29 }
 0x84c   :  { %5447 = vadd.xlane.f32.xlu0 %v5443_v10 }
 0x860   :  { %5572 = vperm.xlu0 %8461, %v5554_v31  }
 0x862   :  { %5567 = vperm.xlu2 %8460, %v5553_v12  }
 0x89d   :  { %v5432_v19 = vpop.xlane.xlu2 %5431 }
 0x89e   :  { %v12214_v24 = vmul.f32 0.125, %v5432_v19 }
 0x8a0   :  { %v5459_v0 = vmul.f32 %v12214_v24, %v12214_v24 }
 0x8ad   :  { %v5436_v25 = vpop.xlane.xlu0 %5435 }
 0x8ae   :  { %v12204_v35 = vmul.f32 0.125, %v5436_v25  ;;  %v5520_v25 = vld [vmem:[%s12543_s7 + $0x8] sm:$0xff] }
 0x8af   :  { %v5452_v48 = vpop.xlane.xlu1 %5451 }
 0x8b0   :  { %v5461_v54 = vmul.f32 %v12204_v35, %v12204_v35  ;;  %v5457_v44 = vmul.f32 0.125, %v5452_v48 }
 0x8b2   :  { %v5465_v13 = vsub.f32 %v5457_v44, %v5461_v54 }
 0x8b4   :  { %v5469_v5 = vmax.f32 %v5465_v13, 0.0  ;;  %v5519_v13 = vld [vmem:[%s12543_s7] sm:$0xff] }
 0x8b5   :  { %v5438_v60 = vpop.xlane.xlu2 %5437 }
 0x8b6   :  { %v12208_v55 = vmul.f32 0.125, %v5438_v60  ;;  %v12216_v38 = vadd.f32 1e-05, %v5469_v5 }
 0x8b7   :  { %v5434_v15 = vpop.xlane.xlu1 %5433  ;;  %v5454_v59 = vpop.xlane.xlu0 %5453 }
 0x8b8   :  { %v5462_v9 = vmul.f32 %v12208_v55, %v12208_v55  ;;  %v5458_v21 = vmul.f32 0.125, %v5454_v59  ;;  %v12212_v26 = vmul.f32 0.125, %v5434_v15  ;;  %8479 = vrsqrt.f32 %v12216_v38  ;;  %v5551_v59 = vld [vmem:[%s12542_s8] sm:$0xff] }
 0x8b9   :  { %vm5505_vm6 = vweird.f32 %v12216_v38 }
 0x8ba   :  { %v5466_v50 = vsub.f32 %v5458_v21, %v5462_v9  ;;  %v5460_v28 = vmul.f32 %v12212_v26, %v12212_v26 }
 0x8bc   :  { %v5470_v42 = vmax.f32 %v5466_v50, 0.0  ;;  %v5521_v50 = vld [vmem:[%s12543_s7 + $0x10] sm:$0xff]  ;;  %s8513_s7 = smov 36  }
 0x8bd   :  { %v5450_v18 = vpop.xlane.xlu2 %5449 }
 0x8be   :  { %v5456_v49 = vmul.f32 0.125, %v5450_v18  ;;  %v5478_v33 = vadd.f32 1e-05, %v5470_v42  ;;  %v8480_v1 = vpop.eup %8479  ;;  %v5552_v18 = vld [vmem:[%s12542_s8 + $0x8] sm:$0xff]  ;;  %s8514_s8 = smov 32  }
 0x8bf   :  { %v5448_v45 = vpop.xlane.xlu0 %5447  ;;  %v5500_v32 = vmul.f32 %v8480_v1, %v12216_v38  ;;  %vm5506_vm5 = vweird.f32 %v8480_v1 }
 0x8c0   :  { %v5464_v47 = vsub.f32 %v5456_v49, %v5460_v28  ;;  %v5455_v30 = vmul.f32 0.125, %v5448_v45  ;;  %8481 = vrsqrt.f32 %v5478_v33  ;;  %vm5515_vm13 = vweird.f32 %v5478_v33  ;;  %vm5507_vm7 = vmor %vm5505_vm6, %vm5506_vm5 }
 0x8c1   :  { %v5501_v17 = vmul.f32 %v8480_v1, %v5500_v32  ;;  %v5474_v45 = vsub.f32 %v12192_v39, %v12208_v55 }
 0x8c2   :  { %v5468_v52 = vmax.f32 %v5464_v47, 0.0  ;;  %v5463_v36 = vsub.f32 %v5455_v30, %v5459_v0 }
 0x8c3   :  { %v5502_v53 = vmul.f32 0.5, %v5501_v17 }
 0x8c4   :  { %v5476_v62 = vadd.f32 1e-05, %v5468_v52  ;;  %v5467_v40 = vmax.f32 %v5463_v36, 0.0 }
 0x8c5   :  { %v5503_v48 = vsub.f32 1.5, %v5502_v53  ;;  %v5568_v36 = vpop.permute.xlu2 %5567 }
 0x8c6   :  { %8483 = vrsqrt.f32 %v5476_v62  ;;  %v5475_v3 = vadd.f32 1e-05, %v5467_v40  ;;  %v8482_v2 = vpop.eup %8481  ;;  %vm5495_vm0 = vweird.f32 %v5476_v62 }
 0x8c7   :  { %v5510_v11 = vmul.f32 %v8482_v2, %v5478_v33  ;;  %vm5516_vm12 = vweird.f32 %v8482_v2  ;;  %v5504_v9 = vmul.f32 %v8480_v1, %v5503_v48  ;;  %v5471_v33 = vsub.f32 %v12182_v23, %v12214_v24 }
 0x8c8   :  { %8485 = vrsqrt.f32 %v5475_v3  ;;  %vm5517_vm14 = vmor %vm5515_vm13, %vm5516_vm12  ;;  %vm5485_vm3 = vweird.f32 %v5475_v3 }
 0x8c9   :  { %v5511_v6 = vmul.f32 %v8482_v2, %v5510_v11  ;;  %v5508_v21 = vsel %vm5507_vm7, %v8480_v1, %v5504_v9  ;;  %v5472_v11 = vsub.f32 %v12190_v57, %v12212_v26  ;;  %vm5629_vm7 = vcmask 261120  }
 0x8ca   :  { %v5525_v42 = vmul.f32 %v5521_v50, %v5508_v21  ;;  %v12316_v21 = vadd.s32 4294967292, %v12586_v58 }
 0x8cb   :  { %v5512_v14 = vmul.f32 0.5, %v5511_v6 }
 0x8cc   :  { %v8484_v43 = vpop.eup %8483  ;;  %vm3359_vm5 = vcmp.ge.s32.totalorder %v12316_v21, 0 }
 0x8cd   :  { %v5490_v34 = vmul.f32 %v8484_v43, %v5476_v62  ;;  %v5513_v41 = vsub.f32 1.5, %v5512_v14  ;;  %vm5496_vm15 = vweird.f32 %v8484_v43 }
 0x8ce   :  { %v8486_v27 = vpop.eup %8485  ;;  %vm5497_vm2 = vmor %vm5495_vm0, %vm5496_vm15 }
 0x8cf   :  { %v5491_v46 = vmul.f32 %v8484_v43, %v5490_v34  ;;  %v5480_v16 = vmul.f32 %v8486_v27, %v5475_v3  ;;  %v5514_v7 = vmul.f32 %v8482_v2, %v5513_v41  ;;  %vm5486_vm1 = vweird.f32 %v8486_v27 }
 0x8d0   :  { %vm5487_vm4 = vmor %vm5485_vm3, %vm5486_vm1  ;;  %v5473_v3 = vsub.f32 %v12186_v8, %v12204_v35 }
 0x8d1   :  { %v5492_v37 = vmul.f32 0.5, %v5491_v46  ;;  %v5481_v56 = vmul.f32 %v8486_v27, %v5480_v16  ;;  %v5518_v51 = vsel %vm5517_vm14, %v8482_v2, %v5514_v7 }
 0x8d2   :  { %v5526_v31 = vmul.f32 %v5522_v4, %v5518_v51  ;;  %v5573_v28 = vpop.permute.xlu0 %5572 }
 0x8d3   :  { %v5493_v29 = vsub.f32 1.5, %v5492_v37  ;;  %v5482_v10 = vmul.f32 0.5, %v5481_v56 }
 0x8d4   :  { %5544 = vperm.xlu0 %8461, %v5526_v31  }
 0x8d5   :  { %v5483_v12 = vsub.f32 1.5, %v5482_v10  ;;  %v5494_v19 = vmul.f32 %v8484_v43, %v5493_v29  ;;  %v3354_v29 = vadd.s32 4294967292, %v12581_v63  ;;  %v12295_v10 = vadd.s32 4, %v12586_v58  ;;  %v8027_v58 = vld [vmem:[%s12544_s9 + $0x10] sm:$0xff] }
 0x8d7   :  { %v5498_v54 = vsel %vm5497_vm2, %v8484_v43, %v5494_v19  ;;  %v5484_v44 = vmul.f32 %v8486_v27, %v5483_v12  ;;  %vm3355_vm13 = vcmp.ge.s32.totalorder %v3354_v29, 0  ;;  %vm3356_vm14 = vcmp.lt.s32.totalorder %v3354_v29, 8 }
 0x8d8   :  { %v5524_v60 = vmul.f32 %v5520_v25, %v5498_v54  ;;  %vm3372_vm15 = vcmp.lt.s32.totalorder %v12295_v10, 8  ;;  %vm12300_vm0 = vmand %vm3355_vm13, %vm3356_vm14  ;;  %v8033_v10 = vld [vmem:[%s12544_s9 + $0x40] sm:$0xff] }
 0x8d9   :  { %v5488_v15 = vsel %vm5487_vm4, %v8486_v27, %v5484_v44  ;;  %vm3373_vm1 = vmand %vm12300_vm0, %vm3372_vm15  ;;  %v3384_v44 = vadd.s32 4, %v12581_v63 }
 0x8da   :  { %5534 = vperm.xlu2 %8460, %v5524_v60   ;;  %v5523_v5 = vmul.f32 %v5519_v13, %v5488_v15  ;;  %v12309_v54 = vsel %vm3373_vm1, 1.0, %v12584_v22 }
 0x8db   :  { %vm3385_vm2 = vcmp.ge.s32.totalorder %v3384_v44, 0  ;;  %vm3386_vm3 = vcmp.lt.s32.totalorder %v3384_v44, 8 }
 0x8dc   :  { %5529 = vperm.xlu1 %8462, %v5523_v5   ;;  %5557 = vperm.xlu0 %8461, %v5551_v59   ;;  %vm12319_vm4 = vmand %vm3385_vm2, %vm3386_vm3 }
 0x8dd   :  { %vm3397_vm6 = vmand %vm12319_vm4, %vm3372_vm15 }
 0x8e4   :  { %5539 = vperm.xlu1 %8462, %v5525_v42  }
 0x8ec   :  { %5562 = vperm.xlu1 %8462, %v5552_v18  }
 0x934   :  { %v5535_v24 = vpop.permute.xlu2 %5534 }
 0x935   :  { %v5548_v6 = vmul.f32 %v5535_v24, %v5472_v11 }
 0x946   :  { %v5545_v49 = vpop.permute.xlu0 %5544 }
 0x947   :  { %v5550_v30 = vmul.f32 %v5545_v49, %v5474_v45  ;;  %v12350_v45 = vsel %vm12300_vm0, 1.0, %v12584_v22 }
 0x949   :  { %v5578_v40 = vadd.f32 %v5573_v28, %v5550_v30 }
 0x94b   :  { %v5586_v39 = vmul.f32 0.2, %v5578_v40  ;;  %vm5582_vm9 = vcmp.gt.f32.partialorder %v5578_v40, 0.0 }
 0x94d   :  { %v5590_v43 = vsel %vm5582_vm9, %v5578_v40, %v5586_v39  ;;  %vm3376_vm9 = vmand %vm11196_vm10, %vm3359_vm5 }
 0x94e   :  { %v5530_v38 = vpop.permute.xlu1 %5529  ;;  %v5558_v47 = vpop.permute.xlu0 %5557 }
 0x94f   :  { %v5547_v0 = vmul.f32 %v5530_v38, %v5471_v33  ;;  %v8029_v33 = vld [vmem:[%s12544_s9 + $0x20] sm:$0xff]  ;;  %v12344_v38 = vsel %vm3397_vm6, 1.0, %v12584_v22 }
 0x951   :  { %v5575_v52 = vadd.f32 %v5558_v47, %v5547_v0 }
 0x953   :  { %vm5579_vm8 = vcmp.gt.f32.partialorder %v5575_v52, 0.0  ;;  %v5583_v62 = vmul.f32 0.2, %v5575_v52 }
 0x955   :  { %v5587_v1 = vsel %vm5579_vm8, %v5575_v52, %v5583_v62  ;;  %vm3360_vm8 = vmand %vm12300_vm0, %vm3359_vm5 }
 0x956   :  { %v5540_v2 = vpop.permute.xlu1 %5539  ;;  %5591 = vrot.lane.b32.xlu2 %v5587_v1, %s8513_s7  ;;  %5607 = vrot.lane.b32.xlu1 %v5587_v1, %s8514_s8  ;;  %v12355_v52 = vsel %vm3360_vm8, 1.0, %v12584_v22 }
 0x957   :  { %v5549_v23 = vmul.f32 %v5540_v2, %v5473_v3 }
 0x959   :  { %v5577_v55 = vadd.f32 %v5568_v36, %v5549_v23  ;;  %v12358_v36 = vsel %vm3376_vm9, 1.0, %v12584_v22 }
 0x95b   :  { %vm5581_vm11 = vcmp.gt.f32.partialorder %v5577_v55, 0.0  ;;  %v5585_v32 = vmul.f32 0.2, %v5577_v55 }
 0x95d   :  { %v5589_v8 = vsel %vm5581_vm11, %v5577_v55, %v5585_v32  ;;  %vm3381_vm11 = vmand %vm11196_vm10, %vm3372_vm15 }
 0x95e   :  { %v5563_v35 = vpop.permute.xlu1 %5562  ;;  %5669 = vrot.lane.b32.xlu2 %v5587_v1, %s8515_s19  ;;  %5710 = vrot.lane.b32.xlu1 %v5587_v1, %s8516_s20  ;;  %v5755_v14 = vpack.c.bf16 %v5590_v43, %v5589_v8  ;;  %vm3388_vm10 = vmand %vm12319_vm4, %vm3359_vm5 }
 0x95f   :  { %v5576_v34 = vadd.f32 %v5563_v35, %v5548_v6 }
 0x960   :  { %5770 = vmatpush.bf16.msra.mxu2 %v5755_v14 }
 0x961   :  { %vm5580_vm12 = vcmp.gt.f32.partialorder %v5576_v34, 0.0  ;;  %v5584_v27 = vmul.f32 0.2, %v5576_v34 }
 0x963   :  { %v5588_v17 = vsel %vm5580_vm12, %v5576_v34, %v5584_v27 }
 0x964   :  { %5593 = vrot.lane.b32.xlu0 %v5588_v17, %s8513_s7  ;;  %v5754_v57 = vpack.c.bf16 %v5588_v17, %v5587_v1 }
 0x966   :  { %5609 = vrot.lane.b32.xlu2 %v5588_v17, %s8514_s8  ;;  %5673 = vrot.lane.b32.xlu1 %v5589_v8, %s8515_s19 }
 0x967   :  { %5771 = vmatpush.bf16.msra.mxu2 %v5754_v57 }
 0x96a   :  { %7717 = vmatmul.msk.bf16.vlgmr.msra.gmra.mxu2 %vm5629_vm7, %v8029_v33  ;;  %v12423_v33 = vsel %vm12319_vm4, 1.0, %v12584_v22  ;;  %vm6043_vm4 = vcmask 130048  }
 0x96c   :  { %5671 = vrot.lane.b32.xlu0 %v5588_v17, %s8515_s19 }
 0x96e   :  { %5712 = vrot.lane.b32.xlu2 %v5588_v17, %s8516_s20  ;;  %5907 = vrot.lane.b32.xlu1 %v5589_v8, %s8517_s23 }
 0x974   :  { %5595 = vrot.lane.b32.xlu0 %v5589_v8, %s8513_s7 }
 0x976   :  { %5611 = vrot.lane.b32.xlu2 %v5589_v8, %s8514_s8  ;;  %5903 = vrot.lane.b32.xlu1 %v5587_v1, %s8517_s23 }
 0x97c   :  { %5714 = vrot.lane.b32.xlu0 %v5589_v8, %s8516_s20 }
 0x97e   :  { %5780 = vrot.lane.b32.xlu2 %v5587_v1, %s8518_s24  ;;  %5597 = vrot.lane.b32.xlu1 %v5590_v43, %s8513_s7 }
 0x984   :  { %5613 = vrot.lane.b32.xlu0 %v5590_v43, %s8514_s8 }
 0x986   :  { %5866 = vrot.lane.b32.xlu2 %v5589_v8, %s8519_s17  ;;  %5716 = vrot.lane.b32.xlu1 %v5590_v43, %s8516_s20 }
 0x98c   :  { %5784 = vrot.lane.b32.xlu0 %v5589_v8, %s8518_s24 }
 0x98e   :  { %5675 = vrot.lane.b32.xlu2 %v5590_v43, %s8515_s19  ;;  %5786 = vrot.lane.b32.xlu1 %v5590_v43, %s8518_s24 }
 0x994   :  { %5782 = vrot.lane.b32.xlu0 %v5588_v17, %s8518_s24 }
 0x996   :  { %5905 = vrot.lane.b32.xlu2 %v5588_v17, %s8517_s23  ;;  %5827 = vrot.lane.b32.xlu1 %v5590_v43, %s8520_s0 }
 0x99c   :  { %5825 = vrot.lane.b32.xlu0 %v5589_v8, %s8520_s0 }
 0x99e   :  { %5909 = vrot.lane.b32.xlu2 %v5590_v43, %s8517_s23  ;;  %5823 = vrot.lane.b32.xlu1 %v5588_v17, %s8520_s0 }
 0x9a4   :  { %5821 = vrot.lane.b32.xlu0 %v5587_v1, %s8520_s0 }
 0x9a6   :  { %5862 = vrot.lane.b32.xlu2 %v5587_v1, %s8519_s17 }
 0x9ac   :  { %5868 = vrot.lane.b32.xlu0 %v5590_v43, %s8519_s17 }
 0x9b0   :  { %v12282_v26 = vpop.permute.xlu2 %5591 }
 0x9b1   :  { %v5599_v61 = vmul.f32 %v12355_v52, %v12282_v26 }
 0x9b4   :  { %5864 = vrot.lane.b32.xlu0 %v5588_v17, %s8519_s17 }
 0x9b8   :  { %v5670_v41 = vpop.permute.xlu2 %5669 }
 0x9b9   :  { %v5677_v50 = vmul.f32 %v12309_v54, %v5670_v41 }
 0x9c0   :  { %v12285_v46 = vpop.permute.xlu2 %5609 }
 0x9c1   :  { %v5616_v24 = vmul.f32 %v12350_v45, %v12285_v46  ;;  %v8026_v46 = vld [vmem:[%s12544_s9 + $0x8] sm:$0xff] }
 0x9c8   :  { %v12287_v16 = vpop.permute.xlu2 %5712  ;;  %v5608_v7 = vpop.permute.xlu1 %5607 }
 0x9c9   :  { %v5615_v62 = vmul.f32 %v12350_v45, %v5608_v7  ;;  %v5719_v14 = vmul.f32 %v12358_v36, %v12287_v16 }
 0x9cb   :  { %v5622_v34 = vpack.c.bf16 %v5616_v24, %v5615_v62 }
 0x9d0   :  { %v5612_v4 = vpop.permute.xlu2 %5611  ;;  %v5711_v37 = vpop.permute.xlu1 %5710 }
 0x9d1   :  { %v5617_v47 = vmul.f32 %v12350_v45, %v5612_v4  ;;  %v5718_v32 = vmul.f32 %v12358_v36, %v5711_v37  ;;  %v12386_v4 = vsel %vm3381_vm11, 1.0, %v12584_v22 }
 0x9d3   :  { %v5725_v16 = vpack.c.bf16 %v5719_v14, %v5718_v32 }
 0x9d6   :  { %v12289_v56 = vpop.permute.xlu0 %5593 }
 0x9d7   :  { %v5600_v17 = vmul.f32 %v12355_v52, %v12289_v56  ;;  %v8028_v56 = vld [vmem:[%s12544_s9 + $0x18] sm:$0xff] }
 0x9d8   :  { %v12291_v53 = vpop.permute.xlu2 %5780  ;;  %v5674_v51 = vpop.permute.xlu1 %5673 }
 0x9d9   :  { %v5679_v15 = vmul.f32 %v12309_v54, %v5674_v51  ;;  %v5605_v26 = vpack.c.bf16 %v5600_v17, %v5599_v61  ;;  %v5788_v25 = vmul.f32 %v12386_v4, %v12291_v53 }
 0x9de   :  { %v5672_v31 = vpop.permute.xlu0 %5671 }
 0x9df   :  { %v5678_v5 = vmul.f32 %v12309_v54, %v5672_v31 }
 0x9e0   :  { %v12297_v12 = vpop.permute.xlu2 %5866  ;;  %v5908_v19 = vpop.permute.xlu1 %5907 }
 0x9e1   :  { %v5684_v18 = vpack.c.bf16 %v5678_v5, %v5677_v50  ;;  %v5913_v40 = vmul.f32 %v12344_v38, %v5908_v19 }
 0x9e6   :  { %v5596_v48 = vpop.permute.xlu0 %5595 }
 0x9e7   :  { %v5601_v35 = vmul.f32 %v12355_v52, %v5596_v48 }
 0x9e8   :  { %v5676_v13 = vpop.permute.xlu2 %5675  ;;  %v5904_v60 = vpop.permute.xlu1 %5903 }
 0x9e9   :  { %v5680_v59 = vmul.f32 %v12309_v54, %v5676_v13  ;;  %v5911_v27 = vmul.f32 %v12344_v38, %v5904_v60  ;;  %v12407_v60 = vsel %vm3388_vm10, 1.0, %v12584_v22 }
 0x9eb   :  { %v5685_v9 = vpack.c.bf16 %v5680_v59, %v5679_v15  ;;  %v8025_v59 = vld [vmem:[%s12544_s9] sm:$0xff] }
 0x9ed   :  { %5700 = vmatpush.bf16.msra.mxu0 %v5685_v9  ;;  %v5773_v24 = vpop.f32.mrf.mxu2 }
 0x9ee   :  { %v5715_v42 = vpop.permute.xlu0 %5714 }
 0x9ef   :  { %v5720_v2 = vmul.f32 %v12358_v36, %v5715_v42 }
 0x9f0   :  { %v5906_v28 = vpop.permute.xlu2 %5905  ;;  %v5598_v49 = vpop.permute.xlu1 %5597 }
 0x9f1   :  { %5701 = vmatpush.bf16.msra.mxu0 %v5684_v18  ;;  %v5602_v11 = vmul.f32 %v12355_v52, %v5598_v49  ;;  %v5912_v6 = vmul.f32 %v12344_v38, %v5906_v28  ;;  %v8031_v49 = vld [vmem:[%s12544_s9 + $0x30] sm:$0xff] }
 0x9f3   :  { %v5606_v57 = vpack.c.bf16 %v5602_v11, %v5601_v35  ;;  %v5918_v7 = vpack.c.bf16 %v5912_v6, %v5911_v27 }
 0x9f4   :  { %7703 = vmatmul.msk.bf16.vlgmr.msra.gmra.mxu0 %vm5629_vm7, %v8027_v58 }
 0x9f6   :  { %v5614_v0 = vpop.permute.xlu0 %5613 }
 0x9f7   :  { %v5618_v30 = vmul.f32 %v12350_v45, %v5614_v0  ;;  %v8030_v0 = vld [vmem:[%s12544_s9 + $0x28] sm:$0xff] }
 0x9f8   :  { %v5910_v1 = vpop.permute.xlu2 %5909  ;;  %v5717_v3 = vpop.permute.xlu1 %5716 }
 0x9f9   :  { %v5623_v23 = vpack.c.bf16 %v5618_v30, %v5617_v47  ;;  %v5914_v39 = vmul.f32 %v12344_v38, %v5910_v1  ;;  %v5721_v55 = vmul.f32 %v12358_v36, %v5717_v3  ;;  %v5872_v47 = vmul.f32 %v12423_v33, %v12297_v12 }
 0x9fb   :  { %v5919_v43 = vpack.c.bf16 %v5914_v39, %v5913_v40  ;;  %v5726_v8 = vpack.c.bf16 %v5721_v55, %v5720_v2  ;;  %5639 = vmatpush.bf16.msrb.mxu3 %v5623_v23  ;;  %v8032_v2 = vld [vmem:[%s12544_s9 + $0x38] sm:$0xff] }
 0x9fd   :  { %5741 = vmatpush.bf16.msrb.mxu1 %v5726_v8  ;;  %5934 = vmatpush.bf16.msrb.mxu2 %v5919_v43 }
 0x9fe   :  { %v5785_v41 = vpop.permute.xlu0 %5784 }
 0x9ff   :  { %5640 = vmatpush.bf16.msrb.mxu3 %v5622_v34  ;;  %v5790_v51 = vmul.f32 %v12386_v4, %v5785_v41  ;;  %v5775_v34 = vpop.f32.mrf.mxu2 }
 0xa00   :  { %v5787_v37 = vpop.permute.xlu1 %5786  ;;  %v5863_v40 = vpop.permute.xlu2 %5862 }
 0xa01   :  { %v5791_v29 = vmul.f32 %v12386_v4, %v5787_v37  ;;  %5742 = vmatpush.bf16.msrb.mxu1 %v5725_v16  ;;  %5935 = vmatpush.bf16.msrb.mxu2 %v5918_v7  ;;  %v5870_v22 = vmul.f32 %v12423_v33, %v5863_v40 }
 0xa02   :  { %7691 = vmatmul.msk.bf16.vlgmr.msrb.gmra.mxu3 %vm5629_vm7, %v8026_v46 }
 0xa03   :  { %5661 = vmatpush.bf16.msra.mxu3 %v5606_v57  ;;  %v5796_v31 = vpack.c.bf16 %v5791_v29, %v5790_v51 }
 0xa04   :  { %7710 = vmatmul.msk.bf16.vlgmr.msrb.gmra.mxu1 %vm5629_vm7, %v8028_v56  ;;  %7745 = vmatmul.msk.bf16.vlgmr.msrb.gmra.mxu2 %vm5629_vm7, %v8033_v10 }
 0xa06   :  { %v5783_v19 = vpop.permute.xlu0 %5782 }
 0xa07   :  { %5662 = vmatpush.bf16.msra.mxu3 %v5605_v26  ;;  %v5789_v48 = vmul.f32 %v12386_v4, %v5783_v19 }
 0xa08   :  { %v5828_v13 = vpop.permute.xlu1 %5827 }
 0xa09   :  { %v5795_v44 = vpack.c.bf16 %v5789_v48, %v5788_v25  ;;  %v5832_v53 = vmul.f32 %v12407_v60, %v5828_v13 }
 0xa0b   :  { %5811 = vmatpush.bf16.msrb.mxu3 %v5796_v31 }
 0xa0e   :  { %v5826_v15 = vpop.permute.xlu0 %5825 }
 0xa0f   :  { %5812 = vmatpush.bf16.msrb.mxu3 %v5795_v44  ;;  %v5831_v5 = vmul.f32 %v12407_v60, %v5826_v15 }
 0xa10   :  { %v5824_v21 = vpop.permute.xlu1 %5823 }
 0xa11   :  { %v5837_v9 = vpack.c.bf16 %v5832_v53, %v5831_v5  ;;  %v5830_v42 = vmul.f32 %v12407_v60, %v5824_v21  ;;  %v6006_v21 = vld [vmem:[%s12545_s11] sm:$0xff] }
 0xa12   :  { %7696 = vmatmul.msk.bf16.vlgmr.msra.gmra.mxu3 %vm5629_vm7, %v8025_v59 }
 0xa13   :  { %5852 = vmatpush.bf16.msrb.mxu0 %v5837_v9 }
 0xa16   :  { %v5822_v50 = vpop.permute.xlu0 %5821 }
 0xa17   :  { %v5829_v18 = vmul.f32 %v12407_v60, %v5822_v50 }
 0xa19   :  { %v5836_v28 = vpack.c.bf16 %v5830_v42, %v5829_v18 }
 0xa1b   :  { %5853 = vmatpush.bf16.msrb.mxu0 %v5836_v28 }
 0xa1e   :  { %v5869_v58 = vpop.permute.xlu0 %5868  ;;  %7731 = vmatmul.msk.bf16.vlgmr.msrb.gmra.mxu0 %vm5629_vm7, %v8031_v49 }
 0xa1f   :  { %v5873_v30 = vmul.f32 %v12423_v33, %v5869_v58 }
 0xa21   :  { %v5878_v62 = vpack.c.bf16 %v5873_v30, %v5872_v47 }
 0xa22   :  { %7724 = vmatmul.msk.bf16.vlgmr.msrb.gmra.mxu3 %vm5629_vm7, %v8030_v0 }
 0xa23   :  { %5893 = vmatpush.bf16.msra.mxu1 %v5878_v62 }
 0xa26   :  { %v5865_v63 = vpop.permute.xlu0 %5864 }
 0xa27   :  { %v5871_v1 = vmul.f32 %v12423_v33, %v5865_v63 }
 0xa29   :  { %v5877_v3 = vpack.c.bf16 %v5871_v1, %v5870_v22 }
 0xa2b   :  { %5894 = vmatpush.bf16.msra.mxu1 %v5877_v3 }
 0xa2e   :  { %7738 = vmatmul.msk.bf16.vlgmr.msra.gmra.mxu1 %vm5629_vm7, %v8032_v2 }
 0xa71   :  { %v5703_v39 = vpop.f32.mrf.mxu0 }
 0xa79   :  { %v5705_v8 = vpop.f32.mrf.mxu0 }
 0xa81   :  { %v5744_v32 = vpop.f32.mrf.mxu1 }
 0xa85   :  { %v5642_v12 = vpop.f32.mrf.mxu3 }
 0xa87   :  { %v5937_v56 = vpop.f32.mrf.mxu2 }
 0xa89   :  { %v5746_v27 = vpop.f32.mrf.mxu1 }
 0xa8d   :  { %v5644_v23 = vpop.f32.mrf.mxu3 }
 0xa8f   :  { %v5939_v59 = vpop.f32.mrf.mxu2 }
 0xa95   :  { %v5664_v55 = vpop.f32.mrf.mxu3 }
 0xa96   :  { %v5665_v11 = vadd.f32 %v5664_v55, %v5642_v12 }
 0xa98   :  { %v5708_v6 = vadd.f32 %v5703_v39, %v5665_v11 }
 0xa9a   :  { %v5749_v35 = vadd.f32 %v5744_v32, %v5708_v6  ;;  %v5990_v6 = vld [vmem:[%s12546_s10] sm:$0xff] }
 0xa9b   :  { %v5855_v16 = vpop.f32.mrf.mxu0 }
 0xa9c   :  { %v5778_v17 = vadd.f32 %v5773_v24, %v5749_v35 }
 0xa9d   :  { %v5666_v43 = vpop.f32.mrf.mxu3 }
 0xa9e   :  { %v5667_v14 = vadd.f32 %v5666_v43, %v5644_v23 }
 0xaa0   :  { %v5709_v57 = vadd.f32 %v5705_v8, %v5667_v14 }
 0xaa2   :  { %v5750_v7 = vadd.f32 %v5746_v27, %v5709_v57 }
 0xaa3   :  { %v5857_v25 = vpop.f32.mrf.mxu0 }
 0xaa4   :  { %v5779_v51 = vadd.f32 %v5775_v34, %v5750_v7 }
 0xaa5   :  { %v5814_v41 = vpop.f32.mrf.mxu3 }
 0xaa6   :  { %v5819_v46 = vadd.f32 %v5814_v41, %v5778_v17  ;;  %v5991_v17 = vld [vmem:[%s12546_s10 + $0x8] sm:$0xff] }
 0xaa8   :  { %v5860_v61 = vadd.f32 %v5855_v16, %v5819_v46  ;;  %v6007_v46 = vld [vmem:[%s12545_s11 + $0x8] sm:$0xff] }
 0xaab   :  { %v5896_v37 = vpop.f32.mrf.mxu1 }
 0xaac   :  { %v5901_v29 = vadd.f32 %v5896_v37, %v5860_v61 }
 0xaad   :  { %v5816_v10 = vpop.f32.mrf.mxu3 }
 0xaae   :  { %v12439_v26 = vadd.f32 %v5937_v56, %v5901_v29  ;;  %v5820_v31 = vadd.f32 %v5816_v10, %v5779_v51 }
 0xab0   :  { %v5944_v19 = vmul.f32 %v12180_v20, %v12439_v26  ;;  %v5861_v48 = vadd.f32 %v5857_v25, %v5820_v31 }
 0xab2   :  { %5946 = vadd.xlane.f32.xlu1 %v5944_v19  ;;  %v5952_v44 = vmul.f32 %v5944_v19, %v5944_v19 }
 0xab3   :  { %v5898_v13 = vpop.f32.mrf.mxu1 }
 0xab4   :  { %v5902_v15 = vadd.f32 %v5898_v13, %v5861_v48  ;;  %5954 = vadd.xlane.f32.xlu0 %v5952_v44 }
 0xab6   :  { %v12443_v53 = vadd.f32 %v5939_v59, %v5902_v15  ;;  %v6252_v15 = vld [vmem:[%s12547_s13] sm:$0xff] }
 0xab8   :  { %v5945_v5 = vmul.f32 %v12180_v20, %v12443_v53 }
 0xaba   :  { %5948 = vadd.xlane.f32.xlu2 %v5945_v5  ;;  %v5953_v9 = vmul.f32 %v5945_v5, %v5945_v5 }
 0xabc   :  { %5956 = vadd.xlane.f32.xlu1 %v5953_v9 }
 0xad5   :  { %6010 = vperm.xlu1 %8462, %v6006_v21  }
 0xb25   :  { %v5947_v50 = vpop.xlane.xlu1 %5946 }
 0xb26   :  { %v5950_v42 = vmul.f32 0.125, %v5947_v50 }
 0xb27   :  { %v5955_v18 = vpop.xlane.xlu0 %5954 }
 0xb28   :  { %v5960_v28 = vmul.f32 %v5950_v42, %v5950_v42  ;;  %v5958_v49 = vmul.f32 0.125, %v5955_v18  ;;  %v5966_v16 = vsub.f32 %v12439_v26, %v5950_v42  ;;  %v7751_v18 = vld [vmem:[%s12548_s12 + $0xc] sm:$0xf] }
 0xb2a   :  { %v5962_v58 = vsub.f32 %v5958_v49, %v5960_v28 }
 0xb2c   :  { %v5964_v0 = vmax.f32 %v5962_v58, 0.0 }
 0xb2d   :  { %v5949_v47 = vpop.xlane.xlu2 %5948 }
 0xb2e   :  { %v5968_v30 = vadd.f32 1e-05, %v5964_v0  ;;  %v5951_v62 = vmul.f32 0.125, %v5949_v47 }
 0xb2f   :  { %v5957_v40 = vpop.xlane.xlu1 %5956 }
 0xb30   :  { %8487 = vrsqrt.f32 %v5968_v30  ;;  %v5961_v20 = vmul.f32 %v5951_v62, %v5951_v62  ;;  %v5959_v63 = vmul.f32 0.125, %v5957_v40  ;;  %vm5976_vm13 = vweird.f32 %v5968_v30 }
 0xb31   :  { %v5967_v31 = vsub.f32 %v12443_v53, %v5951_v62 }
 0xb32   :  { %v5963_v22 = vsub.f32 %v5959_v63, %v5961_v20 }
 0xb34   :  { %v5965_v1 = vmax.f32 %v5963_v22, 0.0 }
 0xb36   :  { %v8488_v3 = vpop.eup %8487  ;;  %v5969_v2 = vadd.f32 1e-05, %v5965_v1 }
 0xb37   :  { %v5971_v12 = vmul.f32 %v8488_v3, %v5968_v30  ;;  %vm5977_vm12 = vweird.f32 %v8488_v3 }
 0xb38   :  { %8489 = vrsqrt.f32 %v5969_v2  ;;  %vm5978_vm14 = vmor %vm5976_vm13, %vm5977_vm12  ;;  %vm5986_vm0 = vweird.f32 %v5969_v2 }
 0xb39   :  { %v5972_v23 = vmul.f32 %v8488_v3, %v5971_v12  ;;  %v6032_v12 = vld [vmem:[%s12548_s12] sm:$0xf] }
 0xb3b   :  { %v5973_v39 = vmul.f32 0.5, %v5972_v23  ;;  %v7759_v23 = vld [vmem:[%s12548_s12 + $0x1c] sm:$0xf] }
 0xb3d   :  { %v5974_v55 = vsub.f32 1.5, %v5973_v39 }
 0xb3e   :  { %v8490_v24 = vpop.eup %8489 }
 0xb3f   :  { %v5981_v11 = vmul.f32 %v8490_v24, %v5969_v2  ;;  %v5975_v32 = vmul.f32 %v8488_v3, %v5974_v55  ;;  %vm5987_vm15 = vweird.f32 %v8490_v24 }
 0xb40   :  { %vm5988_vm1 = vmor %vm5986_vm0, %vm5987_vm15 }
 0xb41   :  { %v5982_v43 = vmul.f32 %v8490_v24, %v5981_v11  ;;  %v5979_v8 = vsel %vm5978_vm14, %v8488_v3, %v5975_v32  ;;  %v7753_v11 = vld [vmem:[%s12548_s12 + $0x10] sm:$0xf]  ;;  %v7749_v32 = vld [vmem:[%s12548_s12 + $0x8] sm:$0xf] }
 0xb42   :  { %v5992_v35 = vmul.f32 %v5990_v6, %v5979_v8 }
 0xb43   :  { %v5983_v14 = vmul.f32 0.5, %v5982_v43 }
 0xb44   :  { %5996 = vperm.xlu2 %8460, %v5992_v35  }
 0xb45   :  { %v5984_v34 = vsub.f32 1.5, %v5983_v14 }
 0xb47   :  { %v5985_v27 = vmul.f32 %v8490_v24, %v5984_v34  ;;  %v6011_v37 = vpop.permute.xlu1 %6010 }
 0xb49   :  { %v5989_v57 = vsel %vm5988_vm1, %v8490_v24, %v5985_v27 }
 0xb4a   :  { %v5993_v41 = vmul.f32 %v5991_v17, %v5989_v57  ;;  %v7755_v57 = vld [vmem:[%s12548_s12 + $0x14] sm:$0xf] }
 0xb4c   :  { %6001 = vperm.xlu0 %8461, %v5993_v41  }
 0xb54   :  { %6015 = vperm.xlu0 %8461, %v6007_v46  }
 0xb9e   :  { %v5997_v7 = vpop.permute.xlu2 %5996 }
 0xb9f   :  { %v6004_v61 = vmul.f32 %v5997_v7, %v5966_v16 }
 0xba1   :  { %v6018_v56 = vadd.f32 %v6011_v37, %v6004_v61 }
 0xba3   :  { %vm6020_vm2 = vcmp.gt.f32.partialorder %v6018_v56, 0.0  ;;  %v6022_v51 = vmul.f32 0.2, %v6018_v56 }
 0xba5   :  { %v6024_v29 = vsel %vm6020_vm2, %v6018_v56, %v6022_v51 }
 0xba6   :  { %6102 = vrot.lane.b32.xlu0 %v6024_v29, %s8516_s20  ;;  %6034 = vrot.lane.b32.xlu2 %v6024_v29, %s8514_s8 }
 0xbae   :  { %6076 = vrot.lane.b32.xlu2 %v6024_v29, %s8515_s19 }
 0xbbe   :  { %v6002_v10 = vpop.permute.xlu0 %6001 }
 0xbbf   :  { %v6005_v19 = vmul.f32 %v6002_v10, %v5967_v31 }
 0xbc6   :  { %v6016_v25 = vpop.permute.xlu0 %6015 }
 0xbc7   :  { %v6019_v48 = vadd.f32 %v6016_v25, %v6005_v19 }
 0xbc9   :  { %vm6021_vm3 = vcmp.gt.f32.partialorder %v6019_v48, 0.0  ;;  %v6023_v26 = vmul.f32 0.2, %v6019_v48 }
 0xbcb   :  { %v6025_v44 = vsel %vm6021_vm3, %v6019_v48, %v6023_v26 }
 0xbcc   :  { %6036 = vrot.lane.b32.xlu1 %v6025_v44, %s8514_s8  ;;  %6028 = vrot.lane.b32.xlu0 %v6025_v44, %s8513_s7  ;;  %v6130_v13 = vpack.c.bf16 %v6025_v44, %v6024_v29 }
 0xbcd   :  { %6104 = vrot.lane.b32.xlu2 %v6025_v44, %s8516_s20 }
 0xbd4   :  { %6026 = vrot.lane.b32.xlu1 %v6024_v29, %s8513_s7  ;;  %6200 = vrot.lane.b32.xlu0 %v6024_v29, %s8519_s17 }
 0xbd5   :  { %6226 = vrot.lane.b32.xlu2 %v6024_v29, %s8517_s23 }
 0xbdc   :  { %6078 = vrot.lane.b32.xlu1 %v6025_v44, %s8515_s19  ;;  %6150 = vrot.lane.b32.xlu0 %v6025_v44, %s8518_s24 }
 0xbdd   :  { %6202 = vrot.lane.b32.xlu2 %v6025_v44, %s8519_s17 }
 0xbe4   :  { %6148 = vrot.lane.b32.xlu1 %v6024_v29, %s8518_s24  ;;  %6174 = vrot.lane.b32.xlu0 %v6024_v29, %s8520_s0 }
 0xbe5   :  { %6176 = vrot.lane.b32.xlu2 %v6025_v44, %s8520_s0 }
 0xbec   :  { %6228 = vrot.lane.b32.xlu1 %v6025_v44, %s8517_s23 }
 0xbf4   :  { %6255 = vperm.xlu1 %8462, %v6252_v15  }
 0xc00   :  { %v6035_v59 = vpop.permute.xlu2 %6034 }
 0xc01   :  { %v6038_v0 = vmul.f32 %v12350_v45, %v6035_v59 }
 0xc08   :  { %v6077_v53 = vpop.permute.xlu2 %6076 }
 0xc18   :  { %v6103_v5 = vpop.permute.xlu0 %6102 }
 0xc19   :  { %v6106_v21 = vmul.f32 %v12358_v36, %v6103_v5 }
 0xc27   :  { %v6105_v9 = vpop.permute.xlu2 %6104 }
 0xc28   :  { %v6107_v50 = vmul.f32 %v12358_v36, %v6105_v9  ;;  %v7746_v36 = vld [vmem:[%s12548_s12 + $0x4] sm:$0xf] }
 0xc2a   :  { %v6110_v42 = vpack.c.bf16 %v6107_v50, %v6106_v21 }
 0xc2c   :  { %6121 = vmatpush.bf16.msra.mxu2 %v6110_v42 }
 0xc2f   :  { %7752 = vmatmul.msk.bf16.vlgmr.msra.gmra.mxu2 %vm6043_vm4, %v7751_v18  ;;  %v6227_v28 = vpop.permute.xlu2 %6226 }
 0xc30   :  { %v6230_v46 = vmul.f32 %v12344_v38, %v6227_v28 }
 0xc37   :  { %v6203_v62 = vpop.permute.xlu2 %6202 }
 0xc38   :  { %v6205_v63 = vmul.f32 %v12423_v33, %v6203_v62 }
 0xc3e   :  { %v6029_v49 = vpop.permute.xlu0 %6028  ;;  %v6037_v58 = vpop.permute.xlu1 %6036 }
 0xc3f   :  { %v6039_v47 = vmul.f32 %v12350_v45, %v6037_v58  ;;  %v6031_v22 = vmul.f32 %v12355_v52, %v6029_v49  ;;  %v6177_v6 = vpop.permute.xlu2 %6176 }
 0xc40   :  { %v6179_v35 = vmul.f32 %v12407_v60, %v6177_v6 }
 0xc41   :  { %v6042_v30 = vpack.c.bf16 %v6039_v47, %v6038_v0 }
 0xc43   :  { %6054 = vmatpush.bf16.msra.mxu3 %v6042_v30 }
 0xc46   :  { %v6201_v40 = vpop.permute.xlu0 %6200  ;;  %7747 = vmatmul.msk.bf16.vlgmr.msra.gmra.mxu3 %vm6043_vm4, %v7746_v36  ;;  %v6027_v20 = vpop.permute.xlu1 %6026 }
 0xc47   :  { %6141 = vmatpush.bf16.msrb.mxu3 %v6130_v13  ;;  %v6204_v1 = vmul.f32 %v12423_v33, %v6201_v40  ;;  %v6030_v45 = vmul.f32 %v12355_v52, %v6027_v20  ;;  %v6080_v52 = vmul.f32 %v12309_v54, %v6077_v53 }
 0xc49   :  { %v6208_v3 = vpack.c.bf16 %v6205_v63, %v6204_v1  ;;  %v6033_v2 = vpack.c.bf16 %v6031_v22, %v6030_v45 }
 0xc4b   :  { %6070 = vmatpush.bf16.msra.mxu0 %v6033_v2  ;;  %6219 = vmatpush.bf16.msrb.mxu2 %v6208_v3 }
 0xc4e   :  { %v6151_v39 = vpop.permute.xlu0 %6150  ;;  %v6079_v55 = vpop.permute.xlu1 %6078  ;;  %7748 = vmatmul.msk.bf16.vlgmr.msra.gmra.mxu0 %vm6043_vm4, %v6032_v12  ;;  %7760 = vmatmul.msk.bf16.vlgmr.msrb.gmra.mxu2 %vm6043_vm4, %v7759_v23 }
 0xc4f   :  { %v6081_v33 = vmul.f32 %v12309_v54, %v6079_v55  ;;  %v6153_v54 = vmul.f32 %v12386_v4, %v6151_v39 }
 0xc51   :  { %v6084_v24 = vpack.c.bf16 %v6081_v33, %v6080_v52 }
 0xc53   :  { %6095 = vmatpush.bf16.msrb.mxu1 %v6084_v24 }
 0xc56   :  { %v6175_v43 = vpop.permute.xlu0 %6174  ;;  %7754 = vmatmul.msk.bf16.vlgmr.msrb.gmra.mxu3 %vm6043_vm4, %v7753_v11  ;;  %v6149_v8 = vpop.permute.xlu1 %6148  ;;  %7750 = vmatmul.msk.bf16.vlgmr.msrb.gmra.mxu1 %vm6043_vm4, %v7749_v32 }
 0xc57   :  { %v6178_v14 = vmul.f32 %v12407_v60, %v6175_v43  ;;  %v6152_v34 = vmul.f32 %v12386_v4, %v6149_v8  ;;  %v7761_v4 = vld [vmem:[%s12548_s12 + $0x20] sm:$0xf]  ;;  %v7757_v60 = vld [vmem:[%s12548_s12 + $0x18] sm:$0xf] }
 0xc59   :  { %v6182_v27 = vpack.c.bf16 %v6179_v35, %v6178_v14  ;;  %v6156_v17 = vpack.c.bf16 %v6153_v54, %v6152_v34 }
 0xc5b   :  { %6167 = vmatpush.bf16.msrb.mxu0 %v6156_v17  ;;  %6193 = vmatpush.bf16.msra.mxu1 %v6182_v27 }
 0xc5e   :  { %v6229_v41 = vpop.permute.xlu1 %6228  ;;  %7756 = vmatmul.msk.bf16.vlgmr.msrb.gmra.mxu0 %vm6043_vm4, %v7755_v57 }
 0xc5f   :  { %v6231_v16 = vmul.f32 %v12344_v38, %v6229_v41 }
 0xc61   :  { %v6234_v7 = vpack.c.bf16 %v6231_v16, %v6230_v46 }
 0xc63   :  { %6245 = vmatpush.bf16.msra.mxu3 %v6234_v7 }
 0xc66   :  { %7762 = vmatmul.msk.bf16.vlgmr.msra.gmra.mxu3 %vm6043_vm4, %v7761_v4  ;;  %7758 = vmatmul.msk.bf16.vlgmr.msra.gmra.mxu1 %vm6043_vm4, %v7757_v60  ;;  %v6256_v49 = vpop.permute.xlu1 %6255 }
 0xcb2   :  { %v6123_v61 = vpop.f32.mrf.mxu2 }
 0xcba   :  { %v6125_v37 = vpop.f32.mrf.mxu2 }
 0xcc9   :  { %v6056_v56 = vpop.f32.mrf.mxu3 }
 0xccb   :  { %v6072_v51 = vpop.f32.mrf.mxu0 }
 0xccc   :  { %v6073_v19 = vadd.f32 %v6072_v51, %v6056_v56 }
 0xcd1   :  { %v6058_v29 = vpop.f32.mrf.mxu3  ;;  %v6221_v38 = vpop.f32.mrf.mxu2 }
 0xcd3   :  { %v6097_v10 = vpop.f32.mrf.mxu1  ;;  %v6074_v31 = vpop.f32.mrf.mxu0 }
 0xcd4   :  { %v6101_v25 = vadd.f32 %v6097_v10, %v6073_v19 }
 0xcd6   :  { %v6127_v15 = vadd.f32 %v6123_v61, %v6101_v25 }
 0xcd9   :  { %v6143_v48 = vpop.f32.mrf.mxu3  ;;  %v6223_v26 = vpop.f32.mrf.mxu2 }
 0xcda   :  { %v6147_v59 = vadd.f32 %v6143_v48, %v6127_v15 }
 0xcdb   :  { %v6099_v44 = vpop.f32.mrf.mxu1  ;;  %v6169_v13 = vpop.f32.mrf.mxu0 }
 0xcdc   :  { %v6173_v5 = vadd.f32 %v6169_v13, %v6147_v59 }
 0xce1   :  { %v6145_v53 = vpop.f32.mrf.mxu3 }
 0xce3   :  { %v6195_v9 = vpop.f32.mrf.mxu1  ;;  %v6171_v21 = vpop.f32.mrf.mxu0 }
 0xce4   :  { %v6199_v50 = vadd.f32 %v6195_v9, %v6173_v5 }
 0xce6   :  { %v6225_v42 = vadd.f32 %v6221_v38, %v6199_v50 }
 0xce9   :  { %v6247_v18 = vpop.f32.mrf.mxu3 }
 0xcea   :  { %v6251_v28 = vadd.f32 %v6247_v18, %v6225_v42 }
 0xceb   :  { %v6197_v58 = vpop.f32.mrf.mxu1 }
 0xcec   :  { %v6258_v0 = vadd.f32 %v6256_v49, %v6251_v28 }
 0xcee   :  { %v6259_v47 = vsub.f32 0.0, %v6258_v0 }
 0xcf0   :  { %v6260_v30 = vmul.f32 1.442695, %v6259_v47 }
 0xcf1   :  { %v6249_v36 = vpop.f32.mrf.mxu3 }
 0xcf2   :  { %8491 = vpow2.f32 %v6260_v30 }
 0xcf8   :  { %v8492_v62 = vpop.eup %8491 }
 0xcf9   :  { %v6262_v40 = vadd.f32 1.0, %v8492_v62 }
 0xcfb   :  { %8493 = vrcp.f32 %v6262_v40 }
 0xd01   :  { %v8494_v20 = vpop.eup %8493 }
 0xd02   :  { %v6264_v63 = vmax.f32 %v8494_v20, 0.0 }
 0xd04   :  { %v6265_v22 = vmin.f32 %v6264_v63, 1.0 }
 0xd06   :  { %6266 = vst [vmem:[%s12549_s14] sm:$0xff] %v6265_v22 }

</bundles_post_ra>
